<compile_context>
chip_gen: v7x
topology: tpu7x:2x2x1
jax: 0.10.0
libtpu: 0.0.40
codegen_flags: <defaults>
</compile_context>

<pallas_src>
import functools

import jax
import jax.numpy as jnp
from jax import lax
from jax.experimental import pallas as pl
from jax.experimental.pallas import tpu as pltpu

EPS = 1e-5
LANE = 128


def _round_up(x, m):
    return (x + m - 1) // m * m


# ----------------------------- Pallas kernels ------------------------------

def _conv3x3_stats_kernel(x_ref, w_ref, sc_ref, sh_ref, mask_ref,
                          y_ref, sum_ref, sumsq_ref,
                          pad_ref, slab_ref,
                          *, H, W, apply_input_bn_relu):
    """3x3 conv (stride 1, pad 1) on one image tile + per-image channel statistics.

    Wide layout: Wp = W + 2 columns per row (zero halo columns included), rows
    flattened to H*Wp.  Wide column c in [1, W] holds real pixels; c in {0, Wp-1}
    is halo/junk and is forced to zero on output.

    x_ref    : (1, H*Wp, Cp)    bf16  input tile (halo columns already zero)
    w_ref    : (9*Cp, Coutp)    bf16  weights, tap-major (ky, kx)
    sc_ref   : (1, Cp)          f32   input-side BN scale (used iff apply_input_bn_relu)
    sh_ref   : (1, Cp)          f32   input-side BN shift
    mask_ref : (H*Wp, 1)        f32   1.0 on real columns, 0.0 on halo columns
    y_ref    : (1, H*Wp, Coutp) bf16  raw conv output (halo columns zero)
    sum_ref  : (1, 1, Coutp)    f32   per-image sum over real pixels
    sumsq_ref: (1, 1, Coutp)    f32   per-image sum of squares over real pixels
    pad_ref  : (S + H*Wp + 2*Wp, Cp)  bf16 VMEM flat zero-guarded pad buffer
    slab_ref : (H*Wp, 9*Cp)     bf16  VMEM im2col slab
    """
    Wp = W + 2
    HWp = H * Wp
    cp = x_ref.shape[-1]
    coutp = w_ref.shape[-1]
    S = _round_up(Wp + 1, 16)            # interior start (bf16 vreg-aligned)
    total = S + HWp + 2 * Wp

    mask = mask_ref[...]                                       # (HWp, 1) f32

    x = x_ref[...].reshape(HWp, cp)                            # bf16
    if apply_input_bn_relu:
        xf = jnp.maximum(x.astype(jnp.float32) * sc_ref[...] + sh_ref[...], 0.0)
        x = (xf * mask).astype(jnp.bfloat16)   # halo columns must stay exactly zero

    # Zero only guard/halo rows (interior is fully overwritten every step).
    pad_ref[0:S, :] = jnp.zeros((S, cp), jnp.bfloat16)
    pad_ref[S + HWp:total, :] = jnp.zeros((2 * Wp, cp), jnp.bfloat16)
    pad_ref[S:S + HWp, :] = x

    # im2col in VMEM: each tap is one contiguous HWp-row window of the pad buffer.
    for k in range(9):
        dy, dx = k // 3, k % 3
        start = S + (dy - 1) * Wp + (dx - 1)
        slab_ref[:, k * cp:(k + 1) * cp] = pad_ref[start:start + HWp, :]

    # Single deep-K MXU contraction; accumulation stays inside the MXU (f32).
    acc = jnp.dot(slab_ref[...], w_ref[...], preferred_element_type=jnp.float32)
    acc = acc * mask                       # zero halo / wrap-around columns

    y_ref[...] = acc.reshape(1, HWp, coutp).astype(y_ref.dtype)
    sum_ref[...] = jnp.sum(acc, axis=0, keepdims=True).reshape(1, 1, coutp)
    sumsq_ref[...] = jnp.sum(acc * acc, axis=0, keepdims=True).reshape(1, 1, coutp)


def _bn_add_relu_kernel(y_ref, sc_ref, sh_ref, res_ref, o_ref):
    """out = relu(y * scale + shift + identity) on a (TM, Cp) row tile."""
    y = y_ref[...].astype(jnp.float32) * sc_ref[...] + sh_ref[...]
    o_ref[...] = jnp.maximum(y + res_ref[...].astype(jnp.float32), 0.0)


# ---------------------------- pallas_call wrappers --------------------------

def _conv3x3_with_stats(x_tiles, w, in_scale, in_shift, mask, *,
                        H, W, apply_input_bn_relu):
    N, HWp, Cp = x_tiles.shape
    K9, Coutp = w.shape
    Wp = W + 2
    S = _round_up(Wp + 1, 16)
    kernel = functools.partial(_conv3x3_stats_kernel, H=H, W=W,
                               apply_input_bn_relu=apply_input_bn_relu)
    y, s, ss = pl.pallas_call(
        kernel,
        grid=(N,),
        in_specs=[
            pl.BlockSpec((1, HWp, Cp), lambda n: (n, 0, 0)),
            pl.BlockSpec((K9, Coutp), lambda n: (0, 0)),
            pl.BlockSpec((1, Cp), lambda n: (0, 0)),
            pl.BlockSpec((1, Cp), lambda n: (0, 0)),
            pl.BlockSpec((HWp, 1), lambda n: (0, 0)),
        ],
        out_specs=[
            pl.BlockSpec((1, HWp, Coutp), lambda n: (n, 0, 0)),
            pl.BlockSpec((1, 1, Coutp), lambda n: (n, 0, 0)),
            pl.BlockSpec((1, 1, Coutp), lambda n: (n, 0, 0)),
        ],
        out_shape=[
            jax.ShapeDtypeStruct((N, HWp, Coutp), jnp.bfloat16),
            jax.ShapeDtypeStruct((N, 1, Coutp), jnp.float32),
            jax.ShapeDtypeStruct((N, 1, Coutp), jnp.float32),
        ],
        scratch_shapes=[
            pltpu.VMEM((S + HWp + 2 * Wp, Cp), jnp.bfloat16),   # flat pad buffer
            pltpu.VMEM((HWp, 9 * Cp), jnp.bfloat16),            # im2col slab
        ],
        # Per-image partial stats -> no cross-step state -> fully parallel grid.
        compiler_params=pltpu.CompilerParams(
            dimension_semantics=("parallel",)),
    )(x_tiles, w, in_scale, in_shift, mask)
    return y, s, ss


def _bn_add_relu(y, scale, shift, identity, *, tm=1024):
    P, Cp = y.shape
    tm = min(tm, _round_up(P, 8))
    return pl.pallas_call(
        _bn_add_relu_kernel,
        grid=(pl.cdiv(P, tm),),
        in_specs=[
            pl.BlockSpec((tm, Cp), lambda i: (i, 0)),
            pl.BlockSpec((1, Cp), lambda i: (0, 0)),
            pl.BlockSpec((1, Cp), lambda i: (0, 0)),
            pl.BlockSpec((tm, Cp), lambda i: (i, 0)),
        ],
        out_specs=pl.BlockSpec((tm, Cp), lambda i: (i, 0)),
        out_shape=jax.ShapeDtypeStruct((P, Cp), jnp.float32),
        compiler_params=pltpu.CompilerParams(
            dimension_semantics=("parallel",)),
    )(y, scale, shift, identity)


# -------------------------------- JAX glue ---------------------------------

def _bn_scale_shift(s, ss, gamma, beta, count):
    """Fold batch sums into a per-channel affine: y*scale + shift == BN(y)."""
    mean = s / count
    var = jnp.maximum(ss / count - mean * mean, 0.0)   # biased (training) variance
    scale = gamma * lax.rsqrt(var + EPS)
    shift = beta - mean * scale
    return scale, shift


def _weight_to_taps(w_oihw, cin_p, cout_p):
    """PyTorch conv weight (Cout, Cin, 3, 3) -> (9*Cin_p, Cout_p) bf16, zero-padded."""
    cout, cin, _, _ = w_oihw.shape
    w = jnp.transpose(w_oihw.astype(jnp.float32), (2, 3, 1, 0)).reshape(9, cin, cout)
    w = jnp.pad(w, ((0, 0), (0, cin_p - cin), (0, cout_p - cout)))
    return w.reshape(9 * cin_p, cout_p).astype(jnp.bfloat16)


def _pad_channel_vec(v, cp):
    return jnp.pad(v.astype(jnp.float32), (0, cp - v.shape[0])).reshape(1, cp)


def resblock_forward(x_nchw, params):
    """Exact forward of ResBlock(inplanes=planes, stride=1, downsample=None)."""
    w1, g1, b1, w2, g2, b2 = params
    N, C, H, W = x_nchw.shape
    assert w1.shape[0] == C, "downsample=None requires inplanes == planes"
    Cp = _round_up(C, LANE)            # lane-dense channels; padding stays exactly zero
    Wp = W + 2
    HWp = H * Wp
    P = N * H * W                      # real pixel count (BatchNorm denominator)

    # One-time layout pass: NCHW -> NHWC, zero column halo, lane-pad channels, bf16.
    x_nhwc = jnp.transpose(x_nchw, (0, 2, 3, 1))
    x_wide = jnp.pad(x_nhwc, ((0, 0), (0, 0), (1, 1), (0, Cp - C)))
    x_wide = x_wide.astype(jnp.bfloat16).reshape(N, HWp, Cp)

    w1t = _weight_to_taps(w1, Cp, Cp)
    w2t = _weight_to_taps(w2, Cp, Cp)
    g1p, b1p = _pad_channel_vec(g1, Cp), _pad_channel_vec(b1, Cp)
    g2p, b2p = _pad_channel_vec(g2, Cp), _pad_channel_vec(b2, Cp)
    ones = jnp.ones((1, Cp), jnp.float32)
    zeros = jnp.zeros((1, Cp), jnp.float32)

    # 1.0 on real wide-columns (c in [1, W]), 0.0 on halo columns.
    col = jnp.tile(jnp.arange(Wp), H)
    mask = ((col >= 1) & (col <= W)).astype(jnp.float32).reshape(HWp, 1)

    # conv1 (raw bf16 output, halo columns zero) + per-image batch statistics.
    y1, s1, ss1 = _conv3x3_with_stats(x_wide, w1t, ones, zeros, mask,
                                      H=H, W=W, apply_input_bn_relu=False)
    scale1, shift1 = _bn_scale_shift(jnp.sum(s1, axis=0), jnp.sum(ss1, axis=0),
                                     g1p, b1p, float(P))

    # bn1 + relu fused into conv2's input prologue; conv2 (raw bf16) + batch stats.
    y2, s2, ss2 = _conv3x3_with_stats(y1, w2t, scale1, shift1, mask,
                                      H=H, W=W, apply_input_bn_relu=True)
    scale2, shift2 = _bn_scale_shift(jnp.sum(s2, axis=0), jnp.sum(ss2, axis=0),
                                     g2p, b2p, float(P))

    # bn2 + residual + relu on lane-dense rows; halo rows are junk and sliced off.
    out = _bn_add_relu(y2.reshape(N * HWp, Cp), scale2, shift2,
                       x_wide.reshape(N * HWp, Cp))
    out = out.reshape(N, H, Wp, Cp)[:, :, 1:W + 1, :C]
    return jnp.transpose(out, (0, 3, 1, 2))


# --------------------------- pure-JAX reference ----------------------------

def _reference(x, params):
    w1, g1, b1, w2, g2, b2 = params

    def conv(v, w):
        return lax.conv_general_dilated(
            v, w, (1, 1), ((1, 1), (1, 1)),
            dimension_numbers=("NCHW", "OIHW", "NCHW"))

    def bn(y, g, b):
        m = jnp.mean(y, axis=(0, 2, 3), keepdims=True)
        v = jnp.mean((y - m) ** 2, axis=(0, 2, 3), keepdims=True)
        return ((y - m) * lax.rsqrt(v + EPS) * g.reshape(1, -1, 1, 1)
                + b.reshape(1, -1, 1, 1))

    out = jnp.maximum(bn(conv(x, w1), g1, b1), 0.0)
    out = bn(conv(out, w2), g2, b2)
    return jnp.maximum(out + x, 0.0)


# ----------------------------------- main -----------------------------------

if __name__ == "__main__":
    N, C, H, W = 2, 4, 16, 16
    key = jax.random.PRNGKey(0)
    kx, k1, k2, kg1, kb1, kg2, kb2 = jax.random.split(key, 7)

    x = jax.random.normal(kx, (N, C, H, W), jnp.float32)
    # Deterministic synthetic parameters (shapes from ResBlock.__init__).
    w1 = 0.2 * jax.random.normal(k1, (C, C, 3, 3), jnp.float32)   # conv1.weight
    w2 = 0.2 * jax.random.normal(k2, (C, C, 3, 3), jnp.float32)   # conv2.weight
    g1 = 1.0 + 0.1 * jax.random.normal(kg1, (C,), jnp.float32)    # bn1.weight
    b1 = 0.1 * jax.random.normal(kb1, (C,), jnp.float32)          # bn1.bias
    g2 = 1.0 + 0.1 * jax.random.normal(kg2, (C,), jnp.float32)    # bn2.weight
    b2 = 0.1 * jax.random.normal(kb2, (C,), jnp.float32)          # bn2.bias
    params = (w1, g1, b1, w2, g2, b2)

    forward = jax.jit(resblock_forward)
    out = jax.block_until_ready(forward(x, params))
    ref = jax.block_until_ready(_reference(x, params))

    assert out.shape == (N, C, H, W)
    max_err = float(jnp.max(jnp.abs(out - ref)))
    # bf16 MXU operands / bf16 conv outputs vs an all-f32 reference.
    assert max_err < 5e-2, f"mismatch vs reference: {max_err}"
    print("KERNEL_OK")
</pallas_src>

<mosaic_0001>
module attributes {stable_mosaic.version = 11 : i64} {
  func.func @_conv3x3_stats_kernel(%arg0: i32, %arg1: memref<1x288x128xbf16, #tpu.memory_space<vmem>>, %arg2: memref<1152x128xbf16, #tpu.memory_space<vmem>>, %arg3: memref<1x128xf32, #tpu.memory_space<vmem>>, %arg4: memref<1x128xf32, #tpu.memory_space<vmem>>, %arg5: memref<288x1xf32, #tpu.memory_space<vmem>>, %arg6: memref<1x288x128xbf16, #tpu.memory_space<vmem>>, %arg7: memref<1x1x128xf32, #tpu.memory_space<vmem>>, %arg8: memref<1x1x128xf32, #tpu.memory_space<vmem>>, %arg9: memref<356x128xbf16, #tpu.memory_space<vmem>>, %arg10: memref<288x1152xbf16, #tpu.memory_space<vmem>>) attributes {dimension_semantics = [#tpu.dimension_semantics<parallel>], iteration_bounds = array<i64: 2>, scalar_prefetch = 0 : i64, scratch_operands = 2 : i64, tpu.core_type = #tpu.core_type<tc>, window_params = [{transform_indices = @transform_0, window_bounds = array<i64: 1, 288, 128>}, {pipeline_mode = #tpu.pipeline_mode<synchronous>, transform_indices = @transform_1, window_bounds = array<i64: 1152, 128>}, {pipeline_mode = #tpu.pipeline_mode<synchronous>, transform_indices = @transform_2, window_bounds = array<i64: 1, 128>}, {pipeline_mode = #tpu.pipeline_mode<synchronous>, transform_indices = @transform_3, window_bounds = array<i64: 1, 128>}, {pipeline_mode = #tpu.pipeline_mode<synchronous>, transform_indices = @transform_4, window_bounds = array<i64: 288, 1>}, {transform_indices = @transform_5, window_bounds = array<i64: 1, 288, 128>}, {transform_indices = @transform_6, window_bounds = array<i64: 1, 1, 128>}, {transform_indices = @transform_7, window_bounds = array<i64: 1, 1, 128>}]} {
    %c0 = arith.constant 0 : index
    %c0_0 = arith.constant 0 : index
    %0 = vector.load %arg5[%c0, %c0_0] : memref<288x1xf32, #tpu.memory_space<vmem>>, vector<288x1xf32>
    %c0_1 = arith.constant 0 : index
    %c0_2 = arith.constant 0 : index
    %c0_3 = arith.constant 0 : index
    %1 = vector.load %arg1[%c0_1, %c0_2, %c0_3] : memref<1x288x128xbf16, #tpu.memory_space<vmem>>, vector<1x288x128xbf16>
    %2 = vector.shape_cast %1 : vector<1x288x128xbf16> to vector<288x128xbf16>
    %cst = arith.constant 0.000000e+00 : bf16
    %3 = vector.broadcast %cst : bf16 to vector<32x128xbf16>
    %c0_4 = arith.constant 0 : index
    %c0_5 = arith.constant 0 : index
    %4 = vector.load %arg9[%c0_4, %c0_5] : memref<356x128xbf16, #tpu.memory_space<vmem>>, vector<32x128xbf16>
    tpu.vector_store %arg9[%c0_4, %c0_5], %3 {strides = array<i32>} : memref<356x128xbf16, #tpu.memory_space<vmem>>, vector<32x128xbf16>,
    %cst_6 = arith.constant 0.000000e+00 : bf16
    %5 = vector.broadcast %cst_6 : bf16 to vector<36x128xbf16>
    %c320 = arith.constant 320 : index
    %c0_7 = arith.constant 0 : index
    %6 = vector.load %arg9[%c320, %c0_7] : memref<356x128xbf16, #tpu.memory_space<vmem>>, vector<36x128xbf16>
    tpu.vector_store %arg9[%c320, %c0_7], %5 {strides = array<i32>} : memref<356x128xbf16, #tpu.memory_space<vmem>>, vector<36x128xbf16>,
    %c32 = arith.constant 32 : index
    %c0_8 = arith.constant 0 : index
    %7 = vector.load %arg9[%c32, %c0_8] : memref<356x128xbf16, #tpu.memory_space<vmem>>, vector<288x128xbf16>
    tpu.vector_store %arg9[%c32, %c0_8], %2 {strides = array<i32>} : memref<356x128xbf16, #tpu.memory_space<vmem>>, vector<288x128xbf16>,
    %c13 = arith.constant 13 : index
    %c0_9 = arith.constant 0 : index
    %8 = vector.load %arg9[%c13, %c0_9] : memref<356x128xbf16, #tpu.memory_space<vmem>>, vector<288x128xbf16>
    %c0_10 = arith.constant 0 : index
    %c0_11 = arith.constant 0 : index
    %9 = vector.load %arg10[%c0_10, %c0_11] : memref<288x1152xbf16, #tpu.memory_space<vmem>>, vector<288x128xbf16>
    tpu.vector_store %arg10[%c0_10, %c0_11], %8 {strides = array<i32>} : memref<288x1152xbf16, #tpu.memory_space<vmem>>, vector<288x128xbf16>,
    %c14 = arith.constant 14 : index
    %c0_12 = arith.constant 0 : index
    %10 = vector.load %arg9[%c14, %c0_12] : memref<356x128xbf16, #tpu.memory_space<vmem>>, vector<288x128xbf16>
    %c0_13 = arith.constant 0 : index
    %c128 = arith.constant 128 : index
    %11 = vector.load %arg10[%c0_13, %c128] : memref<288x1152xbf16, #tpu.memory_space<vmem>>, vector<288x128xbf16>
    tpu.vector_store %arg10[%c0_13, %c128], %10 {strides = array<i32>} : memref<288x1152xbf16, #tpu.memory_space<vmem>>, vector<288x128xbf16>,
    %c15 = arith.constant 15 : index
    %c0_14 = arith.constant 0 : index
    %12 = vector.load %arg9[%c15, %c0_14] : memref<356x128xbf16, #tpu.memory_space<vmem>>, vector<288x128xbf16>
    %c0_15 = arith.constant 0 : index
    %c256 = arith.constant 256 : index
    %13 = vector.load %arg10[%c0_15, %c256] : memref<288x1152xbf16, #tpu.memory_space<vmem>>, vector<288x128xbf16>
    tpu.vector_store %arg10[%c0_15, %c256], %12 {strides = array<i32>} : memref<288x1152xbf16, #tpu.memory_space<vmem>>, vector<288x128xbf16>,
    %c31 = arith.constant 31 : index
    %c0_16 = arith.constant 0 : index
    %14 = vector.load %arg9[%c31, %c0_16] : memref<356x128xbf16, #tpu.memory_space<vmem>>, vector<288x128xbf16>
    %c0_17 = arith.constant 0 : index
    %c384 = arith.constant 384 : index
    %15 = vector.load %arg10[%c0_17, %c384] : memref<288x1152xbf16, #tpu.memory_space<vmem>>, vector<288x128xbf16>
    tpu.vector_store %arg10[%c0_17, %c384], %14 {strides = array<i32>} : memref<288x1152xbf16, #tpu.memory_space<vmem>>, vector<288x128xbf16>,
    %c32_18 = arith.constant 32 : index
    %c0_19 = arith.constant 0 : index
    %16 = vector.load %arg9[%c32_18, %c0_19] : memref<356x128xbf16, #tpu.memory_space<vmem>>, vector<288x128xbf16>
    %c0_20 = arith.constant 0 : index
    %c512 = arith.constant 512 : index
    %17 = vector.load %arg10[%c0_20, %c512] : memref<288x1152xbf16, #tpu.memory_space<vmem>>, vector<288x128xbf16>
    tpu.vector_store %arg10[%c0_20, %c512], %16 {strides = array<i32>} : memref<288x1152xbf16, #tpu.memory_space<vmem>>, vector<288x128xbf16>,
    %c33 = arith.constant 33 : index
    %c0_21 = arith.constant 0 : index
    %18 = vector.load %arg9[%c33, %c0_21] : memref<356x128xbf16, #tpu.memory_space<vmem>>, vector<288x128xbf16>
    %c0_22 = arith.constant 0 : index
    %c640 = arith.constant 640 : index
    %19 = vector.load %arg10[%c0_22, %c640] : memref<288x1152xbf16, #tpu.memory_space<vmem>>, vector<288x128xbf16>
    tpu.vector_store %arg10[%c0_22, %c640], %18 {strides = array<i32>} : memref<288x1152xbf16, #tpu.memory_space<vmem>>, vector<288x128xbf16>,
    %c49 = arith.constant 49 : index
    %c0_23 = arith.constant 0 : index
    %20 = vector.load %arg9[%c49, %c0_23] : memref<356x128xbf16, #tpu.memory_space<vmem>>, vector<288x128xbf16>
    %c0_24 = arith.constant 0 : index
    %c768 = arith.constant 768 : index
    %21 = vector.load %arg10[%c0_24, %c768] : memref<288x1152xbf16, #tpu.memory_space<vmem>>, vector<288x128xbf16>
    tpu.vector_store %arg10[%c0_24, %c768], %20 {strides = array<i32>} : memref<288x1152xbf16, #tpu.memory_space<vmem>>, vector<288x128xbf16>,
    %c50 = arith.constant 50 : index
    %c0_25 = arith.constant 0 : index
    %22 = vector.load %arg9[%c50, %c0_25] : memref<356x128xbf16, #tpu.memory_space<vmem>>, vector<288x128xbf16>
    %c0_26 = arith.constant 0 : index
    %c896 = arith.constant 896 : index
    %23 = vector.load %arg10[%c0_26, %c896] : memref<288x1152xbf16, #tpu.memory_space<vmem>>, vector<288x128xbf16>
    tpu.vector_store %arg10[%c0_26, %c896], %22 {strides = array<i32>} : memref<288x1152xbf16, #tpu.memory_space<vmem>>, vector<288x128xbf16>,
    %c51 = arith.constant 51 : index
    %c0_27 = arith.constant 0 : index
    %24 = vector.load %arg9[%c51, %c0_27] : memref<356x128xbf16, #tpu.memory_space<vmem>>, vector<288x128xbf16>
    %c0_28 = arith.constant 0 : index
    %c1024 = arith.constant 1024 : index
    %25 = vector.load %arg10[%c0_28, %c1024] : memref<288x1152xbf16, #tpu.memory_space<vmem>>, vector<288x128xbf16>
    tpu.vector_store %arg10[%c0_28, %c1024], %24 {strides = array<i32>} : memref<288x1152xbf16, #tpu.memory_space<vmem>>, vector<288x128xbf16>,
    %c0_29 = arith.constant 0 : index
    %c0_30 = arith.constant 0 : index
    %26 = vector.load %arg10[%c0_29, %c0_30] : memref<288x1152xbf16, #tpu.memory_space<vmem>>, vector<288x1152xbf16>
    %c0_31 = arith.constant 0 : index
    %c0_32 = arith.constant 0 : index
    %27 = vector.load %arg2[%c0_31, %c0_32] : memref<1152x128xbf16, #tpu.memory_space<vmem>>, vector<1152x128xbf16>
    %cst_33 = arith.constant dense<0.000000e+00> : vector<288x128xf32>
    %28 = tpu.matmul %26, %27, %cst_33 {dimension_numbers = #tpu.dot_dimension_numbers<[1], [0], [0], [1], [0, 0, 1, 1], [], []>} : vector<288x1152xbf16>, vector<1152x128xbf16>, vector<288x128xf32> -> vector<288x128xf32>
    %29 = vector.broadcast %0 : vector<288x1xf32> to vector<288x128xf32>
    %30 = arith.mulf %28, %29 : vector<288x128xf32>
    %31 = vector.shape_cast %30 : vector<288x128xf32> to vector<1x288x128xf32>
    %32 = arith.truncf %31 : vector<1x288x128xf32> to vector<1x288x128xbf16>
    %c0_34 = arith.constant 0 : index
    %c0_35 = arith.constant 0 : index
    %c0_36 = arith.constant 0 : index
    %33 = vector.load %arg6[%c0_34, %c0_35, %c0_36] : memref<1x288x128xbf16, #tpu.memory_space<vmem>>, vector<1x288x128xbf16>
    tpu.vector_store %arg6[%c0_34, %c0_35, %c0_36], %32 {strides = array<i32>} : memref<1x288x128xbf16, #tpu.memory_space<vmem>>, vector<1x288x128xbf16>,
    %cst_37 = arith.constant dense<0.000000e+00> : vector<128xf32>
    %34 = vector.multi_reduction <add>, %30, %cst_37 [0] : vector<288x128xf32> to vector<128xf32>
    %35 = vector.shape_cast %34 : vector<128xf32> to vector<1x128xf32>
    %36 = vector.shape_cast %35 : vector<1x128xf32> to vector<1x1x128xf32>
    %c0_38 = arith.constant 0 : index
    %c0_39 = arith.constant 0 : index
    %c0_40 = arith.constant 0 : index
    %37 = vector.load %arg7[%c0_38, %c0_39, %c0_40] : memref<1x1x128xf32, #tpu.memory_space<vmem>>, vector<1x1x128xf32>
    tpu.vector_store %arg7[%c0_38, %c0_39, %c0_40], %36 {strides = array<i32>} : memref<1x1x128xf32, #tpu.memory_space<vmem>>, vector<1x1x128xf32>,
    %38 = arith.mulf %30, %30 : vector<288x128xf32>
    %cst_41 = arith.constant dense<0.000000e+00> : vector<128xf32>
    %39 = vector.multi_reduction <add>, %38, %cst_41 [0] : vector<288x128xf32> to vector<128xf32>
    %40 = vector.shape_cast %39 : vector<128xf32> to vector<1x128xf32>
    %41 = vector.shape_cast %40 : vector<1x128xf32> to vector<1x1x128xf32>
    %c0_42 = arith.constant 0 : index
    %c0_43 = arith.constant 0 : index
    %c0_44 = arith.constant 0 : index
    %42 = vector.load %arg8[%c0_42, %c0_43, %c0_44] : memref<1x1x128xf32, #tpu.memory_space<vmem>>, vector<1x1x128xf32>
    tpu.vector_store %arg8[%c0_42, %c0_43, %c0_44], %41 {strides = array<i32>} : memref<1x1x128xf32, #tpu.memory_space<vmem>>, vector<1x1x128xf32>,
    return
  }
  func.func @transform_0(%arg0: i32) -> (i32, i32, i32) {
    %c0_i32 = arith.constant 0 : i32
    %c0_i32_0 = arith.constant 0 : i32
    %c0_i32_1 = arith.constant 0 : i32
    return %arg0, %c0_i32, %c0_i32_0 : i32, i32, i32
  }
  func.func @transform_1(%arg0: i32) -> (i32, i32) {
    %c0_i32 = arith.constant 0 : i32
    %c0_i32_0 = arith.constant 0 : i32
    %c0_i32_1 = arith.constant 0 : i32
    return %c0_i32, %c0_i32_0 : i32, i32
  }
  func.func @transform_2(%arg0: i32) -> (i32, i32) {
    %c0_i32 = arith.constant 0 : i32
    %c0_i32_0 = arith.constant 0 : i32
    %c0_i32_1 = arith.constant 0 : i32
    return %c0_i32, %c0_i32_0 : i32, i32
  }
  func.func @transform_3(%arg0: i32) -> (i32, i32) {
    %c0_i32 = arith.constant 0 : i32
    %c0_i32_0 = arith.constant 0 : i32
    %c0_i32_1 = arith.constant 0 : i32
    return %c0_i32, %c0_i32_0 : i32, i32
  }
  func.func @transform_4(%arg0: i32) -> (i32, i32) {
    %c0_i32 = arith.constant 0 : i32
    %c0_i32_0 = arith.constant 0 : i32
    %c0_i32_1 = arith.constant 0 : i32
    return %c0_i32, %c0_i32_0 : i32, i32
  }
  func.func @transform_5(%arg0: i32) -> (i32, i32, i32) {
    %c0_i32 = arith.constant 0 : i32
    %c0_i32_0 = arith.constant 0 : i32
    %c0_i32_1 = arith.constant 0 : i32
    return %arg0, %c0_i32, %c0_i32_0 : i32, i32, i32
  }
  func.func @transform_6(%arg0: i32) -> (i32, i32, i32) {
    %c0_i32 = arith.constant 0 : i32
    %c0_i32_0 = arith.constant 0 : i32
    %c0_i32_1 = arith.constant 0 : i32
    return %arg0, %c0_i32, %c0_i32_0 : i32, i32, i32
  }
  func.func @transform_7(%arg0: i32) -> (i32, i32, i32) {
    %c0_i32 = arith.constant 0 : i32
    %c0_i32_0 = arith.constant 0 : i32
    %c0_i32_1 = arith.constant 0 : i32
    return %arg0, %c0_i32, %c0_i32_0 : i32, i32, i32
  }
}

module attributes {stable_mosaic.version = 11 : i64} {
  func.func @_conv3x3_stats_kernel(%arg0: i32, %arg1: memref<1x288x128xbf16, #tpu.memory_space<vmem>>, %arg2: memref<1152x128xbf16, #tpu.memory_space<vmem>>, %arg3: memref<1x128xf32, #tpu.memory_space<vmem>>, %arg4: memref<1x128xf32, #tpu.memory_space<vmem>>, %arg5: memref<288x1xf32, #tpu.memory_space<vmem>>, %arg6: memref<1x288x128xbf16, #tpu.memory_space<vmem>>, %arg7: memref<1x1x128xf32, #tpu.memory_space<vmem>>, %arg8: memref<1x1x128xf32, #tpu.memory_space<vmem>>, %arg9: memref<356x128xbf16, #tpu.memory_space<vmem>>, %arg10: memref<288x1152xbf16, #tpu.memory_space<vmem>>) attributes {dimension_semantics = [#tpu.dimension_semantics<parallel>], iteration_bounds = array<i64: 2>, scalar_prefetch = 0 : i64, scratch_operands = 2 : i64, tpu.core_type = #tpu.core_type<tc>, window_params = [{transform_indices = @transform_0, window_bounds = array<i64: 1, 288, 128>}, {pipeline_mode = #tpu.pipeline_mode<synchronous>, transform_indices = @transform_1, window_bounds = array<i64: 1152, 128>}, {pipeline_mode = #tpu.pipeline_mode<synchronous>, transform_indices = @transform_2, window_bounds = array<i64: 1, 128>}, {pipeline_mode = #tpu.pipeline_mode<synchronous>, transform_indices = @transform_3, window_bounds = array<i64: 1, 128>}, {pipeline_mode = #tpu.pipeline_mode<synchronous>, transform_indices = @transform_4, window_bounds = array<i64: 288, 1>}, {transform_indices = @transform_5, window_bounds = array<i64: 1, 288, 128>}, {transform_indices = @transform_6, window_bounds = array<i64: 1, 1, 128>}, {transform_indices = @transform_7, window_bounds = array<i64: 1, 1, 128>}]} {
    %c0 = arith.constant 0 : index
    %c0_0 = arith.constant 0 : index
    %0 = vector.load %arg5[%c0, %c0_0] : memref<288x1xf32, #tpu.memory_space<vmem>>, vector<288x1xf32>
    %c0_1 = arith.constant 0 : index
    %c0_2 = arith.constant 0 : index
    %c0_3 = arith.constant 0 : index
    %1 = vector.load %arg1[%c0_1, %c0_2, %c0_3] : memref<1x288x128xbf16, #tpu.memory_space<vmem>>, vector<1x288x128xbf16>
    %2 = vector.shape_cast %1 : vector<1x288x128xbf16> to vector<288x128xbf16>
    %3 = arith.extf %2 : vector<288x128xbf16> to vector<288x128xf32>
    %c0_4 = arith.constant 0 : index
    %c0_5 = arith.constant 0 : index
    %4 = vector.load %arg3[%c0_4, %c0_5] : memref<1x128xf32, #tpu.memory_space<vmem>>, vector<1x128xf32>
    %5 = vector.broadcast %4 : vector<1x128xf32> to vector<288x128xf32>
    %6 = arith.mulf %3, %5 : vector<288x128xf32>
    %c0_6 = arith.constant 0 : index
    %c0_7 = arith.constant 0 : index
    %7 = vector.load %arg4[%c0_6, %c0_7] : memref<1x128xf32, #tpu.memory_space<vmem>>, vector<1x128xf32>
    %8 = vector.broadcast %7 : vector<1x128xf32> to vector<288x128xf32>
    %9 = arith.addf %6, %8 : vector<288x128xf32>
    %cst = arith.constant 0.000000e+00 : f32
    %10 = vector.broadcast %cst : f32 to vector<288x128xf32>
    %11 = arith.maximumf %9, %10 : vector<288x128xf32>
    %12 = vector.broadcast %0 : vector<288x1xf32> to vector<288x128xf32>
    %13 = arith.mulf %11, %12 : vector<288x128xf32>
    %14 = arith.truncf %13 : vector<288x128xf32> to vector<288x128xbf16>
    %cst_8 = arith.constant 0.000000e+00 : bf16
    %15 = vector.broadcast %cst_8 : bf16 to vector<32x128xbf16>
    %c0_9 = arith.constant 0 : index
    %c0_10 = arith.constant 0 : index
    %16 = vector.load %arg9[%c0_9, %c0_10] : memref<356x128xbf16, #tpu.memory_space<vmem>>, vector<32x128xbf16>
    tpu.vector_store %arg9[%c0_9, %c0_10], %15 {strides = array<i32>} : memref<356x128xbf16, #tpu.memory_space<vmem>>, vector<32x128xbf16>,
    %cst_11 = arith.constant 0.000000e+00 : bf16
    %17 = vector.broadcast %cst_11 : bf16 to vector<36x128xbf16>
    %c320 = arith.constant 320 : index
    %c0_12 = arith.constant 0 : index
    %18 = vector.load %arg9[%c320, %c0_12] : memref<356x128xbf16, #tpu.memory_space<vmem>>, vector<36x128xbf16>
    tpu.vector_store %arg9[%c320, %c0_12], %17 {strides = array<i32>} : memref<356x128xbf16, #tpu.memory_space<vmem>>, vector<36x128xbf16>,
    %c32 = arith.constant 32 : index
    %c0_13 = arith.constant 0 : index
    %19 = vector.load %arg9[%c32, %c0_13] : memref<356x128xbf16, #tpu.memory_space<vmem>>, vector<288x128xbf16>
    tpu.vector_store %arg9[%c32, %c0_13], %14 {strides = array<i32>} : memref<356x128xbf16, #tpu.memory_space<vmem>>, vector<288x128xbf16>,
    %c13 = arith.constant 13 : index
    %c0_14 = arith.constant 0 : index
    %20 = vector.load %arg9[%c13, %c0_14] : memref<356x128xbf16, #tpu.memory_space<vmem>>, vector<288x128xbf16>
    %c0_15 = arith.constant 0 : index
    %c0_16 = arith.constant 0 : index
    %21 = vector.load %arg10[%c0_15, %c0_16] : memref<288x1152xbf16, #tpu.memory_space<vmem>>, vector<288x128xbf16>
    tpu.vector_store %arg10[%c0_15, %c0_16], %20 {strides = array<i32>} : memref<288x1152xbf16, #tpu.memory_space<vmem>>, vector<288x128xbf16>,
    %c14 = arith.constant 14 : index
    %c0_17 = arith.constant 0 : index
    %22 = vector.load %arg9[%c14, %c0_17] : memref<356x128xbf16, #tpu.memory_space<vmem>>, vector<288x128xbf16>
    %c0_18 = arith.constant 0 : index
    %c128 = arith.constant 128 : index
    %23 = vector.load %arg10[%c0_18, %c128] : memref<288x1152xbf16, #tpu.memory_space<vmem>>, vector<288x128xbf16>
    tpu.vector_store %arg10[%c0_18, %c128], %22 {strides = array<i32>} : memref<288x1152xbf16, #tpu.memory_space<vmem>>, vector<288x128xbf16>,
    %c15 = arith.constant 15 : index
    %c0_19 = arith.constant 0 : index
    %24 = vector.load %arg9[%c15, %c0_19] : memref<356x128xbf16, #tpu.memory_space<vmem>>, vector<288x128xbf16>
    %c0_20 = arith.constant 0 : index
    %c256 = arith.constant 256 : index
    %25 = vector.load %arg10[%c0_20, %c256] : memref<288x1152xbf16, #tpu.memory_space<vmem>>, vector<288x128xbf16>
    tpu.vector_store %arg10[%c0_20, %c256], %24 {strides = array<i32>} : memref<288x1152xbf16, #tpu.memory_space<vmem>>, vector<288x128xbf16>,
    %c31 = arith.constant 31 : index
    %c0_21 = arith.constant 0 : index
    %26 = vector.load %arg9[%c31, %c0_21] : memref<356x128xbf16, #tpu.memory_space<vmem>>, vector<288x128xbf16>
    %c0_22 = arith.constant 0 : index
    %c384 = arith.constant 384 : index
    %27 = vector.load %arg10[%c0_22, %c384] : memref<288x1152xbf16, #tpu.memory_space<vmem>>, vector<288x128xbf16>
    tpu.vector_store %arg10[%c0_22, %c384], %26 {strides = array<i32>} : memref<288x1152xbf16, #tpu.memory_space<vmem>>, vector<288x128xbf16>,
    %c32_23 = arith.constant 32 : index
    %c0_24 = arith.constant 0 : index
    %28 = vector.load %arg9[%c32_23, %c0_24] : memref<356x128xbf16, #tpu.memory_space<vmem>>, vector<288x128xbf16>
    %c0_25 = arith.constant 0 : index
    %c512 = arith.constant 512 : index
    %29 = vector.load %arg10[%c0_25, %c512] : memref<288x1152xbf16, #tpu.memory_space<vmem>>, vector<288x128xbf16>
    tpu.vector_store %arg10[%c0_25, %c512], %28 {strides = array<i32>} : memref<288x1152xbf16, #tpu.memory_space<vmem>>, vector<288x128xbf16>,
    %c33 = arith.constant 33 : index
    %c0_26 = arith.constant 0 : index
    %30 = vector.load %arg9[%c33, %c0_26] : memref<356x128xbf16, #tpu.memory_space<vmem>>, vector<288x128xbf16>
    %c0_27 = arith.constant 0 : index
    %c640 = arith.constant 640 : index
    %31 = vector.load %arg10[%c0_27, %c640] : memref<288x1152xbf16, #tpu.memory_space<vmem>>, vector<288x128xbf16>
    tpu.vector_store %arg10[%c0_27, %c640], %30 {strides = array<i32>} : memref<288x1152xbf16, #tpu.memory_space<vmem>>, vector<288x128xbf16>,
    %c49 = arith.constant 49 : index
    %c0_28 = arith.constant 0 : index
    %32 = vector.load %arg9[%c49, %c0_28] : memref<356x128xbf16, #tpu.memory_space<vmem>>, vector<288x128xbf16>
    %c0_29 = arith.constant 0 : index
    %c768 = arith.constant 768 : index
    %33 = vector.load %arg10[%c0_29, %c768] : memref<288x1152xbf16, #tpu.memory_space<vmem>>, vector<288x128xbf16>
    tpu.vector_store %arg10[%c0_29, %c768], %32 {strides = array<i32>} : memref<288x1152xbf16, #tpu.memory_space<vmem>>, vector<288x128xbf16>,
    %c50 = arith.constant 50 : index
    %c0_30 = arith.constant 0 : index
    %34 = vector.load %arg9[%c50, %c0_30] : memref<356x128xbf16, #tpu.memory_space<vmem>>, vector<288x128xbf16>
    %c0_31 = arith.constant 0 : index
    %c896 = arith.constant 896 : index
    %35 = vector.load %arg10[%c0_31, %c896] : memref<288x1152xbf16, #tpu.memory_space<vmem>>, vector<288x128xbf16>
    tpu.vector_store %arg10[%c0_31, %c896], %34 {strides = array<i32>} : memref<288x1152xbf16, #tpu.memory_space<vmem>>, vector<288x128xbf16>,
    %c51 = arith.constant 51 : index
    %c0_32 = arith.constant 0 : index
    %36 = vector.load %arg9[%c51, %c0_32] : memref<356x128xbf16, #tpu.memory_space<vmem>>, vector<288x128xbf16>
    %c0_33 = arith.constant 0 : index
    %c1024 = arith.constant 1024 : index
    %37 = vector.load %arg10[%c0_33, %c1024] : memref<288x1152xbf16, #tpu.memory_space<vmem>>, vector<288x128xbf16>
    tpu.vector_store %arg10[%c0_33, %c1024], %36 {strides = array<i32>} : memref<288x1152xbf16, #tpu.memory_space<vmem>>, vector<288x128xbf16>,
    %c0_34 = arith.constant 0 : index
    %c0_35 = arith.constant 0 : index
    %38 = vector.load %arg10[%c0_34, %c0_35] : memref<288x1152xbf16, #tpu.memory_space<vmem>>, vector<288x1152xbf16>
    %c0_36 = arith.constant 0 : index
    %c0_37 = arith.constant 0 : index
    %39 = vector.load %arg2[%c0_36, %c0_37] : memref<1152x128xbf16, #tpu.memory_space<vmem>>, vector<1152x128xbf16>
    %cst_38 = arith.constant dense<0.000000e+00> : vector<288x128xf32>
    %40 = tpu.matmul %38, %39, %cst_38 {dimension_numbers = #tpu.dot_dimension_numbers<[1], [0], [0], [1], [0, 0, 1, 1], [], []>} : vector<288x1152xbf16>, vector<1152x128xbf16>, vector<288x128xf32> -> vector<288x128xf32>
    %41 = vector.broadcast %0 : vector<288x1xf32> to vector<288x128xf32>
    %42 = arith.mulf %40, %41 : vector<288x128xf32>
    %43 = vector.shape_cast %42 : vector<288x128xf32> to vector<1x288x128xf32>
    %44 = arith.truncf %43 : vector<1x288x128xf32> to vector<1x288x128xbf16>
    %c0_39 = arith.constant 0 : index
    %c0_40 = arith.constant 0 : index
    %c0_41 = arith.constant 0 : index
    %45 = vector.load %arg6[%c0_39, %c0_40, %c0_41] : memref<1x288x128xbf16, #tpu.memory_space<vmem>>, vector<1x288x128xbf16>
    tpu.vector_store %arg6[%c0_39, %c0_40, %c0_41], %44 {strides = array<i32>} : memref<1x288x128xbf16, #tpu.memory_space<vmem>>, vector<1x288x128xbf16>,
    %cst_42 = arith.constant dense<0.000000e+00> : vector<128xf32>
    %46 = vector.multi_reduction <add>, %42, %cst_42 [0] : vector<288x128xf32> to vector<128xf32>
    %47 = vector.shape_cast %46 : vector<128xf32> to vector<1x128xf32>
    %48 = vector.shape_cast %47 : vector<1x128xf32> to vector<1x1x128xf32>
    %c0_43 = arith.constant 0 : index
    %c0_44 = arith.constant 0 : index
    %c0_45 = arith.constant 0 : index
    %49 = vector.load %arg7[%c0_43, %c0_44, %c0_45] : memref<1x1x128xf32, #tpu.memory_space<vmem>>, vector<1x1x128xf32>
    tpu.vector_store %arg7[%c0_43, %c0_44, %c0_45], %48 {strides = array<i32>} : memref<1x1x128xf32, #tpu.memory_space<vmem>>, vector<1x1x128xf32>,
    %50 = arith.mulf %42, %42 : vector<288x128xf32>
    %cst_46 = arith.constant dense<0.000000e+00> : vector<128xf32>
    %51 = vector.multi_reduction <add>, %50, %cst_46 [0] : vector<288x128xf32> to vector<128xf32>
    %52 = vector.shape_cast %51 : vector<128xf32> to vector<1x128xf32>
    %53 = vector.shape_cast %52 : vector<1x128xf32> to vector<1x1x128xf32>
    %c0_47 = arith.constant 0 : index
    %c0_48 = arith.constant 0 : index
    %c0_49 = arith.constant 0 : index
    %54 = vector.load %arg8[%c0_47, %c0_48, %c0_49] : memref<1x1x128xf32, #tpu.memory_space<vmem>>, vector<1x1x128xf32>
    tpu.vector_store %arg8[%c0_47, %c0_48, %c0_49], %53 {strides = array<i32>} : memref<1x1x128xf32, #tpu.memory_space<vmem>>, vector<1x1x128xf32>,
    return
  }
  func.func @transform_0(%arg0: i32) -> (i32, i32, i32) {
    %c0_i32 = arith.constant 0 : i32
    %c0_i32_0 = arith.constant 0 : i32
    %c0_i32_1 = arith.constant 0 : i32
    return %arg0, %c0_i32, %c0_i32_0 : i32, i32, i32
  }
  func.func @transform_1(%arg0: i32) -> (i32, i32) {
    %c0_i32 = arith.constant 0 : i32
    %c0_i32_0 = arith.constant 0 : i32
    %c0_i32_1 = arith.constant 0 : i32
    return %c0_i32, %c0_i32_0 : i32, i32
  }
  func.func @transform_2(%arg0: i32) -> (i32, i32) {
    %c0_i32 = arith.constant 0 : i32
    %c0_i32_0 = arith.constant 0 : i32
    %c0_i32_1 = arith.constant 0 : i32
    return %c0_i32, %c0_i32_0 : i32, i32
  }
  func.func @transform_3(%arg0: i32) -> (i32, i32) {
    %c0_i32 = arith.constant 0 : i32
    %c0_i32_0 = arith.constant 0 : i32
    %c0_i32_1 = arith.constant 0 : i32
    return %c0_i32, %c0_i32_0 : i32, i32
  }
  func.func @transform_4(%arg0: i32) -> (i32, i32) {
    %c0_i32 = arith.constant 0 : i32
    %c0_i32_0 = arith.constant 0 : i32
    %c0_i32_1 = arith.constant 0 : i32
    return %c0_i32, %c0_i32_0 : i32, i32
  }
  func.func @transform_5(%arg0: i32) -> (i32, i32, i32) {
    %c0_i32 = arith.constant 0 : i32
    %c0_i32_0 = arith.constant 0 : i32
    %c0_i32_1 = arith.constant 0 : i32
    return %arg0, %c0_i32, %c0_i32_0 : i32, i32, i32
  }
  func.func @transform_6(%arg0: i32) -> (i32, i32, i32) {
    %c0_i32 = arith.constant 0 : i32
    %c0_i32_0 = arith.constant 0 : i32
    %c0_i32_1 = arith.constant 0 : i32
    return %arg0, %c0_i32, %c0_i32_0 : i32, i32, i32
  }
  func.func @transform_7(%arg0: i32) -> (i32, i32, i32) {
    %c0_i32 = arith.constant 0 : i32
    %c0_i32_0 = arith.constant 0 : i32
    %c0_i32_1 = arith.constant 0 : i32
    return %arg0, %c0_i32, %c0_i32_0 : i32, i32, i32
  }
}

module attributes {stable_mosaic.version = 11 : i64} {
  func.func @_bn_add_relu_kernel(%arg0: i32, %arg1: memref<576x128xbf16, #tpu.memory_space<vmem>>, %arg2: memref<1x128xf32, #tpu.memory_space<vmem>>, %arg3: memref<1x128xf32, #tpu.memory_space<vmem>>, %arg4: memref<576x128xbf16, #tpu.memory_space<vmem>>, %arg5: memref<576x128xf32, #tpu.memory_space<vmem>>) attributes {dimension_semantics = [#tpu.dimension_semantics<parallel>], iteration_bounds = array<i64: 1>, scalar_prefetch = 0 : i64, scratch_operands = 0 : i64, tpu.core_type = #tpu.core_type<tc>, window_params = [{transform_indices = @transform_0, window_bounds = array<i64: 576, 128>}, {pipeline_mode = #tpu.pipeline_mode<synchronous>, transform_indices = @transform_1, window_bounds = array<i64: 1, 128>}, {pipeline_mode = #tpu.pipeline_mode<synchronous>, transform_indices = @transform_2, window_bounds = array<i64: 1, 128>}, {transform_indices = @transform_3, window_bounds = array<i64: 576, 128>}, {transform_indices = @transform_4, window_bounds = array<i64: 576, 128>}]} {
    %c0 = arith.constant 0 : index
    %c0_0 = arith.constant 0 : index
    %0 = vector.load %arg1[%c0, %c0_0] : memref<576x128xbf16, #tpu.memory_space<vmem>>, vector<576x128xbf16>
    %1 = arith.extf %0 : vector<576x128xbf16> to vector<576x128xf32>
    %c0_1 = arith.constant 0 : index
    %c0_2 = arith.constant 0 : index
    %2 = vector.load %arg2[%c0_1, %c0_2] : memref<1x128xf32, #tpu.memory_space<vmem>>, vector<1x128xf32>
    %3 = vector.broadcast %2 : vector<1x128xf32> to vector<576x128xf32>
    %4 = arith.mulf %1, %3 : vector<576x128xf32>
    %c0_3 = arith.constant 0 : index
    %c0_4 = arith.constant 0 : index
    %5 = vector.load %arg3[%c0_3, %c0_4] : memref<1x128xf32, #tpu.memory_space<vmem>>, vector<1x128xf32>
    %6 = vector.broadcast %5 : vector<1x128xf32> to vector<576x128xf32>
    %7 = arith.addf %4, %6 : vector<576x128xf32>
    %c0_5 = arith.constant 0 : index
    %c0_6 = arith.constant 0 : index
    %8 = vector.load %arg4[%c0_5, %c0_6] : memref<576x128xbf16, #tpu.memory_space<vmem>>, vector<576x128xbf16>
    %9 = arith.extf %8 : vector<576x128xbf16> to vector<576x128xf32>
    %10 = arith.addf %7, %9 : vector<576x128xf32>
    %cst = arith.constant 0.000000e+00 : f32
    %11 = vector.broadcast %cst : f32 to vector<576x128xf32>
    %12 = arith.maximumf %10, %11 : vector<576x128xf32>
    %c0_7 = arith.constant 0 : index
    %c0_8 = arith.constant 0 : index
    %13 = vector.load %arg5[%c0_7, %c0_8] : memref<576x128xf32, #tpu.memory_space<vmem>>, vector<576x128xf32>
    tpu.vector_store %arg5[%c0_7, %c0_8], %12 {strides = array<i32>} : memref<576x128xf32, #tpu.memory_space<vmem>>, vector<576x128xf32>,
    return
  }
  func.func @transform_0(%arg0: i32) -> (i32, i32) {
    %c0_i32 = arith.constant 0 : i32
    %c0_i32_0 = arith.constant 0 : i32
    return %arg0, %c0_i32 : i32, i32
  }
  func.func @transform_1(%arg0: i32) -> (i32, i32) {
    %c0_i32 = arith.constant 0 : i32
    %c0_i32_0 = arith.constant 0 : i32
    %c0_i32_1 = arith.constant 0 : i32
    return %c0_i32, %c0_i32_0 : i32, i32
  }
  func.func @transform_2(%arg0: i32) -> (i32, i32) {
    %c0_i32 = arith.constant 0 : i32
    %c0_i32_0 = arith.constant 0 : i32
    %c0_i32_1 = arith.constant 0 : i32
    return %c0_i32, %c0_i32_0 : i32, i32
  }
  func.func @transform_3(%arg0: i32) -> (i32, i32) {
    %c0_i32 = arith.constant 0 : i32
    %c0_i32_0 = arith.constant 0 : i32
    return %arg0, %c0_i32 : i32, i32
  }
  func.func @transform_4(%arg0: i32) -> (i32, i32) {
    %c0_i32 = arith.constant 0 : i32
    %c0_i32_0 = arith.constant 0 : i32
    return %arg0, %c0_i32 : i32, i32
  }
}

</mosaic_0001>

<bundles_post_ra>
// kernel: resblock_forward.5
= control target key start
LH: loop header
LB: loop body
LE: loop exit
PB: predicated region body
PF: predicated region fallthrough
CT: control target
= control target key end

     0   :  { %s1646_s0 = inlined_call_operand.vmem [shape: bf16[576,128], index: 0, kind: input, shape index: {}]   ;;  %s1647_s1 = inlined_call_operand.vmem [shape: f32[1,128], index: 1, kind: input, shape index: {}]   ;;  %s1648_s2 = inlined_call_operand.vmem [shape: f32[1,128], index: 2, kind: input, shape index: {}]   ;;  %s1649_s3 = inlined_call_operand.vmem [shape: bf16[576,128], index: 3, kind: input, shape index: {}]   ;;  %s1650_s4 = inlined_call_operand.vmem [shape: f32[576,128], index: 4, kind: output, shape index: {}]  }
   0x1   :  { %v686_v0 = vld [vmem:[%s1646_s0] sm:$0xff]   ;;  %v973_v5 = vld [vmem:[%s1646_s0 + $0x8] sm:$0xff]   ;;  %v974_v12 = vld [vmem:[%s1646_s0 + $0x10] sm:$0xff]  }
   0x2   :  { %v1076_v1 = vld [vmem:[%s1647_s1] ss:$0 sm:$0xff]  ;;  %v687_v2 = vunpack.c.l.bf16 %v686_v0  ;;  %v688_v4 = vunpack.c.h.bf16 %v686_v0  ;;  %v1008_v6 = vld [vmem:[%s1649_s3 + $0x8] sm:$0xff]   ;;  %v691_v10 = vunpack.c.l.bf16 %v973_v5  ;;  %v1009_v13 = vld [vmem:[%s1649_s3 + $0x10] sm:$0xff]   ;;  %v692_v16 = vunpack.c.h.bf16 %v973_v5 }
   0x3   :  { %v830_v3 = vld [vmem:[%s1649_s3] sm:$0xff]   ;;  %v835_v11 = vunpack.c.l.bf16 %v1008_v6  ;;  %v836_v17 = vunpack.c.h.bf16 %v1008_v6  ;;  %v975_v18 = vld [vmem:[%s1646_s0 + $0x18] sm:$0xff]   ;;  %v695_v20 = vunpack.c.l.bf16 %v974_v12  ;;  %v839_v21 = vunpack.c.l.bf16 %v1009_v13  ;;  %v977_v54 = vld [vmem:[%s1646_s0 + $0x28] sm:$0xff]  }
   0x4   :  { %v1090_v7 = vld [vmem:[%s1648_s2] ss:$0 sm:$0xff]  ;;  %v831_v8 = vunpack.c.l.bf16 %v830_v3  ;;  %v832_v9 = vunpack.c.h.bf16 %v830_v3  ;;  %v168_v14 = vmul.f32 %v687_v2, %v1076_v1  ;;  %v169_v15 = vmul.f32 %v688_v4, %v1076_v1  ;;  %v1010_v23 = vld [vmem:[%s1649_s3 + $0x18] sm:$0xff]   ;;  %v1012_v55 = vld [vmem:[%s1649_s3 + $0x28] sm:$0xff]  }
   0x5   :  { %v170_v19 = vmul.f32 %v691_v10, %v1076_v1  ;;  %v696_v22 = vunpack.c.h.bf16 %v974_v12  ;;  %v171_v26 = vmul.f32 %v692_v16, %v1076_v1  ;;  %v840_v27 = vunpack.c.h.bf16 %v1009_v13  ;;  %v976_v40 = vld [vmem:[%s1646_s0 + $0x20] sm:$0xff]   ;;  %v978_v0 = vld [vmem:[%s1646_s0 + $0x30] sm:$0xff]   ;;  %v979_v16 = vld [vmem:[%s1646_s0 + $0x38] sm:$0xff]  }
   0x6   :  { %v247_v24 = vadd.f32 %v1090_v7, %v168_v14  ;;  %v248_v25 = vadd.f32 %v1090_v7, %v169_v15  ;;  %v172_v29 = vmul.f32 %v695_v20, %v1076_v1  ;;  %v699_v31 = vunpack.c.l.bf16 %v975_v18  ;;  %v1011_v45 = vld [vmem:[%s1649_s3 + $0x20] sm:$0xff]   ;;  %v1013_v2 = vld [vmem:[%s1649_s3 + $0x30] sm:$0xff]  }
   0x7   :  { %v249_v28 = vadd.f32 %v1090_v7, %v170_v19  ;;  %v173_v30 = vmul.f32 %v696_v22, %v1076_v1  ;;  %v250_v34 = vadd.f32 %v1090_v7, %v171_v26  ;;  %v843_v35 = vunpack.c.l.bf16 %v1010_v23 }
   0x8   :  { %v463_v32 = vadd.f32 %v831_v8, %v247_v24  ;;  %v464_v33 = vadd.f32 %v832_v9, %v248_v25  ;;  %v251_v37 = vadd.f32 %v1090_v7, %v172_v29  ;;  %v174_v39 = vmul.f32 %v699_v31, %v1076_v1 }
   0x9   :  { %v465_v36 = vadd.f32 %v835_v11, %v249_v28  ;;  %v252_v38 = vadd.f32 %v1090_v7, %v173_v30  ;;  %v466_v43 = vadd.f32 %v836_v17, %v250_v34  ;;  %v700_v44 = vunpack.c.h.bf16 %v975_v18  ;;  %v980_v34 = vld [vmem:[%s1646_s0 + $0x40] sm:$0xff]  }
   0xa   :  { %v535_v41 = vmax.f32 %v463_v32, 0.0  ;;  %v536_v42 = vmax.f32 %v464_v33, 0.0  ;;  %v467_v47 = vadd.f32 %v839_v21, %v251_v37  ;;  %v253_v49 = vadd.f32 %v1090_v7, %v174_v39  ;;  %v1014_v21 = vld [vmem:[%s1649_s3 + $0x38] sm:$0xff]   ;;  %v1015_v39 = vld [vmem:[%s1649_s3 + $0x40] sm:$0xff]  }
   0xb   :  { %v537_v46 = vmax.f32 %v465_v36, 0.0  ;;  %v468_v48 = vadd.f32 %v840_v27, %v252_v38  ;;  %v538_v50 = vmax.f32 %v466_v43, 0.0  ;;  %v175_v51 = vmul.f32 %v700_v44, %v1076_v1 }
   0xc   :  { %607 = vst [vmem:[%s1650_s4] sm:$0xff] %v535_v41  ;;  %608 = vst [vmem:[%s1650_s4 + $0x8] sm:$0xff] %v536_v42  ;;  %v844_v52 = vunpack.c.h.bf16 %v1010_v23  ;;  %v703_v53 = vunpack.c.l.bf16 %v976_v40  ;;  %v539_v56 = vmax.f32 %v467_v47, 0.0  ;;  %v469_v58 = vadd.f32 %v843_v35, %v253_v49  ;;  %v1016_v49 = vld [vmem:[%s1649_s3 + $0x48] sm:$0xff]  }
   0xd   :  { %609 = vst [vmem:[%s1650_s4 + $0x10] sm:$0xff] %v537_v46  ;;  %v540_v57 = vmax.f32 %v468_v48, 0.0  ;;  %v847_v59 = vunpack.c.l.bf16 %v1011_v45  ;;  %610 = vst [vmem:[%s1650_s4 + $0x18] sm:$0xff] %v538_v50  ;;  %v254_v60 = vadd.f32 %v1090_v7, %v175_v51  ;;  %v704_v62 = vunpack.c.h.bf16 %v976_v40  ;;  %v981_v48 = vld [vmem:[%s1646_s0 + $0x48] sm:$0xff]  }
   0xe   :  { %v176_v61 = vmul.f32 %v703_v53, %v1076_v1  ;;  %v848_v63 = vunpack.c.h.bf16 %v1011_v45  ;;  %611 = vst [vmem:[%s1650_s4 + $0x20] sm:$0xff] %v539_v56  ;;  %v541_v3 = vmax.f32 %v469_v58, 0.0  ;;  %v707_v4 = vunpack.c.l.bf16 %v977_v54  ;;  %v982_v58 = vld [vmem:[%s1646_s0 + $0x50] sm:$0xff]  }
   0xf   :  { %612 = vst [vmem:[%s1650_s4 + $0x28] sm:$0xff] %v540_v57  ;;  %v851_v5 = vunpack.c.l.bf16 %v1012_v55  ;;  %v708_v6 = vunpack.c.h.bf16 %v977_v54  ;;  %v470_v8 = vadd.f32 %v844_v52, %v254_v60  ;;  %v177_v10 = vmul.f32 %v704_v62, %v1076_v1 }
  0x10   :  { %v255_v9 = vadd.f32 %v1090_v7, %v176_v61  ;;  %v852_v11 = vunpack.c.h.bf16 %v1012_v55  ;;  %613 = vst [vmem:[%s1650_s4 + $0x30] sm:$0xff] %v541_v3  ;;  %v178_v12 = vmul.f32 %v707_v4, %v1076_v1  ;;  %v711_v14 = vunpack.c.l.bf16 %v978_v0 }
  0x11   :  { %v179_v13 = vmul.f32 %v708_v6, %v1076_v1  ;;  %v855_v15 = vunpack.c.l.bf16 %v1013_v2  ;;  %v542_v17 = vmax.f32 %v470_v8, 0.0  ;;  %v256_v19 = vadd.f32 %v1090_v7, %v177_v10  ;;  %v983_v10 = vld [vmem:[%s1646_s0 + $0x58] sm:$0xff]  }
  0x12   :  { %v471_v18 = vadd.f32 %v847_v59, %v255_v9  ;;  %v712_v20 = vunpack.c.h.bf16 %v978_v0  ;;  %v257_v22 = vadd.f32 %v1090_v7, %v178_v12  ;;  %v180_v24 = vmul.f32 %v711_v14, %v1076_v1 }
  0x13   :  { %v258_v23 = vadd.f32 %v1090_v7, %v179_v13  ;;  %v856_v25 = vunpack.c.h.bf16 %v1013_v2  ;;  %614 = vst [vmem:[%s1650_s4 + $0x38] sm:$0xff] %v542_v17  ;;  %v472_v27 = vadd.f32 %v848_v63, %v256_v19  ;;  %v715_v29 = vunpack.c.l.bf16 %v979_v16  ;;  %v1017_v63 = vld [vmem:[%s1649_s3 + $0x50] sm:$0xff]   ;;  %v1018_v19 = vld [vmem:[%s1649_s3 + $0x58] sm:$0xff]  }
  0x14   :  { %v543_v26 = vmax.f32 %v471_v18, 0.0  ;;  %v181_v28 = vmul.f32 %v712_v20, %v1076_v1  ;;  %v473_v30 = vadd.f32 %v851_v5, %v257_v22  ;;  %v259_v32 = vadd.f32 %v1090_v7, %v180_v24 }
  0x15   :  { %v474_v31 = vadd.f32 %v852_v11, %v258_v23  ;;  %v859_v33 = vunpack.c.l.bf16 %v1014_v21  ;;  %v544_v35 = vmax.f32 %v472_v27, 0.0  ;;  %v182_v37 = vmul.f32 %v715_v29, %v1076_v1 }
  0x16   :  { %615 = vst [vmem:[%s1650_s4 + $0x40] sm:$0xff] %v543_v26  ;;  %v260_v36 = vadd.f32 %v1090_v7, %v181_v28  ;;  %v716_v38 = vunpack.c.h.bf16 %v979_v16  ;;  %v545_v40 = vmax.f32 %v473_v30, 0.0  ;;  %v475_v42 = vadd.f32 %v855_v15, %v259_v32  ;;  %v984_v28 = vld [vmem:[%s1646_s0 + $0x60] sm:$0xff]  }
  0x17   :  { %v546_v41 = vmax.f32 %v474_v31, 0.0  ;;  %v860_v43 = vunpack.c.h.bf16 %v1014_v21  ;;  %616 = vst [vmem:[%s1650_s4 + $0x48] sm:$0xff] %v544_v35  ;;  %v261_v45 = vadd.f32 %v1090_v7, %v182_v37  ;;  %v719_v47 = vunpack.c.l.bf16 %v980_v34 }
  0x18   :  { %v476_v44 = vadd.f32 %v856_v25, %v260_v36  ;;  %v183_v46 = vmul.f32 %v716_v38, %v1076_v1  ;;  %617 = vst [vmem:[%s1650_s4 + $0x50] sm:$0xff] %v545_v40  ;;  %v547_v50 = vmax.f32 %v475_v42, 0.0  ;;  %v863_v51 = vunpack.c.l.bf16 %v1015_v39  ;;  %v985_v42 = vld [vmem:[%s1646_s0 + $0x68] sm:$0xff]  }
  0x19   :  { %618 = vst [vmem:[%s1650_s4 + $0x58] sm:$0xff] %v546_v41  ;;  %v720_v52 = vunpack.c.h.bf16 %v980_v34  ;;  %v864_v53 = vunpack.c.h.bf16 %v1015_v39  ;;  %v477_v55 = vadd.f32 %v859_v33, %v261_v45  ;;  %v184_v57 = vmul.f32 %v719_v47, %v1076_v1  ;;  %v1019_v33 = vld [vmem:[%s1649_s3 + $0x60] sm:$0xff]  }
  0x1a   :  { %v548_v54 = vmax.f32 %v476_v44, 0.0  ;;  %v262_v56 = vadd.f32 %v1090_v7, %v183_v46  ;;  %619 = vst [vmem:[%s1650_s4 + $0x60] sm:$0xff] %v547_v50  ;;  %v723_v60 = vunpack.c.l.bf16 %v981_v48  ;;  %v867_v61 = vunpack.c.l.bf16 %v1016_v49 }
  0x1b   :  { %v185_v59 = vmul.f32 %v720_v52, %v1076_v1  ;;  %v724_v62 = vunpack.c.h.bf16 %v981_v48  ;;  %v549_v0 = vmax.f32 %v477_v55, 0.0  ;;  %v263_v3 = vadd.f32 %v1090_v7, %v184_v57  ;;  %v986_v52 = vld [vmem:[%s1646_s0 + $0x70] sm:$0xff]  }
  0x1c   :  { %620 = vst [vmem:[%s1650_s4 + $0x68] sm:$0xff] %v548_v54  ;;  %v478_v2 = vadd.f32 %v860_v43, %v262_v56  ;;  %v868_v4 = vunpack.c.h.bf16 %v1016_v49  ;;  %v186_v6 = vmul.f32 %v723_v60, %v1076_v1  ;;  %v727_v9 = vunpack.c.l.bf16 %v982_v58  ;;  %v1020_v43 = vld [vmem:[%s1649_s3 + $0x68] sm:$0xff]   ;;  %v1021_v57 = vld [vmem:[%s1649_s3 + $0x70] sm:$0xff]  }
  0x1d   :  { %v264_v5 = vadd.f32 %v1090_v7, %v185_v59  ;;  %v187_v8 = vmul.f32 %v724_v62, %v1076_v1  ;;  %621 = vst [vmem:[%s1650_s4 + $0x70] sm:$0xff] %v549_v0  ;;  %v479_v12 = vadd.f32 %v863_v51, %v263_v3  ;;  %v871_v13 = vunpack.c.l.bf16 %v1017_v63  ;;  %v987_v3 = vld [vmem:[%s1646_s0 + $0x78] sm:$0xff]  }
  0x1e   :  { %v550_v11 = vmax.f32 %v478_v2, 0.0  ;;  %v728_v14 = vunpack.c.h.bf16 %v982_v58  ;;  %v265_v16 = vadd.f32 %v1090_v7, %v186_v6  ;;  %v188_v18 = vmul.f32 %v727_v9, %v1076_v1 }
  0x1f   :  { %v480_v15 = vadd.f32 %v864_v53, %v264_v5  ;;  %v266_v17 = vadd.f32 %v1090_v7, %v187_v8  ;;  %v551_v20 = vmax.f32 %v479_v12, 0.0  ;;  %v872_v22 = vunpack.c.h.bf16 %v1017_v63 }
  0x20   :  { %622 = vst [vmem:[%s1650_s4 + $0x78] sm:$0xff] %v550_v11  ;;  %v189_v21 = vmul.f32 %v728_v14, %v1076_v1  ;;  %v731_v23 = vunpack.c.l.bf16 %v983_v10  ;;  %v481_v25 = vadd.f32 %v867_v61, %v265_v16  ;;  %v267_v27 = vadd.f32 %v1090_v7, %v188_v18 }
  0x21   :  { %v552_v24 = vmax.f32 %v480_v15, 0.0  ;;  %v482_v26 = vadd.f32 %v868_v4, %v266_v17  ;;  %623 = vst [vmem:[%s1650_s4 + $0x80] sm:$0xff] %v551_v20  ;;  %v875_v31 = vunpack.c.l.bf16 %v1018_v19  ;;  %v732_v32 = vunpack.c.h.bf16 %v983_v10 }
  0x22   :  { %v268_v29 = vadd.f32 %v1090_v7, %v189_v21  ;;  %v190_v30 = vmul.f32 %v731_v23, %v1076_v1  ;;  %v553_v34 = vmax.f32 %v481_v25, 0.0  ;;  %v483_v36 = vadd.f32 %v871_v13, %v267_v27  ;;  %v1022_v13 = vld [vmem:[%s1649_s3 + $0x78] sm:$0xff]   ;;  %v1023_v27 = vld [vmem:[%s1649_s3 + $0x80] sm:$0xff]  }
  0x23   :  { %624 = vst [vmem:[%s1650_s4 + $0x88] sm:$0xff] %v552_v24  ;;  %v554_v35 = vmax.f32 %v482_v26, 0.0  ;;  %v876_v37 = vunpack.c.h.bf16 %v1018_v19  ;;  %v191_v40 = vmul.f32 %v732_v32, %v1076_v1  ;;  %v735_v41 = vunpack.c.l.bf16 %v984_v28 }
  0x24   :  { %v484_v38 = vadd.f32 %v872_v22, %v268_v29  ;;  %v269_v39 = vadd.f32 %v1090_v7, %v190_v30  ;;  %625 = vst [vmem:[%s1650_s4 + $0x90] sm:$0xff] %v553_v34  ;;  %v555_v44 = vmax.f32 %v483_v36, 0.0  ;;  %v879_v45 = vunpack.c.l.bf16 %v1019_v33  ;;  %v988_v22 = vld [vmem:[%s1646_s0 + $0x80] sm:$0xff]   ;;  %v989_v36 = vld [vmem:[%s1646_s0 + $0x88] sm:$0xff]  }
  0x25   :  { %626 = vst [vmem:[%s1650_s4 + $0x98] sm:$0xff] %v554_v35  ;;  %v736_v46 = vunpack.c.h.bf16 %v984_v28  ;;  %v880_v47 = vunpack.c.h.bf16 %v1019_v33  ;;  %v270_v50 = vadd.f32 %v1090_v7, %v191_v40  ;;  %v192_v51 = vmul.f32 %v735_v41, %v1076_v1 }
  0x26   :  { %v556_v48 = vmax.f32 %v484_v38, 0.0  ;;  %v485_v49 = vadd.f32 %v875_v31, %v269_v39  ;;  %627 = vst [vmem:[%s1650_s4 + $0xa0] sm:$0xff] %v555_v44  ;;  %v739_v54 = vunpack.c.l.bf16 %v985_v42  ;;  %v883_v55 = vunpack.c.l.bf16 %v1020_v43 }
  0x27   :  { %v193_v53 = vmul.f32 %v736_v46, %v1076_v1  ;;  %v740_v56 = vunpack.c.h.bf16 %v985_v42  ;;  %v486_v59 = vadd.f32 %v876_v37, %v270_v50  ;;  %v271_v60 = vadd.f32 %v1090_v7, %v192_v51  ;;  %v1024_v37 = vld [vmem:[%s1649_s3 + $0x88] sm:$0xff]   ;;  %v990_v46 = vld [vmem:[%s1646_s0 + $0x90] sm:$0xff]  }
  0x28   :  { %628 = vst [vmem:[%s1650_s4 + $0xa8] sm:$0xff] %v556_v48  ;;  %v557_v58 = vmax.f32 %v485_v49, 0.0  ;;  %v884_v61 = vunpack.c.h.bf16 %v1020_v43  ;;  %v194_v63 = vmul.f32 %v739_v54, %v1076_v1  ;;  %v743_v2 = vunpack.c.l.bf16 %v986_v52  ;;  %v1025_v51 = vld [vmem:[%s1649_s3 + $0x90] sm:$0xff]  }
  0x29   :  { %v272_v62 = vadd.f32 %v1090_v7, %v193_v53  ;;  %v195_v0 = vmul.f32 %v740_v56, %v1076_v1  ;;  %v558_v4 = vmax.f32 %v486_v59, 0.0  ;;  %v487_v5 = vadd.f32 %v879_v45, %v271_v60  ;;  %v991_v60 = vld [vmem:[%s1646_s0 + $0x98] sm:$0xff]  }
  0x2a   :  { %629 = vst [vmem:[%s1650_s4 + $0xb0] sm:$0xff] %v557_v58  ;;  %v887_v6 = vunpack.c.l.bf16 %v1021_v57  ;;  %v744_v8 = vunpack.c.h.bf16 %v986_v52  ;;  %v273_v10 = vadd.f32 %v1090_v7, %v194_v63  ;;  %v196_v12 = vmul.f32 %v743_v2, %v1076_v1 }
  0x2b   :  { %v488_v9 = vadd.f32 %v880_v47, %v272_v62  ;;  %v274_v11 = vadd.f32 %v1090_v7, %v195_v0  ;;  %630 = vst [vmem:[%s1650_s4 + $0xb8] sm:$0xff] %v558_v4  ;;  %v559_v14 = vmax.f32 %v487_v5, 0.0  ;;  %v888_v16 = vunpack.c.h.bf16 %v1021_v57 }
  0x2c   :  { %v197_v15 = vmul.f32 %v744_v8, %v1076_v1  ;;  %v747_v17 = vunpack.c.l.bf16 %v987_v3  ;;  %v489_v19 = vadd.f32 %v883_v55, %v273_v10  ;;  %v275_v21 = vadd.f32 %v1090_v7, %v196_v12 }
  0x2d   :  { %v560_v18 = vmax.f32 %v488_v9, 0.0  ;;  %v490_v20 = vadd.f32 %v884_v61, %v274_v11  ;;  %631 = vst [vmem:[%s1650_s4 + $0xc0] sm:$0xff] %v559_v14  ;;  %v891_v25 = vunpack.c.l.bf16 %v1022_v13  ;;  %v748_v26 = vunpack.c.h.bf16 %v987_v3 }
  0x2e   :  { %v276_v23 = vadd.f32 %v1090_v7, %v197_v15  ;;  %v198_v24 = vmul.f32 %v747_v17, %v1076_v1  ;;  %v561_v28 = vmax.f32 %v489_v19, 0.0  ;;  %v491_v30 = vadd.f32 %v887_v6, %v275_v21  ;;  %v1026_v6 = vld [vmem:[%s1649_s3 + $0x98] sm:$0xff]   ;;  %v1027_v21 = vld [vmem:[%s1649_s3 + $0xa0] sm:$0xff]  }
  0x2f   :  { %632 = vst [vmem:[%s1650_s4 + $0xc8] sm:$0xff] %v560_v18  ;;  %v562_v29 = vmax.f32 %v490_v20, 0.0  ;;  %v892_v31 = vunpack.c.h.bf16 %v1022_v13  ;;  %v199_v34 = vmul.f32 %v748_v26, %v1076_v1  ;;  %v751_v35 = vunpack.c.l.bf16 %v988_v22 }
  0x30   :  { %v492_v32 = vadd.f32 %v888_v16, %v276_v23  ;;  %v277_v33 = vadd.f32 %v1090_v7, %v198_v24  ;;  %633 = vst [vmem:[%s1650_s4 + $0xd0] sm:$0xff] %v561_v28  ;;  %v563_v38 = vmax.f32 %v491_v30, 0.0  ;;  %v895_v39 = vunpack.c.l.bf16 %v1023_v27  ;;  %v992_v16 = vld [vmem:[%s1646_s0 + $0xa0] sm:$0xff]   ;;  %v993_v30 = vld [vmem:[%s1646_s0 + $0xa8] sm:$0xff]  }
  0x31   :  { %634 = vst [vmem:[%s1650_s4 + $0xd8] sm:$0xff] %v562_v29  ;;  %v752_v40 = vunpack.c.h.bf16 %v988_v22  ;;  %v896_v41 = vunpack.c.h.bf16 %v1023_v27  ;;  %v278_v44 = vadd.f32 %v1090_v7, %v199_v34  ;;  %v200_v45 = vmul.f32 %v751_v35, %v1076_v1 }
  0x32   :  { %v564_v42 = vmax.f32 %v492_v32, 0.0  ;;  %v493_v43 = vadd.f32 %v891_v25, %v277_v33  ;;  %635 = vst [vmem:[%s1650_s4 + $0xe0] sm:$0xff] %v563_v38  ;;  %v755_v48 = vunpack.c.l.bf16 %v989_v36  ;;  %v899_v49 = vunpack.c.l.bf16 %v1024_v37 }
  0x33   :  { %v201_v47 = vmul.f32 %v752_v40, %v1076_v1  ;;  %v756_v50 = vunpack.c.h.bf16 %v989_v36  ;;  %v494_v53 = vadd.f32 %v892_v31, %v278_v44  ;;  %v279_v54 = vadd.f32 %v1090_v7, %v200_v45  ;;  %v1028_v31 = vld [vmem:[%s1649_s3 + $0xa8] sm:$0xff]   ;;  %v994_v40 = vld [vmem:[%s1646_s0 + $0xb0] sm:$0xff]  }
  0x34   :  { %636 = vst [vmem:[%s1650_s4 + $0xe8] sm:$0xff] %v564_v42  ;;  %v565_v52 = vmax.f32 %v493_v43, 0.0  ;;  %v900_v55 = vunpack.c.h.bf16 %v1024_v37  ;;  %v202_v57 = vmul.f32 %v755_v48, %v1076_v1  ;;  %v759_v59 = vunpack.c.l.bf16 %v990_v46  ;;  %v1029_v45 = vld [vmem:[%s1649_s3 + $0xb0] sm:$0xff]  }
  0x35   :  { %v280_v56 = vadd.f32 %v1090_v7, %v201_v47  ;;  %v203_v58 = vmul.f32 %v756_v50, %v1076_v1  ;;  %v566_v61 = vmax.f32 %v494_v53, 0.0  ;;  %v495_v62 = vadd.f32 %v895_v39, %v279_v54  ;;  %v995_v54 = vld [vmem:[%s1646_s0 + $0xb8] sm:$0xff]  }
  0x36   :  { %637 = vst [vmem:[%s1650_s4 + $0xf0] sm:$0xff] %v565_v52  ;;  %v903_v63 = vunpack.c.l.bf16 %v1025_v51  ;;  %v760_v0 = vunpack.c.h.bf16 %v990_v46  ;;  %v281_v3 = vadd.f32 %v1090_v7, %v202_v57  ;;  %v204_v5 = vmul.f32 %v759_v59, %v1076_v1 }
  0x37   :  { %v496_v2 = vadd.f32 %v896_v41, %v280_v56  ;;  %v282_v4 = vadd.f32 %v1090_v7, %v203_v58  ;;  %638 = vst [vmem:[%s1650_s4 + $0xf8] sm:$0xff] %v566_v61  ;;  %v567_v8 = vmax.f32 %v495_v62, 0.0  ;;  %v904_v10 = vunpack.c.h.bf16 %v1025_v51 }
  0x38   :  { %v205_v9 = vmul.f32 %v760_v0, %v1076_v1  ;;  %v763_v11 = vunpack.c.l.bf16 %v991_v60  ;;  %v497_v13 = vadd.f32 %v899_v49, %v281_v3  ;;  %v283_v15 = vadd.f32 %v1090_v7, %v204_v5 }
  0x39   :  { %v568_v12 = vmax.f32 %v496_v2, 0.0  ;;  %v498_v14 = vadd.f32 %v900_v55, %v282_v4  ;;  %639 = vst [vmem:[%s1650_s4 + $0x100] sm:$0xff] %v567_v8  ;;  %v907_v19 = vunpack.c.l.bf16 %v1026_v6  ;;  %v764_v20 = vunpack.c.h.bf16 %v991_v60 }
  0x3a   :  { %v284_v17 = vadd.f32 %v1090_v7, %v205_v9  ;;  %v206_v18 = vmul.f32 %v763_v11, %v1076_v1  ;;  %v569_v22 = vmax.f32 %v497_v13, 0.0  ;;  %v499_v24 = vadd.f32 %v903_v63, %v283_v15  ;;  %v1030_v63 = vld [vmem:[%s1649_s3 + $0xb8] sm:$0xff]   ;;  %v1031_v15 = vld [vmem:[%s1649_s3 + $0xc0] sm:$0xff]  }
  0x3b   :  { %640 = vst [vmem:[%s1650_s4 + $0x108] sm:$0xff] %v568_v12  ;;  %v570_v23 = vmax.f32 %v498_v14, 0.0  ;;  %v908_v25 = vunpack.c.h.bf16 %v1026_v6  ;;  %v207_v28 = vmul.f32 %v764_v20, %v1076_v1  ;;  %v767_v29 = vunpack.c.l.bf16 %v992_v16 }
  0x3c   :  { %v500_v26 = vadd.f32 %v904_v10, %v284_v17  ;;  %v285_v27 = vadd.f32 %v1090_v7, %v206_v18  ;;  %641 = vst [vmem:[%s1650_s4 + $0x110] sm:$0xff] %v569_v22  ;;  %v571_v32 = vmax.f32 %v499_v24, 0.0  ;;  %v911_v33 = vunpack.c.l.bf16 %v1027_v21  ;;  %v996_v10 = vld [vmem:[%s1646_s0 + $0xc0] sm:$0xff]   ;;  %v997_v24 = vld [vmem:[%s1646_s0 + $0xc8] sm:$0xff]  }
  0x3d   :  { %642 = vst [vmem:[%s1650_s4 + $0x118] sm:$0xff] %v570_v23  ;;  %v768_v34 = vunpack.c.h.bf16 %v992_v16  ;;  %v912_v35 = vunpack.c.h.bf16 %v1027_v21  ;;  %v286_v38 = vadd.f32 %v1090_v7, %v207_v28  ;;  %v208_v39 = vmul.f32 %v767_v29, %v1076_v1 }
  0x3e   :  { %v572_v36 = vmax.f32 %v500_v26, 0.0  ;;  %v501_v37 = vadd.f32 %v907_v19, %v285_v27  ;;  %643 = vst [vmem:[%s1650_s4 + $0x120] sm:$0xff] %v571_v32  ;;  %v771_v42 = vunpack.c.l.bf16 %v993_v30  ;;  %v915_v43 = vunpack.c.l.bf16 %v1028_v31 }
  0x3f   :  { %v209_v41 = vmul.f32 %v768_v34, %v1076_v1  ;;  %v772_v44 = vunpack.c.h.bf16 %v993_v30  ;;  %v502_v47 = vadd.f32 %v908_v25, %v286_v38  ;;  %v287_v48 = vadd.f32 %v1090_v7, %v208_v39  ;;  %v1032_v25 = vld [vmem:[%s1649_s3 + $0xc8] sm:$0xff]   ;;  %v998_v34 = vld [vmem:[%s1646_s0 + $0xd0] sm:$0xff]  }
  0x40   :  { %644 = vst [vmem:[%s1650_s4 + $0x128] sm:$0xff] %v572_v36  ;;  %v573_v46 = vmax.f32 %v501_v37, 0.0  ;;  %v916_v49 = vunpack.c.h.bf16 %v1028_v31  ;;  %v210_v51 = vmul.f32 %v771_v42, %v1076_v1  ;;  %v775_v53 = vunpack.c.l.bf16 %v994_v40  ;;  %v1033_v39 = vld [vmem:[%s1649_s3 + $0xd0] sm:$0xff]  }
  0x41   :  { %v288_v50 = vadd.f32 %v1090_v7, %v209_v41  ;;  %v211_v52 = vmul.f32 %v772_v44, %v1076_v1  ;;  %v574_v55 = vmax.f32 %v502_v47, 0.0  ;;  %v503_v56 = vadd.f32 %v911_v33, %v287_v48  ;;  %v999_v48 = vld [vmem:[%s1646_s0 + $0xd8] sm:$0xff]  }
  0x42   :  { %645 = vst [vmem:[%s1650_s4 + $0x130] sm:$0xff] %v573_v46  ;;  %v919_v57 = vunpack.c.l.bf16 %v1029_v45  ;;  %v776_v58 = vunpack.c.h.bf16 %v994_v40  ;;  %v289_v60 = vadd.f32 %v1090_v7, %v210_v51  ;;  %v212_v62 = vmul.f32 %v775_v53, %v1076_v1 }
  0x43   :  { %v504_v59 = vadd.f32 %v912_v35, %v288_v50  ;;  %v290_v61 = vadd.f32 %v1090_v7, %v211_v52  ;;  %646 = vst [vmem:[%s1650_s4 + $0x138] sm:$0xff] %v574_v55  ;;  %v575_v0 = vmax.f32 %v503_v56, 0.0  ;;  %v920_v3 = vunpack.c.h.bf16 %v1029_v45 }
  0x44   :  { %v213_v2 = vmul.f32 %v776_v58, %v1076_v1  ;;  %v779_v4 = vunpack.c.l.bf16 %v995_v54  ;;  %v505_v6 = vadd.f32 %v915_v43, %v289_v60  ;;  %v291_v9 = vadd.f32 %v1090_v7, %v212_v62 }
  0x45   :  { %v576_v5 = vmax.f32 %v504_v59, 0.0  ;;  %v506_v8 = vadd.f32 %v916_v49, %v290_v61  ;;  %647 = vst [vmem:[%s1650_s4 + $0x140] sm:$0xff] %v575_v0  ;;  %v923_v13 = vunpack.c.l.bf16 %v1030_v63  ;;  %v780_v14 = vunpack.c.h.bf16 %v995_v54 }
  0x46   :  { %v292_v11 = vadd.f32 %v1090_v7, %v213_v2  ;;  %v214_v12 = vmul.f32 %v779_v4, %v1076_v1  ;;  %v577_v16 = vmax.f32 %v505_v6, 0.0  ;;  %v507_v18 = vadd.f32 %v919_v57, %v291_v9  ;;  %v1034_v57 = vld [vmem:[%s1649_s3 + $0xd8] sm:$0xff]   ;;  %v1035_v9 = vld [vmem:[%s1649_s3 + $0xe0] sm:$0xff]  }
  0x47   :  { %648 = vst [vmem:[%s1650_s4 + $0x148] sm:$0xff] %v576_v5  ;;  %v578_v17 = vmax.f32 %v506_v8, 0.0  ;;  %v924_v19 = vunpack.c.h.bf16 %v1030_v63  ;;  %v215_v22 = vmul.f32 %v780_v14, %v1076_v1  ;;  %v783_v23 = vunpack.c.l.bf16 %v996_v10 }
  0x48   :  { %v508_v20 = vadd.f32 %v920_v3, %v292_v11  ;;  %v293_v21 = vadd.f32 %v1090_v7, %v214_v12  ;;  %649 = vst [vmem:[%s1650_s4 + $0x150] sm:$0xff] %v577_v16  ;;  %v579_v26 = vmax.f32 %v507_v18, 0.0  ;;  %v927_v27 = vunpack.c.l.bf16 %v1031_v15  ;;  %v1000_v3 = vld [vmem:[%s1646_s0 + $0xe0] sm:$0xff]   ;;  %v1001_v18 = vld [vmem:[%s1646_s0 + $0xe8] sm:$0xff]  }
  0x49   :  { %650 = vst [vmem:[%s1650_s4 + $0x158] sm:$0xff] %v578_v17  ;;  %v784_v28 = vunpack.c.h.bf16 %v996_v10  ;;  %v928_v29 = vunpack.c.h.bf16 %v1031_v15  ;;  %v294_v32 = vadd.f32 %v1090_v7, %v215_v22  ;;  %v216_v33 = vmul.f32 %v783_v23, %v1076_v1 }
  0x4a   :  { %v580_v30 = vmax.f32 %v508_v20, 0.0  ;;  %v509_v31 = vadd.f32 %v923_v13, %v293_v21  ;;  %651 = vst [vmem:[%s1650_s4 + $0x160] sm:$0xff] %v579_v26  ;;  %v787_v36 = vunpack.c.l.bf16 %v997_v24  ;;  %v931_v37 = vunpack.c.l.bf16 %v1032_v25 }
  0x4b   :  { %v217_v35 = vmul.f32 %v784_v28, %v1076_v1  ;;  %v788_v38 = vunpack.c.h.bf16 %v997_v24  ;;  %v510_v41 = vadd.f32 %v924_v19, %v294_v32  ;;  %v295_v42 = vadd.f32 %v1090_v7, %v216_v33  ;;  %v1036_v19 = vld [vmem:[%s1649_s3 + $0xe8] sm:$0xff]   ;;  %v1002_v28 = vld [vmem:[%s1646_s0 + $0xf0] sm:$0xff]  }
  0x4c   :  { %652 = vst [vmem:[%s1650_s4 + $0x168] sm:$0xff] %v580_v30  ;;  %v581_v40 = vmax.f32 %v509_v31, 0.0  ;;  %v932_v43 = vunpack.c.h.bf16 %v1032_v25  ;;  %v218_v45 = vmul.f32 %v787_v36, %v1076_v1  ;;  %v791_v47 = vunpack.c.l.bf16 %v998_v34  ;;  %v1037_v33 = vld [vmem:[%s1649_s3 + $0xf0] sm:$0xff]  }
  0x4d   :  { %v296_v44 = vadd.f32 %v1090_v7, %v217_v35  ;;  %v219_v46 = vmul.f32 %v788_v38, %v1076_v1  ;;  %v582_v49 = vmax.f32 %v510_v41, 0.0  ;;  %v511_v50 = vadd.f32 %v927_v27, %v295_v42  ;;  %v1003_v42 = vld [vmem:[%s1646_s0 + $0xf8] sm:$0xff]  }
  0x4e   :  { %653 = vst [vmem:[%s1650_s4 + $0x170] sm:$0xff] %v581_v40  ;;  %v935_v51 = vunpack.c.l.bf16 %v1033_v39  ;;  %v792_v52 = vunpack.c.h.bf16 %v998_v34  ;;  %v297_v54 = vadd.f32 %v1090_v7, %v218_v45  ;;  %v220_v56 = vmul.f32 %v791_v47, %v1076_v1 }
  0x4f   :  { %v512_v53 = vadd.f32 %v928_v29, %v296_v44  ;;  %v298_v55 = vadd.f32 %v1090_v7, %v219_v46  ;;  %654 = vst [vmem:[%s1650_s4 + $0x178] sm:$0xff] %v582_v49  ;;  %v583_v58 = vmax.f32 %v511_v50, 0.0  ;;  %v936_v60 = vunpack.c.h.bf16 %v1033_v39 }
  0x50   :  { %v221_v59 = vmul.f32 %v792_v52, %v1076_v1  ;;  %v795_v61 = vunpack.c.l.bf16 %v999_v48  ;;  %v513_v63 = vadd.f32 %v931_v37, %v297_v54  ;;  %v299_v2 = vadd.f32 %v1090_v7, %v220_v56 }
  0x51   :  { %v584_v62 = vmax.f32 %v512_v53, 0.0  ;;  %v514_v0 = vadd.f32 %v932_v43, %v298_v55  ;;  %655 = vst [vmem:[%s1650_s4 + $0x180] sm:$0xff] %v583_v58  ;;  %v939_v6 = vunpack.c.l.bf16 %v1034_v57  ;;  %v796_v8 = vunpack.c.h.bf16 %v999_v48 }
  0x52   :  { %v300_v4 = vadd.f32 %v1090_v7, %v221_v59  ;;  %v222_v5 = vmul.f32 %v795_v61, %v1076_v1  ;;  %v585_v10 = vmax.f32 %v513_v63, 0.0  ;;  %v515_v12 = vadd.f32 %v935_v51, %v299_v2  ;;  %v1038_v51 = vld [vmem:[%s1649_s3 + $0xf8] sm:$0xff]   ;;  %v1039_v2 = vld [vmem:[%s1649_s3 + $0x100] sm:$0xff]  }
  0x53   :  { %656 = vst [vmem:[%s1650_s4 + $0x188] sm:$0xff] %v584_v62  ;;  %v586_v11 = vmax.f32 %v514_v0, 0.0  ;;  %v940_v13 = vunpack.c.h.bf16 %v1034_v57  ;;  %v223_v16 = vmul.f32 %v796_v8, %v1076_v1  ;;  %v799_v17 = vunpack.c.l.bf16 %v1000_v3 }
  0x54   :  { %v516_v14 = vadd.f32 %v936_v60, %v300_v4  ;;  %v301_v15 = vadd.f32 %v1090_v7, %v222_v5  ;;  %657 = vst [vmem:[%s1650_s4 + $0x190] sm:$0xff] %v585_v10  ;;  %v587_v20 = vmax.f32 %v515_v12, 0.0  ;;  %v943_v21 = vunpack.c.l.bf16 %v1035_v9  ;;  %v1004_v60 = vld [vmem:[%s1646_s0 + $0x100] sm:$0xff]   ;;  %v1005_v12 = vld [vmem:[%s1646_s0 + $0x108] sm:$0xff]  }
  0x55   :  { %658 = vst [vmem:[%s1650_s4 + $0x198] sm:$0xff] %v586_v11  ;;  %v800_v22 = vunpack.c.h.bf16 %v1000_v3  ;;  %v944_v23 = vunpack.c.h.bf16 %v1035_v9  ;;  %v302_v26 = vadd.f32 %v1090_v7, %v223_v16  ;;  %v224_v27 = vmul.f32 %v799_v17, %v1076_v1 }
  0x56   :  { %v588_v24 = vmax.f32 %v516_v14, 0.0  ;;  %v517_v25 = vadd.f32 %v939_v6, %v301_v15  ;;  %659 = vst [vmem:[%s1650_s4 + $0x1a0] sm:$0xff] %v587_v20  ;;  %v803_v30 = vunpack.c.l.bf16 %v1001_v18  ;;  %v947_v31 = vunpack.c.l.bf16 %v1036_v19  ;;  %v1043_v20 = vld [vmem:[%s1647_s1] ss:$0 sm:$0xff] }
  0x57   :  { %v225_v29 = vmul.f32 %v800_v22, %v1076_v1  ;;  %v804_v32 = vunpack.c.h.bf16 %v1001_v18  ;;  %v518_v35 = vadd.f32 %v940_v13, %v302_v26  ;;  %v303_v36 = vadd.f32 %v1090_v7, %v224_v27  ;;  %v1040_v13 = vld [vmem:[%s1649_s3 + $0x108] sm:$0xff]   ;;  %v1006_v22 = vld [vmem:[%s1646_s0 + $0x110] sm:$0xff]  }
  0x58   :  { %660 = vst [vmem:[%s1650_s4 + $0x1a8] sm:$0xff] %v588_v24  ;;  %v589_v34 = vmax.f32 %v517_v25, 0.0  ;;  %v948_v37 = vunpack.c.h.bf16 %v1036_v19  ;;  %v226_v39 = vmul.f32 %v803_v30, %v1076_v1  ;;  %v807_v41 = vunpack.c.l.bf16 %v1002_v28 }
  0x59   :  { %v304_v38 = vadd.f32 %v1090_v7, %v225_v29  ;;  %v227_v40 = vmul.f32 %v804_v32, %v1076_v1  ;;  %v590_v43 = vmax.f32 %v518_v35, 0.0  ;;  %v519_v44 = vadd.f32 %v943_v21, %v303_v36  ;;  %v1044_v29 = vld [vmem:[%s1648_s2] ss:$0 sm:$0xff]  ;;  %v1007_v36 = vld [vmem:[%s1646_s0 + $0x118] sm:$0xff]  }
  0x5a   :  { %661 = vst [vmem:[%s1650_s4 + $0x1b0] sm:$0xff] %v589_v34  ;;  %v951_v45 = vunpack.c.l.bf16 %v1037_v33  ;;  %v808_v46 = vunpack.c.h.bf16 %v1002_v28  ;;  %v305_v48 = vadd.f32 %v1090_v7, %v226_v39  ;;  %v228_v50 = vmul.f32 %v807_v41, %v1076_v1 }
  0x5b   :  { %v520_v47 = vadd.f32 %v944_v23, %v304_v38  ;;  %v306_v49 = vadd.f32 %v1090_v7, %v227_v40  ;;  %662 = vst [vmem:[%s1650_s4 + $0x1b8] sm:$0xff] %v590_v43  ;;  %v591_v52 = vmax.f32 %v519_v44, 0.0  ;;  %v952_v54 = vunpack.c.h.bf16 %v1037_v33 }
  0x5c   :  { %v229_v53 = vmul.f32 %v808_v46, %v1076_v1  ;;  %v811_v55 = vunpack.c.l.bf16 %v1003_v42  ;;  %v521_v57 = vadd.f32 %v947_v31, %v305_v48  ;;  %v307_v59 = vadd.f32 %v1090_v7, %v228_v50 }
  0x5d   :  { %v592_v56 = vmax.f32 %v520_v47, 0.0  ;;  %v522_v58 = vadd.f32 %v948_v37, %v306_v49  ;;  %663 = vst [vmem:[%s1650_s4 + $0x1c0] sm:$0xff] %v591_v52  ;;  %v955_v63 = vunpack.c.l.bf16 %v1038_v51  ;;  %v812_v0 = vunpack.c.h.bf16 %v1003_v42 }
  0x5e   :  { %v308_v61 = vadd.f32 %v1090_v7, %v229_v53  ;;  %v230_v62 = vmul.f32 %v811_v55, %v1076_v1  ;;  %v593_v3 = vmax.f32 %v521_v57, 0.0  ;;  %v523_v5 = vadd.f32 %v951_v45, %v307_v59  ;;  %v1042_v45 = vld [vmem:[%s1649_s3 + $0x118] sm:$0xff]  }
  0x5f   :  { %664 = vst [vmem:[%s1650_s4 + $0x1c8] sm:$0xff] %v592_v56  ;;  %v594_v4 = vmax.f32 %v522_v58, 0.0  ;;  %v956_v6 = vunpack.c.h.bf16 %v1038_v51  ;;  %v231_v10 = vmul.f32 %v812_v0, %v1076_v1  ;;  %v815_v11 = vunpack.c.l.bf16 %v1004_v60 }
  0x60   :  { %v524_v8 = vadd.f32 %v952_v54, %v308_v61  ;;  %v309_v9 = vadd.f32 %v1090_v7, %v230_v62  ;;  %665 = vst [vmem:[%s1650_s4 + $0x1d0] sm:$0xff] %v593_v3  ;;  %v595_v14 = vmax.f32 %v523_v5, 0.0  ;;  %v959_v15 = vunpack.c.l.bf16 %v1039_v2 }
  0x61   :  { %666 = vst [vmem:[%s1650_s4 + $0x1d8] sm:$0xff] %v594_v4  ;;  %v816_v1 = vunpack.c.h.bf16 %v1004_v60  ;;  %v960_v16 = vunpack.c.h.bf16 %v1039_v2  ;;  %v310_v19 = vadd.f32 %v1090_v7, %v231_v10  ;;  %v232_v21 = vmul.f32 %v1043_v20, %v815_v11  ;;  %v1041_v7 = vld [vmem:[%s1649_s3 + $0x110] sm:$0xff]  }
  0x62   :  { %v596_v17 = vmax.f32 %v524_v8, 0.0  ;;  %v525_v18 = vadd.f32 %v955_v63, %v309_v9  ;;  %667 = vst [vmem:[%s1650_s4 + $0x1e0] sm:$0xff] %v595_v14  ;;  %v819_v24 = vunpack.c.l.bf16 %v1005_v12  ;;  %v963_v25 = vunpack.c.l.bf16 %v1040_v13 }
  0x63   :  { %v233_v23 = vmul.f32 %v1043_v20, %v816_v1  ;;  %v820_v26 = vunpack.c.h.bf16 %v1005_v12  ;;  %v526_v28 = vadd.f32 %v956_v6, %v310_v19  ;;  %v311_v30 = vadd.f32 %v1044_v29, %v232_v21 }
  0x64   :  { %668 = vst [vmem:[%s1650_s4 + $0x1e8] sm:$0xff] %v596_v17  ;;  %v597_v27 = vmax.f32 %v525_v18, 0.0  ;;  %v964_v31 = vunpack.c.h.bf16 %v1040_v13  ;;  %v234_v33 = vmul.f32 %v1043_v20, %v819_v24  ;;  %v823_v35 = vunpack.c.l.bf16 %v1006_v22 }
  0x65   :  { %v312_v32 = vadd.f32 %v1044_v29, %v233_v23  ;;  %v235_v34 = vmul.f32 %v1043_v20, %v820_v26  ;;  %v598_v37 = vmax.f32 %v526_v28, 0.0  ;;  %v527_v38 = vadd.f32 %v959_v15, %v311_v30 }
  0x66   :  { %669 = vst [vmem:[%s1650_s4 + $0x1f0] sm:$0xff] %v597_v27  ;;  %v967_v39 = vunpack.c.l.bf16 %v1041_v7  ;;  %v824_v40 = vunpack.c.h.bf16 %v1006_v22  ;;  %v313_v42 = vadd.f32 %v1044_v29, %v234_v33  ;;  %v236_v44 = vmul.f32 %v1043_v20, %v823_v35 }
  0x67   :  { %v528_v41 = vadd.f32 %v960_v16, %v312_v32  ;;  %v314_v43 = vadd.f32 %v1044_v29, %v235_v34  ;;  %670 = vst [vmem:[%s1650_s4 + $0x1f8] sm:$0xff] %v598_v37  ;;  %v599_v46 = vmax.f32 %v527_v38, 0.0  ;;  %v968_v48 = vunpack.c.h.bf16 %v1041_v7 }
  0x68   :  { %v237_v47 = vmul.f32 %v1043_v20, %v824_v40  ;;  %v827_v49 = vunpack.c.l.bf16 %v1007_v36  ;;  %v529_v51 = vadd.f32 %v963_v25, %v313_v42  ;;  %v315_v53 = vadd.f32 %v1044_v29, %v236_v44 }
  0x69   :  { %v600_v50 = vmax.f32 %v528_v41, 0.0  ;;  %v530_v52 = vadd.f32 %v964_v31, %v314_v43  ;;  %671 = vst [vmem:[%s1650_s4 + $0x200] sm:$0xff] %v599_v46  ;;  %v971_v56 = vunpack.c.l.bf16 %v1042_v45  ;;  %v828_v57 = vunpack.c.h.bf16 %v1007_v36 }
  0x6a   :  { %v316_v54 = vadd.f32 %v1044_v29, %v237_v47  ;;  %v238_v55 = vmul.f32 %v1043_v20, %v827_v49  ;;  %v601_v58 = vmax.f32 %v529_v51, 0.0  ;;  %v531_v60 = vadd.f32 %v967_v39, %v315_v53 }
  0x6b   :  { %672 = vst [vmem:[%s1650_s4 + $0x208] sm:$0xff] %v600_v50  ;;  %v602_v59 = vmax.f32 %v530_v52, 0.0  ;;  %v239_v63 = vmul.f32 %v1043_v20, %v828_v57  ;;  %v972_v0 = vunpack.c.h.bf16 %v1042_v45 }
  0x6c   :  { %v532_v61 = vadd.f32 %v968_v48, %v316_v54  ;;  %v317_v62 = vadd.f32 %v1044_v29, %v238_v55  ;;  %673 = vst [vmem:[%s1650_s4 + $0x210] sm:$0xff] %v601_v58  ;;  %v603_v2 = vmax.f32 %v531_v60, 0.0 }
  0x6d   :  { %674 = vst [vmem:[%s1650_s4 + $0x218] sm:$0xff] %v602_v59  ;;  %v318_v5 = vadd.f32 %v1044_v29, %v239_v63 }
  0x6e   :  { %v604_v3 = vmax.f32 %v532_v61, 0.0  ;;  %v533_v4 = vadd.f32 %v971_v56, %v317_v62  ;;  %675 = vst [vmem:[%s1650_s4 + $0x220] sm:$0xff] %v603_v2 }
  0x6f   :  { %v534_v8 = vadd.f32 %v972_v0, %v318_v5 }
  0x70   :  { %676 = vst [vmem:[%s1650_s4 + $0x228] sm:$0xff] %v604_v3  ;;  %v605_v6 = vmax.f32 %v533_v4, 0.0 }
  0x71   :  { %v606_v9 = vmax.f32 %v534_v8, 0.0 }
  0x72   :  { %677 = vst [vmem:[%s1650_s4 + $0x230] sm:$0xff] %v605_v6 }
  0x73   :  { %678 = vst [vmem:[%s1650_s4 + $0x238] sm:$0xff] %v606_v9 }

// kernel: resblock_forward.3
= control target key start
LH: loop header
LB: loop body
LE: loop exit
PB: predicated region body
PF: predicated region fallthrough
CT: control target
= control target key end

     0   :  { %s6216_s24 = smov 0   ;;  %s7547_s0 = inlined_call_operand.vmem [shape: bf16[2,288,128], index: 0, kind: input, shape index: {}]   ;;  %s7548_s1 = inlined_call_operand.vmem [shape: bf16[1152,128], index: 1, kind: input, shape index: {}]   ;;  %s7549_s2 = inlined_call_operand.vmem [shape: f32[1,128], index: 2, kind: input, shape index: {}]   ;;  %s7550_s3 = inlined_call_operand.vmem [shape: f32[1,128], index: 3, kind: input, shape index: {}]   ;;  %s7551_s4 = inlined_call_operand.vmem [shape: f32[288,1], index: 4, kind: input, shape index: {}]   ;;  %s7552_s5 = inlined_call_operand.vmem [shape: bf16[2,288,128], index: 5, kind: output, shape index: {0}]   ;;  %s7553_s6 = inlined_call_operand.vmem [shape: f32[2,1,128], index: 6, kind: output, shape index: {1}]   ;;  %s7554_s7 = inlined_call_operand.vmem [shape: f32[2,1,128], index: 7, kind: output, shape index: {2}]  }
   0x1 LB: > { %s5204_s2 = sadd.s32 4294967295, %s6173_s24   ;;  %p5208_p0 = scmp.ge.s32.totalorder %s6173_s24, 1  ;;  %s6173_s24 = sphi %s6216_s24, %s18_s24  }
   0x2   : > { %p242_p1 = scmp.lt.s32.totalorder %s6173_s24, 3 }
   0x4   : > { %p243_p2 = pnand %p5208_p0, %p242_p1 }
   0x6   : > { %246 = sbr.rel (%p243_p2) target bundleno = 689 (0x2b1), region = 40 }
   0xd   : > { %v5910_v0 = vld [vmem:[%s7548_s1] sm:$0xff]   ;;  %v6175_v1 = vmov 0   ;;  %v5912_v3 = vld [vmem:[%s7548_s1 + $0x8] sm:$0xff]   ;;  %v5914_v5 = vld [vmem:[%s7548_s1 + $0x10] sm:$0xff]   ;;  %p280_p3 = scmp.lt.s32.totalorder %s5204_s2, 1  ;;  %vm881_vm0 = vcmask 1044480  }
   0xe   : > { %3698 = vmatprep.subr.bf16.mxu1 %v6175_v1  ;;  %370 = vst [vmem:[#allocation2 + $0x4] sm:$0xf] %v6175_v1  ;;  %371 = vst [vmem:[#allocation2 + $0x8] sm:$0xf] %v6175_v1  ;;  %3875 = vmatprep.subr.bf16.mxu0 %v6175_v1  ;;  %v5911_v2 = vld [vmem:[%s7548_s1 + $0x80] sm:$0xff]   ;;  %v5913_v4 = vld [vmem:[%s7548_s1 + $0x88] sm:$0xff]  }
   0xf   : > { %372 = vst [vmem:[#allocation2 + $0xc] sm:$0xf] %v6175_v1  ;;  %373 = vst [vmem:[#allocation2 + $0xa0] sm:$0xf] %v6175_v1  ;;  %3699 = vmatpush1.bf16.msra.mxu1 %v5910_v0  ;;  %5908 = vset.pattern.permute.xlu0 %v6175_v1  ;;  %v5915_v6 = vld [vmem:[%s7548_s1 + $0x90] sm:$0xff]   ;;  %v5916_v7 = vld [vmem:[%s7548_s1 + $0x18] sm:$0xff]  }
  0x10   : > { %374 = vst [vmem:[#allocation2 + $0xa4] sm:$0xf] %v6175_v1  ;;  %375 = vst [vmem:[#allocation2 + $0xa8] sm:$0xf] %v6175_v1  ;;  %3876 = vmatpush1.bf16.msra.mxu0 %v5911_v2  ;;  %3700 = vmatprep.subr.bf16.mxu1 %v6175_v1  ;;  %v5917_v8 = vld [vmem:[%s7548_s1 + $0x98] sm:$0xff]   ;;  %v5918_v9 = vld [vmem:[%s7548_s1 + $0x20] sm:$0xff]  }
  0x11   : > { %3877 = vmatprep.subr.bf16.mxu0 %v6175_v1  ;;  %5909 = vset.pattern.permute.xlu1 %v6175_v1  ;;  %v5919_v10 = vld [vmem:[%s7548_s1 + $0xa0] sm:$0xff]   ;;  %v5920_v11 = vld [vmem:[%s7548_s1 + $0x28] sm:$0xff]   ;;  %s7602_s2 = smov (!%p280_p3, %s5204_s2), 1  ;;  %v5922_v13 = vld [vmem:[%s7548_s1 + $0x30] sm:$0xff]   ;;  %vm1085_vm1 = vsmask.f32 4352 }
  0x12   : > { %v5921_v12 = vld [vmem:[%s7548_s1 + $0xa8] sm:$0xff]   ;;  %v5923_v14 = vld [vmem:[%s7548_s1 + $0xb0] sm:$0xff]   ;;  %s5898_s29 = smul.u32 144, %s7602_s2  ;;  %v5924_v15 = vld [vmem:[%s7548_s1 + $0x38] sm:$0xff]   ;;  %vm544_vm2 = vsmask.f32 5376  ;;  %s295_s18 = scalar_lea.vmem %s7554_s7, %s7602_s2 }
  0x13   : > { %3701 = vmatpush1.bf16.msra.mxu1 %v5912_v3  ;;  %v5925_v16 = vld [vmem:[%s7548_s1 + $0xb8] sm:$0xff]   ;;  %v5926_v17 = vld [vmem:[%s7548_s1 + $0x40] sm:$0xff]   ;;  %v5928_v21 = vld [vmem:[%s7548_s1 + $0x48] sm:$0xff]   ;;  %vm2549_vm3 = vcmask 1046528   ;;  %vm1920_vm4 = vsmask.f32 7424 }
  0x14   : > { %3878 = vmatpush1.bf16.msra.mxu0 %v5913_v4  ;;  %3702 = vmatprep.subr.bf16.mxu1 %v6175_v1  ;;  %s6308_s13 = scalar_lea.vmem %s7547_s0, %s5898_s29  ;;  %v5927_v18 = vld [vmem:[%s7548_s1 + $0xc0] sm:$0xff]   ;;  %v5929_v22 = vld [vmem:[%s7548_s1 + $0xc8] sm:$0xff]   ;;  %v5930_v24 = vld [vmem:[%s7548_s1 + $0x50] sm:$0xff]   ;;  %vm2753_vm5 = vsmask.f32 6400  ;;  %s7259_s14 = scalar_lea.vmem %s7552_s5, %s5898_s29 }
  0x15   : > { %3879 = vmatprep.subr.bf16.mxu0 %v6175_v1  ;;  %v333_v19 = vld [vmem:[%s6308_s13] sm:$0xff]   ;;  %v335_v20 = vld [vmem:[%s6308_s13 + $0x8] sm:$0xff]   ;;  %v5931_v25 = vld [vmem:[%s7548_s1 + $0xd0] sm:$0xff]  }
  0x16   : > { %378 = vst [vmem:[#allocation2 + $0x10] sm:$0xff] %v333_v19   ;;  %380 = vst [vmem:[#allocation2 + $0x18] sm:$0xff] %v335_v20   ;;  %v5942_v23 = vld [vmem:[#allocation2 + $0x4] sm:$0xf8]   ;;  %v337_v27 = vld [vmem:[%s6308_s13 + $0x10] sm:$0xff]  }
  0x17   : > { %3703 = vmatpush1.bf16.msra.mxu1 %v5914_v5  ;;  %v5946_v26 = vld [vmem:[#allocation2 + $0x4] sm:$0xfc]   ;;  %v5932_v28 = vld [vmem:[%s7548_s1 + $0x58] sm:$0xff]   ;;  %v882_v30 = vrot.slane %v5942_v23, 3  ;;  %382 = vst [vmem:[#allocation2 + $0x20] sm:$0xff] %v337_v27   ;;  %v5938_v3 = vld [vmem:[%s7548_s1 + $0x70] sm:$0xff]  }
  0x18   : > { %3880 = vmatpush1.bf16.msra.mxu0 %v5915_v6  ;;  %3704 = vmatprep.subr.bf16.mxu1 %v6175_v1  ;;  %v5933_v32 = vld [vmem:[%s7548_s1 + $0xd8] sm:$0xff]   ;;  %v5948_v37 = vld [vmem:[#allocation2 + $0x4] sm:$0xf8]   ;;  %v546_v45 = vshrl.u32 %v5946_v26, 16  ;;  %v549_v51 = vshll.u32 %v5946_v26, 16 }
  0x19   : > { %3881 = vmatprep.subr.bf16.mxu0 %v6175_v1  ;;  %v5934_v41 = vld [vmem:[%s7548_s1 + $0x60] sm:$0xff]   ;;  %v1087_v52 = vshrl.u32 %v5948_v37, 16  ;;  %v5936_v53 = vld [vmem:[%s7548_s1 + $0x68] sm:$0xff]   ;;  %v1090_v55 = vshll.u32 %v5948_v37, 16  ;;  %v5941_v20 = vld [vmem:[%s7548_s1 + $0xf8] sm:$0xff]  }
  0x1a   : > { %v5935_v46 = vld [vmem:[%s7548_s1 + $0xe0] sm:$0xff]   ;;  %v5937_v57 = vld [vmem:[%s7548_s1 + $0xe8] sm:$0xff]   ;;  %v548_v58 = vrot.slane %v546_v45, 2  ;;  %v551_v0 = vrot.slane %v549_v51, 3 }
  0x1b   : > { %3705 = vmatpush1.bf16.msra.mxu1 %v5916_v7  ;;  %v1089_v4 = vrot.slane %v1087_v52, 3  ;;  %v1092_v5 = vrot.slane %v1090_v55, 4 }
  0x1c   : > { %3882 = vmatpush1.bf16.msra.mxu0 %v5917_v8  ;;  %3706 = vmatprep.subr.bf16.mxu1 %v6175_v1  ;;  %v339_v8 = vld [vmem:[%s6308_s13 + $0x18] sm:$0xff]   ;;  %v552_v23 = vor.u32 %v551_v0, %v548_v58  ;;  %v5960_v0 = vld [vmem:[%s7548_s1 + $0x110] sm:$0xff]  }
  0x1d   : > { %3883 = vmatprep.subr.bf16.mxu0 %v6175_v1  ;;  %v6340_v29 = vld [vmem:[#allocation2 + $0xc] sm:$0xff]   ;;  %v5945_v34 = vld [vmem:[#allocation2 + $0x14] sm:$0xff]   ;;  %384 = vst [vmem:[#allocation2 + $0x28] sm:$0xff] %v339_v8  }
  0x1e   : > { %v5944_v31 = vld [vmem:[#allocation2 + $0xc] sm:$0xf8]   ;;  %v883_v33 = vrot.slane %v6340_v29, 3  ;;  %v1431_v39 = vshrl.u32 %v5945_v34, 16  ;;  %v1434_v40 = vshll.u32 %v5945_v34, 16  ;;  %v5952_v56 = vld [vmem:[#allocation2 + $0x1c] sm:$0xff]  }
  0x1f   : > { %3707 = vmatpush1.bf16.msra.mxu1 %v5918_v9  ;;  %v1423_v35 = vshrl.u32 %v5944_v31, 16  ;;  %v1426_v36 = vshll.u32 %v5944_v31, 16  ;;  %v5947_v44 = vld [vmem:[#allocation2 + $0xc] sm:$0xff]   ;;  %v5953_v2 = vld [vmem:[#allocation2 + $0x14] sm:$0xff]   ;;  %v1440_v6 = vshrl.u32 %v5952_v56, 16  ;;  %v1443_v7 = vshll.u32 %v5952_v56, 16 }
  0x20   : > { %3884 = vmatpush1.bf16.msra.mxu0 %v5919_v10  ;;  %3708 = vmatprep.subr.bf16.mxu1 %v6175_v1  ;;  %v884_v38 = vsel %vm881_vm0, %v882_v30, %v883_v33  ;;  %v1433_v47 = vrot.slane %v1431_v39, 3  ;;  %v1436_v48 = vrot.slane %v1434_v40, 4  ;;  %v5949_v49 = vld [vmem:[#allocation2 + $0xc] sm:$0xff]   ;;  %v554_v59 = vshrl.u32 %v5947_v44, 16  ;;  %v6378_v10 = vld [vmem:[#allocation2 + $0x14] sm:$0xff]   ;;  %v6397_v40 = vld [vmem:[#allocation2 + $0x1c] sm:$0xff]  }
  0x21   : > { %3885 = vmatprep.subr.bf16.mxu0 %v6175_v1  ;;  %3730 = vmatprep.mubr.bf16.mxu1 %v884_v38  ;;  %v1425_v42 = vrot.slane %v1423_v35, 3  ;;  %v1428_v43 = vrot.slane %v1426_v36, 4  ;;  %v557_v60 = vshll.u32 %v5947_v44, 16  ;;  %v1095_v62 = vshrl.u32 %v5949_v49, 16  ;;  %v5939_v9 = vld [vmem:[%s7548_s1 + $0xf0] sm:$0xff]   ;;  %v343_v31 = vld [vmem:[%s6308_s13 + $0x28] sm:$0xff]  }
  0x22   : > { %v6362_v54 = vor.u32 %v1436_v48, %v1433_v47  ;;  %v1098_v63 = vshll.u32 %v5949_v49, 16  ;;  %v1445_v19 = vrot.slane %v1443_v7, 4  ;;  %v885_v27 = vrot.slane %v6378_v10, 3  ;;  %388 = vst [vmem:[#allocation2 + $0x38] sm:$0xff] %v343_v31   ;;  %v5950_v36 = vld [vmem:[%s7548_s1 + $0x100] sm:$0xff]   ;;  %v5955_v56 = vld [vmem:[%s7548_s1 + $0x108] sm:$0xff]  }
  0x23   : > { %3709 = vmatpush1.bf16.msra.mxu1 %v5920_v11  ;;  %v1429_v50 = vor.u32 %v1428_v43, %v1425_v42  ;;  %v556_v11 = vrot.slane %v554_v59, 2  ;;  %v5958_v38 = vld [vmem:[#allocation2 + $0x1c] sm:$0xff]  }
  0x24   : > { %3886 = vmatpush1.bf16.msra.mxu0 %v5921_v12  ;;  %3710 = vmatprep.subr.bf16.mxu1 %v6175_v1  ;;  %v559_v12 = vrot.slane %v557_v60, 3  ;;  %v5957_v35 = vld [vmem:[#allocation2 + $0x24] sm:$0xff]   ;;  %v5959_v43 = vld [vmem:[#allocation2 + $0x1c] sm:$0xff]   ;;  %v886_v45 = vsel %vm881_vm0, %v883_v33, %v885_v27  ;;  %v572_v51 = vshrl.u32 %v5958_v38, 16  ;;  %v575_v52 = vshll.u32 %v5958_v38, 16 }
  0x25   : > { %3887 = vmatprep.subr.bf16.mxu0 %v6175_v1  ;;  %v1438_v61 = vsel %vm1085_vm1, %v1429_v50, %v6362_v54  ;;  %v1452_v42 = vshll.u32 %v5957_v35, 16  ;;  %v1113_v55 = vshrl.u32 %v5959_v43, 16  ;;  %v5970_v31 = vld [vmem:[%s7548_s1 + $0x120] sm:$0xff]  }
  0x26   : > { %3907 = vmatprep.mubr.bf16.mxu0 %v1438_v61  ;;  %v5963_v61 = vld [vmem:[#allocation2 + $0x24] sm:$0xff]  }
  0x27   : > { %3711 = vmatpush1.bf16.msra.mxu1 %v5922_v13  ;;  %v1097_v13 = vrot.slane %v1095_v62, 3  ;;  %v1454_v50 = vrot.slane %v1452_v42, 4  ;;  %v574_v62 = vrot.slane %v572_v51, 2  ;;  %v5975_v51 = vld [vmem:[%s7548_s1 + $0x128] sm:$0xff]  }
  0x28   : > { %3888 = vmatpush1.bf16.msra.mxu0 %v5923_v14  ;;  %3712 = vmatprep.subr.bf16.mxu1 %v6175_v1  ;;  %v1100_v14 = vrot.slane %v1098_v63, 4  ;;  %v577_v63 = vrot.slane %v575_v52, 3 }
  0x29   : > { %3889 = vmatprep.subr.bf16.mxu0 %v6175_v1 }
  0x2a   : > { %v1101_v26 = vor.u32 %v1100_v14, %v1097_v13  ;;  %v581_v13 = vshrl.u32 %v5963_v61, 16  ;;  %v345_v14 = vld [vmem:[%s6308_s13 + $0x30] sm:$0xff]  }
  0x2b   : > { %3713 = vmatpush1.bf16.msra.mxu1 %v5924_v15  ;;  %v563_v15 = vshrl.u32 %v5953_v2, 16  ;;  %390 = vst [vmem:[#allocation2 + $0x40] sm:$0xff] %v345_v14  }
  0x2c   : > { %3890 = vmatpush1.bf16.msra.mxu0 %v5925_v16  ;;  %3714 = vmatprep.subr.bf16.mxu1 %v6175_v1  ;;  %v5954_v16 = vld [vmem:[#allocation2 + $0x14] sm:$0xff]  }
  0x2d   : > { %3891 = vmatprep.subr.bf16.mxu0 %v6175_v1  ;;  %v1107_v30 = vshll.u32 %v5954_v16, 16  ;;  %v565_v34 = vrot.slane %v563_v15, 2  ;;  %v584_v15 = vshll.u32 %v5963_v61, 16 }
  0x2f   : > { %3715 = vmatpush1.bf16.msra.mxu1 %v5926_v17  ;;  %v5940_v17 = vld [vmem:[%s7548_s1 + $0x78] sm:$0xff]   ;;  %v1109_v47 = vrot.slane %v1107_v30, 4 }
  0x30   : > { %3892 = vmatpush1.bf16.msra.mxu0 %v5927_v18  ;;  %3716 = vmatprep.subr.bf16.mxu1 %v6175_v1  ;;  %v1442_v18 = vrot.slane %v1440_v6, 3 }
  0x31   : > { %3893 = vmatprep.subr.bf16.mxu0 %v6175_v1 }
  0x33   : > { %3717 = vmatpush1.bf16.msra.mxu1 %v5928_v21  ;;  %v566_v21 = vshll.u32 %v5953_v2, 16  ;;  %v5964_v2 = vld [vmem:[#allocation2 + $0x24] sm:$0xff]  }
  0x34   : > { %3894 = vmatpush1.bf16.msra.mxu0 %v5929_v22  ;;  %3718 = vmatprep.subr.bf16.mxu1 %v6175_v1  ;;  %v341_v22 = vld [vmem:[%s6308_s13 + $0x20] sm:$0xff]  }
  0x35   : > { %3895 = vmatprep.subr.bf16.mxu0 %v6175_v1  ;;  %386 = vst [vmem:[#allocation2 + $0x30] sm:$0xff] %v341_v22   ;;  %v568_v37 = vrot.slane %v566_v21, 3 }
  0x37   : > { %3719 = vmatpush1.bf16.msra.mxu1 %v5930_v24  ;;  %v560_v24 = vor.u32 %v559_v12, %v556_v11  ;;  %v569_v29 = vor.u32 %v568_v37, %v565_v34 }
  0x38   : > { %3896 = vmatpush1.bf16.msra.mxu0 %v5931_v25  ;;  %3720 = vmatprep.subr.bf16.mxu1 %v6175_v1  ;;  %v1093_v25 = vor.u32 %v1092_v5, %v1089_v4  ;;  %v1115_v4 = vrot.slane %v1113_v55, 3  ;;  %v6416_v5 = vld [vmem:[#allocation2 + $0x24] sm:$0xff]  }
  0x39   : > { %3897 = vmatprep.subr.bf16.mxu0 %v6175_v1  ;;  %v561_v39 = vsel %vm544_vm2, %v552_v23, %v560_v24  ;;  %v889_v21 = vrot.slane %v6416_v5, 3 }
  0x3a   : > { %v1102_v44 = vsel %vm1085_vm1, %v1093_v25, %v1101_v26 }
  0x3b   : > { %3721 = vmatpush1.bf16.msra.mxu1 %v5932_v28  ;;  %v1104_v28 = vshrl.u32 %v5954_v16, 16  ;;  %v1122_v16 = vshrl.u32 %v5964_v2, 16 }
  0x3c   : > { %3898 = vmatpush1.bf16.msra.mxu0 %v5933_v32  ;;  %3722 = vmatprep.subr.bf16.mxu1 %v6175_v1  ;;  %v1446_v32 = vor.u32 %v1445_v19, %v1442_v18  ;;  %v1125_v18 = vshll.u32 %v5964_v2, 16  ;;  %v5965_v19 = vld [vmem:[%s7548_s1 + $0x118] sm:$0xff]   ;;  %v6428_v25 = vld [vmem:[#allocation2 + $0x2c] sm:$0xff]  }
  0x3d   : > { %3899 = vmatprep.subr.bf16.mxu0 %v6175_v1  ;;  %v5968_v30 = vld [vmem:[#allocation2 + $0x2c] sm:$0xff]  }
  0x3e   : > { %v1447_v48 = vsel %vm1085_vm1, %v6362_v54, %v1446_v32  ;;  %v1116_v54 = vshll.u32 %v5959_v43, 16  ;;  %v5972_v43 = vld [vmem:[#allocation2 + $0x3c] sm:$0xff]  }
  0x3f   : > { %3723 = vmatpush1.bf16.msra.mxu1 %v5934_v41  ;;  %v1449_v41 = vshrl.u32 %v5957_v35, 16  ;;  %v1127_v35 = vrot.slane %v1125_v18, 4 }
  0x40   : > { %3900 = vmatpush1.bf16.msra.mxu0 %v5935_v46  ;;  %3724 = vmatprep.subr.bf16.mxu1 %v6175_v1  ;;  %v1106_v46 = vrot.slane %v1104_v28, 3  ;;  %v1118_v8 = vrot.slane %v1116_v54, 4  ;;  %v1124_v28 = vrot.slane %v1122_v16, 3  ;;  %v5978_v16 = vld [vmem:[#allocation2 + $0x3c] sm:$0xff]  }
  0x41   : > { %3901 = vmatprep.subr.bf16.mxu0 %v6175_v1  ;;  %v1451_v49 = vrot.slane %v1449_v41, 3 }
  0x42   : > { %v1110_v33 = vor.u32 %v1109_v47, %v1106_v46  ;;  %v891_v46 = vrot.slane %v6428_v25, 3  ;;  %v593_v47 = vshll.u32 %v5968_v30, 16 }
  0x43   : > { %3725 = vmatpush1.bf16.msra.mxu1 %v5936_v53  ;;  %v5962_v53 = vld [vmem:[#allocation2 + $0x2c] sm:$0xff]   ;;  %v1455_v58 = vor.u32 %v1454_v50, %v1451_v49  ;;  %v1128_v49 = vor.u32 %v1127_v35, %v1124_v28  ;;  %v611_v35 = vshll.u32 %v5978_v16, 16 }
  0x44   : > { %3902 = vmatpush1.bf16.msra.mxu0 %v5937_v57  ;;  %3726 = vmatprep.subr.bf16.mxu1 %v6175_v1  ;;  %v887_v57 = vrot.slane %v6397_v40, 3  ;;  %v1458_v59 = vshrl.u32 %v5962_v53, 16  ;;  %v1461_v60 = vshll.u32 %v5962_v53, 16  ;;  %v1111_v6 = vsel %vm1085_vm1, %v1101_v26, %v1110_v33  ;;  %v349_v40 = vld [vmem:[%s6308_s13 + $0x40] sm:$0xff]  }
  0x45   : > { %3903 = vmatprep.subr.bf16.mxu0 %v6175_v1  ;;  %v1456_v10 = vsel %vm1085_vm1, %v1446_v32, %v1455_v58  ;;  %v347_v32 = vld [vmem:[%s6308_s13 + $0x38] sm:$0xff]   ;;  %394 = vst [vmem:[#allocation2 + $0x50] sm:$0xff] %v349_v40   ;;  %v1476_v53 = vshrl.u32 %v5972_v43, 16  ;;  %v595_v54 = vrot.slane %v593_v47, 3  ;;  %v353_v40 = vld [vmem:[%s6308_s13 + $0x50] sm:$0xff]  }
  0x46   : > { %v888_v7 = vsel %vm881_vm0, %v885_v27, %v887_v57  ;;  %v1460_v11 = vrot.slane %v1458_v59, 3  ;;  %v1463_v12 = vrot.slane %v1461_v60, 4  ;;  %v586_v27 = vrot.slane %v584_v15, 3  ;;  %392 = vst [vmem:[#allocation2 + $0x48] sm:$0xff] %v347_v32   ;;  %v5990_v32 = vld [vmem:[%s7548_s1 + $0x138] sm:$0xff]   ;;  %398 = vst [vmem:[#allocation2 + $0x60] sm:$0xff] %v353_v40  }
  0x47   : > { %3727 = vmatpush1.bf16.msra.mxu1 %v5938_v3  ;;  %v570_v3 = vsel %vm544_vm2, %v560_v24, %v569_v29  ;;  %v583_v24 = vrot.slane %v581_v13, 2  ;;  %v890_v38 = vsel %vm881_vm0, %v887_v57, %v889_v21  ;;  %v892_v60 = vsel %vm881_vm0, %v889_v21, %v891_v46 }
  0x48   : > { %3904 = vmatpush1.bf16.msra.mxu0 %v5939_v9  ;;  %3728 = vmatprep.subr.bf16.mxu1 %v6175_v1  ;;  %v5967_v9 = vld [vmem:[#allocation2 + $0x34] sm:$0xff]   ;;  %v1464_v23 = vor.u32 %v1463_v12, %v1460_v11 }
  0x49   : > { %3905 = vmatprep.subr.bf16.mxu0 %v6175_v1  ;;  %v1467_v22 = vshrl.u32 %v5967_v9, 16  ;;  %v1470_v26 = vshll.u32 %v5967_v9, 16 }
  0x4a   : > { %v1465_v41 = vsel %vm1085_vm1, %v1455_v58, %v1464_v23  ;;  %v5974_v58 = vld [vmem:[#allocation2 + $0x34] sm:$0xff]  }
  0x4b   : > { %3729 = vmatpush1.bf16.msra.mxu1 %v5940_v17  ;;  %v578_v17 = vor.u32 %v577_v63, %v574_v62  ;;  %v1472_v42 = vrot.slane %v1470_v26, 4  ;;  %v1140_v9 = vshrl.u32 %v5974_v58, 16 }
  0x4c   : > { %3906 = vmatpush1.bf16.msra.mxu0 %v5941_v20  ;;  %5712 = vmatprep.subr.bf16.mxu1 %v6175_v1  ;;  %v1119_v20 = vor.u32 %v1118_v8, %v1115_v4 }
  0x4d   : > { %4052 = vmatprep.subr.bf16.mxu0 %v6175_v1  ;;  %v579_v34 = vsel %vm544_vm2, %v569_v29, %v578_v17  ;;  %v1479_v29 = vshll.u32 %v5972_v43, 16  ;;  %v5977_v63 = vld [vmem:[#allocation2 + $0x44] sm:$0xff]   ;;  %v5981_v28 = vld [vmem:[#allocation2 + $0x4c] sm:$0xff]  }
  0x4e   : > { %3731 = vmatmul.mubr.bf16.vlgmr.msra.gmra.mrb[0].mxu1 %v561_v39  ;;  %v1120_v37 = vsel %vm1085_vm1, %v1110_v33, %v1119_v20  ;;  %v1469_v39 = vrot.slane %v1467_v22, 3  ;;  %v6445_v33 = vld [vmem:[#allocation2 + $0x34] sm:$0xff]   ;;  %v1129_v59 = vsel %vm1085_vm1, %v1119_v20, %v1128_v49  ;;  %v1485_v13 = vshrl.u32 %v5977_v63, 16  ;;  %v5983_v43 = vld [vmem:[#allocation2 + $0x44] sm:$0xff]  }
  0x4f   : > { %3908 = vmatmul.mubr.bf16.vlgmr.msra.gmra.mrb[0].mxu0 %v1102_v44  ;;  %3738 = vmatprep.mubr.bf16.mxu1 %v886_v45  ;;  %v590_v44 = vshrl.u32 %v5968_v30, 16  ;;  %v587_v45 = vor.u32 %v586_v27, %v583_v24  ;;  %v1481_v4 = vrot.slane %v1479_v29, 4  ;;  %v893_v12 = vrot.slane %v6445_v33, 3  ;;  %v6463_v24 = vld [vmem:[#allocation2 + $0x3c] sm:$0xff]  }
  0x50   : > { %4053 = vmatpush1.bf16.msra.mxu0 %v5950_v36  ;;  %3915 = vmatprep.mubr.bf16.mxu0 %v1447_v48  ;;  %v5969_v36 = vld [vmem:[#allocation2 + $0x2c] sm:$0xff]   ;;  %v1473_v52 = vor.u32 %v1472_v42, %v1469_v39  ;;  %v1488_v15 = vshll.u32 %v5977_v63, 16  ;;  %v1142_v22 = vrot.slane %v1140_v9, 3  ;;  %v1487_v27 = vrot.slane %v1485_v13, 3 }
  0x51   : > { %4054 = vmatprep.subr.bf16.mxu0 %v6175_v1  ;;  %v1131_v48 = vshrl.u32 %v5969_v36, 16  ;;  %v1134_v50 = vshll.u32 %v5969_v36, 16  ;;  %v592_v55 = vrot.slane %v590_v44, 2  ;;  %v588_v57 = vsel %vm544_vm2, %v578_v17, %v587_v45  ;;  %v351_v17 = vld [vmem:[%s6308_s13 + $0x48] sm:$0xff]   ;;  %v5996_v44 = vld [vmem:[%s7548_s1 + $0x140] sm:$0xff]  }
  0x52   : > { %v1474_v2 = vsel %vm1085_vm1, %v1464_v23, %v1473_v52  ;;  %396 = vst [vmem:[#allocation2 + $0x58] sm:$0xff] %v351_v17   ;;  %v894_v26 = vsel %vm881_vm0, %v891_v46, %v893_v12  ;;  %v895_v42 = vrot.slane %v6463_v24, 3  ;;  %v1494_v46 = vshrl.u32 %v5981_v28, 16  ;;  %v5989_v13 = vld [vmem:[#allocation2 + $0x4c] sm:$0xff]  }
  0x53   : > { %v1133_v61 = vrot.slane %v1131_v48, 3  ;;  %v1136_v62 = vrot.slane %v1134_v50, 4  ;;  %v596_v8 = vor.u32 %v595_v54, %v592_v55  ;;  %v1497_v47 = vshll.u32 %v5981_v28, 16  ;;  %v5984_v50 = vld [vmem:[#allocation2 + $0x44] sm:$0xff]   ;;  %v5997_v54 = vld [vmem:[%s7548_s1 + $0x190] sm:$0xff]  }
  0x54   : > { %4055 = vmatpush1.bf16.msra.mxu0 %v5955_v56  ;;  %v5973_v56 = vld [vmem:[#allocation2 + $0x34] sm:$0xff]  }
  0x55   : > { %4056 = vmatprep.subr.bf16.mxu0 %v6175_v1  ;;  %v599_v5 = vshrl.u32 %v5973_v56, 16  ;;  %v1137_v11 = vor.u32 %v1136_v62, %v1133_v61  ;;  %v597_v20 = vsel %vm544_vm2, %v587_v45, %v596_v8  ;;  %v620_v61 = vshll.u32 %v5983_v43, 16 }
  0x56   : > { %3739 = vmatmul.mubr.bf16.gmra.mrb[4].mxu1 %v570_v3  ;;  %v1478_v3 = vrot.slane %v1476_v53, 3  ;;  %v1158_v62 = vshrl.u32 %v5984_v50, 16 }
  0x57   : > { %3916 = vmatmul.mubr.bf16.gmra.mrb[4].mxu0 %v1111_v6  ;;  %3746 = vmatprep.mubr.bf16.mxu1 %v888_v7  ;;  %v602_v6 = vshll.u32 %v5973_v56, 16  ;;  %v5985_v7 = vld [vmem:[%s7548_s1 + $0x180] sm:$0xff]   ;;  %v601_v18 = vrot.slane %v599_v5, 2  ;;  %v1138_v25 = vsel %vm1085_vm1, %v1128_v49, %v1137_v11  ;;  %v896_v56 = vsel %vm881_vm0, %v893_v12, %v895_v42 }
  0x58   : > { %3923 = vmatprep.mubr.bf16.mxu0 %v1456_v10  ;;  %4057 = vmatpush1.bf16.msra.mxu0 %v5960_v0  ;;  %v5982_v0 = vld [vmem:[%s7548_s1 + $0x130] sm:$0xff]   ;;  %v1143_v10 = vshll.u32 %v5974_v58, 16  ;;  %v1482_v14 = vor.u32 %v1481_v4, %v1478_v3  ;;  %v6480_v49 = vld [vmem:[#allocation2 + $0x44] sm:$0xff]   ;;  %v622_v9 = vrot.slane %v620_v61, 3  ;;  %v1160_v12 = vrot.slane %v1158_v62, 3 }
  0x59   : > { %4058 = vmatprep.subr.bf16.mxu0 %v6175_v1  ;;  %5728 = vmatpush1.bf16.msra.mxu1 %v5985_v7  ;;  %v604_v21 = vrot.slane %v602_v6, 3  ;;  %v5987_v55 = vld [vmem:[#allocation2 + $0x54] sm:$0xff]   ;;  %v5988_v3 = vld [vmem:[#allocation2 + $0x4c] sm:$0xff]   ;;  %v897_v5 = vrot.slane %v6480_v49, 3 }
  0x5a   : > { %5713 = vmatprep.subr.bf16.mxu1 %v6175_v1  ;;  %v1145_v23 = vrot.slane %v1143_v10, 4  ;;  %v1483_v30 = vsel %vm1085_vm1, %v1473_v52, %v1482_v14  ;;  %v613_v52 = vrot.slane %v611_v35, 3  ;;  %v1503_v6 = vshrl.u32 %v5987_v55, 16  ;;  %v5994_v28 = vld [vmem:[#allocation2 + $0x54] sm:$0xff]  }
  0x5b   : > { %v1506_v10 = vshll.u32 %v5987_v55, 16  ;;  %v626_v17 = vshrl.u32 %v5988_v3, 16  ;;  %v6008_v35 = vld [vmem:[%s7548_s1 + $0x150] sm:$0xff]   ;;  %v635_v49 = vshrl.u32 %v5994_v28, 16 }
  0x5c   : > { %4059 = vmatpush1.bf16.msra.mxu0 %v5965_v19  ;;  %v5979_v19 = vld [vmem:[#allocation2 + $0x3c] sm:$0xff]  }
  0x5d   : > { %4060 = vmatprep.subr.bf16.mxu0 %v6175_v1  ;;  %v1149_v36 = vshrl.u32 %v5979_v19, 16  ;;  %v1152_v39 = vshll.u32 %v5979_v19, 16  ;;  %v1508_v24 = vrot.slane %v1506_v10, 4  ;;  %v637_v61 = vrot.slane %v635_v49, 2  ;;  %v6014_v10 = vld [vmem:[%s7548_s1 + $0x158] sm:$0xff]  }
  0x5e   : > { %3747 = vmatmul.mubr.bf16.gmra.mrb[8].mxu1 %v579_v34  ;;  %v608_v34 = vshrl.u32 %v5978_v16, 16 }
  0x5f   : > { %3924 = vmatmul.mubr.bf16.gmra.mrb[8].mxu0 %v1120_v37  ;;  %3754 = vmatprep.mubr.bf16.mxu1 %v890_v38  ;;  %v5991_v37 = vld [vmem:[%s7548_s1 + $0x188] sm:$0xff]   ;;  %v605_v38 = vor.u32 %v604_v21, %v601_v18  ;;  %v1151_v53 = vrot.slane %v1149_v36, 3  ;;  %v1154_v29 = vrot.slane %v1152_v39, 4  ;;  %v1505_v21 = vrot.slane %v1503_v6, 3 }
  0x60   : > { %3931 = vmatprep.mubr.bf16.mxu0 %v1465_v41  ;;  %4061 = vmatpush1.bf16.msra.mxu0 %v5970_v31  ;;  %v1490_v31 = vrot.slane %v1488_v15, 4  ;;  %v1146_v41 = vor.u32 %v1145_v23, %v1142_v22  ;;  %v610_v48 = vrot.slane %v608_v34, 2  ;;  %v6002_v18 = vld [vmem:[%s7548_s1 + $0x148] sm:$0xff]   ;;  %v629_v22 = vshll.u32 %v5988_v3, 16 }
  0x61   : > { %4062 = vmatprep.subr.bf16.mxu0 %v6175_v1  ;;  %5729 = vmatpush1.bf16.msra.mxu1 %v5991_v37  ;;  %v1155_v4 = vor.u32 %v1154_v29, %v1151_v53  ;;  %v628_v34 = vrot.slane %v626_v17, 2  ;;  %v1509_v37 = vor.u32 %v1508_v24, %v1505_v21  ;;  %v638_v29 = vshll.u32 %v5994_v28, 16 }
  0x62   : > { %v1491_v45 = vor.u32 %v1490_v31, %v1487_v27  ;;  %5714 = vmatprep.subr.bf16.mxu1 %v6175_v1  ;;  %v1147_v33 = vsel %vm1085_vm1, %v1137_v11, %v1146_v41  ;;  %v614_v63 = vor.u32 %v613_v52, %v610_v48  ;;  %v355_v11 = vld [vmem:[%s6308_s13 + $0x58] sm:$0xff]   ;;  %v1170_v27 = vshll.u32 %v5989_v13, 16  ;;  %v357_v31 = vld [vmem:[%s6308_s13 + $0x60] sm:$0xff]  }
  0x63   : > { %400 = vst [vmem:[#allocation2 + $0x68] sm:$0xff] %v355_v11   ;;  %v1156_v19 = vsel %vm1085_vm1, %v1146_v41, %v1155_v4  ;;  %402 = vst [vmem:[#allocation2 + $0x70] sm:$0xff] %v357_v31   ;;  %v631_v40 = vrot.slane %v629_v22, 3  ;;  %v5995_v41 = vld [vmem:[#allocation2 + $0x54] sm:$0xff]  }
  0x64   : > { %4063 = vmatpush1.bf16.msra.mxu0 %v5975_v51  ;;  %v606_v51 = vsel %vm544_vm2, %v596_v8, %v605_v38  ;;  %v1492_v58 = vsel %vm1085_vm1, %v1482_v14, %v1491_v45  ;;  %v615_v14 = vsel %vm544_vm2, %v605_v38, %v614_v63  ;;  %v1176_v55 = vshrl.u32 %v5995_v41, 16  ;;  %v6020_v31 = vld [vmem:[%s7548_s1 + $0x1b0] sm:$0xff]  }
  0x65   : > { %4064 = vmatprep.subr.bf16.mxu0 %v6175_v1  ;;  %5730 = vmatpush1.bf16.msra.mxu1 %v5997_v54  ;;  %v6000_v54 = vld [vmem:[#allocation2 + $0x5c] sm:$0xff]  }
  0x66   : > { %3755 = vmatmul.mubr.bf16.gmra.mrb[12].mxu1 %v588_v57  ;;  %v617_v57 = vshrl.u32 %v5983_v43, 16  ;;  %5715 = vmatprep.subr.bf16.mxu1 %v6175_v1 }
  0x67   : > { %3932 = vmatmul.mubr.bf16.gmra.mrb[12].mxu0 %v1129_v59  ;;  %3762 = vmatprep.mubr.bf16.mxu1 %v892_v60  ;;  %v1496_v59 = vrot.slane %v1494_v46, 3  ;;  %v1499_v60 = vrot.slane %v1497_v47, 4 }
  0x68   : > { %3939 = vmatprep.mubr.bf16.mxu0 %v1474_v2  ;;  %4065 = vmatpush1.bf16.msra.mxu0 %v5982_v0  ;;  %v1161_v0 = vshll.u32 %v5984_v50, 16  ;;  %v6491_v2 = vld [vmem:[#allocation2 + $0x4c] sm:$0xff]   ;;  %v619_v8 = vrot.slane %v617_v57, 2  ;;  %v6009_v50 = vld [vmem:[%s7548_s1 + $0x1a0] sm:$0xff]   ;;  %v632_v57 = vor.u32 %v631_v40, %v628_v34 }
  0x69   : > { %4066 = vmatprep.subr.bf16.mxu0 %v6175_v1  ;;  %v1500_v7 = vor.u32 %v1499_v60, %v1496_v59  ;;  %v899_v16 = vrot.slane %v6491_v2, 3 }
  0x6a   : > { %v1163_v15 = vrot.slane %v1161_v0, 4  ;;  %v5999_v46 = vld [vmem:[#allocation2 + $0x64] sm:$0xff]   ;;  %v640_v0 = vrot.slane %v638_v29, 3 }
  0x6b   : > { %v1501_v23 = vsel %vm1085_vm1, %v1491_v45, %v1500_v7  ;;  %v6515_v45 = vld [vmem:[#allocation2 + $0x54] sm:$0xff]   ;;  %v900_v48 = vsel %vm881_vm0, %v897_v5, %v899_v16  ;;  %v1521_v62 = vshrl.u32 %v5999_v46, 16  ;;  %v1524_v3 = vshll.u32 %v5999_v46, 16  ;;  %v6006_v24 = vld [vmem:[#allocation2 + $0x64] sm:$0xff]  }
  0x6c   : > { %4067 = vmatpush1.bf16.msra.mxu0 %v5990_v32  ;;  %v623_v32 = vor.u32 %v622_v9, %v619_v8  ;;  %v1164_v36 = vor.u32 %v1163_v15, %v1160_v12  ;;  %v901_v60 = vrot.slane %v6515_v45, 3  ;;  %v644_v9 = vshrl.u32 %v6000_v54, 16  ;;  %v6007_v28 = vld [vmem:[#allocation2 + $0x64] sm:$0xff]   ;;  %v363_v46 = vld [vmem:[%s6308_s13 + $0x78] sm:$0xff]  }
  0x6d   : > { %4068 = vmatprep.subr.bf16.mxu0 %v6175_v1  ;;  %v1526_v17 = vrot.slane %v1524_v3, 4  ;;  %v641_v2 = vor.u32 %v640_v0, %v637_v61  ;;  %v1197_v49 = vshll.u32 %v6007_v28, 16  ;;  %408 = vst [vmem:[#allocation2 + $0x88] sm:$0xff] %v363_v46  }
  0x6e   : > { %3763 = vmatmul.mubr.bf16.gmra.mrb[16].mxu1 %v597_v20  ;;  %v898_v20 = vsel %vm881_vm0, %v895_v42, %v897_v5  ;;  %v624_v42 = vsel %vm544_vm2, %v614_v63, %v623_v32  ;;  %v1165_v47 = vsel %vm1085_vm1, %v1155_v4, %v1164_v36  ;;  %v1178_v4 = vrot.slane %v1176_v55, 3  ;;  %v6567_v55 = vld [vmem:[#allocation2 + $0x6c] sm:$0xff]  }
  0x6f   : > { %3940 = vmatmul.mubr.bf16.gmra.mrb[16].mxu0 %v1138_v25  ;;  %3770 = vmatprep.mubr.bf16.mxu1 %v894_v26  ;;  %v5993_v25 = vld [vmem:[#allocation2 + $0x5c] sm:$0xff]   ;;  %v1167_v26 = vshrl.u32 %v5989_v13, 16  ;;  %v633_v8 = vsel %vm544_vm2, %v623_v32, %v632_v57  ;;  %v902_v12 = vsel %vm881_vm0, %v899_v16, %v901_v60  ;;  %v1523_v13 = vrot.slane %v1521_v62, 3 }
  0x70   : > { %3947 = vmatprep.mubr.bf16.mxu0 %v1483_v30  ;;  %4069 = vmatpush1.bf16.msra.mxu0 %v5996_v44  ;;  %v6003_v30 = vld [vmem:[%s7548_s1 + $0x198] sm:$0xff]   ;;  %v1512_v38 = vshrl.u32 %v5993_v25, 16  ;;  %v1515_v39 = vshll.u32 %v5993_v25, 16  ;;  %v1172_v44 = vrot.slane %v1170_v27, 4  ;;  %v642_v32 = vsel %vm544_vm2, %v632_v57, %v641_v2  ;;  %v6027_v62 = vld [vmem:[%s7548_s1 + $0x1c0] sm:$0xff]  }
  0x71   : > { %4070 = vmatprep.subr.bf16.mxu0 %v6175_v1  ;;  %5731 = vmatpush1.bf16.msra.mxu1 %v6003_v30  ;;  %v1169_v43 = vrot.slane %v1167_v26, 3  ;;  %v1527_v25 = vor.u32 %v1526_v17, %v1523_v13  ;;  %v646_v26 = vrot.slane %v644_v9, 2  ;;  %v1199_v61 = vrot.slane %v1197_v49, 4  ;;  %v6028_v13 = vld [vmem:[%s7548_s1 + $0x1c8] sm:$0xff]  }
  0x72   : > { %5716 = vmatprep.subr.bf16.mxu1 %v6175_v1  ;;  %v1514_v52 = vrot.slane %v1512_v38, 3  ;;  %v1517_v53 = vrot.slane %v1515_v39, 4 }
  0x73   : > { %v1173_v59 = vor.u32 %v1172_v44, %v1169_v43  ;;  %v6022_v43 = vld [vmem:[%s7548_s1 + $0x1b8] sm:$0xff]  }
  0x74   : > { %4071 = vmatpush1.bf16.msra.mxu0 %v6002_v18  ;;  %v1518_v63 = vor.u32 %v1517_v53, %v1514_v52  ;;  %v6015_v18 = vld [vmem:[%s7548_s1 + $0x1a8] sm:$0xff]  }
  0x75   : > { %4072 = vmatprep.subr.bf16.mxu0 %v6175_v1  ;;  %5732 = vmatpush1.bf16.msra.mxu1 %v6009_v50  ;;  %v1174_v11 = vsel %vm1085_vm1, %v1164_v36, %v1173_v59  ;;  %v6550_v36 = vld [vmem:[#allocation2 + $0x64] sm:$0xff]   ;;  %v6012_v52 = vld [vmem:[#allocation2 + $0x6c] sm:$0xff]  }
  0x76   : > { %3771 = vmatmul.mubr.bf16.gmra.mrb[20].mxu1 %v606_v51  ;;  %v1510_v51 = vsel %vm1085_vm1, %v1500_v7, %v1509_v37  ;;  %5717 = vmatprep.subr.bf16.mxu1 %v6175_v1  ;;  %v6001_v7 = vld [vmem:[#allocation2 + $0x5c] sm:$0xff]   ;;  %v1519_v15 = vsel %vm1085_vm1, %v1509_v37, %v1518_v63  ;;  %v1528_v44 = vsel %vm1085_vm1, %v1518_v63, %v1527_v25  ;;  %v662_v0 = vshrl.u32 %v6012_v52, 16 }
  0x77   : > { %3948 = vmatmul.mubr.bf16.gmra.mrb[20].mxu0 %v1147_v33  ;;  %3778 = vmatprep.mubr.bf16.mxu1 %v896_v56  ;;  %v1179_v33 = vshll.u32 %v5995_v41, 16  ;;  %v6525_v56 = vld [vmem:[#allocation2 + $0x5c] sm:$0xff]   ;;  %v1185_v21 = vshrl.u32 %v6001_v7, 16  ;;  %v1188_v16 = vshll.u32 %v6001_v7, 16  ;;  %v653_v41 = vshrl.u32 %v6006_v24, 16 }
  0x78   : > { %3955 = vmatprep.mubr.bf16.mxu0 %v1492_v58  ;;  %4073 = vmatpush1.bf16.msra.mxu0 %v6008_v35  ;;  %v359_v58 = vld [vmem:[%s6308_s13 + $0x68] sm:$0xff]   ;;  %v903_v6 = vrot.slane %v6525_v56, 3  ;;  %v6021_v37 = vld [vmem:[%s7548_s1 + $0x160] sm:$0xff]   ;;  %v665_v3 = vshll.u32 %v6012_v52, 16  ;;  %v907_v56 = vrot.slane %v6567_v55, 3 }
  0x79   : > { %4074 = vmatprep.subr.bf16.mxu0 %v6175_v1  ;;  %404 = vst [vmem:[#allocation2 + $0x78] sm:$0xff] %v359_v58   ;;  %v1181_v5 = vrot.slane %v1179_v33, 4  ;;  %5733 = vmatpush1.bf16.msra.mxu1 %v6015_v18  ;;  %v1187_v34 = vrot.slane %v1185_v21, 3  ;;  %v1190_v35 = vrot.slane %v1188_v16, 4  ;;  %v655_v29 = vrot.slane %v653_v41, 2  ;;  %v6013_v33 = vld [vmem:[#allocation2 + $0x6c] sm:$0xff]  }
  0x7a   : > { %5718 = vmatprep.subr.bf16.mxu1 %v6175_v1  ;;  %v904_v39 = vsel %vm881_vm0, %v901_v60, %v903_v6  ;;  %v1203_v7 = vshrl.u32 %v6013_v33, 16  ;;  %v6029_v18 = vld [vmem:[%s7548_s1 + $0x168] sm:$0xff]  }
  0x7b   : > { %v1182_v22 = vor.u32 %v1181_v5, %v1178_v4  ;;  %v1191_v53 = vor.u32 %v1190_v35, %v1187_v34 }
  0x7c   : > { %4075 = vmatpush1.bf16.msra.mxu0 %v6014_v10 }
  0x7d   : > { %4076 = vmatprep.subr.bf16.mxu0 %v6175_v1  ;;  %v1183_v38 = vsel %vm1085_vm1, %v1173_v59, %v1182_v22  ;;  %5734 = vmatpush1.bf16.msra.mxu1 %v6020_v31  ;;  %v1192_v4 = vsel %vm1085_vm1, %v1182_v22, %v1191_v53 }
  0x7e   : > { %3779 = vmatmul.mubr.bf16.gmra.mrb[24].mxu1 %v615_v14  ;;  %v6005_v14 = vld [vmem:[#allocation2 + $0x6c] sm:$0xff]   ;;  %5719 = vmatprep.subr.bf16.mxu1 %v6175_v1 }
  0x7f   : > { %3956 = vmatmul.mubr.bf16.gmra.mrb[24].mxu0 %v1156_v19  ;;  %3786 = vmatprep.mubr.bf16.mxu1 %v898_v20  ;;  %v647_v19 = vshll.u32 %v6000_v54, 16  ;;  %v361_v20 = vld [vmem:[%s6308_s13 + $0x70] sm:$0xff]   ;;  %v1533_v27 = vshll.u32 %v6005_v14, 16 }
  0x80   : > { %3963 = vmatprep.mubr.bf16.mxu0 %v1501_v23  ;;  %406 = vst [vmem:[#allocation2 + $0x80] sm:$0xff] %v361_v20   ;;  %v1530_v23 = vshrl.u32 %v6005_v14, 16  ;;  %4077 = vmatpush1.bf16.msra.mxu0 %v6021_v37  ;;  %v664_v14 = vrot.slane %v662_v0, 2  ;;  %v6018_v17 = vld [vmem:[#allocation2 + $0x74] sm:$0xff]   ;;  %v1205_v20 = vrot.slane %v1203_v7, 3  ;;  %v6042_v0 = vld [vmem:[%s7548_s1 + $0x1e8] sm:$0xff]  }
  0x81   : > { %v649_v30 = vrot.slane %v647_v19, 3  ;;  %v1535_v45 = vrot.slane %v1533_v27, 4  ;;  %4078 = vmatprep.subr.bf16.mxu0 %v6175_v1  ;;  %5735 = vmatpush1.bf16.msra.mxu1 %v6022_v43  ;;  %v671_v27 = vshrl.u32 %v6018_v17, 16  ;;  %v6038_v43 = vld [vmem:[%s7548_s1 + $0x170] sm:$0xff]  }
  0x82   : > { %v1532_v40 = vrot.slane %v1530_v23, 3  ;;  %5720 = vmatprep.subr.bf16.mxu1 %v6175_v1 }
  0x83   : > { %v650_v50 = vor.u32 %v649_v30, %v646_v26  ;;  %v6591_v26 = vld [vmem:[#allocation2 + $0x74] sm:$0xff]   ;;  %v673_v46 = vrot.slane %v671_v27, 2 }
  0x84   : > { %v1536_v57 = vor.u32 %v1535_v45, %v1532_v40  ;;  %4079 = vmatpush1.bf16.msra.mxu0 %v6029_v18  ;;  %v6034_v30 = vld [vmem:[%s7548_s1 + $0x1d0] sm:$0xff]   ;;  %v367_v40 = vld [vmem:[%s6308_s13 + $0x88] sm:$0xff]   ;;  %v909_v45 = vrot.slane %v6591_v26, 3 }
  0x85   : > { %v651_v63 = vsel %vm544_vm2, %v641_v2, %v650_v50  ;;  %5736 = vmatpush1.bf16.msra.mxu1 %v6027_v62  ;;  %v365_v2 = vld [vmem:[%s6308_s13 + $0x80] sm:$0xff]   ;;  %4080 = vmatprep.subr.bf16.mxu0 %v6175_v1  ;;  %412 = vst [vmem:[#allocation2 + $0x98] sm:$0xff] %v367_v40   ;;  %s292_s13 = scalar_lea.vmem %s7553_s6, %s7602_s2 }
  0x86   : > { %3787 = vmatmul.mubr.bf16.gmra.mrb[28].mxu1 %v624_v42  ;;  %v6011_v42 = vld [vmem:[#allocation2 + $0x74] sm:$0xff]   ;;  %v1537_v9 = vsel %vm1085_vm1, %v1527_v25, %v1536_v57  ;;  %5721 = vmatprep.subr.bf16.mxu1 %v6175_v1  ;;  %410 = vst [vmem:[#allocation2 + $0x90] sm:$0xff] %v365_v2  }
  0x87   : > { %3964 = vmatmul.mubr.bf16.gmra.mrb[28].mxu0 %v1165_v47  ;;  %3794 = vmatprep.mubr.bf16.mxu1 %v900_v48  ;;  %v656_v47 = vshll.u32 %v6006_v24, 16  ;;  %v1194_v48 = vshrl.u32 %v6007_v28, 16  ;;  %v1539_v54 = vshrl.u32 %v6011_v42, 16  ;;  %v1542_v58 = vshll.u32 %v6011_v42, 16  ;;  %v6019_v24 = vld [vmem:[#allocation2 + $0x74] sm:$0xff]   ;;  %v6024_v37 = vld [vmem:[#allocation2 + $0x84] sm:$0xff]  }
  0x88   : > { %3971 = vmatprep.mubr.bf16.mxu0 %v1510_v51  ;;  %v905_v51 = vrot.slane %v6550_v36, 3  ;;  %v674_v28 = vshll.u32 %v6018_v17, 16  ;;  %v1215_v42 = vshll.u32 %v6019_v24, 16  ;;  %v1560_v49 = vshll.u32 %v6024_v37, 16  ;;  %4081 = vmatpush1.bf16.msra.mxu0 %v6038_v43  ;;  %v6610_v52 = vld [vmem:[#allocation2 + $0x7c] sm:$0xff]   ;;  %v6641_v2 = vld [vmem:[%s7548_s1 + $0x1f0] sm:$0xff]  }
  0x89   : > { %v658_v59 = vrot.slane %v656_v47, 3  ;;  %v1196_v60 = vrot.slane %v1194_v48, 3  ;;  %v1541_v10 = vrot.slane %v1539_v54, 3  ;;  %5737 = vmatpush1.bf16.msra.mxu1 %v6028_v13  ;;  %v1557_v48 = vshrl.u32 %v6024_v37, 16  ;;  %4082 = vmatprep.subr.bf16.mxu0 %v6175_v1 }
  0x8a   : > { %v906_v5 = vsel %vm881_vm0, %v903_v6, %v905_v51  ;;  %5722 = vmatprep.subr.bf16.mxu1 %v6175_v1 }
  0x8b   : > { %v659_v6 = vor.u32 %v658_v59, %v655_v29  ;;  %v1200_v19 = vor.u32 %v1199_v61, %v1196_v60  ;;  %v6026_v59 = vld [vmem:[#allocation2 + $0x7c] sm:$0xff]   ;;  %v1559_v62 = vrot.slane %v1557_v48, 3 }
  0x8d   : > { %v660_v25 = vsel %vm544_vm2, %v650_v50, %v659_v6  ;;  %v1201_v31 = vsel %vm1085_vm1, %v1191_v53, %v1200_v19  ;;  %5738 = vmatpush1.bf16.msra.mxu1 %v6034_v30  ;;  %v676_v50 = vrot.slane %v674_v28, 3  ;;  %v6025_v53 = vld [vmem:[#allocation2 + $0x7c] sm:$0xff]   ;;  %v6031_v60 = vld [vmem:[#allocation2 + $0x8c] sm:$0xff]   ;;  %v6037_v27 = vld [vmem:[#allocation2 + $0x94] sm:$0xff]  }
  0x8e   : > { %3795 = vmatmul.mubr.bf16.gmra.mrb[32].mxu1 %v633_v8  ;;  %v1206_v8 = vshll.u32 %v6013_v33, 16  ;;  %5723 = vmatprep.subr.bf16.mxu1 %v6175_v1  ;;  %v1217_v33 = vrot.slane %v1215_v42, 4  ;;  %v680_v7 = vshrl.u32 %v6025_v53, 16  ;;  %v6049_v28 = vld [vmem:[%s7548_s1 + $0x1f8] sm:$0xff]   ;;  %v1578_v40 = vshll.u32 %v6037_v27, 16  ;;  %v6650_v42 = vld [vmem:[#allocation2 + $0x8c] sm:$0xff]  }
  0x8f   : > { %3972 = vmatmul.mubr.bf16.gmra.mrb[32].mxu0 %v1174_v11  ;;  %3802 = vmatprep.mubr.bf16.mxu1 %v902_v12  ;;  %v1544_v11 = vrot.slane %v1542_v58, 4  ;;  %v6017_v12 = vld [vmem:[#allocation2 + $0x7c] sm:$0xff]   ;;  %v910_v58 = vsel %vm881_vm0, %v907_v56, %v909_v45 }
  0x90   : > { %3979 = vmatprep.mubr.bf16.mxu0 %v1519_v15  ;;  %v667_v15 = vrot.slane %v665_v3, 3  ;;  %v1208_v16 = vrot.slane %v1206_v8, 4  ;;  %v1548_v22 = vshrl.u32 %v6017_v12, 16  ;;  %v1551_v23 = vshll.u32 %v6017_v12, 16  ;;  %v6047_v3 = vld [vmem:[%s7548_s1 + $0x178] sm:$0xff]   ;;  %v6032_v12 = vld [vmem:[#allocation2 + $0x84] sm:$0xff]  }
  0x91   : > { %v1545_v21 = vor.u32 %v1544_v11, %v1541_v10  ;;  %v683_v8 = vshll.u32 %v6025_v53, 16  ;;  %v1224_v10 = vshll.u32 %v6026_v59, 16  ;;  %v6631_v11 = vld [vmem:[#allocation2 + $0x84] sm:$0xff]   ;;  %4083 = vmatpush1.bf16.msra.mxu0 %v6047_v3  ;;  %v692_v30 = vshll.u32 %v6032_v12, 16 }
  0x92   : > { %v1550_v35 = vrot.slane %v1548_v22, 3  ;;  %v1553_v36 = vrot.slane %v1551_v23, 4  ;;  %v668_v41 = vor.u32 %v667_v15, %v664_v14  ;;  %4229 = vmatprep.subr.bf16.mxu0 %v6175_v1  ;;  %v6033_v15 = vld [vmem:[#allocation2 + $0x84] sm:$0xff]   ;;  %v913_v22 = vrot.slane %v6631_v11, 3 }
  0x93   : > { %v1546_v34 = vsel %vm1085_vm1, %v1536_v57, %v1545_v21  ;;  %v6041_v57 = vld [vmem:[%s7548_s1 + $0x1e0] sm:$0xff]   ;;  %v689_v23 = vshrl.u32 %v6032_v12, 16  ;;  %v1580_v53 = vrot.slane %v1578_v40, 4  ;;  %v6043_v3 = vld [vmem:[#allocation2 + $0x94] ss:$0 sps:$4 sm:$0x77]  }
  0x94   : > { %v1554_v47 = vor.u32 %v1553_v36, %v1550_v35  ;;  %v669_v29 = vsel %vm544_vm2, %v659_v6, %v668_v41  ;;  %v1569_v6 = vshll.u32 %v6031_v60, 16  ;;  %v6039_v35 = vld [vmem:[#allocation2 + $0x8c] sm:$0xff]  }
  0x95   : > { %v6056_v40 = vld [vmem:[#allocation2 + $0x48] sm:$0xff]  }
  0x96   : > { %3803 = vmatmul.mubr.bf16.gmra.mrb[36].mxu1 %v642_v32  ;;  %v908_v32 = vsel %vm881_vm0, %v905_v51, %v907_v56  ;;  %v1555_v61 = vsel %vm1085_vm1, %v1545_v21, %v1554_v47  ;;  %v1566_v56 = vshrl.u32 %v6031_v60, 16  ;;  %v1571_v26 = vrot.slane %v1569_v6, 4 }
  0x97   : > { %3980 = vmatmul.mubr.bf16.gmra.mrb[36].mxu0 %v1183_v38  ;;  %3810 = vmatprep.mubr.bf16.mxu1 %v904_v39  ;;  %v6035_v38 = vld [vmem:[%s7548_s1 + $0x1d8] sm:$0xff]   ;;  %v1212_v39 = vshrl.u32 %v6019_v24, 16 }
  0x98   : > { %3987 = vmatprep.mubr.bf16.mxu0 %v1528_v44  ;;  %v1209_v44 = vor.u32 %v1208_v16, %v1205_v20  ;;  %5739 = vmatpush1.bf16.msra.mxu1 %v6035_v38  ;;  %v685_v20 = vrot.slane %v683_v8, 3  ;;  %v1226_v16 = vrot.slane %v1224_v10, 4  ;;  %v691_v38 = vrot.slane %v689_v23, 2 }
  0x99   : > { %v1214_v51 = vrot.slane %v1212_v39, 3  ;;  %5724 = vmatprep.subr.bf16.mxu1 %v6175_v1  ;;  %v1575_v39 = vshrl.u32 %v6037_v27, 16  ;;  %v6662_v27 = vld [vmem:[#allocation2 + $0x40] sm:$0xff]  }
  0x9a   : > { %v1210_v54 = vsel %vm1085_vm1, %v1200_v19, %v1209_v44  ;;  %v682_v19 = vrot.slane %v680_v7, 2  ;;  %v6046_v7 = vld [vmem:[#allocation2 + $0x94] ss:$0 sps:$4 sm:$0xff]  }
  0x9b   : > { %v1218_v55 = vor.u32 %v1217_v33, %v1214_v51  ;;  %v701_v33 = vshll.u32 %v6039_v35, 16 }
  0x9c   : > { %5740 = vmatpush1.bf16.msra.mxu1 %v6041_v57 }
  0x9d   : > { %5725 = vmatprep.subr.bf16.mxu1 %v6175_v1  ;;  %v1219_v17 = vsel %vm1085_vm1, %v1209_v44, %v1218_v55 }
  0x9e   : > { %3811 = vmatmul.mubr.bf16.gmra.mrb[40].mxu1 %v651_v63  ;;  %v1562_v63 = vrot.slane %v1560_v49, 4  ;;  %v698_v49 = vshrl.u32 %v6039_v35, 16 }
  0x9f   : > { %3988 = vmatmul.mubr.bf16.gmra.mrb[40].mxu0 %v1192_v4  ;;  %3818 = vmatprep.mubr.bf16.mxu1 %v906_v5  ;;  %v677_v4 = vor.u32 %v676_v50, %v673_v46  ;;  %v911_v5 = vrot.slane %v6610_v52, 3  ;;  %v6044_v50 = vld [vmem:[#allocation2 + $0x9c] ss:$0 sps:$4 sm:$0xff]   ;;  %v1577_v52 = vrot.slane %v1575_v39, 3 }
  0xa0   : > { %3995 = vmatprep.mubr.bf16.mxu0 %v1537_v9  ;;  %v1221_v9 = vshrl.u32 %v6026_v59, 16  ;;  %v1563_v13 = vor.u32 %v1562_v63, %v1559_v62  ;;  %5741 = vmatpush1.bf16.msra.mxu1 %v6042_v0  ;;  %v700_v60 = vrot.slane %v698_v49, 2  ;;  %v1587_v63 = vshll.u32 %v6044_v50, 16  ;;  %v6045_v0 = vld [vmem:[#allocation2 + $0x94] ss:$0 sps:$4 sm:$0x77]  }
  0xa1   : > { %v678_v14 = vsel %vm544_vm2, %v668_v41, %v677_v4  ;;  %5726 = vmatprep.subr.bf16.mxu1 %v6175_v1  ;;  %v912_v18 = vsel %vm881_vm0, %v909_v45, %v911_v5  ;;  %v694_v41 = vrot.slane %v692_v30, 3  ;;  %v6040_v45 = vld [vmem:[#allocation2 + $0x8c] sm:$0xff]   ;;  %v1581_v62 = vor.u32 %v1580_v53, %v1577_v52 }
  0xa2   : > { %v1223_v21 = vrot.slane %v1221_v9, 3  ;;  %v1564_v24 = vsel %vm1085_vm1, %v1554_v47, %v1563_v13  ;;  %v914_v47 = vsel %vm881_vm0, %v911_v5, %v913_v22  ;;  %v707_v6 = vshrl.u32 %v6045_v0, 16 }
  0xa3   : > { %v695_v57 = vor.u32 %v694_v41, %v691_v38 }
  0xa4   : > { %5742 = vmatpush1.bf16.msra.mxu1 %v6641_v2  ;;  %v1227_v36 = vor.u32 %v1226_v16, %v1223_v21  ;;  %v6051_v16 = vld [vmem:[#allocation2 + $0x18] sm:$0xff]   ;;  %v709_v23 = vrot.slane %v707_v6, 2  ;;  %v6085_v6 = vld [vmem:[%s7548_s1 + $0x200] sm:$0xff]  }
  0xa5   : > { %5727 = vmatprep.subr.bf16.mxu1 %v6175_v1  ;;  %v1929_v38 = vshll.u32 %v6051_v16, 16 }
  0xa6   : > { %3819 = vmatmul.mubr.bf16.gmra.mrb[44].mxu1 %v660_v25  ;;  %v1568_v25 = vrot.slane %v1566_v56, 3  ;;  %v1228_v46 = vsel %vm1085_vm1, %v1218_v55, %v1227_v36  ;;  %v703_v55 = vrot.slane %v701_v33, 3  ;;  %v6050_v56 = vld [vmem:[#allocation2 + $0x10] sm:$0xff]  }
  0xa7   : > { %3996 = vmatmul.mubr.bf16.gmra.mrb[44].mxu0 %v1201_v31  ;;  %3826 = vmatprep.mubr.bf16.mxu1 %v908_v32  ;;  %v1230_v31 = vshrl.u32 %v6033_v15, 16  ;;  %v686_v32 = vor.u32 %v685_v20, %v682_v19  ;;  %v917_v19 = vrot.slane %v6043_v3, 3  ;;  %v1251_v20 = vshll.u32 %v6046_v7, 16  ;;  %v6054_v3 = vld [vmem:[#allocation2 + $0x10] sm:$0xff]  }
  0xa8   : > { %4003 = vmatprep.mubr.bf16.mxu0 %v1546_v34  ;;  %v1233_v34 = vshll.u32 %v6033_v15, 16  ;;  %v1572_v37 = vor.u32 %v1571_v26, %v1568_v25  ;;  %5743 = vmatpush1.bf16.msra.mxu1 %v6049_v28  ;;  %v710_v15 = vshll.u32 %v6045_v0, 16  ;;  %v6055_v28 = vld [vmem:[#allocation2 + $0x40] sm:$0xff]   ;;  %v6061_v0 = vld [vmem:[#allocation2 + $0x28] sm:$0xff]  }
  0xa9   : > { %v687_v43 = vsel %vm544_vm2, %v677_v4, %v686_v32  ;;  %v1232_v44 = vrot.slane %v1230_v31, 3  ;;  %v696_v4 = vsel %vm544_vm2, %v686_v32, %v695_v57  ;;  %v1253_v32 = vrot.slane %v1251_v20, 4  ;;  %5660 = vmatprep.subr.bf16.mxu1 %v6085_v6  ;;  %v6059_v20 = vld [vmem:[#allocation2 + $0x18] sm:$0xff]  }
  0xaa   : > { %v1235_v48 = vrot.slane %v1233_v34, 4  ;;  %v1573_v51 = vsel %vm1085_vm1, %v1563_v13, %v1572_v37  ;;  %v1582_v12 = vsel %vm1085_vm1, %v1572_v37, %v1581_v62  ;;  %v1589_v13 = vrot.slane %v1587_v63, 4  ;;  %v6053_v34 = vld [vmem:[#allocation2 + $0x48] sm:$0xff]  }
  0xab   : > { %v712_v25 = vrot.slane %v710_v15, 3  ;;  %v2275_v41 = vshll.u32 %v6055_v28, 16 }
  0xac   : > { %v1236_v59 = vor.u32 %v1235_v48, %v1232_v44  ;;  %v2561_v44 = vrot.slane %v6053_v34, 1  ;;  %v2279_v48 = vshrl.u32 %v6055_v28, 16 }
  0xad   : > { %v713_v39 = vor.u32 %v712_v25, %v709_v23  ;;  %v6090_v23 = vld [vmem:[%s7548_s1 + $0x208] sm:$0xff]  }
  0xae   : > { %3827 = vmatmul.mubr.bf16.gmra.mrb[48].mxu1 %v669_v29  ;;  %v915_v29 = vrot.slane %v6650_v42, 3  ;;  %v1237_v8 = vsel %vm1085_vm1, %v1227_v36, %v1236_v59  ;;  %v1922_v36 = vshrl.u32 %v6050_v56, 16 }
  0xaf   : > { %4004 = vmatmul.mubr.bf16.gmra.mrb[48].mxu0 %v1210_v54  ;;  %3834 = vmatprep.mubr.bf16.mxu1 %v910_v58  ;;  %v1239_v54 = vshrl.u32 %v6040_v45, 16  ;;  %v1242_v58 = vshll.u32 %v6040_v45, 16 }
  0xb0   : > { %4011 = vmatprep.mubr.bf16.mxu0 %v1555_v61  ;;  %v1584_v61 = vshrl.u32 %v6044_v50, 16  ;;  %v916_v9 = vsel %vm881_vm0, %v913_v22, %v915_v29  ;;  %v1924_v22 = vshll.u32 %v6050_v56, 16  ;;  %v918_v31 = vsel %vm881_vm0, %v915_v29, %v917_v19  ;;  %v6058_v29 = vld [vmem:[#allocation2 + $0x50] sm:$0xff]  }
  0xb1   : > { %v1241_v5 = vrot.slane %v1239_v54, 3  ;;  %v1244_v10 = vrot.slane %v1242_v58, 4  ;;  %v6669_v50 = vrot.slane %v2275_v41, 1  ;;  %v6065_v19 = vld [vmem:[#allocation2 + $0x30] sm:$0xff]   ;;  %v6063_v41 = vld [vmem:[#allocation2 + $0x20] sm:$0xff]  }
  0xb2   : > { %v1586_v11 = vrot.slane %v1584_v61, 3  ;;  %v1926_v37 = vrot.slane %v1924_v22, 1  ;;  %v2563_v61 = vrot.slane %v6058_v29, 1  ;;  %v6099_v29 = vld [vmem:[%s7548_s1 + $0x210] sm:$0xff]  }
  0xb3   : > { %v2281_v58 = vor.u32 %v2279_v48, %v6669_v50  ;;  %v6070_v48 = vld [vmem:[#allocation2 + $0x68] sm:$0xff]  }
  0xb4   : > { %v1590_v21 = vor.u32 %v1589_v13, %v1586_v11  ;;  %v1927_v45 = vor.u32 %v1926_v37, %v1922_v36  ;;  %v1945_v11 = vshll.u32 %v6061_v0, 16  ;;  %v6154_v36 = vld [vmem:[%s7548_s1 + $0x190] sm:$0xff]  }
  0xb6   : > { %3835 = vmatmul.mubr.bf16.gmra.mrb[52].mxu1 %v678_v14  ;;  %v704_v14 = vor.u32 %v703_v55, %v700_v60  ;;  %v1591_v35 = vsel %vm1085_vm1, %v1581_v62, %v1590_v21  ;;  %v6060_v60 = vld [vmem:[#allocation2 + $0x50] sm:$0xff]   ;;  %v2287_v55 = vshrl.u32 %v6056_v40, 16 }
  0xb7   : > { %4012 = vmatmul.mubr.bf16.gmra.mrb[52].mxu0 %v1219_v17  ;;  %3842 = vmatprep.mubr.bf16.mxu1 %v912_v18  ;;  %v1248_v17 = vshrl.u32 %v6046_v7, 16  ;;  %v1245_v18 = vor.u32 %v1244_v10, %v1241_v5  ;;  %v2291_v5 = vshll.u32 %v6060_v60, 16  ;;  %v2564_v7 = vsel %vm2549_vm3, %v2561_v44, %v2563_v61 }
  0xb8   : > { %4019 = vmatprep.mubr.bf16.mxu0 %v1564_v24  ;;  %v705_v24 = vsel %vm544_vm2, %v695_v57, %v704_v14  ;;  %v714_v49 = vsel %vm544_vm2, %v704_v14, %v713_v39  ;;  %v1933_v57 = vshrl.u32 %v6051_v16, 16  ;;  %v6152_v14 = vld [vmem:[%s7548_s1 + $0x180] sm:$0xff]   ;;  %v2295_v16 = vshrl.u32 %v6060_v60, 16 }
  0xb9   : > { %v1250_v26 = vrot.slane %v1248_v17, 3  ;;  %v1246_v30 = vsel %vm1085_vm1, %v1236_v59, %v1245_v18  ;;  %v2293_v56 = vrot.slane %v2291_v5, 1  ;;  %v6727_v5 = vld [vmem:[#allocation2 + $0x70] sm:$0xff]  }
  0xbb   : > { %v1254_v42 = vor.u32 %v1253_v32, %v1250_v26  ;;  %v6066_v26 = vld [vmem:[#allocation2 + $0x60] sm:$0xff]   ;;  %v2297_v32 = vor.u32 %v2295_v16, %v2293_v56 }
  0xbc   : > { %v2567_v37 = vrot.slane %v6066_v26, 1 }
  0xbd   : > { %v1255_v52 = vsel %vm1085_vm1, %v1245_v18, %v1254_v42  ;;  %v1947_v18 = vrot.slane %v1945_v11, 1  ;;  %v6105_v11 = vld [vmem:[%s7548_s1 + $0x220] sm:$0xff]  }
  0xbe   : > { %3843 = vmatmul.mubr.bf16.gmra.mrb[56].mxu1 %v687_v43  ;;  %v2559_v43 = vrot.slane %v6662_v27, 1 }
  0xbf   : > { %4020 = vmatmul.mubr.bf16.gmra.mrb[56].mxu0 %v1228_v46  ;;  %3850 = vmatprep.mubr.bf16.mxu1 %v914_v47  ;;  %v1931_v46 = vrot.slane %v1929_v38, 1  ;;  %v6057_v47 = vld [vmem:[#allocation2 + $0x20] sm:$0xff]  }
  0xc0   : > { %4027 = vmatprep.mubr.bf16.mxu0 %v1573_v51  ;;  %v2283_v51 = vshll.u32 %v6056_v40, 16  ;;  %v2562_v53 = vsel %vm2549_vm3, %v2559_v43, %v2561_v44  ;;  %v1937_v54 = vshll.u32 %v6057_v47, 16  ;;  %v1941_v10 = vshrl.u32 %v6057_v47, 16  ;;  %v6069_v40 = vld [vmem:[#allocation2 + $0x38] sm:$0xff]  }
  0xc1   : > { %v1932_v33 = vsel %vm1920_vm4, %v1927_v45, %v1931_v46  ;;  %v1935_v62 = vor.u32 %v1933_v57, %v1931_v46  ;;  %v6155_v47 = vld [vmem:[%s7548_s1 + $0x198] sm:$0xff]  }
  0xc2   : > { %v2285_v59 = vrot.slane %v2283_v51, 1  ;;  %v1939_v63 = vrot.slane %v1937_v54, 1  ;;  %v1957_v51 = vshrl.u32 %v6065_v19, 16  ;;  %v6100_v54 = vld [vmem:[%s7548_s1 + $0x218] sm:$0xff]  }
  0xc4   : > { %v2289_v13 = vor.u32 %v2287_v55, %v2285_v59  ;;  %v1943_v17 = vor.u32 %v1941_v10, %v1939_v63 }
  0xc6   : > { %3851 = vmatmul.mubr.bf16.gmra.mrb[60].mxu1 %v696_v4  ;;  %v2286_v4 = vsel %vm1920_vm4, %v2281_v58, %v2285_v59  ;;  %v2294_v21 = vsel %vm1920_vm4, %v2289_v13, %v2293_v56  ;;  %v1948_v28 = vsel %vm1920_vm4, %v1943_v17, %v1947_v18  ;;  %v2569_v58 = vrot.slane %v6070_v48, 1  ;;  %v6156_v59 = vld [vmem:[%s7548_s1 + $0x1a0] sm:$0xff]   ;;  %v6076_v56 = vld [vmem:[#allocation2 + $0x70] sm:$0xff]  }
  0xc7   : > { %4028 = vmatmul.mubr.bf16.gmra.mrb[60].mxu0 %v1237_v8  ;;  %3858 = vmatprep.mubr.bf16.mxu1 %v916_v9  ;;  %v6062_v8 = vld [vmem:[#allocation2 + $0x58] sm:$0xff]   ;;  %v1940_v9 = vsel %vm1920_vm4, %v1935_v62, %v1939_v63  ;;  %v6073_v62 = vld [vmem:[#allocation2 + $0x40] sm:$0xff]   ;;  %v6067_v63 = vld [vmem:[#allocation2 + $0x28] sm:$0xff]  }
  0xc8   : > { %4035 = vmatprep.mubr.bf16.mxu0 %v1582_v12  ;;  %v6680_v12 = vld [vmem:[#allocation2 + $0x58] sm:$0xff]   ;;  %v2565_v15 = vrot.slane %v6062_v8, 1  ;;  %v2570_v55 = vsel %vm2549_vm3, %v2567_v37, %v2569_v58  ;;  %v1969_v10 = vshll.u32 %v6073_v62, 16  ;;  %v6082_v48 = vld [vmem:[#allocation2 + $0x80] sm:$0xff]  }
  0xc9   : > { %v2299_v22 = vshll.u32 %v6680_v12, 16  ;;  %v2303_v44 = vshrl.u32 %v6680_v12, 16 }
  0xca   : > { %v2566_v25 = vsel %vm2549_vm3, %v2563_v61, %v2565_v15  ;;  %v2568_v46 = vsel %vm2549_vm3, %v2565_v15, %v2567_v37  ;;  %v6071_v15 = vld [vmem:[#allocation2 + $0x30] sm:$0xff]   ;;  %v6160_v37 = vld [vmem:[%s7548_s1 + $0x1c0] sm:$0xff]  }
  0xcb   : > { %v2301_v34 = vrot.slane %v2299_v22, 1  ;;  %v2323_v22 = vshll.u32 %v6076_v56, 16 }
  0xcd   : > { %v2302_v42 = vsel %vm1920_vm4, %v2297_v32, %v2301_v34 }
  0xce   : > { %3859 = vmatmul.mubr.bf16.gmra.mrb[64].mxu1 %v705_v24  ;;  %v6153_v24 = vld [vmem:[%s7548_s1 + $0x188] sm:$0xff]  }
  0xcf   : > { %4036 = vmatmul.mubr.bf16.gmra.mrb[64].mxu0 %v1246_v30  ;;  %3866 = vmatprep.mubr.bf16.mxu1 %v918_v31  ;;  %v1949_v30 = vshrl.u32 %v6061_v0, 16  ;;  %v1953_v31 = vshll.u32 %v6065_v19, 16  ;;  %v6077_v19 = vld [vmem:[#allocation2 + $0x48] sm:$0xff]  }
  0xd0   : > { %4043 = vmatprep.mubr.bf16.mxu0 %v1591_v35  ;;  %v6068_v35 = vld [vmem:[#allocation2 + $0x60] sm:$0xff]  }
  0xd1   : > { %v1951_v38 = vor.u32 %v1949_v30, %v1947_v18  ;;  %v1955_v39 = vrot.slane %v1953_v31, 1  ;;  %v2307_v45 = vshll.u32 %v6068_v35, 16  ;;  %v1971_v18 = vrot.slane %v1969_v10, 1  ;;  %v6111_v31 = vld [vmem:[%s7548_s1 + $0x230] sm:$0xff]  }
  0xd2   : > { %v1977_v30 = vshll.u32 %v6077_v19, 16 }
  0xd3   : > { %v2309_v57 = vrot.slane %v2307_v45, 1  ;;  %v1959_v60 = vor.u32 %v1957_v51, %v1955_v39  ;;  %v2327_v45 = vshrl.u32 %v6076_v56, 16  ;;  %v6164_v56 = vld [vmem:[%s7548_s1 + $0x1e0] sm:$0xff]  }
  0xd6   : > { %3867 = vmatmul.mubr.bf16.gmra.mrb[68].mxu1 %v714_v49  ;;  %v1956_v49 = vsel %vm1920_vm4, %v1951_v38, %v1955_v39  ;;  %v1979_v39 = vrot.slane %v1977_v30, 1  ;;  %v6094_v30 = vld [vmem:[#allocation2 + $0x90] sm:$0xff]  }
  0xd7   : > { %4044 = vmatmul.mubr.bf16.gmra.mrb[68].mxu0 %v1255_v52  ;;  %4301 = vmatprep.mubr.bf16.mxu1 %v2562_v53  ;;  %v1961_v52 = vshll.u32 %v6069_v40, 16  ;;  %v6711_v53 = vld [vmem:[#allocation2 + $0x68] sm:$0xff]  }
  0xd8   : > { %4084 = vmatprep.mubr.bf16.mxu0 %v1932_v33  ;;  %v2305_v33 = vor.u32 %v2303_v44, %v2301_v34  ;;  %v2319_v16 = vshrl.u32 %v6711_v53, 16  ;;  %v2325_v34 = vrot.slane %v2323_v22, 1  ;;  %v6165_v22 = vld [vmem:[%s7548_s1 + $0x1e8] sm:$0xff]  }
  0xd9   : > { %v1963_v61 = vrot.slane %v1961_v52, 1  ;;  %v1981_v52 = vshrl.u32 %v6077_v19, 16 }
  0xda   : > { %v2310_v0 = vsel %vm1920_vm4, %v2305_v33, %v2309_v57 }
  0xdb   : > { %v1964_v8 = vsel %vm1920_vm4, %v1959_v60, %v1963_v61 }
  0xde   : > { %4302 = vmatmul.mubr.bf16.vlgmr.msra.gmra.mrb[72].mxu1 %v2286_v4  ;;  %v2315_v4 = vshll.u32 %v6711_v53, 16 }
  0xdf   : > { %4085 = vmatmul.mubr.bf16.vlgmr.msra.gmra.mrb[0].mxu0 %v6054_v3  ;;  %4309 = vmatprep.mubr.bf16.mxu1 %v2564_v7  ;;  %v2311_v3 = vshrl.u32 %v6068_v35, 16  ;;  %v6157_v7 = vld [vmem:[%s7548_s1 + $0x1a8] sm:$0xff]   ;;  %v6080_v35 = vld [vmem:[#allocation2 + $0x78] sm:$0xff]  }
  0xe0   : > { %4230 = vmatpush1.bf16.msra.mxu0 %v6152_v14  ;;  %4092 = vmatprep.mubr.bf16.mxu0 %v1940_v9  ;;  %v1965_v9 = vshrl.u32 %v6069_v40, 16  ;;  %v2317_v13 = vrot.slane %v2315_v4, 1  ;;  %v6158_v14 = vld [vmem:[%s7548_s1 + $0x1b0] sm:$0xff]  }
  0xe1   : > { %4231 = vmatprep.subr.bf16.mxu0 %v6175_v1  ;;  %5661 = vmatpush3.bf16.msra.mxu1 %v6085_v6  ;;  %v2313_v12 = vor.u32 %v2311_v3, %v2309_v57  ;;  %v2571_v6 = vrot.slane %v6727_v5, 1  ;;  %v6081_v40 = vld [vmem:[#allocation2 + $0x50] sm:$0xff]   ;;  %v6084_v57 = vld [vmem:[#allocation2 + $0x80] sm:$0xff]   ;;  %v6163_v5 = vld [vmem:[%s7548_s1 + $0x1d8] sm:$0xff]  }
  0xe2   : > { %5662 = vmatprep.subr.bf16.mxu1 %v6090_v23  ;;  %v1967_v17 = vor.u32 %v1965_v9, %v1963_v61  ;;  %v2321_v32 = vor.u32 %v2319_v16, %v2317_v13  ;;  %v1985_v53 = vshll.u32 %v6081_v40, 16  ;;  %v6086_v61 = vld [vmem:[#allocation2 + $0x58] sm:$0xff]   ;;  %v2339_v3 = vshll.u32 %v6084_v57, 16  ;;  %v6092_v16 = vld [vmem:[#allocation2 + $0x90] sm:$0xff]  }
  0xe3   : > { %v1993_v9 = vshll.u32 %v6086_v61, 16  ;;  %v2343_v19 = vshrl.u32 %v6084_v57, 16 }
  0xe4   : > { %4232 = vmatpush1.bf16.msra.mxu0 %v6153_v24  ;;  %v6078_v24 = vld [vmem:[#allocation2 + $0x78] sm:$0xff]   ;;  %v1972_v26 = vsel %vm1920_vm4, %v1967_v17, %v1971_v18  ;;  %v2326_v44 = vsel %vm1920_vm4, %v2321_v32, %v2325_v34  ;;  %v1987_v60 = vrot.slane %v1985_v53, 1  ;;  %v6083_v17 = vld [vmem:[#allocation2 + $0x48] sm:$0xff]  }
  0xe5   : > { %4233 = vmatprep.subr.bf16.mxu0 %v6175_v1  ;;  %5663 = vmatpush3.bf16.msra.mxu1 %v6090_v23  ;;  %v2572_v23 = vsel %vm2549_vm3, %v2569_v58, %v2571_v6  ;;  %v6162_v58 = vld [vmem:[%s7548_s1 + $0x1d0] sm:$0xff]  }
  0xe6   : > { %4310 = vmatmul.mubr.bf16.gmra.mrb[76].mxu1 %v2294_v21  ;;  %5664 = vmatprep.subr.bf16.mxu1 %v6099_v29  ;;  %v2318_v21 = vsel %vm1920_vm4, %v2313_v12, %v2317_v13  ;;  %v6089_v12 = vld [vmem:[#allocation2 + $0x88] sm:$0xff]  }
  0xe7   : > { %4093 = vmatmul.mubr.bf16.gmra.mrb[4].mxu0 %v6059_v20  ;;  %4317 = vmatprep.mubr.bf16.mxu1 %v2566_v25  ;;  %v6106_v20 = vld [vmem:[%s7548_s1 + $0x228] sm:$0xff]   ;;  %v6159_v25 = vld [vmem:[%s7548_s1 + $0x1b8] sm:$0xff]  }
  0xe8   : > { %4100 = vmatprep.mubr.bf16.mxu0 %v1948_v28  ;;  %4234 = vmatpush1.bf16.msra.mxu0 %v6154_v36  ;;  %v1973_v28 = vshrl.u32 %v6073_v62, 16  ;;  %v2573_v36 = vrot.slane %v6078_v24, 1  ;;  %v6079_v62 = vld [vmem:[#allocation2 + $0x40] sm:$0xff]   ;;  %v1997_v24 = vshrl.u32 %v6086_v61, 16 }
  0xe9   : > { %4235 = vmatprep.subr.bf16.mxu0 %v6175_v1  ;;  %5665 = vmatpush3.bf16.msra.mxu1 %v6099_v29  ;;  %v2329_v29 = vor.u32 %v2327_v45, %v2325_v34  ;;  %v6102_v61 = vld [vmem:[#allocation2 + $0xa0] sm:$0xff]  }
  0xea   : > { %5666 = vmatprep.subr.bf16.mxu1 %v6100_v54  ;;  %v1975_v38 = vor.u32 %v1973_v28, %v1971_v18 }
  0xec   : > { %4236 = vmatpush1.bf16.msra.mxu0 %v6155_v47  ;;  %v2574_v47 = vsel %vm2549_vm3, %v2571_v6, %v2573_v36  ;;  %v1980_v51 = vsel %vm1920_vm4, %v1975_v38, %v1979_v39  ;;  %v2351_v38 = vshrl.u32 %v6089_v12, 16 }
  0xed   : > { %4237 = vmatprep.subr.bf16.mxu0 %v6175_v1  ;;  %5667 = vmatpush3.bf16.msra.mxu1 %v6100_v54  ;;  %v2575_v54 = vrot.slane %v6082_v48, 1 }
  0xee   : > { %4318 = vmatmul.mubr.bf16.gmra.mrb[80].mxu1 %v2302_v42  ;;  %5668 = vmatprep.subr.bf16.mxu1 %v6105_v11  ;;  %v6075_v42 = vld [vmem:[#allocation2 + $0x38] sm:$0xff]  }
  0xef   : > { %4101 = vmatmul.mubr.bf16.gmra.mrb[8].mxu0 %v6063_v41  ;;  %4325 = vmatprep.mubr.bf16.mxu1 %v2568_v46  ;;  %v6112_v41 = vld [vmem:[%s7548_s1 + $0x238] sm:$0xff]   ;;  %v2331_v46 = vshll.u32 %v6080_v35, 16  ;;  %v2576_v4 = vsel %vm2549_vm3, %v2573_v36, %v2575_v54  ;;  %v6088_v36 = vld [vmem:[#allocation2 + $0x50] sm:$0xff]  }
  0xf0   : > { %4108 = vmatprep.mubr.bf16.mxu0 %v1956_v49  ;;  %4238 = vmatpush1.bf16.msra.mxu0 %v6156_v59  ;;  %v6161_v49 = vld [vmem:[%s7548_s1 + $0x1c8] sm:$0xff]   ;;  %v1983_v59 = vor.u32 %v1981_v52, %v1979_v39  ;;  %v2355_v39 = vshll.u32 %v6094_v30, 16  ;;  %v6101_v52 = vld [vmem:[#allocation2 + $0x70] sm:$0xff]  }
  0xf1   : > { %4239 = vmatprep.subr.bf16.mxu0 %v6175_v1  ;;  %5669 = vmatpush3.bf16.msra.mxu1 %v6105_v11  ;;  %v2333_v33 = vrot.slane %v2331_v46, 1  ;;  %v2341_v11 = vrot.slane %v2339_v3, 1  ;;  %v2017_v3 = vshll.u32 %v6101_v52, 16 }
  0xf2   : > { %5670 = vmatprep.subr.bf16.mxu1 %v6106_v20  ;;  %v2357_v46 = vrot.slane %v2355_v39, 1  ;;  %v6826_v39 = vld [vmem:[#allocation2 + $0x80] sm:$0xff]  }
  0xf4   : > { %4240 = vmatpush1.bf16.msra.mxu0 %v6157_v7  ;;  %v1988_v7 = vsel %vm1920_vm4, %v1983_v59, %v1987_v60 }
  0xf5   : > { %4241 = vmatprep.subr.bf16.mxu0 %v6175_v1  ;;  %5671 = vmatpush3.bf16.msra.mxu1 %v6106_v20  ;;  %v2347_v20 = vshll.u32 %v6089_v12, 16  ;;  %v6097_v12 = vld [vmem:[#allocation2 + $0x60] sm:$0xff]  }
  0xf6   : > { %4326 = vmatmul.mubr.bf16.gmra.mrb[84].mxu1 %v2310_v0  ;;  %5672 = vmatprep.subr.bf16.mxu1 %v6111_v31  ;;  %v2335_v0 = vshrl.u32 %v6080_v35, 16  ;;  %v6095_v35 = vld [vmem:[#allocation2 + $0x68] sm:$0xff]  }
  0xf7   : > { %4109 = vmatmul.mubr.bf16.gmra.mrb[12].mxu0 %v6067_v63  ;;  %4333 = vmatprep.mubr.bf16.mxu1 %v2570_v55  ;;  %v2334_v63 = vsel %vm1920_vm4, %v2329_v29, %v2333_v33  ;;  %v6087_v55 = vld [vmem:[#allocation2 + $0x88] sm:$0xff]   ;;  %v2349_v28 = vrot.slane %v2347_v20, 1  ;;  %v2009_v45 = vshll.u32 %v6095_v35, 16  ;;  %v6115_v20 = vld [vmem:[#allocation2 + $0x20] sm:$0xff]  }
  0xf8   : > { %4116 = vmatprep.mubr.bf16.mxu0 %v1964_v8  ;;  %4242 = vmatpush1.bf16.msra.mxu0 %v6158_v14  ;;  %v1989_v8 = vshrl.u32 %v6081_v40, 16  ;;  %v2337_v10 = vor.u32 %v2335_v0, %v2333_v33  ;;  %v2577_v13 = vrot.slane %v6087_v55, 1  ;;  %v1995_v14 = vrot.slane %v1993_v9, 1  ;;  %v6093_v33 = vld [vmem:[#allocation2 + $0x58] sm:$0xff]  }
  0xf9   : > { %4243 = vmatprep.subr.bf16.mxu0 %v6175_v1  ;;  %5673 = vmatpush3.bf16.msra.mxu1 %v6111_v31  ;;  %v2579_v31 = vrot.slane %v6092_v16, 1  ;;  %v2013_v0 = vshrl.u32 %v6095_v35, 16  ;;  %v2019_v9 = vrot.slane %v2017_v3, 1  ;;  %v2763_v35 = vshrl.u32 %v6115_v20, 16 }
  0xfa   : > { %5674 = vmatprep.subr.bf16.mxu1 %v6112_v41  ;;  %v1991_v6 = vor.u32 %v1989_v8, %v1987_v60  ;;  %v2342_v18 = vsel %vm1920_vm4, %v2337_v10, %v2341_v11  ;;  %v1999_v32 = vor.u32 %v1997_v24, %v1995_v14  ;;  %v6809_v10 = vld [vmem:[#allocation2 + $0x78] sm:$0xff]   ;;  %v6110_v24 = vld [vmem:[#allocation2 + $0xa8] ss:$0 sps:$4 sm:$0x11]  }
  0xfb   : > { %v2580_v40 = vsel %vm2549_vm3, %v2577_v13, %v2579_v31 }
  0xfc   : > { %4244 = vmatpush1.bf16.msra.mxu0 %v6159_v25 }
  0xfd   : > { %4245 = vmatprep.subr.bf16.mxu0 %v6175_v1  ;;  %5675 = vmatpush3.bf16.msra.mxu1 %v6112_v41  ;;  %v6096_v41 = vld [vmem:[#allocation2 + $0x98] sm:$0xff]  }
  0xfe   : > { %4334 = vmatmul.mubr.bf16.gmra.mrb[88].mxu1 %v2318_v21  ;;  %v2578_v21 = vsel %vm2549_vm3, %v2575_v54, %v2577_v13  ;;  %v2581_v48 = vrot.slane %v6096_v41, 1  ;;  %v2359_v54 = vshrl.u32 %v6094_v30, 16  ;;  %v297_v30 = vld [vmem:[%s7551_s4] sm:$0xff]  ;;  %v298_v41 = vld [vmem:[%s7551_s4 + $0x8] sm:$0xff] }
  0xff   : > { %4117 = vmatmul.mubr.bf16.gmra.mrb[16].mxu0 %v6071_v15  ;;  %4341 = vmatprep.mubr.bf16.mxu1 %v2572_v23  ;;  %v6091_v15 = vld [vmem:[#allocation2 + $0x60] sm:$0xff]   ;;  %v1996_v23 = vsel %vm1920_vm4, %v1991_v6, %v1995_v14 }
 0x100   : > { %4124 = vmatprep.mubr.bf16.mxu0 %v1972_v26  ;;  %4246 = vmatpush1.bf16.msra.mxu0 %v6160_v37  ;;  %v2001_v25 = vshll.u32 %v6091_v15, 16  ;;  %v2345_v26 = vor.u32 %v2343_v19, %v2341_v11  ;;  %v2582_v60 = vsel %vm2549_vm3, %v2579_v31, %v2581_v48  ;;  %v6114_v19 = vld [vmem:[#allocation2 + $0x18] sm:$0xfe]   ;;  %v299_v31 = vld [vmem:[%s7551_s4 + $0x10] sm:$0xff] }
 0x101   : > { %4247 = vmatprep.subr.bf16.mxu0 %v6175_v1  ;;  %4585 = vperm.xlu0 %5908, %v297_v30  }
 0x102   : > { %v2003_v34 = vrot.slane %v2001_v25, 1  ;;  %v2350_v37 = vsel %vm1920_vm4, %v2345_v26, %v2349_v28  ;;  %4595 = vperm.xlu1 %5909, %v299_v31   ;;  %v2037_v31 = vshrl.u32 %v6826_v39, 16 }
 0x104   : > { %4248 = vmatpush1.bf16.msra.mxu0 %v6161_v49 }
 0x105   : > { %4249 = vmatprep.subr.bf16.mxu0 %v6175_v1  ;;  %4590 = vperm.xlu0 %5908, %v298_v41  }
 0x106   : > { %4342 = vmatmul.mubr.bf16.gmra.mrb[92].mxu1 %v2326_v44  ;;  %v2005_v44 = vshrl.u32 %v6091_v15, 16  ;;  %v6108_v15 = vld [vmem:[#allocation2 + $0xa8] ss:$0 sps:$4 sm:$0x11]  }
 0x107   : > { %4125 = vmatmul.mubr.bf16.gmra.mrb[20].mxu0 %v6075_v42  ;;  %4349 = vmatprep.mubr.bf16.mxu1 %v2574_v47  ;;  %v6166_v42 = vld [vmem:[%s7548_s1 + $0x1f8] sm:$0xff]  }
 0x108   : > { %4132 = vmatprep.mubr.bf16.mxu0 %v1980_v51  ;;  %4250 = vmatpush1.bf16.msra.mxu0 %v6162_v58  ;;  %v6098_v47 = vld [vmem:[#allocation2 + $0x98] sm:$0xff]   ;;  %v2007_v49 = vor.u32 %v2005_v44, %v2003_v34  ;;  %v2011_v51 = vrot.slane %v2009_v45, 1  ;;  %v6103_v44 = vld [vmem:[#allocation2 + $0x68] sm:$0xff]  }
 0x109   : > { %4251 = vmatprep.subr.bf16.mxu0 %v6175_v1  ;;  %v2363_v58 = vshll.u32 %v6098_v47, 16  ;;  %v2367_v6 = vshrl.u32 %v6098_v47, 16  ;;  %v2379_v47 = vshll.u32 %v6110_v24, 16 }
 0x10a   : > { %v2015_v8 = vor.u32 %v2013_v0, %v2011_v51 }
 0x10b   : > { %v2365_v55 = vrot.slane %v2363_v58, 1  ;;  %v2381_v3 = vrot.slane %v2379_v47, 1 }
 0x10c   : > { %4252 = vmatpush1.bf16.msra.mxu0 %v6163_v5  ;;  %v6807_v5 = vld [vmem:[#allocation2 + $0xa0] sm:$0xff]   ;;  %v2020_v16 = vsel %vm1920_vm4, %v2015_v8, %v2019_v9 }
 0x10d   : > { %4253 = vmatprep.subr.bf16.mxu0 %v6175_v1  ;;  %v2371_v14 = vshll.u32 %v6807_v5, 16  ;;  %v2369_v25 = vor.u32 %v2367_v6, %v2365_v55  ;;  %v303_v6 = vld [vmem:[%s7551_s4 + $0x30] sm:$0xff] }
 0x10e   : > { %4350 = vmatmul.mubr.bf16.gmra.mrb[96].mxu1 %v2334_v63  ;;  %v2012_v63 = vsel %vm1920_vm4, %v2007_v49, %v2011_v51 }
 0x10f   : > { %4133 = vmatmul.mubr.bf16.gmra.mrb[24].mxu0 %v6079_v62  ;;  %4357 = vmatprep.mubr.bf16.mxu1 %v2576_v4  ;;  %v2361_v4 = vor.u32 %v2359_v54, %v2357_v46  ;;  %v2373_v26 = vrot.slane %v2371_v14, 1 }
 0x110   : > { %4140 = vmatprep.mubr.bf16.mxu0 %v1988_v7  ;;  %4254 = vmatpush1.bf16.msra.mxu0 %v6164_v56  ;;  %v2583_v7 = vrot.slane %v6102_v61, 1  ;;  %v2033_v61 = vshll.u32 %v6826_v39, 16 }
 0x111   : > { %4255 = vmatprep.subr.bf16.mxu0 %v6175_v1  ;;  %v2366_v56 = vsel %vm1920_vm4, %v2361_v4, %v2365_v55  ;;  %v2374_v45 = vsel %vm1920_vm4, %v2369_v25, %v2373_v26 }
 0x114   : > { %4256 = vmatpush1.bf16.msra.mxu0 %v6165_v22  ;;  %v2021_v22 = vshrl.u32 %v6101_v52, 16 }
 0x115   : > { %4257 = vmatprep.subr.bf16.mxu0 %v6175_v1 }
 0x116   : > { %4358 = vmatmul.mubr.bf16.gmra.mrb[100].mxu1 %v2342_v18  ;;  %v2584_v18 = vsel %vm2549_vm3, %v2581_v48, %v2583_v7  ;;  %v6117_v48 = vld [vmem:[#allocation2 + $0x28] sm:$0xff]  }
 0x117   : > { %4141 = vmatmul.mubr.bf16.gmra.mrb[28].mxu0 %v6083_v17  ;;  %4365 = vmatprep.mubr.bf16.mxu1 %v2578_v21  ;;  %v2772_v4 = vshrl.u32 %v6117_v48, 16  ;;  %v2775_v55 = vshll.u32 %v6117_v48, 16  ;;  %v308_v48 = vld [vmem:[%s7551_s4 + $0x58] sm:$0xff] }
 0x118   : > { %4148 = vmatprep.mubr.bf16.mxu0 %v1996_v23  ;;  %4258 = vmatpush1.bf16.msra.mxu0 %v6641_v2  ;;  %v2004_v2 = vsel %vm1920_vm4, %v1999_v32, %v2003_v34  ;;  %v2025_v23 = vshll.u32 %v6809_v10, 16  ;;  %v2755_v32 = vshrl.u32 %v6114_v19, 16  ;;  %v2758_v34 = vshll.u32 %v6114_v19, 16 }
 0x119   : > { %4259 = vmatprep.subr.bf16.mxu0 %v6175_v1  ;;  %v2353_v1 = vor.u32 %v2351_v38, %v2349_v28  ;;  %v2585_v28 = vrot.slane %v6108_v15, 1  ;;  %v304_v15 = vld [vmem:[%s7551_s4 + $0x38] sm:$0xff] }
 0x11a   : > { %v2027_v38 = vrot.slane %v2025_v23, 1  ;;  %v2757_v51 = vrot.slane %v2755_v32, 1  ;;  %v2760_v52 = vrot.slane %v2758_v34, 2  ;;  %v305_v34 = vld [vmem:[%s7551_s4 + $0x40] sm:$0xff] }
 0x11b   : > { %v2358_v57 = vsel %vm1920_vm4, %v2353_v1, %v2357_v46  ;;  %v2586_v1 = vsel %vm2549_vm3, %v2583_v7, %v2585_v28  ;;  %v2375_v46 = vshrl.u32 %v6807_v5, 16 }
 0x11c   : > { %4260 = vmatpush1.bf16.msra.mxu0 %v6166_v42  ;;  %v2761_v5 = vor.u32 %v2760_v52, %v2757_v51  ;;  %v6116_v51 = vld [vmem:[#allocation2 + $0x78] sm:$0xff]  }
 0x11d   : > { %v2377_v0 = vor.u32 %v2375_v46, %v2373_v26  ;;  %v6123_v26 = vld [vmem:[#allocation2 + $0x40] sm:$0xff]   ;;  %v307_v46 = vld [vmem:[%s7551_s4 + $0x50] sm:$0xff] }
 0x11e   : > { %4366 = vmatmul.mubr.bf16.gmra.mrb[104].mxu1 %v2350_v37  ;;  %v2023_v37 = vor.u32 %v2021_v22, %v2019_v9  ;;  %v2799_v39 = vshrl.u32 %v6123_v26, 16 }
 0x11f   : > { %4149 = vmatmul.mubr.bf16.gmra.mrb[32].mxu0 %v6088_v36  ;;  %4373 = vmatprep.mubr.bf16.mxu1 %v2580_v40  ;;  %v2766_v36 = vshll.u32 %v6115_v20, 16  ;;  %v2382_v19 = vsel %vm1920_vm4, %v2377_v0, %v2381_v3  ;;  %v2774_v20 = vrot.slane %v2772_v4, 1 }
 0x120   : > { %4156 = vmatprep.mubr.bf16.mxu0 %v2004_v2  ;;  %v300_v2 = vld [vmem:[%s7551_s4 + $0x18] sm:$0xff]  ;;  %v2028_v58 = vsel %vm1920_vm4, %v2023_v37, %v2027_v38 }
 0x121   : > { %v6800_v53 = vpop.f32.mrb[0].mxu1  ;;  %4600 = vperm.xlu1 %5909, %v300_v2  }
 0x122   : > { %v3734_v29 = vpop.f32.mrb[1].mxu1 }
 0x123   : > { %v6803_v59 = vpop.f32.mrb[2].mxu1  ;;  %v2765_v29 = vrot.slane %v2763_v35, 1  ;;  %v306_v35 = vld [vmem:[%s7551_s4 + $0x48] sm:$0xff] }
 0x124   : > { %v3737_v62 = vpop.f32.mrb[3].mxu1 }
 0x125   : > { %v301_v62 = vld [vmem:[%s7551_s4 + $0x20] sm:$0xff] }
 0x126   : > { %4374 = vmatmul.mubr.bf16.gmra.mrb[108].mxu1 %v2358_v57  ;;  %v6119_v57 = vld [vmem:[#allocation2 + $0x30] sm:$0xff]   ;;  %4605 = vperm.xlu0 %5908, %v301_v62  }
 0x127   : > { %4157 = vmatmul.mubr.bf16.gmra.mrb[36].mxu0 %v6093_v33  ;;  %4381 = vmatprep.mubr.bf16.mxu1 %v2582_v60  ;;  %v2768_v33 = vrot.slane %v2766_v36, 2  ;;  %v2029_v60 = vshrl.u32 %v6809_v10, 16  ;;  %v2781_v8 = vshrl.u32 %v6119_v57, 16  ;;  %v2784_v9 = vshll.u32 %v6119_v57, 16  ;;  %v6125_v57 = vld [vmem:[#allocation2 + $0x48] sm:$0xff]   ;;  %v6127_v62 = vld [vmem:[#allocation2 + $0x50] sm:$0xff]  }
 0x128   : > { %4164 = vmatprep.mubr.bf16.mxu0 %v2012_v63  ;;  %v302_v63 = vld [vmem:[%s7551_s4 + $0x28] sm:$0xff] }
 0x129   : > { %v6811_v11 = vpop.f32.mrb[4].mxu1  ;;  %v2769_v7 = vor.u32 %v2768_v33, %v2765_v29  ;;  %v2031_v10 = vor.u32 %v2029_v60, %v2027_v38  ;;  %4610 = vperm.xlu1 %5909, %v302_v63   ;;  %v2783_v24 = vrot.slane %v2781_v8, 1  ;;  %v2786_v25 = vrot.slane %v2784_v9, 2 }
 0x12a   : > { %v3742_v13 = vpop.f32.mrb[5].mxu1  ;;  %4615 = vperm.xlu0 %5908, %v303_v6   ;;  %v2801_v60 = vrot.slane %v2799_v39, 1  ;;  %v2808_v8 = vshrl.u32 %v6125_v57, 16  ;;  %v2811_v9 = vshll.u32 %v6125_v57, 16  ;;  %v314_v39 = vld [vmem:[%s7551_s4 + $0x88] sm:$0xff] }
 0x12b   : > { %v6815_v17 = vpop.f32.mrb[6].mxu1  ;;  %v6850_v13 = vld [vmem:[#allocation2 + $0x88] sm:$0xff]   ;;  %v2770_v23 = vsel %vm2753_vm5, %v2761_v5, %v2769_v7  ;;  %v2787_v41 = vor.u32 %v2786_v25, %v2783_v24 }
 0x12c   : > { %7555 = vst [vmem:[#allocation4_spill] sm:$0xff] %v6815_v17  ;;  %v3745_v21 = vpop.f32.mrb[7].mxu1  ;;  %v2041_v32 = vshll.u32 %v6850_v13, 16  ;;  %v2045_v3 = vshrl.u32 %v6850_v13, 16  ;;  %v310_v5 = vld [vmem:[%s7551_s4 + $0x68] sm:$0xff]  ;;  %v2820_v13 = vshll.u32 %v6127_v62, 16 }
 0x12d   : > { %v2777_v21 = vrot.slane %v2775_v55, 2  ;;  %4620 = vperm.xlu1 %5909, %v304_v15   ;;  %v309_v55 = vld [vmem:[%s7551_s4 + $0x60] sm:$0xff]  ;;  %v6896_v15 = vld [vmem:[#allocation2 + $0x98] sm:$0xff]   ;;  %v2810_v24 = vrot.slane %v2808_v8, 1  ;;  %v2813_v25 = vrot.slane %v2811_v9, 2  ;;  %v6133_v57 = vld [vmem:[#allocation2 + $0x68] sm:$0xff]  }
 0x12e   : > { %4382 = vmatmul.mubr.bf16.gmra.mrb[112].mxu1 %v2366_v56  ;;  %4625 = vperm.xlu0 %5908, %v305_v34   ;;  %v6131_v34 = vld [vmem:[#allocation2 + $0x60] sm:$0xff]  }
 0x12f   : > { %4165 = vmatmul.mubr.bf16.gmra.mrb[40].mxu0 %v6097_v12  ;;  %4389 = vmatprep.mubr.bf16.mxu1 %v2584_v18  ;;  %v2035_v12 = vrot.slane %v2033_v61, 1  ;;  %v6109_v18 = vld [vmem:[#allocation2 + $0x70] sm:$0xff]   ;;  %v2778_v36 = vor.u32 %v2777_v21, %v2774_v20  ;;  %v312_v21 = vld [vmem:[%s7551_s4 + $0x78] sm:$0xff] }
 0x130   : > { %4172 = vmatprep.mubr.bf16.mxu0 %v2020_v16  ;;  %v6121_v16 = vld [vmem:[#allocation2 + $0x38] sm:$0xff]  }
 0x131   : > { %v6828_v40 = vpop.f32.mrb[8].mxu1  ;;  %v2036_v30 = vsel %vm1920_vm4, %v2031_v10, %v2035_v12  ;;  %v2790_v37 = vshrl.u32 %v6121_v16, 16  ;;  %v2793_v38 = vshll.u32 %v6121_v16, 16  ;;  %v2039_v2 = vor.u32 %v2037_v31, %v2035_v12  ;;  %4630 = vperm.xlu1 %5909, %v306_v35   ;;  %v6120_v16 = vld [vmem:[#allocation2 + $0x80] sm:$0xff]  }
 0x132   : > { %7556 = vst [vmem:[#allocation5_spill] sm:$0xff] %v6828_v40  ;;  %v3750_v42 = vpop.f32.mrb[9].mxu1  ;;  %v2779_v52 = vsel %vm2753_vm5, %v2769_v7, %v2778_v36  ;;  %4635 = vperm.xlu0 %5908, %v307_v46   ;;  %v2817_v12 = vshrl.u32 %v6127_v62, 16 }
 0x133   : > { %v6839_v49 = vpop.f32.mrb[10].mxu1  ;;  %v2802_v42 = vshll.u32 %v6123_v26, 16  ;;  %v2792_v29 = vrot.slane %v2790_v37, 1  ;;  %v2795_v33 = vrot.slane %v2793_v38, 2  ;;  %v6129_v26 = vld [vmem:[#allocation2 + $0x58] sm:$0xff]   ;;  %v2057_v38 = vshll.u32 %v6896_v15, 16 }
 0x134   : > { %7557 = vst [vmem:[#allocation6_spill] sm:$0xff] %v6839_v49  ;;  %v3753_v54 = vpop.f32.mrb[11].mxu1  ;;  %v2819_v31 = vrot.slane %v2817_v12, 1  ;;  %v2061_v12 = vshrl.u32 %v6896_v15, 16 }
 0x135   : > { %v2804_v61 = vrot.slane %v2802_v42, 2  ;;  %4640 = vperm.xlu1 %5909, %v308_v48   ;;  %v2796_v7 = vor.u32 %v2795_v33, %v2792_v29  ;;  %v2814_v42 = vor.u32 %v2813_v25, %v2810_v24  ;;  %v315_v33 = vld [vmem:[%s7551_s4 + $0x90] sm:$0xff] }
 0x136   : > { %4390 = vmatmul.mubr.bf16.gmra.mrb[116].mxu1 %v2374_v45  ;;  %v6873_v45 = vld [vmem:[#allocation2 + $0x90] sm:$0xff]   ;;  %4645 = vperm.xlu0 %5908, %v309_v55  }
 0x137   : > { %4173 = vmatmul.mubr.bf16.gmra.mrb[44].mxu0 %v6103_v44  ;;  %4397 = vmatprep.mubr.bf16.mxu1 %v2586_v1  ;;  %v2043_v44 = vrot.slane %v2041_v32, 1  ;;  %v2049_v4 = vshll.u32 %v6873_v45, 16  ;;  %v2805_v10 = vor.u32 %v2804_v61, %v2801_v60  ;;  %v2822_v32 = vrot.slane %v2820_v13, 2  ;;  %v316_v60 = vld [vmem:[%s7551_s4 + $0x98] sm:$0xff]  ;;  %v6124_v61 = vld [vmem:[#allocation2 + $0x88] sm:$0xff]  }
 0x138   : > { %4180 = vmatprep.mubr.bf16.mxu0 %v2028_v58  ;;  %v2788_v58 = vsel %vm2753_vm5, %v2778_v36, %v2787_v41  ;;  %v2053_v37 = vshrl.u32 %v6873_v45, 16  ;;  %v2835_v45 = vshrl.u32 %v6131_v34, 16 }
 0x139   : > { %v6852_v56 = vpop.f32.mrb[12].mxu1  ;;  %v2044_v0 = vsel %vm1920_vm4, %v2039_v2, %v2043_v44  ;;  %v2047_v6 = vor.u32 %v2045_v3, %v2043_v44  ;;  %4650 = vperm.xlu1 %5909, %v310_v5   ;;  %v2826_v2 = vshrl.u32 %v6129_v26, 16  ;;  %v2829_v44 = vshll.u32 %v6129_v26, 16  ;;  %v319_v26 = vld [vmem:[%s7551_s4 + $0xb0] sm:$0xff] }
 0x13a   : > { %7558 = vst [vmem:[#allocation7_spill] sm:$0xff] %v6852_v56  ;;  %v3758_v14 = vpop.f32.mrb[13].mxu1  ;;  %v2823_v46 = vor.u32 %v2822_v32, %v2819_v31  ;;  %v2815_v62 = vsel %vm2753_vm5, %v2805_v10, %v2814_v42  ;;  %v2837_v55 = vrot.slane %v2835_v45, 1 }
 0x13b   : > { %v6861_v22 = vpop.f32.mrb[14].mxu1  ;;  %v2051_v14 = vrot.slane %v2049_v4, 1 }
 0x13c   : > { %7559 = vst [vmem:[#allocation8_spill] sm:$0xff] %v6861_v22  ;;  %v3761_v28 = vpop.f32.mrb[15].mxu1  ;;  %v2824_v4 = vsel %vm2753_vm5, %v2814_v42, %v2823_v46 }
 0x13d   : > { %v2052_v36 = vsel %vm1920_vm4, %v2047_v6, %v2051_v14  ;;  %4660 = vperm.xlu1 %5909, %v312_v21   ;;  %v2055_v48 = vor.u32 %v2053_v37, %v2051_v14  ;;  %v2844_v6 = vshrl.u32 %v6133_v57, 16  ;;  %v2847_v14 = vshll.u32 %v6133_v57, 16  ;;  %v6139_v37 = vld [vmem:[#allocation2 + $0x78] sm:$0xff]   ;;  %v6960_v57 = vld [vmem:[#allocation2 + $0x20] sm:$0xff]  }
 0x13e   : > { %4398 = vmatmul.mubr.bf16.gmra.mrb[120].mxu1 %v2382_v19  ;;  %v311_v19 = vld [vmem:[%s7551_s4 + $0x70] sm:$0xff] }
 0x13f   : > { %4181 = vmatmul.mubr.bf16.gmra.mrb[48].mxu0 %v6109_v18  ;;  %5676 = vmatprep.mubr.bf16.mxu1 %v2770_v23  ;;  %v2797_v23 = vsel %vm2753_vm5, %v2787_v41, %v2796_v7  ;;  %v313_v41 = vld [vmem:[%s7551_s4 + $0x80] sm:$0xff]  ;;  %v2849_v31 = vrot.slane %v2847_v14, 2 }
 0x140   : > { %4188 = vmatprep.mubr.bf16.mxu0 %v2036_v30  ;;  %v2806_v30 = vsel %vm2753_vm5, %v2796_v7, %v2805_v10  ;;  %4655 = vperm.xlu0 %5908, %v311_v19   ;;  %v6136_v7 = vld [vmem:[#allocation2 + $0x70] sm:$0xff]   ;;  %v317_v10 = vld [vmem:[%s7551_s4 + $0xa0] sm:$0xff]  ;;  %v318_v19 = vld [vmem:[%s7551_s4 + $0xa8] sm:$0xff] }
 0x141   : > { %v6875_v1 = vpop.f32.mrb[16].mxu1  ;;  %4670 = vperm.xlu1 %5909, %v314_v39   ;;  %v2856_v15 = vshll.u32 %v6136_v7, 16 }
 0x142   : > { %7560 = vst [vmem:[#allocation9_spill] sm:$0xff] %v6875_v1  ;;  %v3766_v47 = vpop.f32.mrb[17].mxu1 }
 0x143   : > { %v6884_v54 = vpop.f32.mrb[18].mxu1  ;;  %v2838_v47 = vshll.u32 %v6131_v34, 16  ;;  %v320_v34 = vld [vmem:[%s7551_s4 + $0xb8] sm:$0xff]  ;;  %v2858_v42 = vrot.slane %v2856_v15, 2 }
 0x144   : > { %7561 = vst [vmem:[#allocation10_spill] sm:$0xff] %v6884_v54  ;;  %v3769_v63 = vpop.f32.mrb[19].mxu1  ;;  %4665 = vperm.xlu0 %5908, %v313_v41  }
 0x145   : > { %v2828_v63 = vrot.slane %v2826_v2, 1  ;;  %v2840_v5 = vrot.slane %v2838_v47, 2  ;;  %4680 = vperm.xlu1 %5909, %v316_v60   ;;  %v6137_v2 = vld [vmem:[#allocation2 + $0x18] sm:$0xff]   ;;  %v2865_v60 = vshll.u32 %v6139_v37, 16 }
 0x146   : > { %5677 = vmatmul.mubr.bf16.vlgmr.msra.gmra.mrb[124].mxu1 %v2779_v52  ;;  %v6130_v52 = vld [vmem:[#allocation2 + $0xa0] ss:$0 sps:$4 sm:$0x11]  }
 0x147   : > { %4189 = vmatmul.mubr.bf16.gmra.mrb[52].mxu0 %v6116_v51  ;;  %5680 = vmatprep.mubr.bf16.mxu1 %v2788_v58  ;;  %v2059_v51 = vrot.slane %v2057_v38, 1  ;;  %v2065_v13 = vshll.u32 %v6130_v52, 16  ;;  %v2841_v21 = vor.u32 %v2840_v5, %v2837_v55 }
 0x148   : > { %4196 = vmatprep.mubr.bf16.mxu0 %v2044_v0  ;;  %v2831_v0 = vrot.slane %v2829_v44, 2  ;;  %4675 = vperm.xlu0 %5908, %v315_v33   ;;  %v6141_v44 = vld [vmem:[#allocation2 + $0x80] sm:$0xff]   ;;  %v322_v33 = vld [vmem:[%s7551_s4 + $0xc8] sm:$0xff] }
 0x149   : > { %v6898_v18 = vpop.f32.mrb[20].mxu1  ;;  %v2060_v9 = vsel %vm1920_vm4, %v2055_v48, %v2059_v51  ;;  %v2067_v24 = vrot.slane %v2065_v13, 1  ;;  %4690 = vperm.xlu1 %5909, %v318_v19   ;;  %v6134_v48 = vld [vmem:[#allocation2 + $0x18] sm:$0xfe]   ;;  %v2867_v19 = vrot.slane %v2865_v60, 2 }
 0x14a   : > { %v3774_v20 = vpop.f32.mrb[21].mxu1  ;;  %v324_v13 = vld [vmem:[%s7551_s4 + $0xd8] sm:$0xff] }
 0x14b   : > { %v6907_v28 = vpop.f32.mrb[22].mxu1  ;;  %v2832_v20 = vor.u32 %v2831_v0, %v2828_v63  ;;  %v2871_v63 = vshrl.u32 %v6141_v44, 16  ;;  %v2874_v0 = vshll.u32 %v6141_v44, 16 }
 0x14c   : > { %v3777_v35 = vpop.f32.mrb[23].mxu1  ;;  %4685 = vperm.xlu0 %5908, %v317_v10   ;;  %v2236_v10 = vshrl.u32 %v6137_v2, 16 }
 0x14d   : > { %v6128_v35 = vld [vmem:[#allocation2 + $0x90] sm:$0xff]   ;;  %v2842_v41 = vsel %vm2753_vm5, %v2832_v20, %v2841_v21  ;;  %4700 = vperm.xlu1 %5909, %v320_v34   ;;  %v325_v34 = vld [vmem:[%s7551_s4 + $0xe0] sm:$0xff] }
 0x14e   : > { %5681 = vmatmul.mubr.bf16.gmra.mrb[128].mxu1 %v2797_v23  ;;  %v2063_v23 = vor.u32 %v2061_v12, %v2059_v51  ;;  %v6952_v51 = vld [vmem:[#allocation2 + $0x20] sm:$0xff]  }
 0x14f   : > { %4197 = vmatmul.mubr.bf16.gmra.mrb[56].mxu0 %v6120_v16  ;;  %5684 = vmatprep.mubr.bf16.mxu1 %v2806_v30  ;;  %v2853_v16 = vshrl.u32 %v6136_v7, 16  ;;  %v2846_v30 = vrot.slane %v2844_v6, 1  ;;  %v2551_v55 = vrot.slane %v6952_v51, 1  ;;  %v323_v7 = vld [vmem:[%s7551_s4 + $0xd0] sm:$0xff]  ;;  %v2243_v6 = vshll.u32 %v6960_v57, 16 }
 0x150   : > { %4204 = vmatprep.mubr.bf16.mxu0 %v2052_v36  ;;  %v2833_v36 = vsel %vm2753_vm5, %v2823_v46, %v2832_v20  ;;  %4695 = vperm.xlu0 %5908, %v319_v26   ;;  %v2068_v47 = vsel %vm1920_vm4, %v2063_v23, %v2067_v24  ;;  %v321_v46 = vld [vmem:[%s7551_s4 + $0xc0] sm:$0xff]  ;;  %v6143_v20 = vld [vmem:[#allocation2 + $0x88] sm:$0xff]   ;;  %v2873_v24 = vrot.slane %v2871_v63, 1  ;;  %v2876_v26 = vrot.slane %v2874_v0, 2 }
 0x151   : > { %v6919_v29 = vpop.f32.mrb[24].mxu1  ;;  %v2855_v39 = vrot.slane %v2853_v16, 1  ;;  %v2850_v52 = vor.u32 %v2849_v31, %v2846_v30  ;;  %4710 = vperm.xlu1 %5909, %v322_v33   ;;  %v6145_v30 = vld [vmem:[#allocation2 + $0x90] sm:$0xff]  }
 0x152   : > { %v3782_v58 = vpop.f32.mrb[25].mxu1  ;;  %v2877_v44 = vor.u32 %v2876_v26, %v2873_v24 }
 0x153   : > { %v6928_v3 = vpop.f32.mrb[26].mxu1  ;;  %v2862_v58 = vshrl.u32 %v6139_v37, 16 }
 0x154   : > { %v3785_v8 = vpop.f32.mrb[27].mxu1  ;;  %4705 = vperm.xlu0 %5908, %v321_v46   ;;  %v327_v46 = vld [vmem:[%s7551_s4 + $0xf0] sm:$0xff] }
 0x155   : > { %v6132_v8 = vld [vmem:[#allocation2 + $0x98] sm:$0xff]   ;;  %v2864_v14 = vrot.slane %v2862_v58, 1  ;;  %4720 = vperm.xlu1 %5909, %v324_v13   ;;  %v6149_v13 = vld [vmem:[#allocation2 + $0xa0] sm:$0xff]  }
 0x156   : > { %5685 = vmatmul.mubr.bf16.gmra.mrb[132].mxu1 %v2815_v62  ;;  %v2238_v62 = vshll.u32 %v6137_v2, 16  ;;  %v328_v58 = vld [vmem:[%s7551_s4 + $0xf8] sm:$0xff] }
 0x157   : > { %4205 = vmatmul.mubr.bf16.gmra.mrb[60].mxu0 %v6124_v61  ;;  %5688 = vmatprep.mubr.bf16.mxu1 %v2824_v4  ;;  %v2859_v61 = vor.u32 %v2858_v42, %v2855_v39  ;;  %v2550_v4 = vrot.slane %v6134_v48, 1  ;;  %v2868_v37 = vor.u32 %v2867_v19, %v2864_v14  ;;  %v2880_v39 = vshrl.u32 %v6143_v20, 16  ;;  %v7004_v14 = vld [vmem:[#allocation2 + $0x30] sm:$0xff]  }
 0x158   : > { %4212 = vmatprep.mubr.bf16.mxu0 %v2060_v9  ;;  %v2851_v9 = vsel %vm2753_vm5, %v2841_v21, %v2850_v52  ;;  %v2240_v23 = vrot.slane %v2238_v62, 1  ;;  %4715 = vperm.xlu0 %5908, %v323_v7   ;;  %v2883_v42 = vshll.u32 %v6143_v20, 16  ;;  %v330_v20 = vld [vmem:[%s7551_s4 + $0x108] sm:$0xff] }
 0x159   : > { %v6939_v25 = vpop.f32.mrb[28].mxu1  ;;  %v2860_v15 = vsel %vm2753_vm5, %v2850_v52, %v2859_v61  ;;  %v2552_v31 = vsel %vm2549_vm3, %v2550_v4, %v2551_v55  ;;  %v2247_v52 = vshrl.u32 %v6960_v57, 16  ;;  %v2869_v60 = vsel %vm2753_vm5, %v2859_v61, %v2868_v37  ;;  %v6147_v4 = vld [vmem:[#allocation2 + $0x98] sm:$0xff]   ;;  %v329_v61 = vld [vmem:[%s7551_s4 + $0x100] sm:$0xff] }
 0x15a   : > { %v3790_v32 = vpop.f32.mrb[29].mxu1  ;;  %v2241_v2 = vor.u32 %v2240_v23, %v2236_v10  ;;  %v2882_v63 = vrot.slane %v2880_v39, 1  ;;  %v2885_v0 = vrot.slane %v2883_v42, 2  ;;  %v2898_v24 = vshrl.u32 %v6147_v4, 16  ;;  %v332_v39 = vld [vmem:[%s7551_s4 + $0x118] sm:$0xff] }
 0x15b   : > { %v6948_v38 = vpop.f32.mrb[30].mxu1  ;;  %v6977_v32 = vld [vmem:[#allocation2 + $0x28] sm:$0xff]   ;;  %v2901_v26 = vshll.u32 %v6147_v4, 16 }
 0x15c   : > { %v3793_v45 = vpop.f32.mrb[31].mxu1  ;;  %4725 = vperm.xlu0 %5908, %v325_v34   ;;  %v2553_v48 = vrot.slane %v6977_v32, 1  ;;  %v2886_v23 = vor.u32 %v2885_v0, %v2882_v63  ;;  %v2555_v32 = vrot.slane %v7004_v14, 1  ;;  %v6148_v0 = vld [vmem:[#allocation2 + $0x38] sm:$0xff]  }
 0x15d   : > { %v2889_v45 = vshrl.u32 %v6145_v30, 16 }
 0x15e   : > { %5689 = vmatmul.mubr.bf16.gmra.mrb[136].mxu1 %v2833_v36  ;;  %v2245_v36 = vrot.slane %v2243_v6, 1  ;;  %v2554_v6 = vsel %vm2549_vm3, %v2551_v55, %v2553_v48  ;;  %v2556_v63 = vsel %vm2549_vm3, %v2553_v48, %v2555_v32 }
 0x15f   : > { %4213 = vmatmul.mubr.bf16.gmra.mrb[64].mxu0 %v6128_v35  ;;  %5692 = vmatprep.mubr.bf16.mxu1 %v2842_v41  ;;  %v326_v35 = vld [vmem:[%s7551_s4 + $0xe8] sm:$0xff] }
 0x160   : > { %4220 = vmatprep.mubr.bf16.mxu0 %v2068_v47  ;;  %v6985_v41 = vld [vmem:[#allocation2 + $0x28] sm:$0xff]   ;;  %v2892_v47 = vshll.u32 %v6145_v30, 16  ;;  %4730 = vperm.xlu1 %5909, %v326_v35   ;;  %v2249_v19 = vor.u32 %v2247_v52, %v2245_v36  ;;  %v6146_v30 = vld [vmem:[#allocation2 + $0x30] sm:$0xff]  }
 0x161   : > { %v6963_v5 = vpop.f32.mrb[32].mxu1  ;;  %v2251_v62 = vshll.u32 %v6985_v41, 16  ;;  %4735 = vperm.xlu0 %5908, %v327_v46   ;;  %v331_v35 = vld [vmem:[%s7551_s4 + $0x110] sm:$0xff]  ;;  %v6151_v46 = vld [vmem:[#allocation2 + $0xa8] ss:$0 sps:$4 sm:$0x33]  }
 0x162   : > { %v3798_v12 = vpop.f32.mrb[33].mxu1  ;;  %v2894_v57 = vrot.slane %v2892_v47, 2  ;;  %v2903_v47 = vrot.slane %v2901_v26, 2  ;;  %v2916_v4 = vshrl.u32 %v6151_v46, 16  ;;  %v2263_v26 = vshrl.u32 %v6146_v30, 16 }
 0x163   : > { %v6973_v16 = vpop.f32.mrb[34].mxu1  ;;  %v2891_v12 = vrot.slane %v2889_v45, 1  ;;  %v2900_v45 = vrot.slane %v2898_v24, 1 }
 0x164   : > { %v3801_v21 = vpop.f32.mrb[35].mxu1  ;;  %4740 = vperm.xlu1 %5909, %v328_v58   ;;  %v2259_v58 = vshll.u32 %v6146_v30, 16  ;;  %v2918_v48 = vrot.slane %v2916_v4, 1 }
 0x165   : > { %v2895_v55 = vor.u32 %v2894_v57, %v2891_v12  ;;  %v2907_v21 = vshrl.u32 %v6149_v13, 16  ;;  %4745 = vperm.xlu0 %5908, %v329_v61  }
 0x166   : > { %5693 = vmatmul.mubr.bf16.gmra.mrb[140].mxu1 %v2851_v9  ;;  %v2878_v9 = vsel %vm2753_vm5, %v2868_v37, %v2877_v44  ;;  %v2261_v12 = vrot.slane %v2259_v58, 1 }
 0x167   : > { %4221 = vmatmul.mubr.bf16.gmra.mrb[68].mxu0 %v6132_v8  ;;  %5696 = vmatprep.mubr.bf16.mxu1 %v2860_v15  ;;  %v2246_v8 = vsel %vm1920_vm4, %v2241_v2, %v2245_v36  ;;  %v2253_v15 = vrot.slane %v2251_v62, 1  ;;  %v2255_v36 = vshrl.u32 %v6985_v41, 16  ;;  %v2887_v2 = vsel %vm2753_vm5, %v2877_v44, %v2886_v23 }
 0x168   : > { %4261 = vmatprep.mubr.bf16.mxu0 %v2552_v31  ;;  %v2910_v31 = vshll.u32 %v6149_v13, 16  ;;  %4750 = vperm.xlu1 %5909, %v330_v20   ;;  %v2904_v44 = vor.u32 %v2903_v47, %v2900_v45  ;;  %v6150_v13 = vld [vmem:[#allocation2 + $0x38] sm:$0xff]  }
 0x169   : > { %v6988_v51 = vpop.f32.mrb[36].mxu1  ;;  %v2254_v42 = vsel %vm1920_vm4, %v2249_v19, %v2253_v15  ;;  %4755 = vperm.xlu0 %5908, %v331_v35   ;;  %v2271_v45 = vshrl.u32 %v6150_v13, 16 }
 0x16a   : > { %v3806_v33 = vpop.f32.mrb[37].mxu1  ;;  %v2912_v62 = vrot.slane %v2910_v31, 2  ;;  %v2905_v61 = vsel %vm2753_vm5, %v2895_v55, %v2904_v44 }
 0x16b   : > { %v6999_v7 = vpop.f32.mrb[38].mxu1  ;;  %v2896_v33 = vsel %vm2753_vm5, %v2886_v23, %v2895_v55 }
 0x16c   : > { %v3809_v10 = vpop.f32.mrb[39].mxu1  ;;  %4760 = vperm.xlu1 %5909, %v332_v39  }
 0x16d   : > { %v2557_v10 = vrot.slane %v6148_v0, 1 }
 0x16e   : > { %5697 = vmatmul.mubr.bf16.gmra.mrb[144].mxu1 %v2869_v60  ;;  %v2909_v60 = vrot.slane %v2907_v21, 1  ;;  %v2267_v21 = vshll.u32 %v6150_v13, 16 }
 0x16f   : > { %4262 = vmatmul.mubr.bf16.vlgmr.msra.gmra.mrb[0].mxu0 %v2246_v8  ;;  %5700 = vmatprep.mubr.bf16.mxu1 %v2878_v9  ;;  %v2919_v8 = vshll.u32 %v6151_v46, 16  ;;  %v2257_v9 = vor.u32 %v2255_v36, %v2253_v15  ;;  %v2558_v31 = vsel %vm2549_vm3, %v2555_v32, %v2557_v10  ;;  %v2265_v36 = vor.u32 %v2263_v26, %v2261_v12 }
 0x170   : > { %4269 = vmatprep.mubr.bf16.mxu0 %v2554_v6  ;;  %v2913_v57 = vor.u32 %v2912_v62, %v2909_v60  ;;  %v2269_v55 = vrot.slane %v2267_v21, 1  ;;  %v2560_v32 = vsel %vm2549_vm3, %v2557_v10, %v2559_v43 }
 0x171   : > { %v7013_v34 = vpop.f32.mrb[40].mxu1  ;;  %v2921_v19 = vrot.slane %v2919_v8, 2  ;;  %v2262_v23 = vsel %vm1920_vm4, %v2257_v9, %v2261_v12 }
 0x172   : > { %v3814_v37 = vpop.f32.mrb[41].mxu1  ;;  %v2914_v24 = vsel %vm2753_vm5, %v2904_v44, %v2913_v57  ;;  %v2270_v30 = vsel %vm1920_vm4, %v2265_v36, %v2269_v55  ;;  %v2273_v46 = vor.u32 %v2271_v45, %v2269_v55 }
 0x173   : > { %v7024_v52 = vpop.f32.mrb[42].mxu1  ;;  %v2922_v35 = vor.u32 %v2921_v19, %v2918_v48 }
 0x174   : > { %v3817_v41 = vpop.f32.mrb[43].mxu1  ;;  %v2278_v62 = vsel %vm1920_vm4, %v2273_v46, %v6669_v50 }
 0x176   : > { %5701 = vmatmul.mubr.bf16.gmra.mrb[148].mxu1 %v2887_v2 }
 0x177   : > { %4270 = vmatmul.mubr.bf16.gmra.mrb[4].mxu0 %v2254_v42  ;;  %5704 = vmatprep.mubr.bf16.mxu1 %v2896_v33  ;;  %v2923_v42 = vsel %vm2753_vm5, %v2913_v57, %v2922_v35 }
 0x178   : > { %4277 = vmatprep.mubr.bf16.mxu0 %v2556_v63 }
 0x179   : > { %v7028_v6 = vpop.f32.mrb[44].mxu1 }
 0x17a   : > { %v3822_v14 = vpop.f32.mrb[45].mxu1 }
 0x17b   : > { %v7031_v20 = vpop.f32.mrb[46].mxu1 }
 0x17c   : > { %v3825_v15 = vpop.f32.mrb[47].mxu1 }
 0x17e   : > { %5705 = vmatmul.mubr.bf16.gmra.mrb[152].mxu1 %v2905_v61 }
 0x17f   : > { %4278 = vmatmul.mubr.bf16.gmra.mrb[8].mxu0 %v2262_v23  ;;  %5708 = vmatprep.mubr.bf16.mxu1 %v2914_v24 }
 0x180   : > { %4285 = vmatprep.mubr.bf16.mxu0 %v2558_v31 }
 0x181   : > { %v7036_v37 = vpop.f32.mrb[48].mxu1 }
 0x182   : > { %v3830_v39 = vpop.f32.mrb[49].mxu1 }
 0x183   : > { %v7039_v2 = vpop.f32.mrb[50].mxu1 }
 0x184   : > { %v3833_v47 = vpop.f32.mrb[51].mxu1 }
 0x186   : > { %5709 = vmatmul.mubr.bf16.gmra.mrb[156].mxu1 %v2923_v42 }
 0x187   : > { %4286 = vmatmul.mubr.bf16.gmra.mrb[12].mxu0 %v2270_v30 }
 0x188   : > { %4293 = vmatprep.mubr.bf16.mxu0 %v2560_v32 }
 0x189   : > { %v7045_v33 = vpop.f32.mrb[52].mxu1 }
 0x18a   : > { %v3838_v58 = vpop.f32.mrb[53].mxu1 }
 0x18b   : > { %v7047_v60 = vpop.f32.mrb[54].mxu1 }
 0x18c   : > { %v3841_v41 = vpop.f32.mrb[55].mxu1 }
 0x18d   : > { %v7071_v41 = vpop.permute.xlu0 %4585 }
 0x18f   : > { %4294 = vmatmul.mubr.bf16.gmra.mrb[16].mxu0 %v2278_v62 }
 0x191   : > { %v7051_v63 = vpop.f32.mrb[56].mxu1 }
 0x192   : > { %v3846_v0 = vpop.f32.mrb[57].mxu1 }
 0x193   : > { %v7053_v27 = vpop.f32.mrb[58].mxu1 }
 0x194   : > { %v3849_v43 = vpop.f32.mrb[59].mxu1 }
 0x195   : > { %v7073_v43 = vpop.permute.xlu1 %4595 }
 0x196   : > { %7562 = vst [vmem:[#allocation11_spill] sm:$0xff] %v7073_v43 }
 0x199   : > { %v7055_v44 = vpop.f32.mrb[60].mxu1 }
 0x19a   : > { %v3854_v4 = vpop.f32.mrb[61].mxu1 }
 0x19b   : > { %v7057_v8 = vpop.f32.mrb[62].mxu1 }
 0x19c   : > { %v3857_v9 = vpop.f32.mrb[63].mxu1 }
 0x19d   : > { %v7077_v9 = vpop.permute.xlu0 %4590 }
 0x1a1   : > { %v7059_v12 = vpop.f32.mrb[64].mxu1 }
 0x1a2   : > { %v3862_v57 = vpop.f32.mrb[65].mxu1 }
 0x1a3   : > { %v7061_v13 = vpop.f32.mrb[66].mxu1 }
 0x1a4   : > { %v3865_v50 = vpop.f32.mrb[67].mxu1 }
 0x1a9   : > { %v7063_v10 = vpop.f32.mrb[68].mxu1 }
 0x1aa   : > { %v3870_v14 = vpop.f32.mrb[69].mxu1 }
 0x1ab   : > { %v7065_v61 = vpop.f32.mrb[70].mxu1 }
 0x1ac   : > { %v3873_v48 = vpop.f32.mrb[71].mxu1 }
 0x1b1   : > { %v4303_v19 = vpop.f32.mrb[72].mxu1 }
 0x1b2   : > { %v4305_v23 = vpop.f32.mrb[73].mxu1 }
 0x1b3   : > { %v4306_v24 = vpop.f32.mrb[74].mxu1 }
 0x1b4   : > { %v4308_v26 = vpop.f32.mrb[75].mxu1 }
 0x1b9   : > { %v4311_v21 = vpop.f32.mrb[76].mxu1 }
 0x1ba   : > { %v4313_v15 = vpop.f32.mrb[77].mxu1 }
 0x1bb   : > { %v4314_v31 = vpop.f32.mrb[78].mxu1 }
 0x1bc   : > { %v4316_v35 = vpop.f32.mrb[79].mxu1 }
 0x1c1   : > { %v4319_v36 = vpop.f32.mrb[80].mxu1 }
 0x1c2   : > { %v4321_v55 = vpop.f32.mrb[81].mxu1 }
 0x1c3   : > { %v4322_v39 = vpop.f32.mrb[82].mxu1 }
 0x1c4   : > { %v4324_v42 = vpop.f32.mrb[83].mxu1 }
 0x1c9   : > { %v4327_v30 = vpop.f32.mrb[84].mxu1 }
 0x1ca   : > { %v4329_v45 = vpop.f32.mrb[85].mxu1 }
 0x1cb   : > { %v4330_v47 = vpop.f32.mrb[86].mxu1 }
 0x1cc   : > { %v4332_v32 = vpop.f32.mrb[87].mxu1 }
 0x1cd   : > { %v7087_v32 = vpop.permute.xlu1 %4600 }
 0x1ce   : > { %7563 = vst [vmem:[#allocation12_spill] sm:$0xff] %v7087_v32 }
 0x1d1   : > { %v7067_v46 = vpop.f32.mrb[88].mxu1 }
 0x1d2   : > { %v4337_v58 = vpop.f32.mrb[89].mxu1 }
 0x1d3   : > { %v7069_v62 = vpop.f32.mrb[90].mxu1 }
 0x1d4   : > { %v4340_v0 = vpop.f32.mrb[91].mxu1 }
 0x1d5   : > { %v7091_v0 = vpop.permute.xlu0 %4605 }
 0x1d6   : > { %7564 = vst [vmem:[#allocation13_spill] sm:$0xff] %v7091_v0 }
 0x1d9   : > { %v7075_v4 = vpop.f32.mrb[92].mxu1  ;;  %v7105_v1 = vpop.permute.xlu0 %4615 }
 0x1da   : > { %v4126_v57 = vpop.f32.mrb[20].mxu0  ;;  %v4345_v50 = vpop.f32.mrb[93].mxu1  ;;  %7566 = vst [vmem:[#allocation15_spill] sm:$0xff] %v7105_v1 }
 0x1db   : > { %v5754_v14 = vadd.f32 %v4126_v57, %v6898_v18  ;;  %v4128_v48 = vpop.f32.mrb[21].mxu0  ;;  %v7080_v23 = vpop.f32.mrb[94].mxu1 }
 0x1dc   : > { %v4129_v26 = vpop.f32.mrb[22].mxu0  ;;  %v4348_v15 = vpop.f32.mrb[95].mxu1 }
 0x1dd   : > { %v5756_v35 = vadd.f32 %v4129_v26, %v6907_v28  ;;  %v7083_v55 = vadd.f32 %v5754_v14, %v4303_v19  ;;  %v4131_v42 = vpop.f32.mrb[23].mxu0  ;;  %v7119_v1 = vpop.permute.xlu0 %4625 }
 0x1de   : > { %7568 = vst [vmem:[#allocation17_spill] sm:$0xff] %v7119_v1 }
 0x1df   : > { %v7085_v45 = vadd.f32 %v5756_v35, %v4306_v24  ;;  %v7101_v35 = vpop.permute.xlu1 %4610 }
 0x1e0   : > { %7565 = vst [vmem:[#allocation14_spill] sm:$0xff] %v7101_v35 }
 0x1e1   : > { %v7089_v58 = vpop.f32.mrb[96].mxu1  ;;  %v7133_v1 = vpop.permute.xlu0 %4635 }
 0x1e2   : > { %v4134_v50 = vpop.f32.mrb[24].mxu0  ;;  %v4353_v18 = vpop.f32.mrb[97].mxu1 }
 0x1e3   : > { %v5758_v57 = vadd.f32 %v4134_v50, %v6919_v29  ;;  %v4136_v48 = vpop.f32.mrb[25].mxu0  ;;  %v7094_v54 = vpop.f32.mrb[98].mxu1 }
 0x1e4   : > { %v4137_v15 = vpop.f32.mrb[26].mxu0  ;;  %v4356_v28 = vpop.f32.mrb[99].mxu1 }
 0x1e5   : > { %v5760_v19 = vadd.f32 %v4137_v15, %v6928_v3  ;;  %v7097_v14 = vadd.f32 %v5758_v57, %v4311_v21  ;;  %v4139_v24 = vpop.f32.mrb[27].mxu0 }
 0x1e7   : > { %v7099_v26 = vadd.f32 %v5760_v19, %v4314_v31  ;;  %v7115_v19 = vpop.permute.xlu1 %4620 }
 0x1e8   : > { %7567 = vst [vmem:[#allocation16_spill] sm:$0xff] %v7115_v19 }
 0x1e9   : > { %v7103_v42 = vpop.f32.mrb[100].mxu1 }
 0x1ea   : > { %v4142_v18 = vpop.f32.mrb[28].mxu0  ;;  %v4361_v29 = vpop.f32.mrb[101].mxu1 }
 0x1eb   : > { %v5762_v50 = vadd.f32 %v4142_v18, %v6939_v25  ;;  %v4144_v48 = vpop.f32.mrb[29].mxu0  ;;  %v7108_v22 = vpop.f32.mrb[102].mxu1 }
 0x1ec   : > { %v4145_v28 = vpop.f32.mrb[30].mxu0  ;;  %v4364_v3 = vpop.f32.mrb[103].mxu1 }
 0x1ed   : > { %v5764_v21 = vadd.f32 %v4145_v28, %v6948_v38  ;;  %v7111_v57 = vadd.f32 %v5762_v50, %v4319_v36  ;;  %v4147_v31 = vpop.f32.mrb[31].mxu0 }
 0x1ef   : > { %v7113_v15 = vadd.f32 %v5764_v21, %v4322_v39  ;;  %v7129_v21 = vpop.permute.xlu1 %4630 }
 0x1f0   : > { %7569 = vst [vmem:[#allocation18_spill] sm:$0xff] %v7129_v21 }
 0x1f1   : > { %v7117_v24 = vpop.f32.mrb[104].mxu1 }
 0x1f2   : > { %v4150_v29 = vpop.f32.mrb[32].mxu0  ;;  %v4369_v25 = vpop.f32.mrb[105].mxu1 }
 0x1f3   : > { %v5766_v18 = vadd.f32 %v4150_v29, %v6963_v5  ;;  %v4152_v48 = vpop.f32.mrb[33].mxu0  ;;  %v7122_v56 = vpop.f32.mrb[106].mxu1 }
 0x1f4   : > { %v4153_v3 = vpop.f32.mrb[34].mxu0  ;;  %v4372_v38 = vpop.f32.mrb[107].mxu1 }
 0x1f5   : > { %v5768_v36 = vadd.f32 %v4153_v3, %v6973_v16  ;;  %v7125_v50 = vadd.f32 %v5766_v18, %v4327_v30  ;;  %v4155_v39 = vpop.f32.mrb[35].mxu0 }
 0x1f7   : > { %v7127_v28 = vadd.f32 %v5768_v36, %v4330_v47  ;;  %v7145_v36 = vpop.permute.xlu1 %4640 }
 0x1f9   : > { %v7131_v31 = vpop.f32.mrb[108].mxu1 }
 0x1fa   : > { %v4158_v25 = vpop.f32.mrb[36].mxu0  ;;  %v4377_v5 = vpop.f32.mrb[109].mxu1 }
 0x1fb   : > { %v5770_v29 = vadd.f32 %v4158_v25, %v6988_v51  ;;  %v4160_v48 = vpop.f32.mrb[37].mxu0  ;;  %v7136_v19 = vpop.f32.mrb[110].mxu1 }
 0x1fc   : > { %v4161_v38 = vpop.f32.mrb[38].mxu0  ;;  %v4380_v16 = vpop.f32.mrb[111].mxu1 }
 0x1fd   : > { %v5772_v30 = vadd.f32 %v4161_v38, %v6999_v7  ;;  %v7140_v47 = vadd.f32 %v5770_v29, %v7067_v46  ;;  %v4163_v18 = vpop.f32.mrb[39].mxu0  ;;  %v7149_v5 = vpop.permute.xlu0 %4645 }
 0x1fe   : > { %v7161_v18 = vpop.permute.xlu1 %4650 }
 0x1ff   : > { %v7143_v3 = vadd.f32 %v5772_v30, %v7069_v62 }
 0x201   : > { %v7147_v39 = vpop.f32.mrb[112].mxu1 }
 0x202   : > { %v4166_v51 = vpop.f32.mrb[40].mxu0  ;;  %v4385_v25 = vpop.f32.mrb[113].mxu1 }
 0x203   : > { %v5774_v48 = vadd.f32 %v4166_v51, %v7013_v34  ;;  %v4168_v16 = vpop.f32.mrb[41].mxu0  ;;  %v7152_v21 = vpop.f32.mrb[114].mxu1 }
 0x204   : > { %v4169_v7 = vpop.f32.mrb[42].mxu0  ;;  %v4388_v46 = vpop.f32.mrb[115].mxu1 }
 0x205   : > { %v7155_v29 = vadd.f32 %v5774_v48, %v7075_v4  ;;  %v5776_v62 = vadd.f32 %v4169_v7, %v7024_v52  ;;  %v4171_v38 = vpop.f32.mrb[43].mxu0  ;;  %v7165_v25 = vpop.permute.xlu0 %4655 }
 0x206   : > { %v7177_v38 = vpop.permute.xlu1 %4660 }
 0x207   : > { %v7159_v30 = vadd.f32 %v5776_v62, %v7080_v23 }
 0x209   : > { %v7163_v35 = vpop.f32.mrb[116].mxu1 }
 0x20a   : > { %v4174_v34 = vpop.f32.mrb[44].mxu0  ;;  %v4393_v51 = vpop.f32.mrb[117].mxu1 }
 0x20b   : > { %v5778_v16 = vadd.f32 %v4174_v34, %v7028_v6  ;;  %v4176_v46 = vpop.f32.mrb[45].mxu0  ;;  %v7168_v0 = vpop.f32.mrb[118].mxu1 }
 0x20c   : > { %v4177_v4 = vpop.f32.mrb[46].mxu0  ;;  %v4396_v48 = vpop.f32.mrb[119].mxu1 }
 0x20d   : > { %v5780_v52 = vadd.f32 %v4177_v4, %v7031_v20  ;;  %v4179_v7 = vpop.f32.mrb[47].mxu0  ;;  %v7172_v23 = vadd.f32 %v5778_v16, %v7089_v58  ;;  %v7181_v51 = vpop.permute.xlu0 %4665 }
 0x20e   : > { %v7193_v7 = vpop.permute.xlu1 %4670 }
 0x20f   : > { %v7175_v62 = vadd.f32 %v5780_v52, %v7094_v54 }
 0x211   : > { %v7179_v49 = vpop.f32.mrb[120].mxu1 }
 0x212   : > { %v4182_v6 = vpop.f32.mrb[48].mxu0  ;;  %v4401_v34 = vpop.f32.mrb[121].mxu1 }
 0x213   : > { %v5782_v46 = vadd.f32 %v4182_v6, %v7036_v37  ;;  %v4184_v48 = vpop.f32.mrb[49].mxu0  ;;  %v7184_v40 = vpop.f32.mrb[122].mxu1 }
 0x214   : > { %v4185_v20 = vpop.f32.mrb[50].mxu0  ;;  %v4404_v4 = vpop.f32.mrb[123].mxu1 }
 0x215   : > { %v5784_v58 = vadd.f32 %v4185_v20, %v7039_v2  ;;  %v4187_v16 = vpop.f32.mrb[51].mxu0  ;;  %v7188_v54 = vadd.f32 %v5782_v46, %v7103_v42  ;;  %v7197_v34 = vpop.permute.xlu0 %4675 }
 0x216   : > { %v7213_v43 = vpop.permute.xlu1 %4680 }
 0x217   : > { %v7191_v52 = vadd.f32 %v5784_v58, %v7108_v22 }
 0x219   : > { %7570 = vst [vmem:[#allocation19_spill] sm:$0xff] %v7191_v52  ;;  %v7195_v32 = vpop.f32.mrb[124].mxu1 }
 0x21a   : > { %v4190_v37 = vpop.f32.mrb[52].mxu0  ;;  %v7199_v6 = vpop.f32.mrb[125].mxu1 }
 0x21b   : > { %v5786_v48 = vadd.f32 %v4190_v37, %v7045_v33  ;;  %v4192_v4 = vpop.f32.mrb[53].mxu0  ;;  %v7202_v2 = vpop.f32.mrb[126].mxu1 }
 0x21c   : > { %7571 = vst [vmem:[#allocation20_spill] sm:$0xff] %v7202_v2  ;;  %v4193_v20 = vpop.f32.mrb[54].mxu0  ;;  %v7204_v42 = vpop.f32.mrb[127].mxu1 }
 0x21d   : > { %v5788_v22 = vadd.f32 %v4193_v20, %v7047_v60  ;;  %v4195_v46 = vpop.f32.mrb[55].mxu0  ;;  %v7208_v58 = vadd.f32 %v5786_v48, %v7117_v24  ;;  %v7217_v33 = vpop.permute.xlu0 %4685 }
 0x21f   : > { %v7211_v16 = vadd.f32 %v5788_v22, %v7122_v56 }
 0x221   : > { %v7215_v52 = vpop.f32.mrb[128].mxu1 }
 0x222   : > { %7572 = vst [vmem:[#allocation21_spill] sm:$0xff] %v7215_v52  ;;  %v4198_v37 = vpop.f32.mrb[56].mxu0  ;;  %v7219_v4 = vpop.f32.mrb[129].mxu1 }
 0x223   : > { %7573 = vst [vmem:[#allocation22_spill] sm:$0xff] %v7219_v4  ;;  %v5790_v2 = vadd.f32 %v4198_v37, %v7051_v63  ;;  %v4200_v17 = vpop.f32.mrb[57].mxu0  ;;  %v7222_v60 = vpop.f32.mrb[130].mxu1 }
 0x224   : > { %7574 = vst [vmem:[#allocation23_spill] sm:$0xff] %v7222_v60  ;;  %v4201_v20 = vpop.f32.mrb[58].mxu0  ;;  %v7224_v24 = vpop.f32.mrb[131].mxu1 }
 0x225   : > { %7575 = vst [vmem:[#allocation24_spill] sm:$0xff] %v7224_v24  ;;  %v5792_v56 = vadd.f32 %v4201_v20, %v7053_v27  ;;  %v4203_v48 = vpop.f32.mrb[59].mxu0  ;;  %v7228_v22 = vadd.f32 %v5790_v2, %v7131_v31  ;;  %v7233_v52 = vpop.permute.xlu1 %4690 }
 0x226   : > { %v7235_v63 = vpop.permute.xlu0 %4695 }
 0x227   : > { %7576 = vst [vmem:[#allocation25_spill] sm:$0xff] %v7228_v22  ;;  %v7231_v46 = vadd.f32 %v5792_v56, %v7136_v19 }
 0x229   : > { %7577 = vst [vmem:[#allocation26_spill] sm:$0xff] %v7231_v46  ;;  %v5686_v4 = vpop.f32.mrb[132].mxu1 }
 0x22a   : > { %v4206_v17 = vpop.f32.mrb[60].mxu0  ;;  %v4481_v37 = vadd.f32 %v7083_v55, %v5686_v4  ;;  %v7238_v60 = vpop.f32.mrb[133].mxu1 }
 0x22b   : > { %v5794_v27 = vadd.f32 %v4206_v17, %v7055_v44  ;;  %v4208_v20 = vpop.f32.mrb[61].mxu0  ;;  %v5687_v48 = vpop.f32.mrb[134].mxu1 }
 0x22c   : > { %v4209_v31 = vpop.f32.mrb[62].mxu0  ;;  %v4484_v2 = vadd.f32 %v7085_v45, %v5687_v48  ;;  %v7242_v19 = vpop.f32.mrb[135].mxu1  ;;  %v7249_v22 = vmul.f32 %v7133_v1, %v4481_v37 }
 0x22d   : > { %v5796_v56 = vadd.f32 %v4209_v31, %v7057_v8  ;;  %v4211_v24 = vpop.f32.mrb[63].mxu0  ;;  %v7246_v46 = vadd.f32 %v5794_v27, %v7147_v39  ;;  %v7266_v45 = vpop.permute.xlu1 %4700 }
 0x22e   : > { %v7252_v55 = vmul.f32 %v7145_v36, %v4484_v2  ;;  %v7268_v39 = vpop.permute.xlu0 %4705 }
 0x22f   : > { %v7262_v44 = vadd.f32 %v5796_v56, %v7152_v21 }
 0x230   : > { %v5555_v8 = vpack.c.bf16 %v7252_v55, %v7249_v22 }
 0x231   : > { %v5690_v1 = vpop.f32.mrb[136].mxu1 }
 0x232   : > { %5621 = vst [vmem:[%s7259_s14 + $0x28] sm:$0xff] %v5555_v8   ;;  %v4214_v36 = vpop.f32.mrb[64].mxu0  ;;  %v4497_v4 = vadd.f32 %v7111_v57, %v5690_v1  ;;  %v4488_v24 = vpop.f32.mrb[137].mxu1 }
 0x233   : > { %v5798_v17 = vadd.f32 %v4214_v36, %v7059_v12  ;;  %v4216_v37 = vpop.f32.mrb[65].mxu0  ;;  %v4489_v27 = vadd.f32 %v7097_v14, %v4488_v24  ;;  %v5691_v21 = vpop.f32.mrb[138].mxu1 }
 0x234   : > { %v4217_v20 = vpop.f32.mrb[66].mxu0  ;;  %v4500_v48 = vadd.f32 %v7113_v15, %v5691_v21  ;;  %v4491_v31 = vpop.f32.mrb[139].mxu1  ;;  %v7281_v12 = vmul.f32 %v7165_v25, %v4497_v4 }
 0x235   : > { %v5800_v2 = vadd.f32 %v4217_v20, %v7061_v13  ;;  %v4219_v56 = vpop.f32.mrb[67].mxu0  ;;  %v4492_v8 = vadd.f32 %v7099_v26, %v4491_v31  ;;  %v7278_v57 = vadd.f32 %v5798_v17, %v7163_v35  ;;  %v7287_v1 = vmul.f32 %v7149_v5, %v4489_v27  ;;  %v7297_v35 = vpop.permute.xlu1 %4710 }
 0x236   : > { %v7284_v14 = vmul.f32 %v7177_v38, %v4500_v48  ;;  %v7301_v38 = vpop.permute.xlu0 %4715 }
 0x237   : > { %v7290_v15 = vmul.f32 %v7161_v18, %v4492_v8  ;;  %v7293_v13 = vadd.f32 %v5800_v2, %v7168_v0 }
 0x238   : > { %v5565_v26 = vpack.c.bf16 %v7284_v14, %v7281_v12 }
 0x239   : > { %v5560_v25 = vpack.c.bf16 %v7290_v15, %v7287_v1  ;;  %v5694_v36 = vpop.f32.mrb[140].mxu1 }
 0x23a   : > { %5623 = vst [vmem:[%s7259_s14 + $0x38] sm:$0xff] %v5565_v26   ;;  %v4222_v5 = vpop.f32.mrb[68].mxu0  ;;  %v4513_v4 = vadd.f32 %v7140_v47, %v5694_v36  ;;  %v4504_v18 = vpop.f32.mrb[141].mxu1 }
 0x23b   : > { %5622 = vst [vmem:[%s7259_s14 + $0x30] sm:$0xff] %v5560_v25   ;;  %v5802_v0 = vadd.f32 %v4222_v5, %v7063_v10  ;;  %v4224_v24 = vpop.f32.mrb[69].mxu0  ;;  %v4505_v17 = vadd.f32 %v7125_v50, %v4504_v18  ;;  %v5695_v37 = vpop.f32.mrb[142].mxu1 }
 0x23c   : > { %v4225_v27 = vpop.f32.mrb[70].mxu0  ;;  %v4516_v21 = vadd.f32 %v7143_v3, %v5695_v37  ;;  %v4507_v20 = vpop.f32.mrb[143].mxu1  ;;  %v7315_v10 = vmul.f32 %v7197_v34, %v4513_v4 }
 0x23d   : > { %v5804_v48 = vadd.f32 %v4225_v27, %v7065_v61  ;;  %v4227_v31 = vpop.f32.mrb[71].mxu0  ;;  %v4508_v2 = vadd.f32 %v7127_v28, %v4507_v20  ;;  %v7312_v47 = vadd.f32 %v5802_v0, %v7179_v49  ;;  %v7321_v56 = vmul.f32 %v7181_v51, %v4505_v17  ;;  %v4721_v49 = vpop.permute.xlu1 %4720 }
 0x23e   : > { %v7318_v50 = vmul.f32 %v7213_v43, %v4516_v21  ;;  %v7333_v26 = vpop.permute.xlu0 %4725 }
 0x23f   : > { %v7324_v3 = vmul.f32 %v7193_v7, %v4508_v2  ;;  %v7327_v61 = vadd.f32 %v5804_v48, %v7184_v40 }
 0x240   : > { %v5575_v28 = vpack.c.bf16 %v7318_v50, %v7315_v10 }
 0x241   : > { %v5570_v34 = vpack.c.bf16 %v7324_v3, %v7321_v56  ;;  %v5698_v8 = vpop.f32.mrb[144].mxu1 }
 0x242   : > { %5625 = vst [vmem:[%s7259_s14 + $0x48] sm:$0xff] %v5575_v28   ;;  %v4263_v43 = vpop.f32.mrb[0].mxu0  ;;  %v4529_v51 = vadd.f32 %v7172_v23, %v5698_v8  ;;  %v4520_v25 = vpop.f32.mrb[145].mxu1 }
 0x243   : > { %5624 = vst [vmem:[%s7259_s14 + $0x40] sm:$0xff] %v5570_v34   ;;  %v5744_v7 = vadd.f32 %v4263_v43, %v6800_v53  ;;  %v4265_v40 = vpop.f32.mrb[1].mxu0  ;;  %v4521_v36 = vadd.f32 %v7155_v29, %v4520_v25  ;;  %v5699_v5 = vpop.f32.mrb[146].mxu1 }
 0x244   : > { %v4266_v4 = vpop.f32.mrb[2].mxu0  ;;  %v4532_v18 = vadd.f32 %v7175_v62, %v5699_v5  ;;  %v4523_v0 = vpop.f32.mrb[147].mxu1  ;;  %v7345_v27 = vmul.f32 %v7235_v63, %v4529_v51 }
 0x245   : > { %v4441_v24 = vadd.f32 %v5744_v7, %v7199_v6  ;;  %v5745_v17 = vadd.f32 %v4266_v4, %v6803_v59  ;;  %v4268_v37 = vpop.f32.mrb[3].mxu0  ;;  %v4524_v23 = vadd.f32 %v7159_v30, %v4523_v0  ;;  %v7352_v21 = vmul.f32 %v7217_v33, %v4521_v36  ;;  %v7360_v6 = vpop.permute.xlu1 %4730 }
 0x246   : > { %v7348_v53 = vmul.f32 %v7266_v45, %v4532_v18  ;;  %v4736_v20 = vpop.permute.xlu0 %4735  ;;  %v7579_v18 = vld [vmem:[#allocation19_spill] sm:$0xff]  ;;  %v7581_v37 = vld [vmem:[#allocation20_spill] sm:$0xff] }
 0x247   : > { %v4763_v29 = vmul.f32 %v7071_v41, %v4441_v24  ;;  %v4444_v62 = vadd.f32 %v5745_v17, %v7204_v42  ;;  %v7356_v59 = vmul.f32 %v7233_v52, %v4524_v23 }
 0x248   : > { %v5585_v30 = vpack.c.bf16 %v7348_v53, %v7345_v27 }
 0x249   : > { %v4764_v63 = vmul.f32 %v7077_v9, %v4444_v62  ;;  %v5580_v45 = vpack.c.bf16 %v7356_v59, %v7352_v21  ;;  %v5702_v41 = vpop.f32.mrb[148].mxu1  ;;  %v5021_v33 = vmul.f32 %v4763_v29, %v4763_v29  ;;  %v4741_v62 = vpop.permute.xlu1 %4740 }
 0x24a   : > { %5627 = vst [vmem:[%s7259_s14 + $0x58] sm:$0xff] %v5585_v30   ;;  %v4271_v42 = vpop.f32.mrb[4].mxu0  ;;  %v4545_v48 = vadd.f32 %v7208_v58, %v5702_v41  ;;  %v4536_v52 = vpop.f32.mrb[149].mxu1  ;;  %v7578_v58 = vld [vmem:[#allocation4_spill] sm:$0xff] }
 0x24b   : > { %v5530_v31 = vpack.c.bf16 %v4764_v63, %v4763_v29  ;;  %v4979_v2 = vadd.f32 %v4764_v63, %v4763_v29  ;;  %v5022_v28 = vmul.f32 %v4764_v63, %v4764_v63  ;;  %5626 = vst [vmem:[%s7259_s14 + $0x50] sm:$0xff] %v5580_v45   ;;  %v5746_v34 = vadd.f32 %v4271_v42, %v6811_v11  ;;  %v4273_v8 = vpop.f32.mrb[5].mxu0  ;;  %v5703_v9 = vpop.f32.mrb[150].mxu1  ;;  %v7582_v63 = vld [vmem:[#allocation12_spill] sm:$0xff] }
 0x24c   : > { %v4537_v43 = vadd.f32 %v7188_v54, %v4536_v52  ;;  %v4274_v51 = vpop.f32.mrb[6].mxu0  ;;  %v4548_v25 = vadd.f32 %v7211_v16, %v5703_v9  ;;  %v4539_v7 = vpop.f32.mrb[151].mxu1  ;;  %v7376_v11 = vmul.f32 %v7301_v38, %v4545_v48  ;;  %v7580_v54 = vld [vmem:[#allocation11_spill] sm:$0xff]  ;;  %v7583_v8 = vld [vmem:[#allocation5_spill] sm:$0xff] }
 0x24d   : > { %5531 = vst [vmem:[%s7259_s14] sm:$0xff] %v5530_v31   ;;  %v5057_v40 = vadd.f32 %v5022_v28, %v5021_v33  ;;  %v4449_v36 = vadd.f32 %v5746_v34, %v7195_v32  ;;  %v5747_v5 = vadd.f32 %v4274_v51, %v7578_v58  ;;  %v4276_v4 = vpop.f32.mrb[7].mxu0  ;;  %v4540_v0 = vadd.f32 %v7579_v18, %v4539_v7  ;;  %v7393_v41 = vpop.permute.xlu0 %4745 }
 0x24e   : > { %v7378_v24 = vmul.f32 %v4721_v49, %v4548_v25  ;;  %v7382_v16 = vmul.f32 %v7268_v39, %v4537_v43  ;;  %v7584_v43 = vld [vmem:[#allocation25_spill] sm:$0xff] }
 0x24f   : > { %v4765_v17 = vmul.f32 %v7580_v54, %v4449_v36  ;;  %v4452_v23 = vadd.f32 %v5747_v5, %v7581_v37  ;;  %v7386_v32 = vmul.f32 %v7297_v35, %v4540_v0  ;;  %v7585_v5 = vld [vmem:[#allocation6_spill] sm:$0xff] }
 0x250   : > { %v5595_v29 = vpack.c.bf16 %v7378_v24, %v7376_v11  ;;  %v7587_v0 = vld [vmem:[#allocation22_spill] sm:$0xff] }
 0x251   : > { %v4980_v30 = vadd.f32 %v4979_v2, %v4765_v17  ;;  %v5023_v38 = vmul.f32 %v4765_v17, %v4765_v17  ;;  %v4766_v49 = vmul.f32 %v7582_v63, %v4452_v23  ;;  %v5590_v45 = vpack.c.bf16 %v7386_v32, %v7382_v16  ;;  %v5706_v39 = vpop.f32.mrb[152].mxu1  ;;  %v7589_v63 = vld [vmem:[#allocation13_spill] sm:$0xff] }
 0x252   : > { %5629 = vst [vmem:[%s7259_s14 + $0x68] sm:$0xff] %v5595_v29   ;;  %v4279_v33 = vpop.f32.mrb[8].mxu0  ;;  %v4561_v35 = vadd.f32 %v7246_v46, %v5706_v39  ;;  %v4552_v42 = vpop.f32.mrb[153].mxu1  ;;  %v7588_v29 = vld [vmem:[#allocation24_spill] sm:$0xff]  ;;  %v7590_v39 = vld [vmem:[#allocation14_spill] sm:$0xff] }
 0x253   : > { %v5058_v48 = vadd.f32 %v5057_v40, %v5023_v38  ;;  %v5535_v52 = vpack.c.bf16 %v4766_v49, %v4765_v17  ;;  %v4981_v31 = vadd.f32 %v4980_v30, %v4766_v49  ;;  %v5024_v28 = vmul.f32 %v4766_v49, %v4766_v49  ;;  %5628 = vst [vmem:[%s7259_s14 + $0x60] sm:$0xff] %v5590_v45   ;;  %v4281_v2 = vpop.f32.mrb[9].mxu0  ;;  %v5707_v34 = vpop.f32.mrb[154].mxu1  ;;  %v7586_v40 = vld [vmem:[#allocation26_spill] sm:$0xff] }
 0x254   : > { %v5748_v9 = vadd.f32 %v4279_v33, %v7583_v8  ;;  %v4553_v51 = vadd.f32 %v7584_v43, %v4552_v42  ;;  %v4282_v25 = vpop.f32.mrb[10].mxu0  ;;  %v4564_v7 = vadd.f32 %v7262_v44, %v5707_v34  ;;  %v4555_v36 = vpop.f32.mrb[155].mxu1  ;;  %v7405_v17 = vmul.f32 %v4736_v20, %v4561_v35  ;;  %v7591_v34 = vld [vmem:[#allocation7_spill] sm:$0xff] }
 0x255   : > { %5617 = vst [vmem:[%s7259_s14 + $0x8] sm:$0xff] %v5535_v52   ;;  %v5059_v58 = vadd.f32 %v5058_v48, %v5024_v28  ;;  %v5749_v46 = vadd.f32 %v4282_v25, %v7585_v5  ;;  %v4284_v4 = vpop.f32.mrb[11].mxu0  ;;  %v4556_v18 = vadd.f32 %v7586_v40, %v4555_v36  ;;  %v4751_v30 = vpop.permute.xlu1 %4750  ;;  %v7593_v40 = vld [vmem:[#allocation8_spill] sm:$0xff] }
 0x256   : > { %v4457_v54 = vadd.f32 %v5748_v9, %v7587_v0  ;;  %v7407_v37 = vmul.f32 %v4741_v62, %v4564_v7  ;;  %v7410_v23 = vmul.f32 %v7333_v26, %v4553_v51  ;;  %v4756_v33 = vpop.permute.xlu0 %4755  ;;  %v7592_v4 = vld [vmem:[#allocation21_spill] sm:$0xff] }
 0x257   : > { %v4460_v44 = vadd.f32 %v5749_v46, %v7588_v29  ;;  %v7414_v38 = vmul.f32 %v7360_v6, %v4556_v18 }
 0x258   : > { %v4767_v49 = vmul.f32 %v7589_v63, %v4457_v54  ;;  %v5605_v45 = vpack.c.bf16 %v7407_v37, %v7405_v17 }
 0x259   : > { %v4768_v20 = vmul.f32 %v7590_v39, %v4460_v44  ;;  %v5600_v62 = vpack.c.bf16 %v7414_v38, %v7410_v23  ;;  %v5710_v26 = vpop.f32.mrb[156].mxu1  ;;  %v4761_v46 = vpop.permute.xlu1 %4760 }
 0x25a   : > { %v4982_v35 = vadd.f32 %v4981_v31, %v4767_v49  ;;  %v5025_v42 = vmul.f32 %v4767_v49, %v4767_v49  ;;  %5631 = vst [vmem:[%s7259_s14 + $0x78] sm:$0xff] %v5605_v45   ;;  %v4287_v48 = vpop.f32.mrb[12].mxu0  ;;  %v4577_v6 = vadd.f32 %v7312_v47, %v5710_v26  ;;  %v4568_v52 = vpop.f32.mrb[157].mxu1 }
 0x25b   : > { %v5540_v28 = vpack.c.bf16 %v4768_v20, %v4767_v49  ;;  %v5026_v2 = vmul.f32 %v4768_v20, %v4768_v20  ;;  %5630 = vst [vmem:[%s7259_s14 + $0x70] sm:$0xff] %v5600_v62   ;;  %v5750_v8 = vadd.f32 %v4287_v48, %v7591_v34  ;;  %v4289_v9 = vpop.f32.mrb[13].mxu0  ;;  %v4569_v43 = vadd.f32 %v7278_v57, %v4568_v52  ;;  %v5711_v51 = vpop.f32.mrb[158].mxu1  ;;  %v7595_v49 = vld [vmem:[#allocation23_spill] sm:$0xff] }
 0x25c   : > { %v5060_v25 = vadd.f32 %v5059_v58, %v5025_v42  ;;  %v4983_v7 = vadd.f32 %v4982_v35, %v4768_v20  ;;  %v4290_v36 = vpop.f32.mrb[14].mxu0  ;;  %v4580_v31 = vadd.f32 %v7327_v61, %v5711_v51  ;;  %v4571_v5 = vpop.f32.mrb[159].mxu1  ;;  %v7432_v44 = vmul.f32 %v4756_v33, %v4577_v6  ;;  %v7594_v58 = vld [vmem:[#allocation15_spill] sm:$0xff]  ;;  %v7596_v33 = vld [vmem:[#allocation16_spill] sm:$0xff]  ;;  %v7598_v9 = vld [vmem:[#allocation10_spill] sm:$0xff] }
 0x25d   : > { %5618 = vst [vmem:[%s7259_s14 + $0x10] sm:$0xff] %v5540_v28   ;;  %v4465_v47 = vadd.f32 %v5750_v8, %v7592_v4  ;;  %v5751_v18 = vadd.f32 %v4290_v36, %v7593_v40  ;;  %v4292_v0 = vpop.f32.mrb[15].mxu0  ;;  %v4572_v54 = vadd.f32 %v7293_v13, %v4571_v5  ;;  %v7438_v61 = vmul.f32 %v7393_v41, %v4569_v43  ;;  %v7597_v28 = vld [vmem:[#allocation9_spill] sm:$0xff]  ;;  %v7600_v5 = vld [vmem:[#allocation18_spill] sm:$0xff] }
 0x25e   : > { %v5061_v29 = vadd.f32 %v5060_v25, %v5026_v2  ;;  %v7434_v57 = vmul.f32 %v4761_v46, %v4580_v31  ;;  %v7599_v36 = vld [vmem:[#allocation17_spill] sm:$0xff] }
 0x25f   : > { %v4769_v63 = vmul.f32 %v7594_v58, %v4465_v47  ;;  %v4468_v45 = vadd.f32 %v5751_v18, %v7595_v49  ;;  %v7441_v39 = vmul.f32 %v4751_v30, %v4572_v54 }
 0x260   : > { %v5615_v20 = vpack.c.bf16 %v7434_v57, %v7432_v44 }
 0x261   : > { %v4984_v13 = vadd.f32 %v4983_v7, %v4769_v63  ;;  %v5027_v62 = vmul.f32 %v4769_v63, %v4769_v63  ;;  %v4770_v26 = vmul.f32 %v7596_v33, %v4468_v45  ;;  %v5610_v35 = vpack.c.bf16 %v7441_v39, %v7438_v61 }
 0x262   : > { %5633 = vst [vmem:[%s7259_s14 + $0x88] sm:$0xff] %v5615_v20   ;;  %v4295_v42 = vpop.f32.mrb[16].mxu0  ;;  %v5033_v45 = vmul.f32 %v7287_v1, %v7287_v1 }
 0x263   : > { %v5062_v48 = vadd.f32 %v5061_v29, %v5027_v62  ;;  %v5545_v41 = vpack.c.bf16 %v4770_v26, %v4769_v63  ;;  %v4985_v6 = vadd.f32 %v4984_v13, %v4770_v26  ;;  %v5028_v52 = vmul.f32 %v4770_v26, %v4770_v26  ;;  %5632 = vst [vmem:[%s7259_s14 + $0x80] sm:$0xff] %v5610_v35   ;;  %v4297_v30 = vpop.f32.mrb[17].mxu0 }
 0x264   : > { %v5752_v2 = vadd.f32 %v4295_v42, %v7597_v28  ;;  %v4298_v34 = vpop.f32.mrb[18].mxu0  ;;  %v5031_v29 = vmul.f32 %v7249_v22, %v7249_v22  ;;  %v5034_v62 = vmul.f32 %v7290_v15, %v7290_v15 }
 0x265   : > { %5619 = vst [vmem:[%s7259_s14 + $0x18] sm:$0xff] %v5545_v41   ;;  %v5063_v8 = vadd.f32 %v5062_v48, %v5028_v52  ;;  %v5753_v43 = vadd.f32 %v4298_v34, %v7598_v9  ;;  %v4300_v51 = vpop.f32.mrb[19].mxu0 }
 0x266   : > { %v4473_v25 = vadd.f32 %v5752_v2, %v7238_v60  ;;  %v5032_v60 = vmul.f32 %v7252_v55, %v7252_v55 }
 0x267   : > { %v4476_v7 = vadd.f32 %v5753_v43, %v7242_v19 }
 0x268   : > { %v4771_v31 = vmul.f32 %v7599_v36, %v4473_v25 }
 0x269   : > { %v4772_v46 = vmul.f32 %v7600_v5, %v4476_v7 }
 0x26a   : > { %v4986_v4 = vadd.f32 %v4985_v6, %v4771_v31  ;;  %v5029_v47 = vmul.f32 %v4771_v31, %v4771_v31 }
 0x26b   : > { %v5550_v40 = vpack.c.bf16 %v4772_v46, %v4771_v31  ;;  %v5030_v18 = vmul.f32 %v4772_v46, %v4772_v46 }
 0x26c   : > { %v5064_v0 = vadd.f32 %v5063_v8, %v5029_v47  ;;  %v4987_v54 = vadd.f32 %v4986_v4, %v4772_v46 }
 0x26d   : > { %5620 = vst [vmem:[%s7259_s14 + $0x20] sm:$0xff] %v5550_v40  }
 0x26e   : > { %v4988_v58 = vadd.f32 %v4987_v54, %v7249_v22  ;;  %v5065_v63 = vadd.f32 %v5064_v0, %v5030_v18  ;;  %v5035_v22 = vmul.f32 %v7281_v12, %v7281_v12 }
 0x270   : > { %v4989_v19 = vadd.f32 %v4988_v58, %v7252_v55  ;;  %v5066_v49 = vadd.f32 %v5065_v63, %v5031_v29  ;;  %v5036_v55 = vmul.f32 %v7284_v14, %v7284_v14 }
 0x272   : > { %v4990_v20 = vadd.f32 %v4989_v19, %v7287_v1  ;;  %v5067_v13 = vadd.f32 %v5066_v49, %v5032_v60  ;;  %v5037_v1 = vmul.f32 %v7321_v56, %v7321_v56 }
 0x274   : > { %v4991_v33 = vadd.f32 %v4990_v20, %v7290_v15  ;;  %v5068_v26 = vadd.f32 %v5067_v13, %v5033_v45  ;;  %v5038_v15 = vmul.f32 %v7324_v3, %v7324_v3 }
 0x276   : > { %v4992_v35 = vadd.f32 %v4991_v33, %v7281_v12  ;;  %v5069_v42 = vadd.f32 %v5068_v26, %v5034_v62  ;;  %v5039_v12 = vmul.f32 %v7315_v10, %v7315_v10 }
 0x278   : > { %v4993_v48 = vadd.f32 %v4992_v35, %v7284_v14  ;;  %v5070_v41 = vadd.f32 %v5069_v42, %v5035_v22  ;;  %v5040_v14 = vmul.f32 %v7318_v50, %v7318_v50 }
 0x27a   : > { %v4994_v6 = vadd.f32 %v4993_v48, %v7321_v56  ;;  %v5071_v52 = vadd.f32 %v5070_v41, %v5036_v55  ;;  %v5041_v56 = vmul.f32 %v7352_v21, %v7352_v21  ;;  %v5056_v55 = vmul.f32 %v7434_v57, %v7434_v57 }
 0x27c   : > { %v4995_v30 = vadd.f32 %v4994_v6, %v7324_v3  ;;  %v5072_v28 = vadd.f32 %v5071_v52, %v5037_v1  ;;  %v5042_v3 = vmul.f32 %v7356_v59, %v7356_v59 }
 0x27e   : > { %v4996_v2 = vadd.f32 %v4995_v30, %v7315_v10  ;;  %v5073_v34 = vadd.f32 %v5072_v28, %v5038_v15  ;;  %v5043_v10 = vmul.f32 %v7345_v27, %v7345_v27 }
 0x280   : > { %v4997_v8 = vadd.f32 %v4996_v2, %v7318_v50  ;;  %v5074_v9 = vadd.f32 %v5073_v34, %v5039_v12  ;;  %v5044_v50 = vmul.f32 %v7348_v53, %v7348_v53 }
 0x282   : > { %v4998_v43 = vadd.f32 %v4997_v8, %v7352_v21  ;;  %v5075_v51 = vadd.f32 %v5074_v9, %v5040_v14  ;;  %v5045_v21 = vmul.f32 %v7382_v16, %v7382_v16 }
 0x284   : > { %v4999_v25 = vadd.f32 %v4998_v43, %v7356_v59  ;;  %v5076_v7 = vadd.f32 %v5075_v51, %v5041_v56  ;;  %v5046_v59 = vmul.f32 %v7386_v32, %v7386_v32 }
 0x286   : > { %v5000_v36 = vadd.f32 %v4999_v25, %v7345_v27  ;;  %v5077_v31 = vadd.f32 %v5076_v7, %v5042_v3  ;;  %v5047_v27 = vmul.f32 %v7376_v11, %v7376_v11 }
 0x288   : > { %v5001_v5 = vadd.f32 %v5000_v36, %v7348_v53  ;;  %v5078_v46 = vadd.f32 %v5077_v31, %v5043_v10  ;;  %v5048_v53 = vmul.f32 %v7378_v24, %v7378_v24 }
 0x28a   : > { %v5002_v4 = vadd.f32 %v5001_v5, %v7382_v16  ;;  %v5079_v47 = vadd.f32 %v5078_v46, %v5044_v50  ;;  %v5049_v16 = vmul.f32 %v7410_v23, %v7410_v23 }
 0x28c   : > { %v5003_v40 = vadd.f32 %v5002_v4, %v7386_v32  ;;  %v5080_v18 = vadd.f32 %v5079_v47, %v5045_v21  ;;  %v5050_v32 = vmul.f32 %v7414_v38, %v7414_v38 }
 0x28e   : > { %v5004_v0 = vadd.f32 %v5003_v40, %v7376_v11  ;;  %v5081_v54 = vadd.f32 %v5080_v18, %v5046_v59  ;;  %v5051_v11 = vmul.f32 %v7405_v17, %v7405_v17 }
 0x290   : > { %v5005_v29 = vadd.f32 %v5004_v0, %v7378_v24  ;;  %v5082_v58 = vadd.f32 %v5081_v54, %v5047_v27  ;;  %v5052_v24 = vmul.f32 %v7407_v37, %v7407_v37 }
 0x292   : > { %v5006_v63 = vadd.f32 %v5005_v29, %v7410_v23  ;;  %v5083_v60 = vadd.f32 %v5082_v58, %v5048_v53  ;;  %v5053_v23 = vmul.f32 %v7438_v61, %v7438_v61 }
 0x294   : > { %v5007_v19 = vadd.f32 %v5006_v63, %v7414_v38  ;;  %v5084_v49 = vadd.f32 %v5083_v60, %v5049_v16  ;;  %v5054_v38 = vmul.f32 %v7441_v39, %v7441_v39 }
 0x296   : > { %v5008_v45 = vadd.f32 %v5007_v19, %v7405_v17  ;;  %v5085_v20 = vadd.f32 %v5084_v49, %v5050_v32  ;;  %v5055_v17 = vmul.f32 %v7432_v44, %v7432_v44 }
 0x298   : > { %v5009_v13 = vadd.f32 %v5008_v45, %v7407_v37  ;;  %v5086_v62 = vadd.f32 %v5085_v20, %v5051_v11 }
 0x29a   : > { %v5010_v33 = vadd.f32 %v5009_v13, %v7438_v61  ;;  %v5087_v26 = vadd.f32 %v5086_v62, %v5052_v24 }
 0x29c   : > { %v5011_v22 = vadd.f32 %v5010_v33, %v7441_v39  ;;  %v5088_v35 = vadd.f32 %v5087_v26, %v5053_v23 }
 0x29e   : > { %v5012_v42 = vadd.f32 %v5011_v22, %v7432_v44  ;;  %v5089_v37 = vadd.f32 %v5088_v35, %v5054_v38 }
 0x2a0   : > { %v5013_v61 = vadd.f32 %v5012_v42, %v7434_v57  ;;  %v5090_v48 = vadd.f32 %v5089_v37, %v5055_v17 }
 0x2a2   : > { %v5014_v41 = vrot.slane %v5013_v61, 4  ;;  %v5091_v1 = vadd.f32 %v5090_v48, %v5056_v55 }
 0x2a4   : > { %v5015_v6 = vadd.f32 %v5014_v41, %v5013_v61  ;;  %v5092_v52 = vrot.slane %v5091_v1, 4 }
 0x2a6   : > { %v5016_v39 = vrot.slane %v5015_v6, 2  ;;  %v5093_v15 = vadd.f32 %v5092_v52, %v5091_v1 }
 0x2a8   : > { %v5017_v30 = vadd.f32 %v5016_v39, %v5015_v6  ;;  %v5094_v28 = vrot.slane %v5093_v15, 2 }
 0x2aa   : > { %v5018_v12 = vrot.slane %v5017_v30, 1  ;;  %v5095_v2 = vadd.f32 %v5094_v28, %v5093_v15 }
 0x2ac   : > { %v5019_v44 = vadd.f32 %v5018_v12, %v5017_v30  ;;  %v5096_v34 = vrot.slane %v5095_v2, 1 }
 0x2ae   : > { %5020 = vst [vmem:[%s292_s13] sm:$0x1] %v5019_v44  ;;  %v5097_v57 = vadd.f32 %v5096_v34, %v5095_v2 }
 0x2b0   : > { %5098 = vst [vmem:[%s295_s18] sm:$0x1] %v5097_v57 }
 0x2b1 PF: > { %s18_s24 = sadd.s32 1, %s6173_s24  }
 0x2b2   : > { %p15_p4 = scmp.ge.s32.totalorder %s18_s24, 4  }
 0x2b4   :  { %17 = sbr.rel (!%p15_p4) target bundleno = 1 (0x1), region = 94 }

// kernel: resblock_forward.4
= control target key start
LH: loop header
LB: loop body
LE: loop exit
PB: predicated region body
PF: predicated region fallthrough
CT: control target
= control target key end

     0   :  { %s6827_s24 = smov 0   ;;  %s8590_s0 = inlined_call_operand.vmem [shape: bf16[2,288,128], index: 0, kind: input, shape index: {}]   ;;  %s8591_s1 = inlined_call_operand.vmem [shape: bf16[1152,128], index: 1, kind: input, shape index: {}]   ;;  %s8592_s2 = inlined_call_operand.vmem [shape: f32[1,128], index: 2, kind: input, shape index: {}]   ;;  %s8593_s3 = inlined_call_operand.vmem [shape: f32[1,128], index: 3, kind: input, shape index: {}]   ;;  %s8594_s4 = inlined_call_operand.vmem [shape: f32[288,1], index: 4, kind: input, shape index: {}]   ;;  %s8595_s5 = inlined_call_operand.vmem [shape: bf16[2,288,128], index: 5, kind: output, shape index: {0}]   ;;  %s8596_s6 = inlined_call_operand.vmem [shape: f32[2,1,128], index: 6, kind: output, shape index: {1}]   ;;  %s8597_s7 = inlined_call_operand.vmem [shape: f32[2,1,128], index: 7, kind: output, shape index: {2}]  }
   0x1 LB: > { %s5542_s25 = sadd.s32 4294967295, %s6784_s24   ;;  %p5546_p0 = scmp.ge.s32.totalorder %s6784_s24, 1  ;;  %s6784_s24 = sphi %s6827_s24, %s18_s24  }
   0x2   : > { %p242_p1 = scmp.lt.s32.totalorder %s6784_s24, 3 }
   0x4   : > { %p243_p2 = pnand %p5546_p0, %p242_p1 }
   0x6   : > { %246 = sbr.rel (%p243_p2) target bundleno = 786 (0x312), region = 40 }
   0xd   : > { %v299_v0 = vld [vmem:[%s8594_s4 + $0x10] sm:$0xff]  ;;  %v297_v1 = vld [vmem:[%s8594_s4] sm:$0xff]  ;;  %v8598_v2 = vmov 0   ;;  %v300_v3 = vld [vmem:[%s8594_s4 + $0x18] sm:$0xff]  ;;  %p280_p3 = scmp.lt.s32.totalorder %s5542_s25, 1  ;;  %vm1399_vm0 = vcmask 1044480  }
   0xe   : > { %6518 = vset.pattern.permute.xlu1 %v8598_v2  ;;  %762 = vst [vmem:[#allocation2 + $0x4] sm:$0xf] %v8598_v2  ;;  %763 = vst [vmem:[#allocation2 + $0x8] sm:$0xf] %v8598_v2  ;;  %6517 = vset.pattern.permute.xlu0 %v8598_v2  ;;  %v298_v4 = vld [vmem:[%s8594_s4 + $0x8] sm:$0xff]  ;;  %v301_v6 = vld [vmem:[%s8594_s4 + $0x20] sm:$0xff] }
   0xf   : > { %764 = vst [vmem:[#allocation2 + $0xc] sm:$0xf] %v8598_v2  ;;  %765 = vst [vmem:[#allocation2 + $0xa0] sm:$0xf] %v8598_v2  ;;  %539 = vperm.xlu1 %6518, %v299_v0   ;;  %529 = vperm.xlu0 %6517, %v297_v1   ;;  %v302_v5 = vld [vmem:[%s8594_s4 + $0x28] sm:$0xff]  ;;  %v304_v7 = vld [vmem:[%s8594_s4 + $0x38] sm:$0xff] }
  0x10   : > { %766 = vst [vmem:[#allocation2 + $0xa4] sm:$0xf] %v8598_v2  ;;  %767 = vst [vmem:[#allocation2 + $0xa8] sm:$0xf] %v8598_v2  ;;  %4216 = vmatprep.subr.bf16.mxu1 %v8598_v2  ;;  %4393 = vmatprep.subr.bf16.mxu0 %v8598_v2  ;;  %v303_v8 = vld [vmem:[%s8594_s4 + $0x30] sm:$0xff]  ;;  %v6519_v9 = vld [vmem:[%s8591_s1] sm:$0xff]  }
  0x11   : > { %v306_v10 = vld [vmem:[%s8594_s4 + $0x48] sm:$0xff]  ;;  %v305_v11 = vld [vmem:[%s8594_s4 + $0x40] sm:$0xff]  ;;  %4217 = vmatpush1.bf16.msra.mxu1 %v6519_v9  ;;  %v308_v15 = vld [vmem:[%s8594_s4 + $0x58] sm:$0xff]  ;;  %s8730_s25 = smov (!%p280_p3, %s5542_s25), 1  ;;  %vm1062_vm1 = vsmask.f32 5376 }
  0x12   : > { %v6520_v12 = vld [vmem:[%s8591_s1 + $0x80] sm:$0xff]   ;;  %v6521_v13 = vld [vmem:[%s8591_s1 + $0x8] sm:$0xff]   ;;  %4218 = vmatprep.subr.bf16.mxu1 %v8598_v2  ;;  %v307_v16 = vld [vmem:[%s8594_s4 + $0x50] sm:$0xff]  ;;  %s6507_s28 = smul.u32 144, %s8730_s25  ;;  %vm1603_vm2 = vsmask.f32 4352  ;;  %s292_s19 = scalar_lea.vmem %s8596_s6, %s8730_s25 }
  0x13   : > { %544 = vperm.xlu1 %6518, %v300_v3   ;;  %534 = vperm.xlu0 %6517, %v298_v4   ;;  %v6522_v14 = vld [vmem:[%s8591_s1 + $0x88] sm:$0xff]   ;;  %v6523_v17 = vld [vmem:[%s8591_s1 + $0x10] sm:$0xff]   ;;  %v309_v20 = vld [vmem:[%s8594_s4 + $0x60] sm:$0xff]  ;;  %vm3067_vm3 = vcmask 1046528   ;;  %vm2438_vm4 = vsmask.f32 7424  ;;  %s295_s22 = scalar_lea.vmem %s8597_s7, %s8730_s25 }
  0x14   : > { %4394 = vmatpush1.bf16.msra.mxu0 %v6520_v12  ;;  %v6524_v18 = vld [vmem:[%s8591_s1 + $0x90] sm:$0xff]   ;;  %v310_v19 = vld [vmem:[%s8594_s4 + $0x68] sm:$0xff]  ;;  %v6525_v21 = vld [vmem:[%s8591_s1 + $0x18] sm:$0xff]   ;;  %s7083_s12 = scalar_lea.vmem %s8590_s0, %s6507_s28  ;;  %vm3271_vm5 = vsmask.f32 6400  ;;  %s8306_s17 = scalar_lea.vmem %s8595_s5, %s6507_s28 }
  0x15   : > { %4395 = vmatprep.subr.bf16.mxu0 %v8598_v2  ;;  %4219 = vmatpush1.bf16.msra.mxu1 %v6521_v13  ;;  %v6526_v22 = vld [vmem:[%s8591_s1 + $0x98] sm:$0xff]   ;;  %v311_v24 = vld [vmem:[%s8594_s4 + $0x70] sm:$0xff]  ;;  %v6527_v25 = vld [vmem:[%s8591_s1 + $0x20] sm:$0xff]  }
  0x16   : > { %4220 = vmatprep.subr.bf16.mxu1 %v8598_v2  ;;  %v312_v23 = vld [vmem:[%s8594_s4 + $0x78] sm:$0xff]  ;;  %v6528_v26 = vld [vmem:[%s8591_s1 + $0xa0] sm:$0xff]   ;;  %v314_v27 = vld [vmem:[%s8594_s4 + $0x88] sm:$0xff] }
  0x17   : > { %554 = vperm.xlu1 %6518, %v302_v5   ;;  %549 = vperm.xlu0 %6517, %v301_v6   ;;  %v313_v28 = vld [vmem:[%s8594_s4 + $0x80] sm:$0xff]  ;;  %v6529_v29 = vld [vmem:[%s8591_s1 + $0x28] sm:$0xff]   ;;  %v316_v31 = vld [vmem:[%s8594_s4 + $0x98] sm:$0xff] }
  0x18   : > { %4396 = vmatpush1.bf16.msra.mxu0 %v6522_v14  ;;  %v6530_v30 = vld [vmem:[%s8591_s1 + $0xa8] sm:$0xff]   ;;  %v315_v32 = vld [vmem:[%s8594_s4 + $0x90] sm:$0xff]  ;;  %v317_v36 = vld [vmem:[%s8594_s4 + $0xa0] sm:$0xff] }
  0x19   : > { %4397 = vmatprep.subr.bf16.mxu0 %v8598_v2  ;;  %4221 = vmatpush1.bf16.msra.mxu1 %v6523_v17  ;;  %v6531_v33 = vld [vmem:[%s8591_s1 + $0x30] sm:$0xff]   ;;  %v318_v35 = vld [vmem:[%s8594_s4 + $0xa8] sm:$0xff]  ;;  %v6533_v37 = vld [vmem:[%s8591_s1 + $0x38] sm:$0xff]  }
  0x1a   : > { %4222 = vmatprep.subr.bf16.mxu1 %v8598_v2  ;;  %v6532_v34 = vld [vmem:[%s8591_s1 + $0xb0] sm:$0xff]   ;;  %v6534_v38 = vld [vmem:[%s8591_s1 + $0xb8] sm:$0xff]   ;;  %v6535_v41 = vld [vmem:[%s8591_s1 + $0x40] sm:$0xff]  }
  0x1b   : > { %564 = vperm.xlu1 %6518, %v304_v7   ;;  %559 = vperm.xlu0 %6517, %v303_v8   ;;  %v320_v39 = vld [vmem:[%s8594_s4 + $0xb8] sm:$0xff]  ;;  %v319_v40 = vld [vmem:[%s8594_s4 + $0xb0] sm:$0xff]  ;;  %v6536_v42 = vld [vmem:[%s8591_s1 + $0xc0] sm:$0xff]  }
  0x1c   : > { %4398 = vmatpush1.bf16.msra.mxu0 %v6524_v18  ;;  %v322_v43 = vld [vmem:[%s8594_s4 + $0xc8] sm:$0xff]  ;;  %v321_v44 = vld [vmem:[%s8594_s4 + $0xc0] sm:$0xff]  ;;  %v324_v47 = vld [vmem:[%s8594_s4 + $0xd8] sm:$0xff] }
  0x1d   : > { %4399 = vmatprep.subr.bf16.mxu0 %v8598_v2  ;;  %4223 = vmatpush1.bf16.msra.mxu1 %v6525_v21  ;;  %v6537_v45 = vld [vmem:[%s8591_s1 + $0x48] sm:$0xff]   ;;  %v323_v48 = vld [vmem:[%s8594_s4 + $0xd0] sm:$0xff]  ;;  %v325_v52 = vld [vmem:[%s8594_s4 + $0xe0] sm:$0xff] }
  0x1e   : > { %4224 = vmatprep.subr.bf16.mxu1 %v8598_v2  ;;  %v6538_v46 = vld [vmem:[%s8591_s1 + $0xc8] sm:$0xff]   ;;  %v6539_v49 = vld [vmem:[%s8591_s1 + $0x50] sm:$0xff]   ;;  %v6541_v53 = vld [vmem:[%s8591_s1 + $0x58] sm:$0xff]  }
  0x1f   : > { %574 = vperm.xlu1 %6518, %v306_v10   ;;  %569 = vperm.xlu0 %6517, %v305_v11   ;;  %v6540_v50 = vld [vmem:[%s8591_s1 + $0xd0] sm:$0xff]   ;;  %v326_v51 = vld [vmem:[%s8594_s4 + $0xe8] sm:$0xff]  ;;  %v6542_v54 = vld [vmem:[%s8591_s1 + $0xd8] sm:$0xff]  }
  0x20   : > { %4400 = vmatpush1.bf16.msra.mxu0 %v6526_v22  ;;  %v328_v55 = vld [vmem:[%s8594_s4 + $0xf8] sm:$0xff]  ;;  %v327_v56 = vld [vmem:[%s8594_s4 + $0xf0] sm:$0xff]  ;;  %v6543_v57 = vld [vmem:[%s8591_s1 + $0x60] sm:$0xff]  }
  0x21   : > { %4401 = vmatprep.subr.bf16.mxu0 %v8598_v2  ;;  %4225 = vmatpush1.bf16.msra.mxu1 %v6527_v25  ;;  %v6544_v58 = vld [vmem:[%s8591_s1 + $0xe0] sm:$0xff]   ;;  %v330_v59 = vld [vmem:[%s8594_s4 + $0x108] sm:$0xff]  ;;  %v332_v63 = vld [vmem:[%s8594_s4 + $0x118] sm:$0xff] }
  0x22   : > { %4226 = vmatprep.subr.bf16.mxu1 %v8598_v2  ;;  %v329_v60 = vld [vmem:[%s8594_s4 + $0x100] sm:$0xff]  ;;  %v6545_v61 = vld [vmem:[%s8591_s1 + $0x68] sm:$0xff]   ;;  %v331_v0 = vld [vmem:[%s8594_s4 + $0x110] sm:$0xff] }
  0x23   : > { %584 = vperm.xlu1 %6518, %v308_v15   ;;  %579 = vperm.xlu0 %6517, %v307_v16   ;;  %v6546_v62 = vld [vmem:[%s8591_s1 + $0xe8] sm:$0xff]   ;;  %v6547_v1 = vld [vmem:[%s8591_s1 + $0x70] sm:$0xff]   ;;  %v6551_v4 = vld [vmem:[%s8591_s1 + $0x78] sm:$0xff]  }
  0x24   : > { %4402 = vmatpush1.bf16.msra.mxu0 %v6528_v26  ;;  %v6548_v3 = vld [vmem:[%s8591_s1 + $0xf0] sm:$0xff]   ;;  %v6552_v5 = vld [vmem:[%s8591_s1 + $0xf8] sm:$0xff]   ;;  %v6207_v6 = vld [vmem:[%s7083_s12 + $0x88] sm:$0xff]  }
  0x25   : > { %4403 = vmatprep.subr.bf16.mxu0 %v8598_v2  ;;  %4227 = vmatpush1.bf16.msra.mxu1 %v6529_v29  ;;  %v6010_v7 = vunpack.c.h.bf16 %v6207_v6  ;;  %v6009_v8 = vunpack.c.l.bf16 %v6207_v6  ;;  %v7097_v9 = vld [vmem:[%s8592_s2] ss:$0 sm:$0xff]  ;;  %v6191_v15 = vld [vmem:[%s7083_s12 + $0x8] sm:$0xff]   ;;  %v6192_v17 = vld [vmem:[%s7083_s12 + $0x10] sm:$0xff]  }
  0x26   : > { %4228 = vmatprep.subr.bf16.mxu1 %v8598_v2  ;;  %v7104_v12 = vld [vmem:[%s8593_s3] ss:$0 sm:$0xff]  ;;  %v5945_v18 = vunpack.c.l.bf16 %v6191_v15 }
  0x27   : > { %594 = vperm.xlu1 %6518, %v310_v19   ;;  %589 = vperm.xlu0 %6517, %v309_v20   ;;  %v447_v10 = vmul.f32 %v6010_v7, %v7097_v9  ;;  %v446_v11 = vmul.f32 %v6009_v8, %v7097_v9  ;;  %v5940_v16 = vld [vmem:[%s7083_s12] sm:$0xff]   ;;  %v5946_v19 = vunpack.c.h.bf16 %v6191_v15  ;;  %v6193_v20 = vld [vmem:[%s7083_s12 + $0x18] sm:$0xff]  }
  0x28   : > { %4404 = vmatpush1.bf16.msra.mxu0 %v6530_v30  ;;  %v5941_v21 = vunpack.c.l.bf16 %v5940_v16  ;;  %v5942_v22 = vunpack.c.h.bf16 %v5940_v16  ;;  %v5954_v25 = vunpack.c.h.bf16 %v6193_v20  ;;  %v5953_v26 = vunpack.c.l.bf16 %v6193_v20  ;;  %v6558_v15 = vld [vmem:[#allocation2 + $0x4] sm:$0xf8]  }
  0x29   : > { %4405 = vmatprep.subr.bf16.mxu0 %v8598_v2  ;;  %4229 = vmatpush1.bf16.msra.mxu1 %v6531_v33  ;;  %v7109_v13 = vadd.f32 %v7104_v12, %v447_v10  ;;  %v7112_v14 = vadd.f32 %v7104_v12, %v446_v11  ;;  %v415_v29 = vmul.f32 %v5946_v19, %v7097_v9  ;;  %v6199_v20 = vld [vmem:[%s7083_s12 + $0x48] sm:$0xff]  }
  0x2a   : > { %4230 = vmatprep.subr.bf16.mxu1 %v8598_v2  ;;  %v412_v30 = vmul.f32 %v5941_v21, %v7097_v9 }
  0x2b   : > { %604 = vperm.xlu1 %6518, %v312_v23   ;;  %599 = vperm.xlu0 %6517, %v311_v24   ;;  %v5950_v23 = vunpack.c.h.bf16 %v6192_v17  ;;  %v5949_v24 = vunpack.c.l.bf16 %v6192_v17 }
  0x2c   : > { %4406 = vmatpush1.bf16.msra.mxu0 %v6532_v34  ;;  %v6195_v34 = vld [vmem:[%s7083_s12 + $0x28] sm:$0xff]  }
  0x2d   : > { %4407 = vmatprep.subr.bf16.mxu0 %v8598_v2  ;;  %4231 = vmatpush1.bf16.msra.mxu1 %v6533_v37  ;;  %v418_v37 = vmul.f32 %v5953_v26, %v7097_v9 }
  0x2e   : > { %4232 = vmatprep.subr.bf16.mxu1 %v8598_v2 }
  0x2f   : > { %614 = vperm.xlu1 %6518, %v314_v27   ;;  %609 = vperm.xlu0 %6517, %v313_v28   ;;  %v6194_v27 = vld [vmem:[%s7083_s12 + $0x20] sm:$0xff]   ;;  %v414_v28 = vmul.f32 %v5945_v18, %v7097_v9 }
  0x30   : > { %4408 = vmatpush1.bf16.msra.mxu0 %v6534_v38  ;;  %v5958_v33 = vunpack.c.h.bf16 %v6194_v27  ;;  %v5957_v38 = vunpack.c.l.bf16 %v6194_v27 }
  0x31   : > { %4409 = vmatprep.subr.bf16.mxu0 %v8598_v2  ;;  %4233 = vmatpush1.bf16.msra.mxu1 %v6535_v41  ;;  %v7133_v41 = vadd.f32 %v7104_v12, %v415_v29 }
  0x32   : > { %4234 = vmatprep.subr.bf16.mxu1 %v8598_v2 }
  0x33   : > { %624 = vperm.xlu1 %6518, %v316_v31   ;;  %619 = vperm.xlu0 %6517, %v315_v32   ;;  %v413_v31 = vmul.f32 %v5942_v22, %v7097_v9  ;;  %v417_v32 = vmul.f32 %v5950_v23, %v7097_v9 }
  0x34   : > { %4410 = vmatpush1.bf16.msra.mxu0 %v6536_v42  ;;  %v7136_v42 = vadd.f32 %v7104_v12, %v412_v30  ;;  %v1605_v30 = vshrl.u32 %v6558_v15, 16 }
  0x35   : > { %4411 = vmatprep.subr.bf16.mxu0 %v8598_v2  ;;  %4235 = vmatpush1.bf16.msra.mxu1 %v6537_v45  ;;  %v5961_v45 = vunpack.c.l.bf16 %v6195_v34 }
  0x36   : > { %4236 = vmatprep.subr.bf16.mxu1 %v8598_v2 }
  0x37   : > { %634 = vperm.xlu1 %6518, %v318_v35   ;;  %629 = vperm.xlu0 %6517, %v317_v36   ;;  %v416_v35 = vmul.f32 %v5949_v24, %v7097_v9  ;;  %v419_v36 = vmul.f32 %v5954_v25, %v7097_v9 }
  0x38   : > { %4412 = vmatpush1.bf16.msra.mxu0 %v6538_v46  ;;  %v6197_v46 = vld [vmem:[%s7083_s12 + $0x38] sm:$0xff]  }
  0x39   : > { %4413 = vmatprep.subr.bf16.mxu0 %v8598_v2  ;;  %4237 = vmatpush1.bf16.msra.mxu1 %v6539_v49 }
  0x3a   : > { %4238 = vmatprep.subr.bf16.mxu1 %v8598_v2 }
  0x3b   : > { %644 = vperm.xlu1 %6518, %v320_v39   ;;  %639 = vperm.xlu0 %6517, %v319_v40   ;;  %v6196_v39 = vld [vmem:[%s7083_s12 + $0x30] sm:$0xff]   ;;  %v7130_v40 = vadd.f32 %v7104_v12, %v414_v28 }
  0x3c   : > { %4414 = vmatpush1.bf16.msra.mxu0 %v6540_v50  ;;  %v5966_v49 = vunpack.c.h.bf16 %v6196_v39  ;;  %v5965_v50 = vunpack.c.l.bf16 %v6196_v39 }
  0x3d   : > { %4415 = vmatprep.subr.bf16.mxu0 %v8598_v2  ;;  %4239 = vmatpush1.bf16.msra.mxu1 %v6541_v53  ;;  %v7153_v53 = vadd.f32 %v7104_v12, %v418_v37  ;;  %v5977_v37 = vunpack.c.l.bf16 %v6199_v20 }
  0x3e   : > { %4240 = vmatprep.subr.bf16.mxu1 %v8598_v2  ;;  %v424_v6 = vmul.f32 %v5965_v50, %v7097_v9 }
  0x3f   : > { %654 = vperm.xlu1 %6518, %v322_v43   ;;  %649 = vperm.xlu0 %6517, %v321_v44   ;;  %v7139_v43 = vadd.f32 %v7104_v12, %v413_v31  ;;  %v5962_v44 = vunpack.c.h.bf16 %v6195_v34  ;;  %v497_v10 = vmax.f32 %v7153_v53, 0.0  ;;  %v1608_v31 = vshll.u32 %v6558_v15, 16 }
  0x40   : > { %4416 = vmatpush1.bf16.msra.mxu0 %v6542_v54  ;;  %v420_v54 = vmul.f32 %v5957_v38, %v7097_v9  ;;  %v7192_v27 = vadd.f32 %v7104_v12, %v424_v6  ;;  %v6203_v6 = vld [vmem:[%s7083_s12 + $0x68] sm:$0xff]  }
  0x41   : > { %4417 = vmatprep.subr.bf16.mxu0 %v8598_v2  ;;  %4241 = vmatpush1.bf16.msra.mxu1 %v6543_v57  ;;  %v7158_v57 = vld [vmem:[#allocation2 + $0x4] sm:$0xf8]  }
  0x42   : > { %4242 = vmatprep.subr.bf16.mxu1 %v8598_v2  ;;  %v7175_v11 = vadd.f32 %v7104_v12, %v420_v54  ;;  %v1400_v16 = vrot.slane %v7158_v57, 3  ;;  %v6201_v54 = vld [vmem:[%s7083_s12 + $0x58] sm:$0xff]  }
  0x43   : > { %664 = vperm.xlu1 %6518, %v324_v47   ;;  %659 = vperm.xlu0 %6517, %v323_v48   ;;  %v7143_v47 = vadd.f32 %v7104_v12, %v417_v32  ;;  %v421_v48 = vmul.f32 %v5958_v33, %v7097_v9  ;;  %v5978_v32 = vunpack.c.h.bf16 %v6199_v20  ;;  %v6200_v33 = vld [vmem:[%s7083_s12 + $0x50] sm:$0xff]  }
  0x44   : > { %4418 = vmatpush1.bf16.msra.mxu0 %v6544_v58  ;;  %v5970_v58 = vunpack.c.h.bf16 %v6197_v46  ;;  %v499_v29 = vmax.f32 %v7175_v11, 0.0  ;;  %v5982_v50 = vunpack.c.h.bf16 %v6200_v33  ;;  %v6204_v20 = vld [vmem:[%s7083_s12 + $0x70] sm:$0xff]  }
  0x45   : > { %4419 = vmatprep.subr.bf16.mxu0 %v8598_v2  ;;  %4243 = vmatpush1.bf16.msra.mxu1 %v6545_v61  ;;  %v492_v61 = vmax.f32 %v7139_v43, 0.0 }
  0x46   : > { %4244 = vmatprep.subr.bf16.mxu1 %v8598_v2  ;;  %v427_v17 = vmul.f32 %v5970_v58, %v7097_v9  ;;  %v6202_v58 = vld [vmem:[%s7083_s12 + $0x60] sm:$0xff]  }
  0x47   : > { %674 = vperm.xlu1 %6518, %v326_v51   ;;  %669 = vperm.xlu0 %6517, %v325_v52   ;;  %v7147_v51 = vadd.f32 %v7104_v12, %v416_v35  ;;  %v7150_v52 = vadd.f32 %v7104_v12, %v419_v36 }
  0x48   : > { %4420 = vmatpush1.bf16.msra.mxu0 %v6546_v62  ;;  %v423_v62 = vmul.f32 %v5962_v44, %v7097_v9  ;;  %v7197_v34 = vadd.f32 %v7104_v12, %v427_v17 }
  0x49   : > { %4421 = vmatprep.subr.bf16.mxu0 %v8598_v2  ;;  %4245 = vmatpush1.bf16.msra.mxu1 %v6547_v1  ;;  %v6198_v1 = vld [vmem:[%s7083_s12 + $0x40] sm:$0xff]   ;;  %v495_v7 = vmax.f32 %v7147_v51, 0.0  ;;  %v498_v8 = vmax.f32 %v7150_v52, 0.0 }
  0x4a   : > { %4246 = vmatprep.subr.bf16.mxu1 %v8598_v2  ;;  %v5974_v19 = vunpack.c.h.bf16 %v6198_v1  ;;  %v7182_v21 = vadd.f32 %v7104_v12, %v423_v62  ;;  %v5973_v28 = vunpack.c.l.bf16 %v6198_v1  ;;  %v431_v1 = vmul.f32 %v5978_v32, %v7097_v9 }
  0x4b   : > { %684 = vperm.xlu1 %6518, %v328_v55   ;;  %679 = vperm.xlu0 %6517, %v327_v56   ;;  %v493_v55 = vmax.f32 %v7130_v40, 0.0  ;;  %v494_v56 = vmax.f32 %v7133_v41, 0.0  ;;  %v433_v32 = vmul.f32 %v5982_v50, %v7097_v9 }
  0x4c   : > { %4422 = vmatpush1.bf16.msra.mxu0 %v6548_v3  ;;  %v496_v3 = vmax.f32 %v7143_v47, 0.0  ;;  %v429_v36 = vmul.f32 %v5974_v19, %v7097_v9  ;;  %v502_v38 = vmax.f32 %v7182_v21, 0.0  ;;  %v430_v19 = vmul.f32 %v5977_v37, %v7097_v9 }
  0x4d   : > { %4423 = vmatprep.subr.bf16.mxu0 %v8598_v2  ;;  %4247 = vmatpush1.bf16.msra.mxu1 %v6551_v4  ;;  %v7167_v4 = vadd.f32 %v7104_v12, %v421_v48  ;;  %v5998_v48 = vunpack.c.h.bf16 %v6204_v20 }
  0x4e   : > { %6321 = vmatprep.subr.bf16.mxu1 %v8598_v2 }
  0x4f   : > { %694 = vperm.xlu1 %6518, %v330_v59   ;;  %689 = vperm.xlu0 %6517, %v329_v60   ;;  %v5969_v59 = vunpack.c.l.bf16 %v6197_v46  ;;  %v491_v60 = vmax.f32 %v7136_v42, 0.0  ;;  %v500_v25 = vmax.f32 %v7167_v4, 0.0 }
  0x50   : > { %4424 = vmatpush1.bf16.msra.mxu0 %v6552_v5  ;;  %v425_v5 = vmul.f32 %v5966_v49, %v7097_v9  ;;  %v428_v49 = vmul.f32 %v5973_v28, %v7097_v9  ;;  %v5990_v28 = vunpack.c.h.bf16 %v6202_v58 }
  0x51   : > { %4570 = vmatprep.subr.bf16.mxu0 %v8598_v2  ;;  %v426_v18 = vmul.f32 %v5969_v59, %v7097_v9  ;;  %v5993_v2 = vunpack.c.l.bf16 %v6203_v6 }
  0x52   : > { %v7189_v26 = vadd.f32 %v7104_v12, %v425_v5  ;;  %v5981_v5 = vunpack.c.l.bf16 %v6200_v33  ;;  %v5994_v33 = vunpack.c.h.bf16 %v6203_v6  ;;  %v437_v40 = vmul.f32 %v5990_v28, %v7097_v9 }
  0x53   : > { %704 = vperm.xlu1 %6518, %v332_v63   ;;  %699 = vperm.xlu0 %6517, %v331_v0   ;;  %v422_v63 = vmul.f32 %v5961_v45, %v7097_v9  ;;  %v6553_v0 = vld [vmem:[#allocation2 + $0x4] sm:$0xfc]   ;;  %v7200_v35 = vadd.f32 %v7104_v12, %v426_v18  ;;  %v7227_v18 = vadd.f32 %v7104_v12, %v429_v36 }
  0x54   : > { %v1064_v23 = vshrl.u32 %v6553_v0, 16  ;;  %v1067_v24 = vshll.u32 %v6553_v0, 16  ;;  %v7220_v0 = vrot.slane %v1608_v31, 4  ;;  %v7232_v31 = vadd.f32 %v7104_v12, %v428_v49 }
  0x55   : > { %v7185_v22 = vadd.f32 %v7104_v12, %v422_v63  ;;  %v7218_v63 = vrot.slane %v1605_v30, 3  ;;  %v5989_v30 = vunpack.c.l.bf16 %v6202_v58  ;;  %v7240_v36 = vadd.f32 %v7104_v12, %v431_v1 }
  0x56   : > { %v7205_v44 = vrot.slane %v1064_v23, 2  ;;  %v7207_v45 = vrot.slane %v1067_v24, 3  ;;  %v5986_v23 = vunpack.c.h.bf16 %v6201_v54  ;;  %v5985_v24 = vunpack.c.l.bf16 %v6201_v54 }
  0x57   : > { %v501_v39 = vmax.f32 %v7185_v22, 0.0  ;;  %v432_v37 = vmul.f32 %v5981_v5, %v7097_v9  ;;  %v5997_v54 = vunpack.c.l.bf16 %v6204_v20  ;;  %v438_v41 = vmul.f32 %v5993_v2, %v7097_v9 }
  0x58   : > { %v435_v5 = vmul.f32 %v5986_v23, %v7097_v9  ;;  %v434_v6 = vmul.f32 %v5985_v24, %v7097_v9  ;;  %v7270_v23 = vadd.f32 %v7104_v12, %v433_v32  ;;  %v441_v24 = vmul.f32 %v5998_v48, %v7097_v9 }
  0x59   : > { %v7291_v47 = vadd.f32 %v7104_v12, %v437_v40 }
  0x5a   : > { %v7285_v48 = vadd.f32 %v7104_v12, %v435_v5 }
  0x8e   : > { %v7214_v59 = vpop.permute.xlu1 %539  ;;  %v7216_v62 = vpop.permute.xlu0 %529 }
  0x8f   : > { %8628 = vst [vmem:[#allocation4_spill] sm:$0xff] %v7214_v59  ;;  %8629 = vst [vmem:[#allocation5_spill] sm:$0xff] %v7216_v62  ;;  %v709_v49 = vmul.f32 %v7214_v59, %v493_v55  ;;  %v707_v50 = vmul.f32 %v7216_v62, %v491_v60  ;;  %v436_v55 = vmul.f32 %v5989_v30, %v7097_v9 }
  0x90   : > { %v439_v60 = vmul.f32 %v5994_v33, %v7097_v9  ;;  %v440_v30 = vmul.f32 %v5997_v54, %v7097_v9  ;;  %v7288_v33 = vadd.f32 %v7104_v12, %v434_v6  ;;  %v7303_v54 = vld [vmem:[%s7083_s12 + $0x78] sm:$0xff]   ;;  %v7313_v6 = vadd.f32 %v7104_v12, %v441_v24 }
  0x91   : > { %v6002_v52 = vunpack.c.h.bf16 %v7303_v54 }
  0x92   : > { %v7235_v15 = vpop.permute.xlu1 %544  ;;  %v7237_v17 = vpop.permute.xlu0 %534 }
  0x93   : > { %8630 = vst [vmem:[#allocation6_spill] sm:$0xff] %v7235_v15  ;;  %8631 = vst [vmem:[#allocation7_spill] sm:$0xff] %v7237_v17  ;;  %v710_v58 = vmul.f32 %v7235_v15, %v494_v56  ;;  %v708_v1 = vmul.f32 %v7237_v17, %v492_v61  ;;  %v7267_v61 = vadd.f32 %v7104_v12, %v430_v19 }
  0x94   : > { %v7280_v19 = vadd.f32 %v7104_v12, %v432_v37  ;;  %v7300_v37 = vadd.f32 %v7104_v12, %v438_v41 }
  0x95   : > { %v6019_v20 = vpack.c.bf16 %v710_v58, %v709_v49  ;;  %v6014_v42 = vpack.c.bf16 %v708_v1, %v707_v50 }
  0x96   : > { %v7261_v46 = vpop.permute.xlu1 %554  ;;  %v7263_v56 = vpop.permute.xlu0 %549 }
  0x97   : > { %8632 = vst [vmem:[#allocation8_spill] sm:$0xff] %v7261_v46  ;;  %8633 = vst [vmem:[#allocation9_spill] sm:$0xff] %v7263_v56  ;;  %v712_v2 = vmul.f32 %v7261_v46, %v496_v3  ;;  %v711_v28 = vmul.f32 %v7263_v56, %v495_v7  ;;  %v7294_v3 = vadd.f32 %v7104_v12, %v436_v55  ;;  %v7433_v46 = vld [vmem:[%s7083_s12 + $0x80] sm:$0xff]  }
  0x98   : > { %6209 = vst [vmem:[#allocation2 + $0x18] sm:$0xff] %v6019_v20   ;;  %6208 = vst [vmem:[#allocation2 + $0x10] sm:$0xff] %v6014_v42   ;;  %v7297_v7 = vadd.f32 %v7104_v12, %v439_v60  ;;  %v7323_v42 = vadd.f32 %v7104_v12, %v440_v30 }
  0x99   : > { %v6024_v51 = vpack.c.bf16 %v712_v2, %v711_v28 }
  0x9a   : > { %v7305_v49 = vpop.permute.xlu1 %564  ;;  %v7307_v50 = vpop.permute.xlu0 %559 }
  0x9b   : > { %8634 = vst [vmem:[#allocation10_spill] sm:$0xff] %v7305_v49  ;;  %8635 = vst [vmem:[#allocation11_spill] sm:$0xff] %v7307_v50  ;;  %v714_v40 = vmul.f32 %v7305_v49, %v498_v8  ;;  %v713_v55 = vmul.f32 %v7307_v50, %v497_v10  ;;  %v1070_v8 = vor.u32 %v7207_v45, %v7205_v44 }
  0x9c   : > { %6210 = vst [vmem:[#allocation2 + $0x20] sm:$0xff] %v6024_v51  }
  0x9d   : > { %v6029_v2 = vpack.c.bf16 %v714_v40, %v713_v55 }
  0x9e   : > { %v7332_v28 = vpop.permute.xlu1 %574  ;;  %v7334_v30 = vpop.permute.xlu0 %569 }
  0x9f   : > { %8636 = vst [vmem:[#allocation12_spill] sm:$0xff] %v7332_v28  ;;  %8637 = vst [vmem:[#allocation13_spill] sm:$0xff] %v7334_v30  ;;  %v6550_v51 = vld [vmem:[#allocation2 + $0xc] sm:$0xff]   ;;  %v716_v24 = vmul.f32 %v7332_v28, %v500_v25  ;;  %v715_v40 = vmul.f32 %v7334_v30, %v499_v29  ;;  %v6556_v20 = vld [vmem:[#allocation2 + $0x14] sm:$0xff]   ;;  %v7350_v29 = vmul.f32 %v6002_v52, %v7097_v9 }
  0xa0   : > { %6211 = vst [vmem:[#allocation2 + $0x28] sm:$0xff] %v6029_v2   ;;  %v6554_v55 = vld [vmem:[#allocation2 + $0xc] sm:$0xff]   ;;  %v1401_v53 = vrot.slane %v6550_v51, 3  ;;  %v1949_v1 = vshrl.u32 %v6556_v20, 16  ;;  %v7359_v58 = vld [vmem:[#allocation2 + $0x14] sm:$0xff]   ;;  %v1952_v4 = vshll.u32 %v6556_v20, 16 }
  0xa1   : > { %v6555_v41 = vld [vmem:[#allocation2 + $0xc] sm:$0xf8]   ;;  %v6034_v25 = vpack.c.bf16 %v716_v24, %v715_v40  ;;  %v1072_v60 = vshrl.u32 %v6554_v55, 16  ;;  %v1075_v11 = vshll.u32 %v6554_v55, 16  ;;  %v8603_v22 = vrot.slane %v7359_v58, 3  ;;  %v6562_v49 = vld [vmem:[#allocation2 + $0x14] sm:$0xff]  }
  0xa2   : > { %v7352_v5 = vpop.permute.xlu1 %584  ;;  %v7354_v10 = vpop.permute.xlu0 %579  ;;  %v1402_v44 = vsel %vm1399_vm0, %v1400_v16, %v1401_v53  ;;  %v1941_v45 = vshrl.u32 %v6555_v41, 16  ;;  %v1944_v51 = vshll.u32 %v6555_v41, 16  ;;  %v6559_v57 = vld [vmem:[#allocation2 + $0xc] sm:$0xff]   ;;  %v6596_v16 = vld [vmem:[%s8591_s1 + $0x180] sm:$0xff]   ;;  %v8639_v20 = vmax.f32 %v7192_v27, 0.0 }
  0xa3   : > { %6212 = vst [vmem:[#allocation2 + $0x30] sm:$0xff] %v6034_v25   ;;  %v718_v24 = vmul.f32 %v7352_v5, %v502_v38  ;;  %v717_v52 = vmul.f32 %v7354_v10, %v501_v39  ;;  %4248 = vmatprep.mubr.bf16.mxu1 %v1402_v44  ;;  %v1074_v40 = vrot.slane %v1072_v60, 2  ;;  %v1077_v55 = vrot.slane %v1075_v11, 3  ;;  %v6561_v32 = vld [vmem:[#allocation2 + $0x1c] sm:$0xff]  }
  0xa4   : > { %v1943_v41 = vrot.slane %v1941_v45, 3  ;;  %v1946_v43 = vrot.slane %v1944_v51, 4  ;;  %v1951_v25 = vrot.slane %v1949_v1, 3  ;;  %v1613_v38 = vshrl.u32 %v6559_v57, 16  ;;  %v6560_v27 = vld [vmem:[%s8591_s1 + $0x100] sm:$0xff]  }
  0xa5   : > { %v6039_v21 = vpack.c.bf16 %v718_v24, %v717_v52  ;;  %v7370_v2 = vor.u32 %v1077_v55, %v1074_v40  ;;  %v1954_v44 = vrot.slane %v1952_v4, 4  ;;  %v1616_v28 = vshll.u32 %v6559_v57, 16  ;;  %v7388_v4 = vld [vmem:[#allocation2 + $0x1c] sm:$0xff]   ;;  %v6602_v52 = vld [vmem:[%s8591_s1 + $0x188] sm:$0xff]  }
  0xa6   : > { %v7373_v39 = vpop.permute.xlu1 %594  ;;  %v7375_v60 = vpop.permute.xlu0 %589  ;;  %v1947_v11 = vor.u32 %v1946_v43, %v1943_v41  ;;  %v1958_v30 = vshrl.u32 %v6561_v32, 16  ;;  %v8638_v45 = vmax.f32 %v7189_v26, 0.0  ;;  %v1404_v43 = vsel %vm1399_vm0, %v1401_v53, %v8603_v22 }
  0xa7   : > { %6213 = vst [vmem:[#allocation2 + $0x38] sm:$0xff] %v6039_v21   ;;  %v719_v51 = vmul.f32 %v7375_v60, %v8639_v20  ;;  %v1079_v24 = vsel %vm1062_vm1, %v1070_v8, %v7370_v2  ;;  %v1955_v26 = vor.u32 %v1954_v44, %v1951_v25  ;;  %v1615_v40 = vrot.slane %v1613_v38, 3  ;;  %v6564_v8 = vld [vmem:[#allocation2 + $0x14] sm:$0xff]   ;;  %v6565_v20 = vld [vmem:[#allocation2 + $0x24] sm:$0xff]   ;;  %v6569_v38 = vld [vmem:[#allocation2 + $0x1c] sm:$0xff]  }
  0xa8   : > { %v720_v1 = vmul.f32 %v7373_v39, %v8638_v45  ;;  %4249 = vmatmul.mubr.bf16.vlgmr.msra.gmra.mrb[0].mxu1 %v1079_v24  ;;  %v1618_v55 = vrot.slane %v1616_v28, 4  ;;  %v1960_v57 = vrot.slane %v1958_v30, 3  ;;  %v1961_v21 = vshll.u32 %v6561_v32, 16  ;;  %v6567_v24 = vld [vmem:[#allocation2 + $0x1c] sm:$0xff]  }
  0xa9   : > { %4256 = vmatprep.mubr.bf16.mxu1 %v1404_v43  ;;  %v1081_v53 = vshrl.u32 %v6562_v49, 16  ;;  %v1084_v45 = vshll.u32 %v6562_v49, 16  ;;  %6337 = vmatpush1.bf16.msra.mxu1 %v6596_v16  ;;  %v1956_v22 = vsel %vm1603_vm2, %v1947_v11, %v1955_v26  ;;  %v1622_v44 = vshrl.u32 %v6564_v8, 16 }
  0xaa   : > { %v6044_v41 = vpack.c.bf16 %v720_v1, %v719_v51  ;;  %v7397_v50 = vor.u32 %v1618_v55, %v1615_v40  ;;  %v7399_v25 = vpop.permute.xlu1 %604  ;;  %v7401_v28 = vpop.permute.xlu0 %599  ;;  %v8640_v30 = vmov 0   ;;  %4425 = vmatprep.mubr.bf16.mxu0 %v1956_v22  ;;  %v8641_v32 = vmax.f32 %v7197_v34, 0.0  ;;  %v6566_v34 = vld [vmem:[%s8591_s1 + $0x108] sm:$0xff]  }
  0xab   : > { %6322 = vmatprep.subr.bf16.mxu1 %v8640_v30  ;;  %v8642_v16 = vmax.f32 %v7200_v35, 0.0  ;;  %v1963_v1 = vrot.slane %v1961_v21, 4  ;;  %v1083_v51 = vrot.slane %v1081_v53, 2  ;;  %v8643_v43 = vor.u32 %v7220_v0, %v7218_v63  ;;  %v7424_v63 = vld [vmem:[#allocation2 + $0x24] sm:$0xff]  }
  0xac   : > { %6214 = vst [vmem:[#allocation2 + $0x40] sm:$0xff] %v6044_v41   ;;  %v722_v49 = vmul.f32 %v7399_v25, %v8641_v32  ;;  %v1086_v55 = vrot.slane %v1084_v45, 3  ;;  %v1624_v41 = vrot.slane %v1622_v44, 3  ;;  %v8644_v35 = vunpack.c.l.bf16 %v7303_v54 }
  0xad   : > { %v721_v11 = vmul.f32 %v7401_v28, %v8642_v16  ;;  %v1620_v40 = vsel %vm1603_vm2, %v8643_v43, %v7397_v50  ;;  %v1964_v53 = vor.u32 %v1963_v1, %v1960_v57  ;;  %v1625_v32 = vshll.u32 %v6564_v8, 16  ;;  %6338 = vmatpush1.bf16.msra.mxu1 %v6602_v52 }
  0xae   : > { %v7422_v22 = vmul.f32 %v8644_v35, %v7097_v9  ;;  %4426 = vmatmul.mubr.bf16.vlgmr.msra.gmra.mrb[0].mxu0 %v1620_v40  ;;  %v1967_v16 = vshrl.u32 %v6565_v20, 16  ;;  %v7426_v0 = vpop.permute.xlu1 %614  ;;  %v7428_v45 = vpop.permute.xlu0 %609  ;;  %v7430_v44 = vor.u32 %v1086_v55, %v1083_v51  ;;  %v1970_v43 = vshll.u32 %v6565_v20, 16  ;;  %6323 = vmatprep.subr.bf16.mxu1 %v8640_v30  ;;  %v6570_v20 = vld [vmem:[#allocation2 + $0x2c] sm:$0xff]  }
  0xaf   : > { %v6049_v21 = vpack.c.bf16 %v722_v49, %v721_v11  ;;  %4571 = vmatpush1.bf16.msra.mxu0 %v6560_v27  ;;  %v1090_v54 = vshrl.u32 %v6567_v24, 16  ;;  %v1093_v35 = vshll.u32 %v6567_v24, 16  ;;  %v1965_v57 = vsel %vm1603_vm2, %v1955_v26, %v1964_v53 }
  0xb0   : > { %v8645_v52 = vmax.f32 %v7227_v18, 0.0  ;;  %v8646_v8 = vmax.f32 %v7232_v31, 0.0  ;;  %v1627_v11 = vrot.slane %v1625_v32, 4  ;;  %4572 = vmatprep.subr.bf16.mxu0 %v8640_v30  ;;  %4433 = vmatprep.mubr.bf16.mxu0 %v1965_v57  ;;  %v1088_v1 = vsel %vm1062_vm1, %v7370_v2, %v7430_v44  ;;  %v6608_v18 = vld [vmem:[%s8591_s1 + $0x190] sm:$0xff]  }
  0xb1   : > { %6215 = vst [vmem:[#allocation2 + $0x48] sm:$0xff] %v6049_v21   ;;  %v1969_v51 = vrot.slane %v1967_v16, 3  ;;  %v1972_v24 = vrot.slane %v1970_v43, 4  ;;  %v1092_v26 = vrot.slane %v1090_v54, 2  ;;  %4257 = vmatmul.mubr.bf16.gmra.mrb[4].mxu1 %v1088_v1  ;;  %v8647_v31 = vrot.slane %v7388_v4, 3  ;;  %v6571_v2 = vld [vmem:[%s8591_s1 + $0x110] sm:$0xff]  }
  0xb2   : > { %v724_v27 = vmul.f32 %v7426_v0, %v8645_v52  ;;  %v723_v49 = vmul.f32 %v7428_v45, %v8646_v8  ;;  %v8648_v55 = vrot.slane %v7359_v58, 3  ;;  %v7455_v32 = vor.u32 %v1627_v11, %v1624_v41  ;;  %v7460_v16 = vpop.permute.xlu1 %624  ;;  %v7462_v43 = vpop.permute.xlu0 %619  ;;  %v6572_v8 = vld [vmem:[#allocation2 + $0x24] sm:$0xff]   ;;  %6339 = vmatpush1.bf16.msra.mxu1 %v6608_v18 }
  0xb3   : > { %v1095_v57 = vrot.slane %v1093_v35, 3  ;;  %v7464_v54 = vor.u32 %v1972_v24, %v1969_v51  ;;  %4573 = vmatpush1.bf16.msra.mxu0 %v6566_v34  ;;  %v1631_v52 = vshrl.u32 %v6569_v38, 16  ;;  %v1976_v58 = vshrl.u32 %v6570_v20, 16  ;;  %v6574_v51 = vld [vmem:[#allocation2 + $0x24] sm:$0xff]   ;;  %6324 = vmatprep.subr.bf16.mxu1 %v8640_v30  ;;  %v6577_v34 = vld [vmem:[#allocation2 + $0x2c] sm:$0xff]  }
  0xb4   : > { %v6054_v40 = vpack.c.bf16 %v724_v27, %v723_v49  ;;  %v1406_v21 = vsel %vm1399_vm0, %v8648_v55, %v8647_v31  ;;  %v1634_v27 = vshll.u32 %v6569_v38, 16  ;;  %v8649_v41 = vmax.f32 %v7240_v36, 0.0  ;;  %4574 = vmatprep.subr.bf16.mxu0 %v8640_v30  ;;  %v6614_v31 = vld [vmem:[%s8591_s1 + $0x198] sm:$0xff]  }
  0xb5   : > { %4264 = vmatprep.mubr.bf16.mxu1 %v1406_v21  ;;  %v8650_v49 = vmax.f32 %v7267_v61, 0.0  ;;  %v8606_v1 = vrot.slane %v7424_v63, 3  ;;  %v1629_v38 = vsel %vm1603_vm2, %v7397_v50, %v7455_v32  ;;  %v7478_v24 = vor.u32 %v1095_v57, %v1092_v26  ;;  %v6576_v61 = vld [vmem:[%s8591_s1 + $0x118] sm:$0xff]  }
  0xb6   : > { %6216 = vst [vmem:[#allocation2 + $0x50] sm:$0xff] %v6054_v40   ;;  %v726_v35 = vmul.f32 %v7460_v16, %v8649_v41  ;;  %v1633_v36 = vrot.slane %v1631_v52, 3  ;;  %v1636_v40 = vrot.slane %v1634_v27, 4  ;;  %4434 = vmatmul.mubr.bf16.gmra.mrb[4].mxu0 %v1629_v38  ;;  %v1974_v21 = vsel %vm1603_vm2, %v1964_v53, %v7464_v54  ;;  %v7489_v26 = vpop.permute.xlu1 %634  ;;  %v7491_v57 = vpop.permute.xlu0 %629  ;;  %6340 = vmatpush1.bf16.msra.mxu1 %v6614_v31 }
  0xb7   : > { %v725_v11 = vmul.f32 %v7462_v43, %v8650_v49  ;;  %v1978_v41 = vrot.slane %v1976_v58, 3  ;;  %v1979_v50 = vshll.u32 %v6570_v20, 16  ;;  %4441 = vmatprep.mubr.bf16.mxu0 %v1974_v21  ;;  %8651 = vst [vmem:[#allocation14_spill] sm:$0xff] %v7489_v26  ;;  %8652 = vst [vmem:[#allocation15_spill] sm:$0xff] %v7491_v57  ;;  %4575 = vmatpush1.bf16.msra.mxu0 %v6571_v2  ;;  %v1099_v18 = vshrl.u32 %v6572_v8, 16  ;;  %v7495_v49 = vld [vmem:[#allocation2 + $0x2c] sm:$0xff]  }
  0xb8   : > { %v7493_v52 = vor.u32 %v1636_v40, %v1633_v36  ;;  %v1102_v27 = vshll.u32 %v6572_v8, 16  ;;  %v8653_v53 = vmax.f32 %v7270_v23, 0.0  ;;  %v8654_v58 = vmax.f32 %v7280_v19, 0.0  ;;  %4576 = vmatprep.subr.bf16.mxu0 %v8640_v30  ;;  %v6620_v19 = vld [vmem:[%s8591_s1 + $0x1a0] sm:$0xff]   ;;  %6325 = vmatprep.subr.bf16.mxu1 %v8640_v30 }
  0xb9   : > { %v6059_v55 = vpack.c.bf16 %v726_v35, %v725_v11  ;;  %v6575_v35 = vld [vmem:[#allocation2 + $0x34] sm:$0xff]   ;;  %v6005_v11 = vunpack.c.l.bf16 %v7433_v46  ;;  %v1981_v21 = vrot.slane %v1979_v50, 4  ;;  %v1640_v36 = vshrl.u32 %v6574_v51, 16 }
  0xba   : > { %v728_v20 = vmul.f32 %v7489_v26, %v8653_v53  ;;  %v727_v38 = vmul.f32 %v7491_v57, %v8654_v58  ;;  %v1097_v2 = vsel %vm1062_vm1, %v7430_v44, %v7478_v24  ;;  %v1101_v8 = vrot.slane %v1099_v18, 2  ;;  %v7526_v31 = vpop.permute.xlu1 %644  ;;  %v7528_v53 = vpop.permute.xlu0 %639  ;;  %6341 = vmatpush1.bf16.msra.mxu1 %v6620_v19 }
  0xbb   : > { %6217 = vst [vmem:[#allocation2 + $0x58] sm:$0xff] %v6059_v55   ;;  %v1104_v40 = vrot.slane %v1102_v27, 3  ;;  %v7510_v23 = vadd.f32 %v7104_v12, %v7350_v29  ;;  %4265 = vmatmul.mubr.bf16.gmra.mrb[8].mxu1 %v1097_v2  ;;  %v8655_v50 = vrot.slane %v7388_v4, 3  ;;  %v7520_v18 = vor.u32 %v1981_v21, %v1978_v41  ;;  %v6581_v29 = vld [vmem:[%s8591_s1 + $0x120] sm:$0xff]   ;;  %8656 = vst [vmem:[#allocation16_spill] sm:$0xff] %v7526_v31 }
  0xbc   : > { %v6064_v55 = vpack.c.bf16 %v728_v20, %v727_v38  ;;  %v1643_v27 = vshll.u32 %v6574_v51, 16  ;;  %v1985_v58 = vshrl.u32 %v6575_v35, 16  ;;  %v1988_v4 = vshll.u32 %v6575_v35, 16  ;;  %4577 = vmatpush1.bf16.msra.mxu0 %v6576_v61  ;;  %v6626_v51 = vld [vmem:[%s8591_s1 + $0x1a8] sm:$0xff]   ;;  %v7550_v20 = vld [vmem:[#allocation2 + $0x3c] sm:$0xff]   ;;  %6326 = vmatprep.subr.bf16.mxu1 %v8640_v30 }
  0xbd   : > { %v1408_v44 = vsel %vm1399_vm0, %v8655_v50, %v8606_v1  ;;  %v7533_v41 = vadd.f32 %v7104_v12, %v7422_v22  ;;  %v1638_v38 = vsel %vm1603_vm2, %v7455_v32, %v7493_v52  ;;  %v8657_v21 = vmax.f32 %v7285_v48, 0.0  ;;  %v6579_v12 = vld [vmem:[#allocation2 + $0x2c] sm:$0xff]   ;;  %4578 = vmatprep.subr.bf16.mxu0 %v8640_v30 }
  0xbe   : > { %4272 = vmatprep.mubr.bf16.mxu1 %v1408_v44  ;;  %6218 = vst [vmem:[#allocation2 + $0x60] sm:$0xff] %v6064_v55   ;;  %v8658_v35 = vmax.f32 %v7288_v33, 0.0  ;;  %v1642_v50 = vrot.slane %v1640_v36, 3  ;;  %v7548_v22 = vor.u32 %v1104_v40, %v1101_v8  ;;  %v1645_v44 = vrot.slane %v1643_v27, 4  ;;  %v6586_v48 = vld [vmem:[%s8591_s1 + $0x128] sm:$0xff]   ;;  %4442 = vmatmul.mubr.bf16.gmra.mrb[8].mxu0 %v1638_v38  ;;  %v7559_v8 = vpop.permute.xlu1 %654  ;;  %v7561_v40 = vpop.permute.xlu0 %649  ;;  %v7568_v38 = vld [vmem:[#allocation2 + $0x34] sm:$0xff]  }
  0xbf   : > { %v730_v2 = vmul.f32 %v7526_v31, %v8657_v21  ;;  %v1987_v55 = vrot.slane %v1985_v58, 3  ;;  %v1108_v1 = vshrl.u32 %v6577_v34, 16  ;;  %v1983_v32 = vsel %vm1603_vm2, %v7464_v54, %v7520_v18  ;;  %8659 = vst [vmem:[#allocation17_spill] sm:$0xff] %v7559_v8  ;;  %8660 = vst [vmem:[#allocation18_spill] sm:$0xff] %v7561_v40  ;;  %6342 = vmatpush1.bf16.msra.mxu1 %v6626_v51 }
  0xc0   : > { %v729_v61 = vmul.f32 %v7528_v53, %v8658_v35  ;;  %v1990_v36 = vrot.slane %v1988_v4, 4  ;;  %v1111_v21 = vshll.u32 %v6577_v34, 16  ;;  %4449 = vmatprep.mubr.bf16.mxu0 %v1983_v32  ;;  %v8661_v27 = vrot.slane %v7495_v49, 3  ;;  %4579 = vmatpush1.bf16.msra.mxu0 %v6581_v29  ;;  %v7575_v35 = vld [vmem:[#allocation2 + $0x34] sm:$0xff]  }
  0xc1   : > { %v8662_v58 = vrot.slane %v7424_v63, 3  ;;  %v8663_v54 = vunpack.c.h.bf16 %v7433_v46  ;;  %v444_v4 = vmul.f32 %v6005_v11, %v7097_v9  ;;  %v8664_v63 = vmax.f32 %v7291_v47, 0.0  ;;  %4580 = vmatprep.subr.bf16.mxu0 %v8640_v30  ;;  %6327 = vmatprep.subr.bf16.mxu1 %v8640_v30 }
  0xc2   : > { %v6069_v33 = vpack.c.bf16 %v730_v2, %v729_v61  ;;  %v522_v2 = vmax.f32 %v7510_v23, 0.0  ;;  %v6630_v61 = vld [vmem:[%s8591_s1 + $0x1b0] sm:$0xff]   ;;  %v1652_v46 = vshll.u32 %v6579_v12, 16  ;;  %v7590_v11 = vor.u32 %v1645_v44, %v1642_v50  ;;  %v6761_v44 = vld [vmem:[%s8593_s3] ss:$0 sm:$0xff] }
  0xc3   : > { %v1410_v19 = vsel %vm1399_vm0, %v8662_v58, %v8661_v27  ;;  %v445_v34 = vmul.f32 %v8663_v54, %v7097_v9  ;;  %v732_v32 = vmul.f32 %v7559_v8, %v8664_v63  ;;  %v8665_v27 = vmax.f32 %v7294_v3, 0.0  ;;  %6343 = vmatpush1.bf16.msra.mxu1 %v6630_v61 }
  0xc4   : > { %6219 = vst [vmem:[#allocation2 + $0x68] sm:$0xff] %v6069_v33   ;;  %v1649_v58 = vshrl.u32 %v6579_v12, 16  ;;  %v1106_v9 = vsel %vm1062_vm1, %v7478_v24, %v7548_v22  ;;  %v1110_v54 = vrot.slane %v1108_v1, 2  ;;  %v1113_v33 = vrot.slane %v1111_v21, 3  ;;  %v6591_v12 = vld [vmem:[%s8591_s1 + $0x130] sm:$0xff]   ;;  %v7600_v24 = vpop.permute.xlu1 %664  ;;  %v7602_v1 = vpop.permute.xlu0 %659  ;;  %4581 = vmatpush1.bf16.msra.mxu0 %v6586_v48  ;;  %v6633_v21 = vld [vmem:[%s8591_s1 + $0x1b8] sm:$0xff]   ;;  %6328 = vmatprep.subr.bf16.mxu1 %v8640_v30 }
  0xc5   : > { %v731_v29 = vmul.f32 %v7561_v40, %v8665_v27  ;;  %4273 = vmatmul.mubr.bf16.gmra.mrb[12].mxu1 %v1106_v9  ;;  %v7592_v63 = vor.u32 %v1990_v36, %v1987_v55  ;;  %v1994_v3 = vshrl.u32 %v7550_v20, 16  ;;  %v1997_v27 = vshll.u32 %v7550_v20, 16  ;;  %8666 = vst [vmem:[#allocation19_spill] sm:$0xff] %v7600_v24  ;;  %8667 = vst [vmem:[#allocation20_spill] sm:$0xff] %v7602_v1  ;;  %v7613_v36 = vld [vmem:[#allocation2 + $0x34] sm:$0xff]  }
  0xc6   : > { %4280 = vmatprep.mubr.bf16.mxu1 %v1410_v19  ;;  %v1411_v51 = vrot.slane %v7568_v38, 3  ;;  %v521_v50 = vmax.f32 %v7533_v41, 0.0  ;;  %v7609_v20 = vadd.f32 %v6761_v44, %v445_v34  ;;  %v7611_v55 = vadd.f32 %v6761_v44, %v444_v4  ;;  %v7624_v4 = vld [vmem:[#allocation2 + $0x44] sm:$0xff]   ;;  %4582 = vmatprep.subr.bf16.mxu0 %v8640_v30 }
  0xc7   : > { %v6074_v47 = vpack.c.bf16 %v732_v32, %v731_v29  ;;  %v8668_v19 = vmax.f32 %v7297_v7, 0.0  ;;  %v8669_v32 = vmax.f32 %v7300_v37, 0.0  ;;  %v1651_v34 = vrot.slane %v1649_v58, 3  ;;  %6344 = vmatpush1.bf16.msra.mxu1 %v6633_v21 }
  0xc8   : > { %v1654_v9 = vrot.slane %v1652_v46, 4  ;;  %v1647_v48 = vsel %vm1603_vm2, %v7493_v52, %v7590_v11  ;;  %v7630_v44 = vor.u32 %v1113_v33, %v1110_v54  ;;  %v1117_v7 = vshrl.u32 %v7575_v35, 16  ;;  %v7640_v52 = vpop.permute.xlu0 %669  ;;  %4583 = vmatpush1.bf16.msra.mxu0 %v6591_v12  ;;  %6329 = vmatprep.subr.bf16.mxu1 %v8640_v30 }
  0xc9   : > { %6220 = vst [vmem:[#allocation2 + $0x70] sm:$0xff] %v6074_v47   ;;  %v734_v41 = vmul.f32 %v7600_v24, %v8668_v19  ;;  %v733_v29 = vmul.f32 %v7602_v1, %v8669_v32  ;;  %v1120_v47 = vshll.u32 %v7575_v35, 16  ;;  %4450 = vmatmul.mubr.bf16.gmra.mrb[12].mxu0 %v1647_v48  ;;  %v1992_v58 = vsel %vm1603_vm2, %v7520_v18, %v7592_v63  ;;  %v7638_v32 = vpop.permute.xlu1 %674  ;;  %v7649_v18 = vld [vmem:[#allocation2 + $0x3c] sm:$0xff]  }
  0xca   : > { %v1996_v46 = vrot.slane %v1994_v3, 3  ;;  %v1999_v19 = vrot.slane %v1997_v27, 4  ;;  %4457 = vmatprep.mubr.bf16.mxu0 %v1992_v58  ;;  %8670 = vst [vmem:[#allocation21_spill] sm:$0xff] %v7638_v32  ;;  %8671 = vst [vmem:[#allocation22_spill] sm:$0xff] %v7640_v52  ;;  %v8672_v35 = vrot.slane %v7495_v49, 3  ;;  %v524_v54 = vmax.f32 %v7609_v20, 0.0  ;;  %4584 = vmatprep.subr.bf16.mxu0 %v8640_v30 }
  0xcb   : > { %v6079_v37 = vpack.c.bf16 %v734_v41, %v733_v29  ;;  %v523_v33 = vmax.f32 %v7611_v55, 0.0  ;;  %v6598_v3 = vld [vmem:[%s8591_s1 + $0x138] sm:$0xff]   ;;  %v8673_v27 = vmax.f32 %v7313_v6, 0.0  ;;  %v8674_v49 = vmax.f32 %v7323_v42, 0.0  ;;  %v6637_v42 = vld [vmem:[%s8591_s1 + $0x1c0] sm:$0xff]  }
  0xcc   : > { %v1412_v61 = vsel %vm1399_vm0, %v8672_v35, %v1411_v51  ;;  %v7660_v48 = vor.u32 %v1654_v9, %v1651_v34  ;;  %v1658_v20 = vshrl.u32 %v7613_v36, 16  ;;  %v6587_v55 = vld [vmem:[#allocation2 + $0x3c] sm:$0xff]   ;;  %v1115_v12 = vsel %vm1062_vm1, %v7548_v22, %v7630_v44  ;;  %v7681_v21 = vpop.permute.xlu0 %679  ;;  %4585 = vmatpush1.bf16.msra.mxu0 %v6598_v3  ;;  %6345 = vmatpush1.bf16.msra.mxu1 %v6637_v42 }
  0xcd   : > { %6221 = vst [vmem:[#allocation2 + $0x78] sm:$0xff] %v6079_v37   ;;  %v736_v41 = vmul.f32 %v7638_v32, %v8673_v27  ;;  %v735_v29 = vmul.f32 %v7640_v52, %v8674_v49  ;;  %v1119_v37 = vrot.slane %v1117_v7, 2  ;;  %v1122_v58 = vrot.slane %v1120_v47, 3  ;;  %4281 = vmatmul.mubr.bf16.gmra.mrb[16].mxu1 %v1115_v12  ;;  %v6606_v22 = vld [vmem:[%s8591_s1 + $0x140] sm:$0xff]   ;;  %8676 = vst [vmem:[#allocation24_spill] sm:$0xff] %v7681_v21 }
  0xce   : > { %v1661_v6 = vshll.u32 %v7613_v36, 16  ;;  %v7671_v9 = vor.u32 %v1999_v19, %v1996_v46  ;;  %v2003_v35 = vshrl.u32 %v7624_v4, 16  ;;  %v2006_v27 = vshll.u32 %v7624_v4, 16  ;;  %4288 = vmatprep.mubr.bf16.mxu1 %v1412_v61  ;;  %v7679_v36 = vpop.permute.xlu1 %684  ;;  %v6589_v47 = vld [vmem:[#allocation2 + $0x3c] sm:$0xff]   ;;  %4586 = vmatprep.subr.bf16.mxu0 %v8640_v30 }
  0xcf   : > { %v6084_v34 = vpack.c.bf16 %v736_v41, %v735_v29  ;;  %8675 = vst [vmem:[#allocation23_spill] sm:$0xff] %v7679_v36  ;;  %v1413_v7 = vrot.slane %v7649_v18, 3  ;;  %v738_v4 = vmul.f32 %v7679_v36, %v522_v2  ;;  %v737_v46 = vmul.f32 %v7681_v21, %v521_v50  ;;  %6330 = vmatprep.subr.bf16.mxu1 %v8640_v30 }
  0xd0   : > { %v1660_v19 = vrot.slane %v1658_v20, 3  ;;  %v1126_v41 = vshrl.u32 %v6587_v55, 16  ;;  %v1656_v61 = vsel %vm1603_vm2, %v7590_v11, %v7660_v48  ;;  %v7692_v49 = vor.u32 %v1122_v58, %v1119_v37  ;;  %v6590_v20 = vld [vmem:[#allocation2 + $0x4c] sm:$0xff]   ;;  %v7700_v11 = vpop.permute.xlu0 %689  ;;  %v7709_v58 = vld [vmem:[#allocation2 + $0x44] sm:$0xff]   ;;  %4587 = vmatpush1.bf16.msra.mxu0 %v6606_v22 }
  0xd1   : > { %6222 = vst [vmem:[#allocation2 + $0x80] sm:$0xff] %v6084_v34   ;;  %v1663_v29 = vrot.slane %v1661_v6, 4  ;;  %v1129_v12 = vshll.u32 %v6587_v55, 16  ;;  %4458 = vmatmul.mubr.bf16.gmra.mrb[16].mxu0 %v1656_v61  ;;  %v6089_v3 = vpack.c.bf16 %v738_v4, %v737_v46  ;;  %v2001_v23 = vsel %vm1603_vm2, %v7592_v63, %v7671_v9  ;;  %8678 = vst [vmem:[#allocation26_spill] sm:$0xff] %v7700_v11  ;;  %v6613_v6 = vld [vmem:[%s8591_s1 + $0x148] sm:$0xff]  }
  0xd2   : > { %v2005_v2 = vrot.slane %v2003_v35, 3  ;;  %v2008_v50 = vrot.slane %v2006_v27, 4  ;;  %4465 = vmatprep.mubr.bf16.mxu0 %v2001_v23  ;;  %v7698_v34 = vpop.permute.xlu1 %694  ;;  %v1414_v55 = vsel %vm1399_vm0, %v1411_v51, %v1413_v7  ;;  %v526_v37 = vmax.f32 %v7109_v13, 0.0  ;;  %4588 = vmatprep.subr.bf16.mxu0 %v8640_v30  ;;  %v6592_v4 = vld [vmem:[#allocation2 + $0x44] sm:$0xff]  }
  0xd3   : > { %8677 = vst [vmem:[#allocation25_spill] sm:$0xff] %v7698_v34  ;;  %v525_v63 = vmax.f32 %v7112_v14, 0.0  ;;  %6223 = vst [vmem:[#allocation2 + $0x88] sm:$0xff] %v6089_v3   ;;  %v740_v42 = vmul.f32 %v7698_v34, %v524_v54  ;;  %v739_v35 = vmul.f32 %v7700_v11, %v523_v33  ;;  %v1667_v27 = vshrl.u32 %v6589_v47, 16 }
  0xd4   : > { %v1670_v38 = vshll.u32 %v6589_v47, 16  ;;  %v1124_v13 = vsel %vm1062_vm1, %v7630_v44, %v7692_v49  ;;  %v1664_v14 = vor.u32 %v1663_v29, %v1660_v19  ;;  %v1128_v51 = vrot.slane %v1126_v41, 2  ;;  %v7722_v33 = vpop.permute.xlu0 %699  ;;  %4589 = vmatpush1.bf16.msra.mxu0 %v6613_v6  ;;  %v6619_v44 = vld [vmem:[%s8591_s1 + $0x150] sm:$0xff]   ;;  %v6746_v52 = vld [vmem:[#allocation2 + $0x78] sm:$0xff]  }
  0xd5   : > { %v1131_v22 = vrot.slane %v1129_v12, 3  ;;  %v6094_v46 = vpack.c.bf16 %v740_v42, %v739_v35  ;;  %4289 = vmatmul.mubr.bf16.gmra.mrb[20].mxu1 %v1124_v13  ;;  %v2009_v61 = vor.u32 %v2008_v50, %v2005_v2  ;;  %v2012_v3 = vshrl.u32 %v6590_v20, 16  ;;  %8680 = vst [vmem:[#allocation28_spill] sm:$0xff] %v7722_v33  ;;  %v6594_v2 = vld [vmem:[#allocation2 + $0x44] sm:$0xff]   ;;  %v6595_v50 = vld [vmem:[#allocation2 + $0x54] sm:$0xff]   ;;  %4590 = vmatprep.subr.bf16.mxu0 %v8640_v30 }
  0xd6   : > { %v2015_v23 = vshll.u32 %v6590_v20, 16  ;;  %4296 = vmatprep.mubr.bf16.mxu1 %v1414_v55  ;;  %v7720_v54 = vpop.permute.xlu1 %704  ;;  %v1415_v47 = vrot.slane %v7709_v58, 3  ;;  %v741_v41 = vmul.f32 %v7722_v33, %v525_v63  ;;  %v1669_v29 = vrot.slane %v1667_v27, 3  ;;  %v6625_v63 = vld [vmem:[%s8591_s1 + $0x158] sm:$0xff]  }
  0xd7   : > { %8679 = vst [vmem:[#allocation27_spill] sm:$0xff] %v7720_v54  ;;  %6224 = vst [vmem:[#allocation2 + $0x90] sm:$0xff] %v6094_v46   ;;  %v742_v19 = vmul.f32 %v7720_v54, %v526_v37  ;;  %v1672_v12 = vrot.slane %v1670_v38, 4  ;;  %v1665_v20 = vsel %vm1603_vm2, %v7660_v48, %v1664_v14  ;;  %v1132_v55 = vor.u32 %v1131_v22, %v1128_v51  ;;  %v6597_v48 = vld [vmem:[#allocation2 + $0x4c] sm:$0xff]  }
  0xd8   : > { %v1135_v6 = vshrl.u32 %v6592_v4, 16  ;;  %v1138_v42 = vshll.u32 %v6592_v4, 16  ;;  %v2010_v13 = vsel %vm1603_vm2, %v7671_v9, %v2009_v61  ;;  %v2014_v37 = vrot.slane %v2012_v3, 3  ;;  %4591 = vmatpush1.bf16.msra.mxu0 %v6619_v44  ;;  %v6593_v44 = vld [vmem:[#allocation2 + $0x4c] sm:$0xff]   ;;  %v8046_v54 = vld [vmem:[#allocation2 + $0x80] sm:$0xff]  }
  0xd9   : > { %4466 = vmatmul.mubr.bf16.gmra.mrb[20].mxu0 %v1665_v20  ;;  %v6099_v35 = vpack.c.bf16 %v742_v19, %v741_v41  ;;  %v2017_v46 = vrot.slane %v2015_v23, 4  ;;  %v1676_v27 = vshrl.u32 %v6594_v2, 16  ;;  %v1679_v38 = vshll.u32 %v6594_v2, 16  ;;  %4592 = vmatprep.subr.bf16.mxu0 %v8640_v30  ;;  %v6600_v2 = vld [vmem:[#allocation2 + $0x4c] sm:$0xff]  }
  0xda   : > { %4473 = vmatprep.mubr.bf16.mxu0 %v2010_v13  ;;  %v1133_v51 = vsel %vm1062_vm1, %v7692_v49, %v1132_v55  ;;  %v1673_v22 = vor.u32 %v1672_v12, %v1669_v29  ;;  %v1137_v4 = vrot.slane %v1135_v6, 2  ;;  %v1140_v9 = vrot.slane %v1138_v42, 3  ;;  %v6632_v49 = vld [vmem:[%s8591_s1 + $0x160] sm:$0xff]  }
  0xdb   : > { %6225 = vst [vmem:[#allocation2 + $0x98] sm:$0xff] %v6099_v35   ;;  %v1416_v3 = vsel %vm1399_vm0, %v1413_v7, %v1415_v47  ;;  %v2018_v23 = vor.u32 %v2017_v46, %v2014_v37  ;;  %v2021_v19 = vshrl.u32 %v6595_v50, 16  ;;  %v2024_v41 = vshll.u32 %v6595_v50, 16  ;;  %v6601_v37 = vld [vmem:[#allocation2 + $0x5c] sm:$0xff]  }
  0xdc   : > { %4593 = vmatpush1.bf16.msra.mxu0 %v6625_v63  ;;  %v1678_v29 = vrot.slane %v1676_v27, 3  ;;  %v1681_v12 = vrot.slane %v1679_v38, 4  ;;  %v1674_v20 = vsel %vm1603_vm2, %v1664_v14, %v1673_v22  ;;  %v1141_v18 = vor.u32 %v1140_v9, %v1137_v4  ;;  %v7752_v63 = vld [vmem:[#allocation2 + $0x54] sm:$0xff]  }
  0xdd   : > { %4297 = vmatmul.mubr.bf16.gmra.mrb[24].mxu1 %v1133_v51  ;;  %4594 = vmatprep.subr.bf16.mxu0 %v8640_v30  ;;  %v1144_v6 = vshrl.u32 %v6597_v48, 16  ;;  %v1147_v7 = vshll.u32 %v6597_v48, 16  ;;  %v2019_v42 = vsel %vm1603_vm2, %v2009_v61, %v2018_v23  ;;  %v1417_v50 = vrot.slane %v6593_v44, 3  ;;  %v6603_v4 = vld [vmem:[#allocation2 + $0x54] sm:$0xff]  }
  0xde   : > { %4304 = vmatprep.mubr.bf16.mxu1 %v1416_v3  ;;  %v2023_v35 = vrot.slane %v2021_v19, 3  ;;  %v2026_v13 = vrot.slane %v2024_v41, 4  ;;  %v1682_v46 = vor.u32 %v1681_v12, %v1678_v29  ;;  %v1685_v27 = vshrl.u32 %v6600_v2, 16 }
  0xdf   : > { %v1142_v14 = vsel %vm1062_vm1, %v1132_v55, %v1141_v18  ;;  %v1146_v38 = vrot.slane %v1144_v6, 2  ;;  %v1149_v51 = vrot.slane %v1147_v7, 3  ;;  %v1688_v48 = vshll.u32 %v6600_v2, 16 }
  0xe0   : > { %4595 = vmatpush1.bf16.msra.mxu0 %v6632_v49  ;;  %v1418_v61 = vsel %vm1399_vm0, %v1415_v47, %v1417_v50  ;;  %v2027_v9 = vor.u32 %v2026_v13, %v2023_v35  ;;  %v2030_v3 = vshrl.u32 %v6601_v37, 16  ;;  %v2033_v44 = vshll.u32 %v6601_v37, 16  ;;  %v6605_v49 = vld [vmem:[#allocation2 + $0x54] sm:$0xff]   ;;  %v6607_v47 = vld [vmem:[#allocation2 + $0x64] sm:$0xff]  }
  0xe1   : > { %4474 = vmatmul.mubr.bf16.gmra.mrb[24].mxu0 %v1674_v20  ;;  %4596 = vmatprep.subr.bf16.mxu0 %v8640_v30  ;;  %v1683_v19 = vsel %vm1603_vm2, %v1673_v22, %v1682_v46  ;;  %v1687_v41 = vrot.slane %v1685_v27, 3  ;;  %v1150_v29 = vor.u32 %v1149_v51, %v1146_v38  ;;  %v1690_v12 = vrot.slane %v1688_v48, 4  ;;  %v7764_v48 = vld [vmem:[#allocation2 + $0x5c] sm:$0xff]  }
  0xe2   : > { %4481 = vmatprep.mubr.bf16.mxu0 %v2019_v42  ;;  %v1153_v55 = vshrl.u32 %v6603_v4, 16  ;;  %v1156_v20 = vshll.u32 %v6603_v4, 16  ;;  %v2028_v2 = vsel %vm1603_vm2, %v2018_v23, %v2027_v9  ;;  %v1419_v6 = vrot.slane %v7752_v63, 3 }
  0xe3   : > { %v2032_v58 = vrot.slane %v2030_v3, 3  ;;  %v2035_v7 = vrot.slane %v2033_v44, 4  ;;  %v1694_v42 = vshrl.u32 %v6605_v49, 16  ;;  %v1697_v35 = vshll.u32 %v6605_v49, 16  ;;  %v6611_v3 = vld [vmem:[#allocation2 + $0x5c] sm:$0xff]  }
  0xe4   : > { %v1151_v13 = vsel %vm1062_vm1, %v1141_v18, %v1150_v29  ;;  %v1691_v22 = vor.u32 %v1690_v12, %v1687_v41  ;;  %v1155_v37 = vrot.slane %v1153_v55, 2  ;;  %v1158_v27 = vrot.slane %v1156_v20, 3  ;;  %v6612_v20 = vld [vmem:[#allocation2 + $0x6c] sm:$0xff]  }
  0xe5   : > { %4305 = vmatmul.mubr.bf16.gmra.mrb[28].mxu1 %v1142_v14  ;;  %v6609_v14 = vld [vmem:[#allocation2 + $0x5c] sm:$0xff]   ;;  %v1420_v38 = vsel %vm1399_vm0, %v1417_v50, %v1419_v6  ;;  %v2036_v51 = vor.u32 %v2035_v7, %v2032_v58  ;;  %v2039_v23 = vshrl.u32 %v6607_v47, 16  ;;  %v2042_v63 = vshll.u32 %v6607_v47, 16  ;;  %v6639_v58 = vld [vmem:[%s8591_s1 + $0x1c8] sm:$0xff]  }
  0xe6   : > { %4312 = vmatprep.mubr.bf16.mxu1 %v1418_v61  ;;  %v1696_v4 = vrot.slane %v1694_v42, 3  ;;  %v1699_v61 = vrot.slane %v1697_v35, 4  ;;  %v1692_v44 = vsel %vm1603_vm2, %v1682_v46, %v1691_v22  ;;  %v1162_v18 = vshrl.u32 %v6609_v14, 16  ;;  %v6615_v47 = vld [vmem:[#allocation2 + $0x64] sm:$0xff]   ;;  %6346 = vmatpush1.bf16.msra.mxu1 %v6639_v58 }
  0xe7   : > { %v1165_v41 = vshll.u32 %v6609_v14, 16  ;;  %v2037_v49 = vsel %vm1603_vm2, %v2027_v9, %v2036_v51  ;;  %v1421_v12 = vrot.slane %v7764_v48, 3  ;;  %v2041_v50 = vrot.slane %v2039_v23, 3  ;;  %v6640_v42 = vld [vmem:[%s8591_s1 + $0x168] sm:$0xff]   ;;  %6331 = vmatprep.subr.bf16.mxu1 %v8640_v30 }
  0xe8   : > { %v2044_v55 = vrot.slane %v2042_v63, 4  ;;  %v1703_v7 = vshrl.u32 %v6611_v3, 16  ;;  %v1706_v46 = vshll.u32 %v6611_v3, 16  ;;  %v1700_v35 = vor.u32 %v1699_v61, %v1696_v4  ;;  %4597 = vmatpush1.bf16.msra.mxu0 %v6640_v42  ;;  %v6617_v63 = vld [vmem:[#allocation2 + $0x64] sm:$0xff]  }
  0xe9   : > { %4482 = vmatmul.mubr.bf16.gmra.mrb[28].mxu0 %v1683_v19  ;;  %v1159_v19 = vor.u32 %v1158_v27, %v1155_v37  ;;  %v1167_v37 = vrot.slane %v1165_v41, 3  ;;  %v1422_v27 = vsel %vm1399_vm0, %v1419_v6, %v1421_v12  ;;  %v2051_v48 = vshll.u32 %v6612_v20, 16  ;;  %4598 = vmatprep.subr.bf16.mxu0 %v8640_v30 }
  0xea   : > { %4489 = vmatprep.mubr.bf16.mxu0 %v2028_v2  ;;  %v7769_v2 = vld [vmem:[#allocation2 + $0x64] sm:$0xff]   ;;  %v2045_v14 = vor.u32 %v2044_v55, %v2041_v50  ;;  %v1705_v3 = vrot.slane %v1703_v7, 3  ;;  %v1171_v61 = vshrl.u32 %v6615_v47, 16  ;;  %v6618_v50 = vld [vmem:[#allocation2 + $0x74] sm:$0xff]   ;;  %v1712_v58 = vshrl.u32 %v6617_v63, 16  ;;  %v6621_v7 = vld [vmem:[#allocation2 + $0x6c] sm:$0xff]  }
  0xeb   : > { %v1160_v9 = vsel %vm1062_vm1, %v1150_v29, %v1159_v19  ;;  %v1423_v23 = vrot.slane %v7769_v2, 3  ;;  %v1701_v29 = vsel %vm1603_vm2, %v1691_v22, %v1700_v35  ;;  %v6644_v55 = vld [vmem:[%s8591_s1 + $0x1d0] sm:$0xff]   ;;  %v6646_v22 = vld [vmem:[%s8591_s1 + $0x1d8] sm:$0xff]   ;;  %v1715_v42 = vshll.u32 %v6617_v63, 16 }
  0xec   : > { %v2046_v6 = vsel %vm1603_vm2, %v2036_v51, %v2045_v14  ;;  %6347 = vmatpush1.bf16.msra.mxu1 %v6644_v55  ;;  %v1173_v51 = vrot.slane %v1171_v61, 2  ;;  %v1714_v63 = vrot.slane %v1712_v58, 3  ;;  %v1180_v61 = vshrl.u32 %v6621_v7, 16 }
  0xed   : > { %4313 = vmatmul.mubr.bf16.gmra.mrb[32].mxu1 %v1151_v13  ;;  %v1164_v13 = vrot.slane %v1162_v18, 2  ;;  %v1174_v18 = vshll.u32 %v6615_v47, 16  ;;  %6332 = vmatprep.subr.bf16.mxu1 %v8640_v30 }
  0xee   : > { %4320 = vmatprep.mubr.bf16.mxu1 %v1420_v38  ;;  %v2048_v38 = vshrl.u32 %v6612_v20, 16 }
  0xef   : > { %v1168_v4 = vor.u32 %v1167_v37, %v1164_v13  ;;  %v1176_v47 = vrot.slane %v1174_v18, 3  ;;  %v1424_v13 = vsel %vm1399_vm0, %v1421_v12, %v1423_v23  ;;  %v1183_v18 = vshll.u32 %v6621_v7, 16  ;;  %v6651_v12 = vld [vmem:[%s8591_s1 + $0x1e0] sm:$0xff]   ;;  %v6653_v7 = vld [vmem:[%s8591_s1 + $0x1e8] sm:$0xff]  }
  0xf0   : > { %v2050_v41 = vrot.slane %v2048_v38, 3  ;;  %v2057_v38 = vshrl.u32 %v6618_v50, 16  ;;  %6348 = vmatpush1.bf16.msra.mxu1 %v6646_v22  ;;  %v6627_v22 = vld [vmem:[#allocation2 + $0x74] sm:$0xff]  }
  0xf1   : > { %4490 = vmatmul.mubr.bf16.gmra.mrb[32].mxu0 %v1692_v44  ;;  %v1708_v44 = vrot.slane %v1706_v46, 4  ;;  %v1169_v46 = vsel %vm1062_vm1, %v1159_v19, %v1168_v4  ;;  %6333 = vmatprep.subr.bf16.mxu1 %v8640_v30 }
  0xf2   : > { %4497 = vmatprep.mubr.bf16.mxu0 %v2037_v49  ;;  %v2053_v49 = vrot.slane %v2051_v48, 4  ;;  %v2060_v48 = vshll.u32 %v6618_v50, 16  ;;  %v6624_v50 = vld [vmem:[#allocation2 + $0x7c] sm:$0xff]  }
  0xf3   : > { %v7787_v20 = vor.u32 %v1708_v44, %v1705_v3  ;;  %v6623_v3 = vld [vmem:[#allocation2 + $0x6c] sm:$0xff]   ;;  %v1177_v44 = vor.u32 %v1176_v47, %v1173_v51  ;;  %v1182_v47 = vrot.slane %v1180_v61, 2 }
  0xf4   : > { %v2054_v37 = vor.u32 %v2053_v49, %v2050_v41  ;;  %v2059_v41 = vrot.slane %v2057_v38, 3  ;;  %v2062_v49 = vrot.slane %v2060_v48, 4  ;;  %v1721_v55 = vshrl.u32 %v6623_v3, 16  ;;  %6349 = vmatpush1.bf16.msra.mxu1 %v6651_v12  ;;  %v6631_v12 = vld [vmem:[#allocation2 + $0x84] sm:$0xff]  }
  0xf5   : > { %4321 = vmatmul.mubr.bf16.gmra.mrb[36].mxu1 %v1160_v9  ;;  %v6647_v9 = vld [vmem:[%s8591_s1 + $0x170] sm:$0xff]   ;;  %v1710_v19 = vsel %vm1603_vm2, %v1700_v35, %v7787_v20  ;;  %v1724_v58 = vshll.u32 %v6623_v3, 16  ;;  %6334 = vmatprep.subr.bf16.mxu1 %v8640_v30  ;;  %v2066_v38 = vshrl.u32 %v6624_v50, 16  ;;  %v2069_v48 = vshll.u32 %v6624_v50, 16  ;;  %v7833_v50 = vld [vmem:[#allocation2 + $0x7c] sm:$0xff]  }
  0xf6   : > { %4328 = vmatprep.mubr.bf16.mxu1 %v1422_v27  ;;  %v7800_v27 = vld [vmem:[#allocation2 + $0x6c] sm:$0xff]   ;;  %4599 = vmatpush1.bf16.msra.mxu0 %v6647_v9  ;;  %v7818_v9 = vld [vmem:[#allocation2 + $0x74] sm:$0xff]   ;;  %v1189_v3 = vshrl.u32 %v6627_v22, 16 }
  0xf7   : > { %4600 = vmatprep.subr.bf16.mxu0 %v8640_v30  ;;  %v1425_v35 = vrot.slane %v7800_v27, 3  ;;  %v2063_v27 = vor.u32 %v2062_v49, %v2059_v41  ;;  %v1427_v61 = vrot.slane %v7818_v9, 3  ;;  %v2068_v41 = vrot.slane %v2066_v38, 3  ;;  %v6636_v38 = vld [vmem:[#allocation2 + $0x7c] sm:$0xff]  }
  0xf8   : > { %6350 = vmatpush1.bf16.msra.mxu1 %v6653_v7  ;;  %v2071_v49 = vrot.slane %v2069_v48, 4  ;;  %v2075_v9 = vshrl.u32 %v6631_v12, 16 }
  0xf9   : > { %4498 = vmatmul.mubr.bf16.gmra.mrb[36].mxu0 %v1701_v29  ;;  %v1717_v29 = vrot.slane %v1715_v42, 4  ;;  %v1185_v42 = vrot.slane %v1183_v18, 3  ;;  %v1192_v18 = vshll.u32 %v6627_v22, 16  ;;  %6335 = vmatprep.subr.bf16.mxu1 %v8640_v30 }
  0xfa   : > { %4505 = vmatprep.mubr.bf16.mxu0 %v2046_v6  ;;  %v2055_v6 = vsel %vm1603_vm2, %v2045_v14, %v2054_v37  ;;  %v1178_v14 = vsel %vm1062_vm1, %v1168_v4, %v1177_v44  ;;  %v1723_v4 = vrot.slane %v1721_v55, 3 }
  0xfb   : > { %v1718_v51 = vor.u32 %v1717_v29, %v1714_v63  ;;  %v1726_v63 = vrot.slane %v1724_v58, 4  ;;  %v6657_v29 = vld [vmem:[%s8591_s1 + $0x1f0] sm:$0xff]   ;;  %v6634_v58 = vld [vmem:[#allocation2 + $0x7c] sm:$0xff]  }
  0xfc   : > { %6351 = vmatpush1.bf16.msra.mxu1 %v6657_v29 }
  0xfd   : > { %4329 = vmatmul.mubr.bf16.gmra.mrb[40].mxu1 %v1169_v46  ;;  %v6655_v46 = vld [vmem:[%s8591_s1 + $0x178] sm:$0xff]   ;;  %v1719_v2 = vsel %vm1603_vm2, %v7787_v20, %v1718_v51  ;;  %v1727_v7 = vor.u32 %v1726_v63, %v1723_v4  ;;  %6336 = vmatprep.subr.bf16.mxu1 %v8640_v30  ;;  %v1429_v4 = vrot.slane %v7833_v50, 3  ;;  %v1742_v50 = vshll.u32 %v6636_v38, 16 }
  0xfe   : > { %4336 = vmatprep.mubr.bf16.mxu1 %v1424_v13  ;;  %v1426_v13 = vsel %vm1399_vm0, %v1423_v23, %v1425_v35  ;;  %4601 = vmatpush1.bf16.msra.mxu0 %v6655_v46  ;;  %v1186_v23 = vor.u32 %v1185_v42, %v1182_v47  ;;  %v1191_v46 = vrot.slane %v1189_v3, 2  ;;  %v6662_v20 = vld [vmem:[%s8591_s1 + $0x1f8] sm:$0xff]   ;;  %v2072_v42 = vor.u32 %v2071_v49, %v2068_v41  ;;  %v6638_v3 = vld [vmem:[#allocation2 + $0x8c] sm:$0xff]  }
  0xff   : > { %4747 = vmatprep.subr.bf16.mxu0 %v8640_v30  ;;  %v1728_v48 = vsel %vm1603_vm2, %v1718_v51, %v1727_v7  ;;  %v1430_v51 = vsel %vm1399_vm0, %v1427_v61, %v1429_v4  ;;  %v1739_v49 = vshrl.u32 %v6636_v38, 16 }
 0x100   : > { %v1187_v22 = vsel %vm1062_vm1, %v1177_v44, %v1186_v23  ;;  %6352 = vmatpush1.bf16.msra.mxu1 %v6662_v20 }
 0x101   : > { %4506 = vmatmul.mubr.bf16.gmra.mrb[40].mxu0 %v1710_v19  ;;  %v6629_v19 = vld [vmem:[#allocation2 + $0x74] sm:$0xff]  }
 0x102   : > { %4513 = vmatprep.mubr.bf16.mxu0 %v2055_v6  ;;  %v2064_v6 = vsel %vm1603_vm2, %v2054_v37, %v2063_v27  ;;  %v1730_v55 = vshrl.u32 %v6629_v19, 16  ;;  %v1733_v47 = vshll.u32 %v6629_v19, 16  ;;  %v1428_v37 = vsel %vm1399_vm0, %v1425_v35, %v1427_v61  ;;  %v6645_v61 = vld [vmem:[#allocation2 + $0x94] sm:$0xff]  }
 0x103   : > { %v1198_v19 = vshrl.u32 %v6634_v58, 16  ;;  %v2073_v35 = vsel %vm1603_vm2, %v2063_v27, %v2072_v42 }
 0x104   : > { %v1732_v63 = vrot.slane %v1730_v55, 3  ;;  %v1735_v29 = vrot.slane %v1733_v47, 4  ;;  %v2087_v47 = vshll.u32 %v6638_v3, 16 }
 0x105   : > { %4337 = vmatmul.mubr.bf16.gmra.mrb[44].mxu1 %v1178_v14  ;;  %v1194_v14 = vrot.slane %v1192_v18, 3  ;;  %v6641_v18 = vld [vmem:[#allocation2 + $0x84] sm:$0xff]  }
 0x106   : > { %4344 = vmatprep.mubr.bf16.mxu1 %v1426_v13  ;;  %v2078_v13 = vshll.u32 %v6631_v12, 16  ;;  %v7844_v12 = vld [vmem:[#allocation2 + $0x84] sm:$0xff]   ;;  %v1736_v20 = vor.u32 %v1735_v29, %v1732_v63  ;;  %v2089_v29 = vrot.slane %v2087_v47, 4 }
 0x107   : > { %v1195_v44 = vor.u32 %v1194_v14, %v1191_v46  ;;  %v1200_v46 = vrot.slane %v1198_v19, 2  ;;  %v2084_v14 = vshrl.u32 %v6638_v3, 16  ;;  %v1431_v27 = vrot.slane %v7844_v12, 3 }
 0x108   : > { %v2080_v41 = vrot.slane %v2078_v13, 4  ;;  %v1741_v13 = vrot.slane %v1739_v49, 3  ;;  %v1737_v38 = vsel %vm1603_vm2, %v1727_v7, %v1736_v20  ;;  %v2096_v12 = vshll.u32 %v6645_v61, 16 }
 0x109   : > { %4514 = vmatmul.mubr.bf16.gmra.mrb[44].mxu0 %v1719_v2  ;;  %v1201_v2 = vshll.u32 %v6634_v58, 16  ;;  %v1196_v55 = vsel %vm1062_vm1, %v1186_v23, %v1195_v44  ;;  %v2086_v63 = vrot.slane %v2084_v14, 3  ;;  %v1432_v7 = vsel %vm1399_vm0, %v1429_v4, %v1431_v27  ;;  %v6650_v14 = vld [vmem:[#allocation2 + $0x8c] sm:$0xff]   ;;  %v6654_v4 = vld [vmem:[#allocation2 + $0x94] ss:$0 sps:$4 sm:$0x77]  }
 0x10a   : > { %4521 = vmatprep.mubr.bf16.mxu0 %v2064_v6  ;;  %v2077_v6 = vrot.slane %v2075_v9, 3  ;;  %v6643_v9 = vld [vmem:[#allocation2 + $0x84] sm:$0xff]  }
 0x10b   : > { %v1748_v3 = vshrl.u32 %v6643_v9, 16 }
 0x10c   : > { %v2081_v58 = vor.u32 %v2080_v41, %v2077_v6  ;;  %v1751_v6 = vshll.u32 %v6643_v9, 16  ;;  %v2093_v41 = vshrl.u32 %v6645_v61, 16 }
 0x10d   : > { %4345 = vmatmul.mubr.bf16.gmra.mrb[48].mxu1 %v1187_v22  ;;  %v1203_v22 = vrot.slane %v1201_v2, 3  ;;  %v7851_v2 = vld [vmem:[#allocation2 + $0x8c] sm:$0xff]  }
 0x10e   : > { %4352 = vmatprep.mubr.bf16.mxu1 %v1428_v37  ;;  %v1207_v37 = vshrl.u32 %v6641_v18, 16  ;;  %v2082_v23 = vsel %vm1603_vm2, %v2072_v42, %v2081_v58  ;;  %v1433_v42 = vrot.slane %v7851_v2, 3  ;;  %v2095_v47 = vrot.slane %v2093_v41, 3 }
 0x10f   : > { %v1204_v34 = vor.u32 %v1203_v22, %v1200_v46  ;;  %v1750_v46 = vrot.slane %v1748_v3, 3  ;;  %v1753_v22 = vrot.slane %v1751_v6, 4 }
 0x110   : > { %v1209_v19 = vrot.slane %v1207_v37, 2  ;;  %v2098_v37 = vrot.slane %v2096_v12, 4 }
 0x111   : > { %4522 = vmatmul.mubr.bf16.gmra.mrb[48].mxu0 %v1728_v48  ;;  %v1744_v48 = vrot.slane %v1742_v50, 4  ;;  %v6648_v50 = vld [vmem:[#allocation2 + $0x8c] sm:$0xff]   ;;  %v1754_v2 = vor.u32 %v1753_v22, %v1750_v46 }
 0x112   : > { %4529 = vmatprep.mubr.bf16.mxu0 %v2073_v35  ;;  %v1210_v35 = vshll.u32 %v6641_v18, 16 }
 0x113   : > { %v1745_v18 = vor.u32 %v1744_v48, %v1741_v13  ;;  %v6652_v13 = vld [vmem:[#allocation2 + $0x9c] ss:$0 sps:$4 sm:$0xff]  }
 0x114   : > { %v1212_v49 = vrot.slane %v1210_v35, 3  ;;  %v6649_v35 = vld [vmem:[#allocation2 + $0x94] ss:$0 sps:$4 sm:$0x77]   ;;  %v2102_v41 = vshrl.u32 %v6652_v13, 16  ;;  %v2105_v12 = vshll.u32 %v6652_v13, 16 }
 0x115   : > { %4353 = vmatmul.mubr.bf16.gmra.mrb[52].mxu1 %v1196_v55  ;;  %v2090_v55 = vor.u32 %v2089_v29, %v2086_v63  ;;  %v1746_v9 = vsel %vm1603_vm2, %v1736_v20, %v1745_v18  ;;  %v1760_v63 = vshll.u32 %v6650_v14, 16  ;;  %v1434_v20 = vsel %vm1399_vm0, %v1431_v27, %v1433_v42 }
 0x116   : > { %4360 = vmatprep.mubr.bf16.mxu1 %v1430_v51  ;;  %v1205_v51 = vsel %vm1062_vm1, %v1195_v44, %v1204_v34  ;;  %v1213_v61 = vor.u32 %v1212_v49, %v1209_v19  ;;  %v1219_v44 = vshll.u32 %v6648_v50, 16  ;;  %v2099_v19 = vor.u32 %v2098_v37, %v2095_v47 }
 0x117   : > { %v2091_v48 = vsel %vm1603_vm2, %v2081_v58, %v2090_v55  ;;  %v1762_v49 = vrot.slane %v1760_v63, 4  ;;  %v6656_v58 = vld [vmem:[#allocation2 + $0x94] ss:$0 sps:$4 sm:$0xff]   ;;  %v1435_v46 = vrot.slane %v6649_v35, 3  ;;  %v2104_v22 = vrot.slane %v2102_v41, 3  ;;  %v7863_v63 = vld [vmem:[#allocation2 + $0x40] sm:$0xff]  }
 0x118   : > { %v1214_v29 = vsel %vm1062_vm1, %v1204_v34, %v1213_v61  ;;  %v1221_v6 = vrot.slane %v1219_v44, 3  ;;  %v2100_v34 = vsel %vm1603_vm2, %v2090_v55, %v2099_v19  ;;  %v6660_v44 = vld [vmem:[#allocation2 + $0x10] sm:$0xff]   ;;  %v1766_v27 = vshrl.u32 %v6656_v58, 16  ;;  %v6663_v35 = vld [vmem:[#allocation2 + $0x40] sm:$0xff]  }
 0x119   : > { %4530 = vmatmul.mubr.bf16.gmra.mrb[52].mxu0 %v1737_v38  ;;  %v1216_v38 = vshrl.u32 %v6648_v50, 16  ;;  %v1755_v50 = vsel %vm1603_vm2, %v1745_v18, %v1754_v2  ;;  %v1769_v47 = vshll.u32 %v6656_v58, 16  ;;  %v1436_v18 = vsel %vm1399_vm0, %v1433_v42, %v1435_v46 }
 0x11a   : > { %4537 = vmatprep.mubr.bf16.mxu0 %v2082_v23  ;;  %v1757_v23 = vshrl.u32 %v6650_v14, 16  ;;  %v1228_v14 = vshll.u32 %v6654_v4, 16  ;;  %v2442_v55 = vshll.u32 %v6660_v44, 16 }
 0x11b   : > { %v1218_v3 = vrot.slane %v1216_v38, 2  ;;  %v2107_v38 = vrot.slane %v2105_v12, 4  ;;  %v1771_v12 = vrot.slane %v1769_v47, 4  ;;  %v6667_v47 = vld [vmem:[#allocation2 + $0x20] sm:$0xff]  }
 0x11c   : > { %v2444_v58 = vrot.slane %v2442_v55, 1  ;;  %v2455_v55 = vshll.u32 %v6667_v47, 16 }
 0x11d   : > { %4361 = vmatmul.mubr.bf16.gmra.mrb[56].mxu1 %v1205_v51  ;;  %v1759_v51 = vrot.slane %v1757_v23, 3  ;;  %v1230_v23 = vrot.slane %v1228_v14, 3  ;;  %v2440_v14 = vshrl.u32 %v6660_v44, 16  ;;  %v2797_v44 = vshrl.u32 %v6663_v35, 16 }
 0x11e   : > { %4368 = vmatprep.mubr.bf16.mxu1 %v1432_v7  ;;  %v1222_v7 = vor.u32 %v1221_v6, %v1218_v3  ;;  %v1768_v3 = vrot.slane %v1766_v27, 3  ;;  %v6661_v6 = vld [vmem:[#allocation2 + $0x18] sm:$0xff]   ;;  %v6666_v27 = vld [vmem:[#allocation2 + $0x50] sm:$0xff]  }
 0x11f   : > { %v1763_v13 = vor.u32 %v1762_v49, %v1759_v51  ;;  %v6664_v51 = vld [vmem:[#allocation2 + $0x48] sm:$0xff]  }
 0x120   : > { %v1223_v37 = vsel %vm1062_vm1, %v1213_v61, %v1222_v7 }
 0x121   : > { %4538 = vmatmul.mubr.bf16.gmra.mrb[56].mxu0 %v1746_v9  ;;  %v1225_v9 = vshrl.u32 %v6654_v4, 16  ;;  %v2108_v4 = vor.u32 %v2107_v38, %v2104_v22  ;;  %v1764_v61 = vsel %vm1603_vm2, %v1754_v2, %v1763_v13  ;;  %v1772_v22 = vor.u32 %v1771_v12, %v1768_v3 }
 0x122   : > { %4545 = vmatprep.mubr.bf16.mxu0 %v2091_v48  ;;  %v2801_v2 = vshll.u32 %v6664_v51, 16  ;;  %v2451_v12 = vshrl.u32 %v6661_v6, 16 }
 0x123   : > { %v1227_v48 = vrot.slane %v1225_v9, 2  ;;  %v2109_v49 = vsel %vm1603_vm2, %v2099_v19, %v2108_v4  ;;  %v2793_v9 = vshll.u32 %v6663_v35, 16  ;;  %v2445_v19 = vor.u32 %v2444_v58, %v2440_v14  ;;  %v6670_v58 = vld [vmem:[#allocation2 + $0x58] sm:$0xff]   ;;  %v6665_v14 = vld [vmem:[#allocation2 + $0x10] sm:$0xff]  }
 0x125   : > { %4369 = vmatmul.mubr.bf16.gmra.mrb[60].mxu1 %v1214_v29  ;;  %v6659_v29 = vld [vmem:[#allocation2 + $0x48] sm:$0xff]   ;;  %v1231_v41 = vor.u32 %v1230_v23, %v1227_v48  ;;  %v1773_v23 = vsel %vm1603_vm2, %v1763_v13, %v1772_v22  ;;  %v7891_v22 = vld [vmem:[#allocation2 + $0x58] sm:$0xff]  }
 0x126   : > { %4376 = vmatprep.mubr.bf16.mxu1 %v1434_v20  ;;  %v6695_v20 = vld [vmem:[%s8591_s1 + $0x200] sm:$0xff]   ;;  %v3079_v42 = vrot.slane %v6659_v29, 1  ;;  %v3081_v29 = vrot.slane %v6666_v27, 1  ;;  %v2459_v27 = vshrl.u32 %v6667_v47, 16  ;;  %v6763_v47 = vld [vmem:[%s8591_s1 + $0x188] sm:$0xff]  }
 0x127   : > { %6269 = vmatprep.subr.bf16.mxu1 %v6695_v20  ;;  %v1232_v46 = vsel %vm1062_vm1, %v1222_v7, %v1231_v41  ;;  %v2803_v7 = vrot.slane %v2801_v2, 1 }
 0x128   : > { %v3082_v13 = vsel %vm3067_vm3, %v3079_v42, %v3081_v29 }
 0x129   : > { %4546 = vmatmul.mubr.bf16.gmra.mrb[60].mxu0 %v1755_v50  ;;  %v8608_v50 = vrot.slane %v7863_v63, 1 }
 0x12a   : > { %4553 = vmatprep.mubr.bf16.mxu0 %v2100_v34  ;;  %v2447_v34 = vshll.u32 %v6661_v6, 16 }
 0x12b   : > { %v3080_v38 = vsel %vm3067_vm3, %v8608_v50, %v3079_v42  ;;  %v3083_v42 = vrot.slane %v6670_v58, 1 }
 0x12c   : > { %v2449_v48 = vrot.slane %v2447_v34, 1 }
 0x12d   : > { %4377 = vmatmul.mubr.bf16.gmra.mrb[64].mxu1 %v1223_v37  ;;  %v7876_v37 = vrot.slane %v2793_v9, 1  ;;  %v7889_v9 = vld [vmem:[#allocation2 + $0x28] sm:$0xff]  }
 0x12e   : > { %4384 = vmatprep.mubr.bf16.mxu1 %v1436_v18  ;;  %v7879_v18 = vld [vmem:[#allocation2 + $0x50] sm:$0xff]   ;;  %v2450_v4 = vsel %vm2438_vm4, %v2445_v19, %v2449_v48  ;;  %v2453_v34 = vor.u32 %v2451_v12, %v2449_v48  ;;  %v2463_v19 = vshll.u32 %v7889_v9, 16  ;;  %v7902_v48 = vld [vmem:[#allocation2 + $0x60] sm:$0xff]  }
 0x12f   : > { %v2799_v3 = vor.u32 %v2797_v44, %v7876_v37  ;;  %v2809_v35 = vshll.u32 %v7879_v18, 16  ;;  %v7917_v12 = vld [vmem:[#allocation2 + $0x60] sm:$0xff]  }
 0x131   : > { %4554 = vmatmul.mubr.bf16.gmra.mrb[64].mxu0 %v1764_v61  ;;  %v6701_v61 = vld [vmem:[%s8591_s1 + $0x208] sm:$0xff]   ;;  %v2804_v41 = vsel %vm2438_vm4, %v2799_v3, %v2803_v7  ;;  %v2811_v2 = vrot.slane %v2809_v35, 1  ;;  %v2465_v3 = vrot.slane %v2463_v19, 1  ;;  %v2813_v35 = vshrl.u32 %v7879_v18, 16  ;;  %v6764_v18 = vld [vmem:[%s8591_s1 + $0x190] sm:$0xff]  }
 0x132   : > { %4561 = vmatprep.mubr.bf16.mxu0 %v2109_v49  ;;  %v2457_v49 = vrot.slane %v2455_v55, 1  ;;  %v3084_v55 = vsel %vm3067_vm3, %v3081_v29, %v3083_v42  ;;  %v6713_v29 = vld [vmem:[%s8591_s1 + $0x220] sm:$0xff]   ;;  %v2467_v19 = vshrl.u32 %v7889_v9, 16 }
 0x134   : > { %v2458_v6 = vsel %vm2438_vm4, %v2453_v34, %v2457_v49  ;;  %v2815_v34 = vor.u32 %v2813_v35, %v2811_v2 }
 0x135   : > { %4385 = vmatmul.mubr.bf16.gmra.mrb[68].mxu1 %v1232_v46  ;;  %v2805_v46 = vshrl.u32 %v6664_v51, 16 }
 0x136   : > { %4819 = vmatprep.mubr.bf16.mxu1 %v3080_v38  ;;  %v6707_v38 = vld [vmem:[%s8591_s1 + $0x210] sm:$0xff]  }
 0x137   : > { %v2807_v51 = vor.u32 %v2805_v46, %v2803_v7  ;;  %v7910_v7 = vld [vmem:[#allocation2 + $0x30] sm:$0xff]  }
 0x139   : > { %4562 = vmatmul.mubr.bf16.gmra.mrb[68].mxu0 %v1773_v23  ;;  %v2812_v44 = vsel %vm2438_vm4, %v2807_v51, %v2811_v2  ;;  %v2817_v23 = vshll.u32 %v7891_v22, 16  ;;  %v6678_v51 = vld [vmem:[#allocation2 + $0x68] sm:$0xff]  }
 0x13a   : > { %4602 = vmatprep.mubr.bf16.mxu0 %v2450_v4  ;;  %v6711_v4 = vld [vmem:[%s8591_s1 + $0x218] sm:$0xff]  }
 0x13d   : > { %4820 = vmatmul.mubr.bf16.vlgmr.msra.gmra.mrb[72].mxu1 %v2804_v41  ;;  %v2461_v41 = vor.u32 %v2459_v27, %v2457_v49  ;;  %v2471_v49 = vshll.u32 %v7910_v7, 16  ;;  %v7936_v27 = vld [vmem:[#allocation2 + $0x38] sm:$0xff]  }
 0x13e   : > { %4827 = vmatprep.mubr.bf16.mxu1 %v3082_v13  ;;  %6270 = vmatpush3.bf16.msra.mxu1 %v6695_v20  ;;  %v6762_v20 = vld [vmem:[%s8591_s1 + $0x180] sm:$0xff]   ;;  %v2819_v13 = vrot.slane %v2817_v23, 1  ;;  %v2469_v23 = vor.u32 %v2467_v19, %v2465_v3  ;;  %v2829_v19 = vshrl.u32 %v7917_v12, 16 }
 0x13f   : > { %6271 = vmatprep.subr.bf16.mxu1 %v6701_v61  ;;  %v2466_v58 = vsel %vm2438_vm4, %v2461_v41, %v2465_v3  ;;  %v2479_v41 = vshll.u32 %v7936_v27, 16 }
 0x140   : > { %v2820_v46 = vsel %vm2438_vm4, %v2815_v34, %v2819_v13 }
 0x141   : > { %4603 = vmatmul.mubr.bf16.vlgmr.msra.gmra.mrb[0].mxu0 %v6665_v14  ;;  %v3085_v14 = vrot.slane %v7902_v48, 1  ;;  %v6765_v48 = vld [vmem:[%s8591_s1 + $0x198] sm:$0xff]   ;;  %v2481_v34 = vrot.slane %v2479_v41, 1 }
 0x142   : > { %4748 = vmatpush1.bf16.msra.mxu0 %v6762_v20  ;;  %4610 = vmatprep.mubr.bf16.mxu0 %v2458_v6  ;;  %v6716_v6 = vld [vmem:[%s8591_s1 + $0x228] sm:$0xff]   ;;  %v2473_v20 = vrot.slane %v2471_v49, 1  ;;  %v2475_v49 = vshrl.u32 %v7910_v7, 16 }
 0x143   : > { %4749 = vmatprep.subr.bf16.mxu0 %v8640_v30  ;;  %6272 = vmatpush3.bf16.msra.mxu1 %v6701_v61  ;;  %v6669_v61 = vld [vmem:[#allocation2 + $0x18] sm:$0xff]   ;;  %v3086_v2 = vsel %vm3067_vm3, %v3083_v42, %v3085_v14  ;;  %v6719_v42 = vld [vmem:[%s8591_s1 + $0x230] sm:$0xff]  }
 0x144   : > { %6273 = vmatprep.subr.bf16.mxu1 %v6707_v38 }
 0x145   : > { %4828 = vmatmul.mubr.bf16.gmra.mrb[76].mxu1 %v2812_v44  ;;  %v6673_v44 = vld [vmem:[#allocation2 + $0x20] sm:$0xff]  }
 0x146   : > { %4835 = vmatprep.mubr.bf16.mxu1 %v3084_v55  ;;  %4750 = vmatpush1.bf16.msra.mxu0 %v6763_v47  ;;  %v7942_v55 = vld [vmem:[#allocation2 + $0x68] sm:$0xff]   ;;  %v2474_v47 = vsel %vm2438_vm4, %v2469_v23, %v2473_v20 }
 0x147   : > { %4751 = vmatprep.subr.bf16.mxu0 %v8640_v30  ;;  %6274 = vmatpush3.bf16.msra.mxu1 %v6707_v38  ;;  %v2825_v38 = vshll.u32 %v7917_v12, 16 }
 0x148   : > { %6275 = vmatprep.subr.bf16.mxu1 %v6711_v4 }
 0x149   : > { %4611 = vmatmul.mubr.bf16.gmra.mrb[4].mxu0 %v6669_v61  ;;  %v2827_v9 = vrot.slane %v2825_v38, 1  ;;  %v3087_v61 = vrot.slane %v6678_v51, 1  ;;  %v6767_v38 = vld [vmem:[%s8591_s1 + $0x1a8] sm:$0xff]  }
 0x14a   : > { %4618 = vmatprep.mubr.bf16.mxu0 %v2466_v58  ;;  %4752 = vmatpush1.bf16.msra.mxu0 %v6764_v18  ;;  %v6724_v58 = vld [vmem:[%s8591_s1 + $0x238] sm:$0xff]   ;;  %v6682_v18 = vld [vmem:[#allocation2 + $0x70] sm:$0xff]  }
 0x14b   : > { %4753 = vmatprep.subr.bf16.mxu0 %v8640_v30  ;;  %6276 = vmatpush3.bf16.msra.mxu1 %v6711_v4  ;;  %v2821_v4 = vshrl.u32 %v7891_v22, 16  ;;  %v6766_v22 = vld [vmem:[%s8591_s1 + $0x1a0] sm:$0xff]   ;;  %v2831_v23 = vor.u32 %v2829_v19, %v2827_v9 }
 0x14c   : > { %6277 = vmatprep.subr.bf16.mxu1 %v6713_v29 }
 0x14d   : > { %4836 = vmatmul.mubr.bf16.gmra.mrb[80].mxu1 %v2820_v46  ;;  %v2823_v3 = vor.u32 %v2821_v4, %v2819_v13  ;;  %v3088_v13 = vsel %vm3067_vm3, %v3085_v14, %v3087_v61  ;;  %v6683_v46 = vld [vmem:[#allocation2 + $0x40] sm:$0xff]   ;;  %v6684_v14 = vld [vmem:[#allocation2 + $0x70] sm:$0xff]  }
 0x14e   : > { %4843 = vmatprep.mubr.bf16.mxu1 %v3086_v2  ;;  %4754 = vmatpush1.bf16.msra.mxu0 %v6765_v48  ;;  %v2477_v2 = vor.u32 %v2475_v49, %v2473_v20  ;;  %v3089_v48 = vrot.slane %v6682_v18, 1  ;;  %v6768_v4 = vld [vmem:[%s8591_s1 + $0x1b0] sm:$0xff]   ;;  %v2483_v20 = vshrl.u32 %v7936_v27, 16  ;;  %v2837_v27 = vshrl.u32 %v7942_v55, 16 }
 0x14f   : > { %4755 = vmatprep.subr.bf16.mxu0 %v8640_v30  ;;  %6278 = vmatpush3.bf16.msra.mxu1 %v6713_v29  ;;  %v2828_v35 = vsel %vm2438_vm4, %v2823_v3, %v2827_v9  ;;  %v2833_v29 = vshll.u32 %v7942_v55, 16  ;;  %v6769_v9 = vld [vmem:[%s8591_s1 + $0x1b8] sm:$0xff]   ;;  %v2491_v19 = vshrl.u32 %v6683_v46, 16 }
 0x150   : > { %6279 = vmatprep.subr.bf16.mxu1 %v6716_v6  ;;  %v2482_v7 = vsel %vm2438_vm4, %v2477_v2, %v2481_v34  ;;  %v3090_v41 = vsel %vm3067_vm3, %v3087_v61, %v3089_v48 }
 0x151   : > { %4619 = vmatmul.mubr.bf16.gmra.mrb[8].mxu0 %v6673_v44  ;;  %v2835_v51 = vrot.slane %v2833_v29, 1  ;;  %v2487_v44 = vshll.u32 %v6683_v46, 16  ;;  %v2485_v29 = vor.u32 %v2483_v20, %v2481_v34  ;;  %v2845_v20 = vshrl.u32 %v6684_v14, 16 }
 0x152   : > { %4626 = vmatprep.mubr.bf16.mxu0 %v2474_v47  ;;  %4756 = vmatpush1.bf16.msra.mxu0 %v6766_v22  ;;  %v6686_v47 = vld [vmem:[#allocation2 + $0x78] sm:$0xff]   ;;  %v6687_v22 = vld [vmem:[#allocation2 + $0x48] sm:$0xff]  }
 0x153   : > { %4757 = vmatprep.subr.bf16.mxu0 %v8640_v30  ;;  %6280 = vmatpush3.bf16.msra.mxu1 %v6716_v6  ;;  %v6677_v6 = vld [vmem:[#allocation2 + $0x28] sm:$0xff]   ;;  %v2836_v12 = vsel %vm2438_vm4, %v2831_v23, %v2835_v51  ;;  %v2489_v3 = vrot.slane %v2487_v44, 1  ;;  %v3091_v61 = vrot.slane %v6686_v47, 1  ;;  %v2495_v18 = vshll.u32 %v6687_v22, 16  ;;  %v6690_v44 = vld [vmem:[#allocation2 + $0x80] sm:$0xff]   ;;  %v6691_v23 = vld [vmem:[#allocation2 + $0x50] sm:$0xff]  }
 0x154   : > { %6281 = vmatprep.subr.bf16.mxu1 %v6719_v42  ;;  %v6692_v47 = vld [vmem:[#allocation2 + $0x80] sm:$0xff]   ;;  %v3093_v46 = vrot.slane %v6690_v44, 1 }
 0x155   : > { %4844 = vmatmul.mubr.bf16.gmra.mrb[84].mxu1 %v2828_v35  ;;  %v6681_v35 = vld [vmem:[#allocation2 + $0x30] sm:$0xff]   ;;  %v2490_v49 = vsel %vm2438_vm4, %v2485_v29, %v2489_v3  ;;  %v3092_v55 = vsel %vm3067_vm3, %v3089_v48, %v3091_v61  ;;  %v2499_v29 = vshrl.u32 %v6687_v22, 16  ;;  %v6697_v22 = vld [vmem:[#allocation2 + $0x88] sm:$0xff]  }
 0x156   : > { %4851 = vmatprep.mubr.bf16.mxu1 %v3088_v13  ;;  %4758 = vmatpush1.bf16.msra.mxu0 %v6767_v38  ;;  %v2839_v38 = vor.u32 %v2837_v27, %v2835_v51  ;;  %v6771_v51 = vld [vmem:[%s8591_s1 + $0x1c8] sm:$0xff]  }
 0x157   : > { %4759 = vmatprep.subr.bf16.mxu0 %v8640_v30  ;;  %6282 = vmatpush3.bf16.msra.mxu1 %v6719_v42  ;;  %v2841_v42 = vshll.u32 %v6684_v14, 16  ;;  %v2857_v14 = vshll.u32 %v6692_v47, 16  ;;  %v6694_v27 = vld [vmem:[#allocation2 + $0x88] sm:$0xff]  }
 0x158   : > { %6283 = vmatprep.subr.bf16.mxu1 %v6724_v58  ;;  %v3095_v44 = vrot.slane %v6694_v27, 1  ;;  %v6702_v27 = vld [vmem:[#allocation2 + $0x90] sm:$0xff]  }
 0x159   : > { %4627 = vmatmul.mubr.bf16.gmra.mrb[12].mxu0 %v6677_v6  ;;  %v2843_v13 = vrot.slane %v2841_v42, 1  ;;  %v6770_v6 = vld [vmem:[%s8591_s1 + $0x1c0] sm:$0xff]  }
 0x15a   : > { %4634 = vmatprep.mubr.bf16.mxu0 %v2482_v7  ;;  %4760 = vmatpush1.bf16.msra.mxu0 %v6768_v4  ;;  %v2497_v7 = vrot.slane %v2495_v18, 1  ;;  %v6685_v4 = vld [vmem:[#allocation2 + $0x38] sm:$0xff]  }
 0x15b   : > { %4761 = vmatprep.subr.bf16.mxu0 %v8640_v30  ;;  %6284 = vmatpush3.bf16.msra.mxu1 %v6724_v58  ;;  %v6688_v58 = vld [vmem:[#allocation2 + $0x78] sm:$0xff]   ;;  %v2844_v34 = vsel %vm2438_vm4, %v2839_v38, %v2843_v13 }
 0x15c   : > { %v2849_v2 = vshll.u32 %v6688_v58, 16  ;;  %v6696_v38 = vld [vmem:[#allocation2 + $0x58] sm:$0xff]  }
 0x15d   : > { %4852 = vmatmul.mubr.bf16.gmra.mrb[88].mxu1 %v2836_v12  ;;  %v2493_v12 = vor.u32 %v2491_v19, %v2489_v3 }
 0x15e   : > { %4859 = vmatprep.mubr.bf16.mxu1 %v3090_v41  ;;  %4762 = vmatpush1.bf16.msra.mxu0 %v6769_v9  ;;  %v2851_v42 = vrot.slane %v2849_v2, 1  ;;  %v2503_v41 = vshll.u32 %v6691_v23, 16  ;;  %v2847_v9 = vor.u32 %v2845_v20, %v2843_v13  ;;  %v6773_v13 = vld [vmem:[%s8591_s1 + $0x1d8] sm:$0xff]   ;;  %v2501_v2 = vor.u32 %v2499_v29, %v2497_v7 }
 0x15f   : > { %4763 = vmatprep.subr.bf16.mxu0 %v8640_v30  ;;  %v2498_v48 = vsel %vm2438_vm4, %v2493_v12, %v2497_v7  ;;  %v2865_v12 = vshll.u32 %v6697_v22, 16  ;;  %v2507_v20 = vshrl.u32 %v6691_v23, 16  ;;  %v2861_v29 = vshrl.u32 %v6692_v47, 16 }
 0x160   : > { %v2852_v3 = vsel %vm2438_vm4, %v2847_v9, %v2851_v42  ;;  %v2505_v18 = vrot.slane %v2503_v41, 1  ;;  %v6699_v41 = vld [vmem:[#allocation2 + $0x90] sm:$0xff]   ;;  %v6700_v9 = vld [vmem:[#allocation2 + $0x60] sm:$0xff]  }
 0x161   : > { %4635 = vmatmul.mubr.bf16.gmra.mrb[16].mxu0 %v6681_v35  ;;  %v6772_v35 = vld [vmem:[%s8591_s1 + $0x1d0] sm:$0xff]   ;;  %v3097_v23 = vrot.slane %v6699_v41, 1  ;;  %v6706_v41 = vld [vmem:[#allocation2 + $0x98] sm:$0xff]  }
 0x162   : > { %4642 = vmatprep.mubr.bf16.mxu0 %v2490_v49  ;;  %4764 = vmatpush1.bf16.msra.mxu0 %v6770_v6  ;;  %v3094_v49 = vsel %vm3067_vm3, %v3091_v61, %v3093_v46  ;;  %v6689_v6 = vld [vmem:[#allocation2 + $0x40] sm:$0xff]   ;;  %v2506_v19 = vsel %vm2438_vm4, %v2501_v2, %v2505_v18  ;;  %v2511_v61 = vshll.u32 %v6696_v38, 16  ;;  %v2873_v2 = vshll.u32 %v6702_v27, 16 }
 0x163   : > { %4765 = vmatprep.subr.bf16.mxu0 %v8640_v30  ;;  %v3098_v47 = vsel %vm3067_vm3, %v3095_v44, %v3097_v23 }
 0x165   : > { %4860 = vmatmul.mubr.bf16.gmra.mrb[92].mxu1 %v2844_v34  ;;  %v2853_v34 = vshrl.u32 %v6688_v58, 16  ;;  %v3096_v58 = vsel %vm3067_vm3, %v3093_v46, %v3095_v44 }
 0x166   : > { %4867 = vmatprep.mubr.bf16.mxu1 %v3092_v55  ;;  %4766 = vmatpush1.bf16.msra.mxu0 %v6771_v51  ;;  %v2859_v55 = vrot.slane %v2857_v14, 1  ;;  %v2867_v14 = vrot.slane %v2865_v12, 1 }
 0x167   : > { %4767 = vmatprep.subr.bf16.mxu0 %v8640_v30  ;;  %v2855_v51 = vor.u32 %v2853_v34, %v2851_v42  ;;  %v6775_v42 = vld [vmem:[%s8591_s1 + $0x1e8] sm:$0xff]   ;;  %v2515_v34 = vshrl.u32 %v6696_v38, 16 }
 0x169   : > { %4643 = vmatmul.mubr.bf16.gmra.mrb[20].mxu0 %v6685_v4  ;;  %v6774_v4 = vld [vmem:[%s8591_s1 + $0x1e0] sm:$0xff]   ;;  %v2860_v7 = vsel %vm2438_vm4, %v2855_v51, %v2859_v55  ;;  %v6705_v51 = vld [vmem:[#allocation2 + $0x68] sm:$0xff]  }
 0x16a   : > { %4650 = vmatprep.mubr.bf16.mxu0 %v2498_v48  ;;  %4768 = vmatpush1.bf16.msra.mxu0 %v6772_v35  ;;  %v2513_v48 = vrot.slane %v2511_v61, 1  ;;  %v6693_v35 = vld [vmem:[#allocation2 + $0x48] sm:$0xff]   ;;  %v6704_v61 = vld [vmem:[#allocation2 + $0x98] sm:$0xff]  }
 0x16b   : > { %4769 = vmatprep.subr.bf16.mxu0 %v8640_v30 }
 0x16d   : > { %4868 = vmatmul.mubr.bf16.gmra.mrb[96].mxu1 %v2852_v3  ;;  %v2509_v3 = vor.u32 %v2507_v20, %v2505_v18  ;;  %v2875_v20 = vrot.slane %v2873_v2, 1  ;;  %v6703_v2 = vld [vmem:[#allocation2 + $0x58] sm:$0xff]  }
 0x16e   : > { %4875 = vmatprep.mubr.bf16.mxu1 %v3094_v49  ;;  %4770 = vmatpush1.bf16.msra.mxu0 %v6773_v13  ;;  %v2519_v49 = vshll.u32 %v6700_v9, 16  ;;  %v2863_v13 = vor.u32 %v2861_v29, %v2859_v55  ;;  %v6777_v55 = vld [vmem:[%s8591_s1 + $0x1f8] sm:$0xff]  }
 0x16f   : > { %4771 = vmatprep.subr.bf16.mxu0 %v8640_v30  ;;  %v2514_v46 = vsel %vm2438_vm4, %v2509_v3, %v2513_v48 }
 0x170   : > { %v2868_v18 = vsel %vm2438_vm4, %v2863_v13, %v2867_v14  ;;  %v2523_v13 = vshrl.u32 %v6700_v9, 16 }
 0x171   : > { %4651 = vmatmul.mubr.bf16.gmra.mrb[24].mxu0 %v6689_v6  ;;  %v6776_v6 = vld [vmem:[%s8591_s1 + $0x1f0] sm:$0xff]  }
 0x172   : > { %4658 = vmatprep.mubr.bf16.mxu0 %v2506_v19  ;;  %4772 = vmatpush1.bf16.msra.mxu0 %v6774_v4  ;;  %v2521_v19 = vrot.slane %v2519_v49, 1  ;;  %v6698_v4 = vld [vmem:[#allocation2 + $0x50] sm:$0xff]   ;;  %v2881_v49 = vshll.u32 %v6706_v41, 16 }
 0x173   : > { %4773 = vmatprep.subr.bf16.mxu0 %v8640_v30 }
 0x175   : > { %4876 = vmatmul.mubr.bf16.gmra.mrb[100].mxu1 %v2860_v7  ;;  %v2517_v7 = vor.u32 %v2515_v34, %v2513_v48 }
 0x176   : > { %4883 = vmatprep.mubr.bf16.mxu1 %v3096_v58  ;;  %4774 = vmatpush1.bf16.msra.mxu0 %v6775_v42  ;;  %v2869_v58 = vshrl.u32 %v6697_v22, 16  ;;  %v3099_v42 = vrot.slane %v6704_v61, 1  ;;  %v2877_v61 = vshrl.u32 %v6702_v27, 16 }
 0x177   : > { %4775 = vmatprep.subr.bf16.mxu0 %v8640_v30  ;;  %v2522_v38 = vsel %vm2438_vm4, %v2517_v7, %v2521_v19 }
 0x178   : > { %v2871_v29 = vor.u32 %v2869_v58, %v2867_v14  ;;  %v3100_v48 = vsel %vm3067_vm3, %v3097_v23, %v3099_v42  ;;  %v2879_v9 = vor.u32 %v2877_v61, %v2875_v20 }
 0x179   : > { %4659 = vmatmul.mubr.bf16.gmra.mrb[28].mxu0 %v6693_v35  ;;  %v2527_v35 = vshll.u32 %v6705_v51, 16 }
 0x17a   : > { %4666 = vmatprep.mubr.bf16.mxu0 %v2514_v46  ;;  %4776 = vmatpush1.bf16.msra.mxu0 %v6776_v6  ;;  %v2876_v46 = vsel %vm2438_vm4, %v2871_v29, %v2875_v20  ;;  %v6709_v6 = vld [vmem:[#allocation2 + $0xa0] sm:$0xff]   ;;  %v8035_v29 = vld [vmem:[#allocation2 + $0x78] sm:$0xff]  }
 0x17b   : > { %4777 = vmatprep.subr.bf16.mxu0 %v8640_v30  ;;  %v8022_v12 = vpop.f32.mrb[0].mxu1  ;;  %v2529_v22 = vrot.slane %v2527_v35, 1  ;;  %v6717_v35 = vld [vmem:[#allocation2 + $0xa8] ss:$0 sps:$4 sm:$0x11]  }
 0x17c   : > { %8681 = vst [vmem:[#allocation29_spill] sm:$0xff] %v8022_v12  ;;  %v4252_v30 = vpop.f32.mrb[1].mxu1  ;;  %v6721_v20 = vld [vmem:[#allocation2 + $0x18] sm:$0xfe]  }
 0x17d   : > { %4884 = vmatmul.mubr.bf16.gmra.mrb[104].mxu1 %v2868_v18  ;;  %v8025_v44 = vpop.f32.mrb[2].mxu1  ;;  %v6710_v18 = vld [vmem:[#allocation2 + $0x70] sm:$0xff]   ;;  %v3101_v30 = vrot.slane %v6709_v6, 1  ;;  %v6718_v6 = vld [vmem:[#allocation2 + $0xa8] ss:$0 sps:$4 sm:$0x11]  }
 0x17e   : > { %4891 = vmatprep.mubr.bf16.mxu1 %v3098_v47  ;;  %4778 = vmatpush1.bf16.msra.mxu0 %v6777_v55  ;;  %8682 = vst [vmem:[#allocation30_spill] sm:$0xff] %v8025_v44  ;;  %v4255_v3 = vpop.f32.mrb[3].mxu1  ;;  %v2525_v47 = vor.u32 %v2523_v13, %v2521_v19  ;;  %v2883_v55 = vrot.slane %v2881_v49, 1  ;;  %v2535_v58 = vshll.u32 %v6710_v18, 16  ;;  %v2885_v13 = vshrl.u32 %v6706_v41, 16 }
 0x17f   : > { %v3102_v27 = vsel %vm3067_vm3, %v3099_v42, %v3101_v30  ;;  %v2897_v50 = vshll.u32 %v6718_v6, 16  ;;  %v3276_v11 = vshll.u32 %v6721_v20, 16 }
 0x180   : > { %v2530_v14 = vsel %vm2438_vm4, %v2525_v47, %v2529_v22  ;;  %v2884_v3 = vsel %vm2438_vm4, %v2879_v9, %v2883_v55  ;;  %v2537_v49 = vrot.slane %v2535_v58, 1 }
 0x181   : > { %4667 = vmatmul.mubr.bf16.gmra.mrb[32].mxu0 %v6698_v4  ;;  %v6712_v4 = vld [vmem:[#allocation2 + $0xa0] sm:$0xff]   ;;  %v2899_v6 = vrot.slane %v2897_v50, 1 }
 0x182   : > { %4674 = vmatprep.mubr.bf16.mxu0 %v2522_v38  ;;  %v2889_v19 = vshll.u32 %v6712_v4, 16  ;;  %v2893_v41 = vshrl.u32 %v6712_v4, 16 }
 0x184   : > { %v8029_v34 = vpop.f32.mrb[4].mxu1  ;;  %v2891_v9 = vrot.slane %v2889_v19, 1  ;;  %v2539_v19 = vshrl.u32 %v6710_v18, 16 }
 0x185   : > { %4892 = vmatmul.mubr.bf16.gmra.mrb[108].mxu1 %v2876_v46  ;;  %8683 = vst [vmem:[#allocation31_spill] sm:$0xff] %v8029_v34  ;;  %v4260_v7 = vpop.f32.mrb[5].mxu1  ;;  %v2531_v46 = vshrl.u32 %v6705_v51, 16 }
 0x186   : > { %4899 = vmatprep.mubr.bf16.mxu1 %v3100_v48  ;;  %v8032_v23 = vpop.f32.mrb[6].mxu1  ;;  %v6722_v48 = vld [vmem:[#allocation2 + $0x20] sm:$0xff]   ;;  %v2887_v7 = vor.u32 %v2885_v13, %v2883_v55  ;;  %v2895_v4 = vor.u32 %v2893_v41, %v2891_v9  ;;  %v2547_v41 = vshrl.u32 %v8035_v29, 16 }
 0x187   : > { %8684 = vst [vmem:[#allocation32_spill] sm:$0xff] %v8032_v23  ;;  %v4263_v38 = vpop.f32.mrb[7].mxu1  ;;  %v2533_v47 = vor.u32 %v2531_v46, %v2529_v22  ;;  %v3281_v51 = vshrl.u32 %v6722_v48, 16  ;;  %v3284_v58 = vshll.u32 %v6722_v48, 16  ;;  %v3273_v46 = vshrl.u32 %v6721_v20, 16  ;;  %v6727_v48 = vld [vmem:[#allocation2 + $0x30] sm:$0xff]  }
 0x188   : > { %v2543_v38 = vshll.u32 %v8035_v29, 16  ;;  %v2892_v55 = vsel %vm2438_vm4, %v2887_v7, %v2891_v9  ;;  %v3302_v56 = vshll.u32 %v6727_v48, 16  ;;  %v2900_v50 = vsel %vm2438_vm4, %v2895_v4, %v2899_v6  ;;  %v8112_v23 = vld [vmem:[#allocation2 + $0x28] sm:$0xff]  }
 0x189   : > { %4675 = vmatmul.mubr.bf16.gmra.mrb[36].mxu0 %v6703_v2  ;;  %v6708_v2 = vld [vmem:[#allocation2 + $0x60] sm:$0xff]   ;;  %v3275_v33 = vrot.slane %v3273_v46, 1 }
 0x18a   : > { %4682 = vmatprep.mubr.bf16.mxu0 %v2530_v14  ;;  %v3103_v14 = vrot.slane %v6717_v35, 1  ;;  %v2545_v13 = vrot.slane %v2543_v38, 1 }
 0x18c   : > { %v3104_v35 = vsel %vm3067_vm3, %v3101_v30, %v3103_v14  ;;  %v3278_v30 = vrot.slane %v3276_v11, 2  ;;  %v2549_v4 = vor.u32 %v2547_v41, %v2545_v13 }
 0x18d   : > { %4900 = vmatmul.mubr.bf16.gmra.mrb[112].mxu1 %v2884_v3  ;;  %v2538_v3 = vsel %vm2438_vm4, %v2533_v47, %v2537_v49  ;;  %v3283_v47 = vrot.slane %v3281_v51, 1 }
 0x18e   : > { %4907 = vmatprep.mubr.bf16.mxu1 %v3102_v27  ;;  %v8038_v61 = vpop.f32.mrb[8].mxu1  ;;  %v3279_v9 = vor.u32 %v3278_v30, %v3275_v33 }
 0x18f   : > { %8685 = vst [vmem:[#allocation33_spill] sm:$0xff] %v8038_v61  ;;  %v4268_v42 = vpop.f32.mrb[9].mxu1 }
 0x190   : > { %v8042_v27 = vpop.f32.mrb[10].mxu1  ;;  %v3286_v42 = vrot.slane %v3284_v58, 2  ;;  %v2551_v58 = vshll.u32 %v8046_v54, 16 }
 0x191   : > { %4683 = vmatmul.mubr.bf16.gmra.mrb[40].mxu0 %v6708_v2  ;;  %8686 = vst [vmem:[#allocation34_spill] sm:$0xff] %v8042_v27  ;;  %v4271_v22 = vpop.f32.mrb[11].mxu1  ;;  %v6725_v2 = vld [vmem:[#allocation2 + $0x28] sm:$0xff]  }
 0x192   : > { %4690 = vmatprep.mubr.bf16.mxu0 %v2538_v3  ;;  %v2541_v3 = vor.u32 %v2539_v19, %v2537_v49  ;;  %v6714_v22 = vld [vmem:[#allocation2 + $0x68] sm:$0xff]   ;;  %v3290_v18 = vshrl.u32 %v6725_v2, 16  ;;  %v3293_v7 = vshll.u32 %v6725_v2, 16  ;;  %v3287_v51 = vor.u32 %v3286_v42, %v3283_v47  ;;  %v6729_v2 = vld [vmem:[#allocation2 + $0x38] sm:$0xff]  }
 0x193   : > { %v8056_v19 = vld [vmem:[#allocation2 + $0x88] sm:$0xff]   ;;  %v2553_v42 = vrot.slane %v2551_v58, 1  ;;  %v3308_v30 = vshrl.u32 %v6729_v2, 16 }
 0x194   : > { %v2546_v14 = vsel %vm2438_vm4, %v2541_v3, %v2545_v13  ;;  %v3295_v46 = vrot.slane %v3293_v7, 2  ;;  %v3288_v47 = vsel %vm3271_vm5, %v3279_v9, %v3287_v51  ;;  %v3304_v3 = vrot.slane %v3302_v56, 2 }
 0x195   : > { %4908 = vmatmul.mubr.bf16.gmra.mrb[116].mxu1 %v2892_v55  ;;  %v3299_v55 = vshrl.u32 %v6727_v48, 16  ;;  %v2559_v29 = vshll.u32 %v8056_v19, 16  ;;  %v2554_v7 = vsel %vm2438_vm4, %v2549_v4, %v2553_v42  ;;  %v2555_v13 = vshrl.u32 %v8046_v54, 16 }
 0x196   : > { %4915 = vmatprep.mubr.bf16.mxu1 %v3104_v35  ;;  %v3292_v35 = vrot.slane %v3290_v18, 1  ;;  %v3311_v18 = vshll.u32 %v6729_v2, 16 }
 0x197   : > { %v3301_v48 = vrot.slane %v3299_v55, 1  ;;  %v2561_v41 = vrot.slane %v2559_v29, 1 }
 0x198   : > { %v8049_v20 = vpop.f32.mrb[12].mxu1  ;;  %v3296_v33 = vor.u32 %v3295_v46, %v3292_v35  ;;  %v3310_v35 = vrot.slane %v3308_v30, 1  ;;  %v3313_v46 = vrot.slane %v3311_v18, 2 }
 0x199   : > { %8687 = vst [vmem:[#allocation35_spill] sm:$0xff] %v8049_v20  ;;  %4691 = vmatmul.mubr.bf16.gmra.mrb[44].mxu0 %v6714_v22  ;;  %v4276_v38 = vpop.f32.mrb[13].mxu1  ;;  %v6731_v22 = vld [vmem:[#allocation2 + $0x40] sm:$0xff]  }
 0x19a   : > { %4698 = vmatprep.mubr.bf16.mxu0 %v2546_v14  ;;  %v8052_v49 = vpop.f32.mrb[14].mxu1  ;;  %v6720_v14 = vld [vmem:[#allocation2 + $0x70] sm:$0xff]   ;;  %v3320_v58 = vshll.u32 %v6731_v22, 16  ;;  %v3297_v9 = vsel %vm3271_vm5, %v3287_v51, %v3296_v33  ;;  %v3314_v54 = vor.u32 %v3313_v46, %v3310_v35  ;;  %v6737_v35 = vld [vmem:[#allocation2 + $0x58] sm:$0xff]  }
 0x19b   : > { %8688 = vst [vmem:[#allocation36_spill] sm:$0xff] %v8052_v49  ;;  %v4279_v11 = vpop.f32.mrb[15].mxu1  ;;  %v3344_v49 = vshrl.u32 %v6737_v35, 16 }
 0x19c   : > { %v3317_v11 = vshrl.u32 %v6731_v22, 16  ;;  %v3322_v4 = vrot.slane %v3320_v58, 2  ;;  %v2557_v22 = vor.u32 %v2555_v13, %v2553_v42  ;;  %v2563_v13 = vshrl.u32 %v8056_v19, 16 }
 0x19d   : > { %4916 = vmatmul.mubr.bf16.gmra.mrb[120].mxu1 %v2900_v50  ;;  %v3305_v50 = vor.u32 %v3304_v3, %v3301_v48  ;;  %v6732_v48 = vld [vmem:[#allocation2 + $0x90] sm:$0xff]   ;;  %v3347_v19 = vshll.u32 %v6737_v35, 16 }
 0x19e   : > { %6285 = vmatprep.mubr.bf16.mxu1 %v3288_v47  ;;  %v6733_v47 = vld [vmem:[#allocation2 + $0x48] sm:$0xff]   ;;  %v6735_v3 = vld [vmem:[#allocation2 + $0x50] sm:$0xff]  }
 0x19f   : > { %v3306_v2 = vsel %vm3271_vm5, %v3296_v33, %v3305_v50  ;;  %v3326_v51 = vshrl.u32 %v6733_v47, 16  ;;  %v3329_v29 = vshll.u32 %v6733_v47, 16  ;;  %v3338_v33 = vshll.u32 %v6735_v3, 16 }
 0x1a0   : > { %v8059_v6 = vpop.f32.mrb[16].mxu1  ;;  %v3315_v42 = vsel %vm3271_vm5, %v3305_v50, %v3314_v54 }
 0x1a1   : > { %8689 = vst [vmem:[#allocation37_spill] sm:$0xff] %v8059_v6  ;;  %4699 = vmatmul.mubr.bf16.gmra.mrb[48].mxu0 %v6720_v14  ;;  %v4284_v38 = vpop.f32.mrb[17].mxu1  ;;  %v3319_v14 = vrot.slane %v3317_v11, 1  ;;  %v6736_v6 = vld [vmem:[#allocation2 + $0x98] sm:$0xff]  }
 0x1a2   : > { %4706 = vmatprep.mubr.bf16.mxu0 %v2554_v7  ;;  %v8063_v56 = vpop.f32.mrb[18].mxu1  ;;  %v6726_v7 = vld [vmem:[#allocation2 + $0x78] sm:$0xff]   ;;  %v2562_v38 = vsel %vm2438_vm4, %v2557_v22, %v2561_v41  ;;  %v3331_v22 = vrot.slane %v3329_v29, 2  ;;  %v2575_v50 = vshll.u32 %v6736_v6, 16 }
 0x1a3   : > { %8690 = vst [vmem:[#allocation38_spill] sm:$0xff] %v8063_v56  ;;  %v4287_v55 = vpop.f32.mrb[19].mxu1  ;;  %v3323_v18 = vor.u32 %v3322_v4, %v3319_v14  ;;  %v3335_v56 = vshrl.u32 %v6735_v3, 16  ;;  %v3340_v4 = vrot.slane %v3338_v33, 2  ;;  %v6730_v3 = vld [vmem:[#allocation2 + $0x80] sm:$0xff]   ;;  %v2571_v33 = vshrl.u32 %v6732_v48, 16 }
 0x1a5   : > { %6286 = vmatmul.mubr.bf16.vlgmr.msra.gmra.mrb[124].mxu1 %v3297_v9  ;;  %v2567_v9 = vshll.u32 %v6732_v48, 16  ;;  %v3324_v46 = vsel %vm3271_vm5, %v3314_v54, %v3323_v18  ;;  %v3337_v14 = vrot.slane %v3335_v56, 1 }
 0x1a6   : > { %6289 = vmatprep.mubr.bf16.mxu1 %v3306_v2  ;;  %v3328_v2 = vrot.slane %v3326_v51, 1 }
 0x1a7   : > { %v2569_v47 = vrot.slane %v2567_v9, 1 }
 0x1a8   : > { %v8069_v55 = vpop.f32.mrb[20].mxu1 }
 0x1a9   : > { %4707 = vmatmul.mubr.bf16.gmra.mrb[52].mxu0 %v6726_v7  ;;  %v4292_v30 = vpop.f32.mrb[21].mxu1  ;;  %v6739_v7 = vld [vmem:[#allocation2 + $0x60] sm:$0xff]  }
 0x1aa   : > { %4714 = vmatprep.mubr.bf16.mxu0 %v2562_v38  ;;  %v8071_v11 = vpop.f32.mrb[22].mxu1  ;;  %v2565_v38 = vor.u32 %v2563_v13, %v2561_v41  ;;  %v3353_v20 = vshrl.u32 %v6739_v7, 16  ;;  %v3356_v54 = vshll.u32 %v6739_v7, 16  ;;  %v2577_v13 = vrot.slane %v2575_v50, 1  ;;  %v6734_v7 = vld [vmem:[#allocation2 + $0x88] sm:$0xff]  }
 0x1ab   : > { %v4295_v58 = vpop.f32.mrb[23].mxu1 }
 0x1ac   : > { %v3332_v58 = vor.u32 %v3331_v22, %v3328_v2  ;;  %v2570_v51 = vsel %vm2438_vm4, %v2565_v38, %v2569_v47  ;;  %v3349_v2 = vrot.slane %v3347_v19, 2  ;;  %v6741_v22 = vld [vmem:[#allocation2 + $0x68] sm:$0xff]   ;;  %v3358_v38 = vrot.slane %v3356_v54, 2 }
 0x1ad   : > { %6290 = vmatmul.mubr.bf16.gmra.mrb[128].mxu1 %v3315_v42  ;;  %v3341_v42 = vor.u32 %v3340_v4, %v3337_v14  ;;  %v6743_v14 = vld [vmem:[#allocation2 + $0x70] sm:$0xff]   ;;  %v2573_v4 = vor.u32 %v2571_v33, %v2569_v47  ;;  %v3365_v50 = vshll.u32 %v6741_v22, 16  ;;  %v2579_v54 = vshrl.u32 %v6736_v6, 16  ;;  %v8092_v6 = vld [vmem:[#allocation2 + $0x20] sm:$0xff]  }
 0x1ae   : > { %6293 = vmatprep.mubr.bf16.mxu1 %v3324_v46  ;;  %v3333_v41 = vsel %vm3271_vm5, %v3323_v18, %v3332_v58  ;;  %v3346_v46 = vrot.slane %v3344_v49, 1  ;;  %v3362_v18 = vshrl.u32 %v6741_v22, 16  ;;  %v3371_v32 = vshrl.u32 %v6743_v14, 16 }
 0x1af   : > { %v3342_v35 = vsel %vm3271_vm5, %v3332_v58, %v3341_v42  ;;  %v3374_v58 = vshll.u32 %v6743_v14, 16  ;;  %v2581_v33 = vor.u32 %v2579_v54, %v2577_v13  ;;  %v3367_v27 = vrot.slane %v3365_v50, 2 }
 0x1b0   : > { %v8076_v30 = vpop.f32.mrb[24].mxu1  ;;  %v3350_v48 = vor.u32 %v3349_v2, %v3346_v46  ;;  %v3373_v22 = vrot.slane %v3371_v32, 1 }
 0x1b1   : > { %4715 = vmatmul.mubr.bf16.gmra.mrb[56].mxu0 %v6730_v3  ;;  %v4300_v29 = vpop.f32.mrb[25].mxu1  ;;  %v3355_v3 = vrot.slane %v3353_v20, 1 }
 0x1b2   : > { %4722 = vmatprep.mubr.bf16.mxu0 %v2570_v51  ;;  %v8079_v56 = vpop.f32.mrb[26].mxu1  ;;  %v6740_v29 = vld [vmem:[#allocation2 + $0xa0] ss:$0 sps:$4 sm:$0x11]   ;;  %v2578_v51 = vsel %vm2438_vm4, %v2573_v4, %v2577_v13  ;;  %v3351_v47 = vsel %vm3271_vm5, %v3341_v42, %v3350_v48  ;;  %v3364_v4 = vrot.slane %v3362_v18, 1  ;;  %v3383_v42 = vshll.u32 %v6746_v52, 16 }
 0x1b3   : > { %v4303_v9 = vpop.f32.mrb[27].mxu1  ;;  %v3359_v19 = vor.u32 %v3358_v38, %v3355_v3  ;;  %v3376_v3 = vrot.slane %v3374_v58, 2  ;;  %v6749_v38 = vld [vmem:[#allocation2 + $0x80] sm:$0xff]   ;;  %v6744_v58 = vld [vmem:[#allocation2 + $0x18] sm:$0xfe]  }
 0x1b5   : > { %6294 = vmatmul.mubr.bf16.gmra.mrb[132].mxu1 %v3333_v41  ;;  %v2583_v41 = vshll.u32 %v6740_v29, 16  ;;  %v3360_v46 = vsel %vm3271_vm5, %v3350_v48, %v3359_v19  ;;  %v6738_v29 = vld [vmem:[#allocation2 + $0x90] sm:$0xff]   ;;  %v3377_v50 = vor.u32 %v3376_v3, %v3373_v22  ;;  %v3389_v48 = vshrl.u32 %v6749_v38, 16 }
 0x1b6   : > { %6297 = vmatprep.mubr.bf16.mxu1 %v3342_v35 }
 0x1b7   : > { %v2585_v2 = vrot.slane %v2583_v41, 1  ;;  %v3392_v41 = vshll.u32 %v6749_v38, 16  ;;  %v3391_v22 = vrot.slane %v3389_v48, 1  ;;  %v6753_v38 = vld [vmem:[#allocation2 + $0x90] sm:$0xff]  }
 0x1b8   : > { %v8084_v9 = vpop.f32.mrb[28].mxu1  ;;  %v3410_v21 = vshll.u32 %v6753_v38, 16 }
 0x1b9   : > { %4723 = vmatmul.mubr.bf16.gmra.mrb[60].mxu0 %v6734_v7  ;;  %v4308_v49 = vpop.f32.mrb[29].mxu1  ;;  %v3368_v7 = vor.u32 %v3367_v27, %v3364_v4  ;;  %v2586_v13 = vsel %vm2438_vm4, %v2581_v33, %v2585_v2  ;;  %v3385_v4 = vrot.slane %v3383_v42, 2  ;;  %v3394_v3 = vrot.slane %v3392_v41, 2 }
 0x1ba   : > { %4730 = vmatprep.mubr.bf16.mxu0 %v2578_v51  ;;  %v8086_v20 = vpop.f32.mrb[30].mxu1  ;;  %v3380_v51 = vshrl.u32 %v6746_v52, 16  ;;  %v6747_v49 = vld [vmem:[#allocation2 + $0x18] sm:$0xff]   ;;  %v3407_v41 = vshrl.u32 %v6753_v38, 16  ;;  %v3412_v38 = vrot.slane %v3410_v21, 2 }
 0x1bb   : > { %v4311_v35 = vpop.f32.mrb[31].mxu1  ;;  %v3369_v27 = vsel %vm3271_vm5, %v3359_v19, %v3368_v7  ;;  %v3378_v33 = vsel %vm3271_vm5, %v3368_v7, %v3377_v50  ;;  %v2756_v2 = vshll.u32 %v6747_v49, 16  ;;  %v3395_v48 = vor.u32 %v3394_v3, %v3391_v22 }
 0x1bc   : > { %v8097_v35 = vld [vmem:[#allocation2 + $0x20] sm:$0xff]   ;;  %v3382_v52 = vrot.slane %v3380_v51, 1  ;;  %v8106_v51 = vld [vmem:[#allocation2 + $0x28] sm:$0xff]   ;;  %v2754_v61 = vshrl.u32 %v6747_v49, 16  ;;  %v3409_v3 = vrot.slane %v3407_v41, 1 }
 0x1bd   : > { %6298 = vmatmul.mubr.bf16.gmra.mrb[136].mxu1 %v3351_v47  ;;  %v3069_v47 = vrot.slane %v8092_v6, 1  ;;  %v2758_v36 = vrot.slane %v2756_v2, 1 }
 0x1be   : > { %6301 = vmatprep.mubr.bf16.mxu1 %v3360_v46  ;;  %v6751_v46 = vld [vmem:[#allocation2 + $0x88] sm:$0xff]   ;;  %v3386_v6 = vor.u32 %v3385_v4, %v3382_v52  ;;  %v3071_v52 = vrot.slane %v8106_v51, 1 }
 0x1bf   : > { %v3398_v42 = vshrl.u32 %v6751_v46, 16  ;;  %v2759_v2 = vor.u32 %v2758_v36, %v2754_v61  ;;  %v3413_v36 = vor.u32 %v3412_v38, %v3409_v3  ;;  %v6754_v61 = vld [vmem:[#allocation2 + $0x30] sm:$0xff]  }
 0x1c0   : > { %v8090_v14 = vpop.f32.mrb[32].mxu1  ;;  %v3396_v22 = vsel %vm3271_vm5, %v3386_v6, %v3395_v48  ;;  %v3073_v3 = vrot.slane %v6754_v61, 1 }
 0x1c1   : > { %4731 = vmatmul.mubr.bf16.gmra.mrb[64].mxu0 %v6738_v29  ;;  %v4316_v18 = vpop.f32.mrb[33].mxu1  ;;  %v3068_v29 = vrot.slane %v6744_v58, 1  ;;  %v3400_v4 = vrot.slane %v3398_v42, 1 }
 0x1c2   : > { %4738 = vmatprep.mubr.bf16.mxu0 %v2586_v13  ;;  %v8095_v32 = vpop.f32.mrb[34].mxu1  ;;  %v6742_v13 = vld [vmem:[#allocation2 + $0x98] sm:$0xff]   ;;  %v2761_v18 = vshll.u32 %v8097_v35, 16 }
 0x1c3   : > { %v4319_v54 = vpop.f32.mrb[35].mxu1 }
 0x1c4   : > { %v3070_v54 = vsel %vm3067_vm3, %v3068_v29, %v3069_v47  ;;  %v2763_v15 = vrot.slane %v2761_v18, 1  ;;  %v3387_v29 = vsel %vm3271_vm5, %v3377_v50, %v3386_v6 }
 0x1c5   : > { %6302 = vmatmul.mubr.bf16.gmra.mrb[140].mxu1 %v3369_v27  ;;  %v3401_v27 = vshll.u32 %v6751_v46, 16  ;;  %v6755_v46 = vld [vmem:[#allocation2 + $0x98] sm:$0xff]  }
 0x1c6   : > { %6305 = vmatprep.mubr.bf16.mxu1 %v3378_v33  ;;  %v2764_v49 = vsel %vm2438_vm4, %v2759_v2, %v2763_v15  ;;  %v3416_v51 = vshrl.u32 %v6755_v46, 16  ;;  %v3419_v42 = vshll.u32 %v6755_v46, 16  ;;  %v2765_v2 = vshrl.u32 %v8097_v35, 16 }
 0x1c7   : > { %v3403_v59 = vrot.slane %v3401_v27, 2  ;;  %v3072_v27 = vsel %vm3067_vm3, %v3069_v47, %v3071_v52 }
 0x1c8   : > { %v8104_v19 = vpop.f32.mrb[36].mxu1  ;;  %v3421_v46 = vrot.slane %v3419_v42, 2 }
 0x1c9   : > { %4739 = vmatmul.mubr.bf16.gmra.mrb[68].mxu0 %v6742_v13  ;;  %v4324_v7 = vpop.f32.mrb[37].mxu1  ;;  %v6757_v13 = vld [vmem:[#allocation2 + $0xa0] sm:$0xff]   ;;  %v3404_v50 = vor.u32 %v3403_v59, %v3400_v4 }
 0x1ca   : > { %4779 = vmatprep.mubr.bf16.mxu0 %v3070_v54  ;;  %v8108_v58 = vpop.f32.mrb[38].mxu1  ;;  %v2769_v54 = vshll.u32 %v8112_v23, 16  ;;  %v3425_v6 = vshrl.u32 %v6757_v13, 16  ;;  %v3428_v41 = vshll.u32 %v6757_v13, 16  ;;  %v2767_v13 = vor.u32 %v2765_v2, %v2763_v15 }
 0x1cb   : > { %v4327_v33 = vpop.f32.mrb[39].mxu1  ;;  %v3405_v59 = vsel %vm3271_vm5, %v3395_v48, %v3404_v50  ;;  %v3414_v47 = vsel %vm3271_vm5, %v3404_v50, %v3413_v36 }
 0x1cc   : > { %v6759_v33 = vld [vmem:[#allocation2 + $0xa8] ss:$0 sps:$4 sm:$0x33]   ;;  %v2771_v4 = vrot.slane %v2769_v54, 1  ;;  %v3427_v38 = vrot.slane %v3425_v6, 1  ;;  %v3074_v54 = vsel %vm3067_vm3, %v3071_v52, %v3073_v3 }
 0x1cd   : > { %6306 = vmatmul.mubr.bf16.gmra.mrb[144].mxu1 %v3387_v29  ;;  %v3437_v8 = vshll.u32 %v6759_v33, 16 }
 0x1ce   : > { %6309 = vmatprep.mubr.bf16.mxu1 %v3396_v22  ;;  %v3418_v22 = vrot.slane %v3416_v51, 1 }
 0x1cf   : > { %v3439_v15 = vrot.slane %v3437_v8, 2 }
 0x1d0   : > { %v8116_v18 = vpop.f32.mrb[40].mxu1  ;;  %v3422_v35 = vor.u32 %v3421_v46, %v3418_v22 }
 0x1d1   : > { %4780 = vmatmul.mubr.bf16.vlgmr.msra.gmra.mrb[0].mxu0 %v2764_v49  ;;  %v4332_v7 = vpop.f32.mrb[41].mxu1  ;;  %v6756_v49 = vld [vmem:[#allocation2 + $0x30] sm:$0xff]  }
 0x1d2   : > { %4787 = vmatprep.mubr.bf16.mxu0 %v3072_v27  ;;  %v8120_v21 = vpop.f32.mrb[42].mxu1  ;;  %v3430_v7 = vrot.slane %v3428_v41, 2  ;;  %v3434_v27 = vshrl.u32 %v6759_v33, 16  ;;  %v2777_v48 = vshll.u32 %v6756_v49, 16  ;;  %v3423_v41 = vsel %vm3271_vm5, %v3413_v36, %v3422_v35 }
 0x1d3   : > { %v4335_v29 = vpop.f32.mrb[43].mxu1  ;;  %v2773_v33 = vshrl.u32 %v8112_v23, 16 }
 0x1d4   : > { %v2772_v29 = vsel %vm2438_vm4, %v2767_v13, %v2771_v4  ;;  %v3431_v42 = vor.u32 %v3430_v7, %v3427_v38  ;;  %v3436_v61 = vrot.slane %v3434_v27, 1  ;;  %v2779_v2 = vrot.slane %v2777_v48, 1 }
 0x1d5   : > { %6310 = vmatmul.mubr.bf16.gmra.mrb[148].mxu1 %v3405_v59  ;;  %v6758_v59 = vld [vmem:[#allocation2 + $0x38] sm:$0xff]   ;;  %v2775_v52 = vor.u32 %v2773_v33, %v2771_v4 }
 0x1d6   : > { %6313 = vmatprep.mubr.bf16.mxu1 %v3414_v47  ;;  %v6760_v47 = vld [vmem:[#allocation2 + $0x38] sm:$0xff]   ;;  %v3432_v22 = vsel %vm3271_vm5, %v3422_v35, %v3431_v42  ;;  %v3075_v46 = vrot.slane %v6758_v59, 1  ;;  %v3440_v38 = vor.u32 %v3439_v15, %v3436_v61  ;;  %v2781_v35 = vshrl.u32 %v6756_v49, 16 }
 0x1d7   : > { %v2780_v7 = vsel %vm2438_vm4, %v2775_v52, %v2779_v2  ;;  %v2785_v27 = vshll.u32 %v6760_v47, 16  ;;  %v8691_v61 = vrot.slane %v7863_v63, 1 }
 0x1d8   : > { %v8126_v24 = vpop.f32.mrb[44].mxu1  ;;  %v3076_v8 = vsel %vm3067_vm3, %v3073_v3, %v3075_v46  ;;  %v2783_v4 = vor.u32 %v2781_v35, %v2779_v2 }
 0x1d9   : > { %4788 = vmatmul.mubr.bf16.gmra.mrb[4].mxu0 %v2772_v29  ;;  %v4340_v51 = vpop.f32.mrb[45].mxu1  ;;  %v3441_v29 = vsel %vm3271_vm5, %v3431_v42, %v3440_v38  ;;  %v3078_v3 = vsel %vm3067_vm3, %v3075_v46, %v8691_v61  ;;  %v2789_v42 = vshrl.u32 %v6760_v47, 16 }
 0x1da   : > { %4795 = vmatprep.mubr.bf16.mxu0 %v3074_v54  ;;  %v8129_v50 = vpop.f32.mrb[46].mxu1  ;;  %v2787_v54 = vrot.slane %v2785_v27, 1 }
 0x1db   : > { %v4343_v6 = vpop.f32.mrb[47].mxu1 }
 0x1dc   : > { %v2788_v51 = vsel %vm2438_vm4, %v2783_v4, %v2787_v54  ;;  %v2791_v33 = vor.u32 %v2789_v42, %v2787_v54 }
 0x1dd   : > { %6314 = vmatmul.mubr.bf16.gmra.mrb[152].mxu1 %v3423_v41 }
 0x1de   : > { %6317 = vmatprep.mubr.bf16.mxu1 %v3432_v22  ;;  %v2796_v49 = vsel %vm2438_vm4, %v2791_v33, %v7876_v37 }
 0x1e0   : > { %v8135_v13 = vpop.f32.mrb[48].mxu1 }
 0x1e1   : > { %4796 = vmatmul.mubr.bf16.gmra.mrb[8].mxu0 %v2780_v7  ;;  %v4348_v36 = vpop.f32.mrb[49].mxu1 }
 0x1e2   : > { %4803 = vmatprep.mubr.bf16.mxu0 %v3076_v8  ;;  %v8138_v23 = vpop.f32.mrb[50].mxu1 }
 0x1e3   : > { %v4351_v48 = vpop.f32.mrb[51].mxu1 }
 0x1e5   : > { %6318 = vmatmul.mubr.bf16.gmra.mrb[156].mxu1 %v3441_v29 }
 0x1e8   : > { %v8142_v59 = vpop.f32.mrb[52].mxu1 }
 0x1e9   : > { %4804 = vmatmul.mubr.bf16.gmra.mrb[12].mxu0 %v2788_v51  ;;  %v4356_v15 = vpop.f32.mrb[53].mxu1 }
 0x1ea   : > { %4811 = vmatprep.mubr.bf16.mxu0 %v3078_v3  ;;  %v8147_v6 = vpop.f32.mrb[54].mxu1 }
 0x1eb   : > { %v4359_v41 = vpop.f32.mrb[55].mxu1 }
 0x1f0   : > { %v8151_v2 = vpop.f32.mrb[56].mxu1 }
 0x1f1   : > { %4812 = vmatmul.mubr.bf16.gmra.mrb[16].mxu0 %v2796_v49  ;;  %v4364_v22 = vpop.f32.mrb[57].mxu1 }
 0x1f2   : > { %v8153_v52 = vpop.f32.mrb[58].mxu1 }
 0x1f3   : > { %v4367_v38 = vpop.f32.mrb[59].mxu1 }
 0x1f8   : > { %v8155_v63 = vpop.f32.mrb[60].mxu1 }
 0x1f9   : > { %v4372_v46 = vpop.f32.mrb[61].mxu1 }
 0x1fa   : > { %v8157_v7 = vpop.f32.mrb[62].mxu1 }
 0x1fb   : > { %v4375_v27 = vpop.f32.mrb[63].mxu1 }
 0x200   : > { %v8159_v8 = vpop.f32.mrb[64].mxu1 }
 0x201   : > { %v4380_v47 = vpop.f32.mrb[65].mxu1 }
 0x202   : > { %v8161_v36 = vpop.f32.mrb[66].mxu1 }
 0x203   : > { %v4383_v29 = vpop.f32.mrb[67].mxu1 }
 0x208   : > { %v8163_v37 = vpop.f32.mrb[68].mxu1 }
 0x209   : > { %v4388_v48 = vpop.f32.mrb[69].mxu1 }
 0x20a   : > { %v8165_v35 = vpop.f32.mrb[70].mxu1 }
 0x20b   : > { %v4391_v54 = vpop.f32.mrb[71].mxu1 }
 0x210   : > { %v4821_v4 = vpop.f32.mrb[72].mxu1 }
 0x211   : > { %v4823_v51 = vpop.f32.mrb[73].mxu1 }
 0x212   : > { %v4824_v61 = vpop.f32.mrb[74].mxu1 }
 0x213   : > { %v4826_v3 = vpop.f32.mrb[75].mxu1 }
 0x218   : > { %v4829_v15 = vpop.f32.mrb[76].mxu1 }
 0x219   : > { %v4831_v41 = vpop.f32.mrb[77].mxu1 }
 0x21a   : > { %v4832_v42 = vpop.f32.mrb[78].mxu1 }
 0x21b   : > { %v4834_v33 = vpop.f32.mrb[79].mxu1 }
 0x220   : > { %v4837_v49 = vpop.f32.mrb[80].mxu1 }
 0x221   : > { %v4839_v22 = vpop.f32.mrb[81].mxu1 }
 0x222   : > { %v4840_v38 = vpop.f32.mrb[82].mxu1 }
 0x223   : > { %v4842_v46 = vpop.f32.mrb[83].mxu1 }
 0x228   : > { %v4845_v27 = vpop.f32.mrb[84].mxu1 }
 0x229   : > { %v4847_v47 = vpop.f32.mrb[85].mxu1 }
 0x22a   : > { %v4848_v29 = vpop.f32.mrb[86].mxu1 }
 0x22b   : > { %v4850_v40 = vpop.f32.mrb[87].mxu1 }
 0x230   : > { %v4853_v48 = vpop.f32.mrb[88].mxu1 }
 0x231   : > { %v4855_v34 = vpop.f32.mrb[89].mxu1 }
 0x232   : > { %v8167_v1 = vpop.f32.mrb[90].mxu1 }
 0x233   : > { %v4858_v54 = vpop.f32.mrb[91].mxu1 }
 0x238   : > { %v8169_v51 = vpop.f32.mrb[92].mxu1 }
 0x239   : > { %v4863_v3 = vpop.f32.mrb[93].mxu1 }
 0x23a   : > { %v8171_v17 = vpop.f32.mrb[94].mxu1 }
 0x23b   : > { %v4866_v41 = vpop.f32.mrb[95].mxu1 }
 0x23c   : > { %v4644_v33 = vpop.f32.mrb[20].mxu0 }
 0x23d   : > { %v6363_v22 = vadd.f32 %v4644_v33, %v8069_v55  ;;  %v4646_v62 = vpop.f32.mrb[21].mxu0 }
 0x23e   : > { %v4647_v46 = vpop.f32.mrb[22].mxu0 }
 0x23f   : > { %v6365_v47 = vadd.f32 %v4647_v46, %v8071_v11  ;;  %v4649_v44 = vpop.f32.mrb[23].mxu0  ;;  %v8175_v40 = vadd.f32 %v6363_v22, %v4821_v4 }
 0x240   : > { %v8177_v34 = vpop.f32.mrb[96].mxu1 }
 0x241   : > { %v4871_v26 = vpop.f32.mrb[97].mxu1  ;;  %v8179_v54 = vadd.f32 %v6365_v47, %v4824_v61 }
 0x242   : > { %v8181_v57 = vpop.f32.mrb[98].mxu1 }
 0x243   : > { %v4874_v3 = vpop.f32.mrb[99].mxu1 }
 0x244   : > { %v4652_v31 = vpop.f32.mrb[24].mxu0 }
 0x245   : > { %v6367_v41 = vadd.f32 %v4652_v31, %v8076_v30  ;;  %v4654_v12 = vpop.f32.mrb[25].mxu0 }
 0x246   : > { %v4655_v55 = vpop.f32.mrb[26].mxu0 }
 0x247   : > { %v6369_v62 = vadd.f32 %v4655_v55, %v8079_v56  ;;  %v4657_v33 = vpop.f32.mrb[27].mxu0  ;;  %v8185_v11 = vadd.f32 %v6367_v41, %v4829_v15 }
 0x248   : > { %v8187_v44 = vpop.f32.mrb[100].mxu1 }
 0x249   : > { %v4879_v4 = vpop.f32.mrb[101].mxu1  ;;  %v8189_v22 = vadd.f32 %v6369_v62, %v4832_v42 }
 0x24a   : > { %v8191_v26 = vpop.f32.mrb[102].mxu1 }
 0x24b   : > { %v4882_v61 = vpop.f32.mrb[103].mxu1 }
 0x24c   : > { %v4660_v46 = vpop.f32.mrb[28].mxu0 }
 0x24d   : > { %v6371_v47 = vadd.f32 %v4660_v46, %v8084_v9  ;;  %v4662_v3 = vpop.f32.mrb[29].mxu0 }
 0x24e   : > { %v4663_v31 = vpop.f32.mrb[30].mxu0 }
 0x24f   : > { %v6373_v12 = vadd.f32 %v4663_v31, %v8086_v20  ;;  %v4665_v30 = vpop.f32.mrb[31].mxu0  ;;  %v8195_v56 = vadd.f32 %v6371_v47, %v4837_v49 }
 0x250   : > { %v8197_v15 = vpop.f32.mrb[104].mxu1 }
 0x251   : > { %v4887_v41 = vpop.f32.mrb[105].mxu1  ;;  %v8199_v55 = vadd.f32 %v6373_v12, %v4840_v38 }
 0x252   : > { %v8201_v42 = vpop.f32.mrb[106].mxu1 }
 0x253   : > { %v4890_v62 = vpop.f32.mrb[107].mxu1 }
 0x254   : > { %v4668_v33 = vpop.f32.mrb[32].mxu0 }
 0x255   : > { %v6375_v4 = vadd.f32 %v4668_v33, %v8090_v14  ;;  %v4670_v61 = vpop.f32.mrb[33].mxu0 }
 0x256   : > { %v4671_v9 = vpop.f32.mrb[34].mxu0 }
 0x257   : > { %v6377_v46 = vadd.f32 %v4671_v9, %v8095_v32  ;;  %v4673_v3 = vpop.f32.mrb[35].mxu0  ;;  %v8205_v20 = vadd.f32 %v6375_v4, %v4845_v27 }
 0x258   : > { %v8207_v49 = vpop.f32.mrb[108].mxu1 }
 0x259   : > { %v4895_v47 = vpop.f32.mrb[109].mxu1  ;;  %v8209_v31 = vadd.f32 %v6377_v46, %v4848_v29 }
 0x25a   : > { %v8211_v38 = vpop.f32.mrb[110].mxu1 }
 0x25b   : > { %v4898_v12 = vpop.f32.mrb[111].mxu1 }
 0x25c   : > { %v4676_v30 = vpop.f32.mrb[36].mxu0 }
 0x25d   : > { %v6379_v41 = vadd.f32 %v4676_v30, %v8104_v19  ;;  %v4678_v62 = vpop.f32.mrb[37].mxu0 }
 0x25e   : > { %v4679_v14 = vpop.f32.mrb[38].mxu0 }
 0x25f   : > { %v6381_v33 = vadd.f32 %v4679_v14, %v8108_v58  ;;  %v4681_v61 = vpop.f32.mrb[39].mxu0  ;;  %v8215_v32 = vadd.f32 %v6379_v41, %v4853_v48 }
 0x260   : > { %v8217_v27 = vpop.f32.mrb[112].mxu1 }
 0x261   : > { %v4903_v4 = vpop.f32.mrb[113].mxu1  ;;  %v8220_v9 = vadd.f32 %v6381_v33, %v8167_v1 }
 0x262   : > { %v8222_v29 = vpop.f32.mrb[114].mxu1 }
 0x263   : > { %v4906_v46 = vpop.f32.mrb[115].mxu1 }
 0x264   : > { %v4684_v3 = vpop.f32.mrb[40].mxu0 }
 0x265   : > { %v6383_v47 = vadd.f32 %v4684_v3, %v8116_v18  ;;  %v4686_v19 = vpop.f32.mrb[41].mxu0 }
 0x266   : > { %v4687_v12 = vpop.f32.mrb[42].mxu0 }
 0x267   : > { %v6385_v30 = vadd.f32 %v4687_v12, %v8120_v21  ;;  %v4689_v58 = vpop.f32.mrb[43].mxu0  ;;  %v8227_v48 = vadd.f32 %v6383_v47, %v8169_v51 }
 0x268   : > { %v8229_v41 = vpop.f32.mrb[116].mxu1 }
 0x269   : > { %v4911_v62 = vpop.f32.mrb[117].mxu1  ;;  %v8232_v1 = vadd.f32 %v6385_v30, %v8171_v17 }
 0x26a   : > { %v8234_v14 = vpop.f32.mrb[118].mxu1 }
 0x26b   : > { %v4914_v33 = vpop.f32.mrb[119].mxu1 }
 0x26c   : > { %v4692_v61 = vpop.f32.mrb[44].mxu0 }
 0x26d   : > { %v6387_v18 = vadd.f32 %v4692_v61, %v8126_v24  ;;  %v4694_v4 = vpop.f32.mrb[45].mxu0 }
 0x26e   : > { %v4695_v46 = vpop.f32.mrb[46].mxu0 }
 0x26f   : > { %v6389_v21 = vadd.f32 %v4695_v46, %v8129_v50  ;;  %v4697_v3 = vpop.f32.mrb[47].mxu0  ;;  %v8239_v51 = vadd.f32 %v6387_v18, %v8177_v34 }
 0x270   : > { %v8241_v47 = vpop.f32.mrb[120].mxu1 }
 0x271   : > { %v4919_v19 = vpop.f32.mrb[121].mxu1  ;;  %v8244_v17 = vadd.f32 %v6389_v21, %v8181_v57 }
 0x272   : > { %v8246_v12 = vpop.f32.mrb[122].mxu1 }
 0x273   : > { %v4922_v30 = vpop.f32.mrb[123].mxu1 }
 0x274   : > { %v4700_v58 = vpop.f32.mrb[48].mxu0 }
 0x275   : > { %v6391_v24 = vadd.f32 %v4700_v58, %v8135_v13  ;;  %v4702_v62 = vpop.f32.mrb[49].mxu0 }
 0x276   : > { %v4703_v33 = vpop.f32.mrb[50].mxu0 }
 0x277   : > { %v6393_v50 = vadd.f32 %v4703_v33, %v8138_v23  ;;  %v4705_v61 = vpop.f32.mrb[51].mxu0  ;;  %v8251_v34 = vadd.f32 %v6391_v24, %v8187_v44 }
 0x278   : > { %v8253_v18 = vpop.f32.mrb[124].mxu1 }
 0x279   : > { %v8255_v4 = vpop.f32.mrb[125].mxu1  ;;  %v8258_v57 = vadd.f32 %v6393_v50, %v8191_v26 }
 0x27a   : > { %v8260_v46 = vpop.f32.mrb[126].mxu1 }
 0x27b   : > { %v8262_v21 = vpop.f32.mrb[127].mxu1 }
 0x27c   : > { %v4708_v13 = vpop.f32.mrb[52].mxu0 }
 0x27d   : > { %v6395_v3 = vadd.f32 %v4708_v13, %v8142_v59  ;;  %v4710_v19 = vpop.f32.mrb[53].mxu0 }
 0x27e   : > { %v4711_v23 = vpop.f32.mrb[54].mxu0 }
 0x27f   : > { %v6397_v30 = vadd.f32 %v4711_v23, %v8147_v6  ;;  %v4713_v44 = vpop.f32.mrb[55].mxu0  ;;  %v8267_v58 = vadd.f32 %v6395_v3, %v8197_v15 }
 0x280   : > { %v8269_v24 = vpop.f32.mrb[128].mxu1 }
 0x281   : > { %v8271_v62 = vpop.f32.mrb[129].mxu1  ;;  %v8274_v26 = vadd.f32 %v6397_v30, %v8201_v42 }
 0x282   : > { %v8276_v33 = vpop.f32.mrb[130].mxu1 }
 0x283   : > { %8692 = vst [vmem:[#allocation39_spill] sm:$0xff] %v8276_v33  ;;  %v8278_v50 = vpop.f32.mrb[131].mxu1 }
 0x284   : > { %v4716_v59 = vpop.f32.mrb[56].mxu0 }
 0x285   : > { %v6399_v61 = vadd.f32 %v4716_v59, %v8151_v2  ;;  %v4718_v13 = vpop.f32.mrb[57].mxu0 }
 0x286   : > { %v4719_v6 = vpop.f32.mrb[58].mxu0 }
 0x287   : > { %v6401_v15 = vadd.f32 %v4719_v6, %v8153_v52  ;;  %v4721_v3 = vpop.f32.mrb[59].mxu0  ;;  %v8283_v19 = vadd.f32 %v6399_v61, %v8207_v49 }
 0x288   : > { %v6295_v23 = vpop.f32.mrb[132].mxu1 }
 0x289   : > { %v4999_v42 = vadd.f32 %v8175_v40, %v6295_v23  ;;  %v8286_v30 = vpop.f32.mrb[133].mxu1  ;;  %v8289_v44 = vadd.f32 %v6401_v15, %v8211_v38 }
 0x28a   : > { %v6296_v33 = vpop.f32.mrb[134].mxu1 }
 0x28b   : > { %v5002_v2 = vadd.f32 %v8179_v54, %v6296_v33  ;;  %v8292_v59 = vpop.f32.mrb[135].mxu1  ;;  %v8295_v52 = vmul.f32 %v4999_v42, %v7354_v10 }
 0x28c   : > { %v4724_v13 = vpop.f32.mrb[60].mxu0 }
 0x28d   : > { %v6403_v49 = vadd.f32 %v4724_v13, %v8155_v63  ;;  %v4726_v61 = vpop.f32.mrb[61].mxu0  ;;  %v8299_v6 = vmul.f32 %v5002_v2, %v7352_v5 }
 0x28e   : > { %v4727_v40 = vpop.f32.mrb[62].mxu0 }
 0x28f   : > { %v6129_v54 = vpack.c.bf16 %v8299_v6, %v8295_v52  ;;  %v6405_v10 = vadd.f32 %v4727_v40, %v8157_v7  ;;  %v4729_v38 = vpop.f32.mrb[63].mxu0  ;;  %v8312_v63 = vadd.f32 %v6403_v49, %v8217_v27 }
 0x290   : > { %v6299_v33 = vpop.f32.mrb[136].mxu1 }
 0x291   : > { %6230 = vst [vmem:[%s8306_s17 + $0x28] sm:$0xff] %v6129_v54   ;;  %v5015_v5 = vadd.f32 %v8195_v56, %v6299_v33  ;;  %v5006_v15 = vpop.f32.mrb[137].mxu1  ;;  %v8317_v3 = vadd.f32 %v6405_v10, %v8222_v29 }
 0x292   : > { %v5007_v23 = vadd.f32 %v8185_v11, %v5006_v15  ;;  %v6300_v42 = vpop.f32.mrb[138].mxu1 }
 0x293   : > { %v5018_v2 = vadd.f32 %v8199_v55, %v6300_v42  ;;  %v5009_v13 = vpop.f32.mrb[139].mxu1  ;;  %v8323_v27 = vmul.f32 %v5015_v5, %v7401_v28 }
 0x294   : > { %v4732_v7 = vpop.f32.mrb[64].mxu0  ;;  %v5010_v61 = vadd.f32 %v8189_v22, %v5009_v13  ;;  %v8330_v11 = vmul.f32 %v5007_v23, %v7375_v60 }
 0x295   : > { %v6407_v49 = vadd.f32 %v4732_v7, %v8159_v8  ;;  %v4734_v56 = vpop.f32.mrb[65].mxu0  ;;  %v8327_v29 = vmul.f32 %v5018_v2, %v7399_v25 }
 0x296   : > { %v4735_v40 = vpop.f32.mrb[66].mxu0  ;;  %v8333_v55 = vmul.f32 %v5010_v61, %v7373_v39 }
 0x297   : > { %v6139_v22 = vpack.c.bf16 %v8327_v29, %v8323_v27  ;;  %v6409_v28 = vadd.f32 %v4735_v40, %v8161_v36  ;;  %v4737_v54 = vpop.f32.mrb[67].mxu0  ;;  %v8339_v8 = vadd.f32 %v6407_v49, %v8229_v41 }
 0x298   : > { %v6134_v25 = vpack.c.bf16 %v8333_v55, %v8330_v11  ;;  %v6303_v10 = vpop.f32.mrb[140].mxu1 }
 0x299   : > { %6232 = vst [vmem:[%s8306_s17 + $0x38] sm:$0xff] %v6139_v22   ;;  %v5031_v60 = vadd.f32 %v8215_v32, %v6303_v10  ;;  %v5022_v38 = vpop.f32.mrb[141].mxu1  ;;  %v8346_v39 = vadd.f32 %v6409_v28, %v8234_v14 }
 0x29a   : > { %6231 = vst [vmem:[%s8306_s17 + $0x30] sm:$0xff] %v6134_v25   ;;  %v5023_v33 = vadd.f32 %v8205_v20, %v5022_v38  ;;  %v6304_v5 = vpop.f32.mrb[142].mxu1  ;;  %v8693_v25 = vld [vmem:[#allocation29_spill] sm:$0xff]  ;;  %v8695_v38 = vld [vmem:[#allocation15_spill] sm:$0xff] }
 0x29b   : > { %v5034_v36 = vadd.f32 %v8220_v9, %v6304_v5  ;;  %v5025_v15 = vpop.f32.mrb[143].mxu1  ;;  %v8353_v42 = vmul.f32 %v5031_v60, %v7462_v43  ;;  %v8694_v60 = vld [vmem:[#allocation16_spill] sm:$0xff] }
 0x29c   : > { %v4740_v41 = vpop.f32.mrb[68].mxu0  ;;  %v5026_v23 = vadd.f32 %v8209_v31, %v5025_v15  ;;  %v8360_v20 = vmul.f32 %v5023_v33, %v7428_v45 }
 0x29d   : > { %v6411_v32 = vadd.f32 %v4740_v41, %v8163_v37  ;;  %v4742_v2 = vpop.f32.mrb[69].mxu0  ;;  %v8357_v14 = vmul.f32 %v5034_v36, %v7460_v16 }
 0x29e   : > { %v4743_v13 = vpop.f32.mrb[70].mxu0  ;;  %v8363_v9 = vmul.f32 %v5026_v23, %v7426_v0  ;;  %v8698_v2 = vld [vmem:[#allocation5_spill] sm:$0xff] }
 0x29f   : > { %v6149_v31 = vpack.c.bf16 %v8357_v14, %v8353_v42  ;;  %v6413_v43 = vadd.f32 %v4743_v13, %v8165_v35  ;;  %v4745_v7 = vpop.f32.mrb[71].mxu0  ;;  %v8369_v37 = vadd.f32 %v6411_v32, %v8241_v47 }
 0x2a0   : > { %v6144_v16 = vpack.c.bf16 %v8363_v9, %v8360_v20  ;;  %v6307_v61 = vpop.f32.mrb[144].mxu1 }
 0x2a1   : > { %6234 = vst [vmem:[%s8306_s17 + $0x48] sm:$0xff] %v6149_v31   ;;  %v5047_v45 = vadd.f32 %v8239_v51, %v6307_v61  ;;  %v5038_v49 = vpop.f32.mrb[145].mxu1  ;;  %v8376_v0 = vadd.f32 %v6413_v43, %v8246_v12  ;;  %v8699_v61 = vld [vmem:[#allocation7_spill] sm:$0xff] }
 0x2a2   : > { %6233 = vst [vmem:[%s8306_s17 + $0x40] sm:$0xff] %v6144_v16   ;;  %v5039_v56 = vadd.f32 %v8227_v48, %v5038_v49  ;;  %v6308_v40 = vpop.f32.mrb[146].mxu1 }
 0x2a3   : > { %v5050_v35 = vadd.f32 %v8244_v17, %v6308_v40  ;;  %v5041_v22 = vpop.f32.mrb[147].mxu1  ;;  %v8383_v54 = vmul.f32 %v5047_v45, %v7528_v53  ;;  %v8696_v17 = vld [vmem:[#allocation14_spill] sm:$0xff] }
 0x2a4   : > { %v4781_v47 = vpop.f32.mrb[0].mxu0  ;;  %v5042_v28 = vadd.f32 %v8232_v1, %v5041_v22  ;;  %v8390_v48 = vmul.f32 %v5039_v56, %v8695_v38  ;;  %v8697_v1 = vld [vmem:[#allocation30_spill] sm:$0xff] }
 0x2a5   : > { %v6353_v51 = vadd.f32 %v4781_v47, %v8693_v25  ;;  %v4783_v10 = vpop.f32.mrb[1].mxu0  ;;  %v8387_v12 = vmul.f32 %v5050_v35, %v8694_v60  ;;  %v8700_v25 = vld [vmem:[#allocation20_spill] sm:$0xff]  ;;  %v8702_v60 = vld [vmem:[#allocation18_spill] sm:$0xff] }
 0x2a6   : > { %v4784_v33 = vpop.f32.mrb[2].mxu0  ;;  %v8393_v5 = vmul.f32 %v5042_v28, %v8696_v17  ;;  %v8701_v10 = vld [vmem:[#allocation31_spill] sm:$0xff] }
 0x2a7   : > { %v4959_v36 = vadd.f32 %v6353_v51, %v8255_v4  ;;  %v6159_v53 = vpack.c.bf16 %v8387_v12, %v8383_v54  ;;  %v6354_v15 = vadd.f32 %v4784_v33, %v8697_v1  ;;  %v4786_v41 = vpop.f32.mrb[3].mxu0  ;;  %v8703_v33 = vld [vmem:[#allocation19_spill] sm:$0xff]  ;;  %v8705_v1 = vld [vmem:[#allocation32_spill] sm:$0xff] }
 0x2a8   : > { %v6154_v23 = vpack.c.bf16 %v8393_v5, %v8390_v48  ;;  %v6311_v32 = vpop.f32.mrb[148].mxu1 }
 0x2a9   : > { %v5101_v13 = vmul.f32 %v4959_v36, %v8698_v2  ;;  %6236 = vst [vmem:[%s8306_s17 + $0x58] sm:$0xff] %v6159_v53   ;;  %v4962_v31 = vadd.f32 %v6354_v15, %v8262_v21  ;;  %v5063_v43 = vadd.f32 %v8267_v58, %v6311_v32  ;;  %v5054_v7 = vpop.f32.mrb[149].mxu1  ;;  %v8704_v36 = vld [vmem:[#allocation17_spill] sm:$0xff] }
 0x2aa   : > { %6235 = vst [vmem:[%s8306_s17 + $0x50] sm:$0xff] %v6154_v23   ;;  %v5055_v4 = vadd.f32 %v8251_v34, %v5054_v7  ;;  %v6312_v16 = vpop.f32.mrb[150].mxu1 }
 0x2ab   : > { %v5102_v45 = vmul.f32 %v4962_v31, %v8699_v61  ;;  %v5066_v49 = vadd.f32 %v8274_v26, %v6312_v16  ;;  %v5057_v56 = vpop.f32.mrb[151].mxu1  ;;  %v5359_v40 = vmul.f32 %v5101_v13, %v5101_v13  ;;  %v8411_v58 = vmul.f32 %v5063_v43, %v8700_v25  ;;  %v8708_v25 = vld [vmem:[#allocation33_spill] sm:$0xff] }
 0x2ac   : > { %v4789_v35 = vpop.f32.mrb[4].mxu0  ;;  %v5058_v22 = vadd.f32 %v8258_v57, %v5057_v56  ;;  %v8415_v38 = vmul.f32 %v5055_v4, %v8702_v60  ;;  %v8706_v4 = vld [vmem:[#allocation4_spill] sm:$0xff] }
 0x2ad   : > { %v6104_v47 = vpack.c.bf16 %v5102_v45, %v5101_v13  ;;  %v5317_v28 = vadd.f32 %v5102_v45, %v5101_v13  ;;  %v5360_v21 = vmul.f32 %v5102_v45, %v5102_v45  ;;  %v4791_v51 = vpop.f32.mrb[5].mxu0  ;;  %v6355_v34 = vadd.f32 %v4789_v35, %v8701_v10 }
 0x2ae   : > { %v8418_v26 = vmul.f32 %v5066_v49, %v8703_v33  ;;  %v4792_v17 = vpop.f32.mrb[6].mxu0  ;;  %v8421_v57 = vmul.f32 %v5058_v22, %v8704_v36 }
 0x2af   : > { %6105 = vst [vmem:[%s8306_s17] sm:$0xff] %v6104_v47   ;;  %v5395_v53 = vadd.f32 %v5360_v21, %v5359_v40  ;;  %v6356_v15 = vadd.f32 %v4792_v17, %v8705_v1  ;;  %v4794_v41 = vpop.f32.mrb[7].mxu0  ;;  %v4967_v23 = vadd.f32 %v6355_v34, %v8253_v18  ;;  %v8707_v18 = vld [vmem:[#allocation6_spill] sm:$0xff]  ;;  %v8710_v17 = vld [vmem:[#allocation23_spill] sm:$0xff] }
 0x2b0   : > { %v6169_v32 = vpack.c.bf16 %v8418_v26, %v8411_v58  ;;  %v6164_v2 = vpack.c.bf16 %v8421_v57, %v8415_v38  ;;  %v6315_v13 = vpop.f32.mrb[152].mxu1  ;;  %v8711_v1 = vld [vmem:[#allocation22_spill] sm:$0xff] }
 0x2b1   : > { %v4970_v31 = vadd.f32 %v6356_v15, %v8260_v46  ;;  %v5079_v43 = vadd.f32 %v8312_v63, %v6315_v13  ;;  %v5070_v7 = vpop.f32.mrb[153].mxu1  ;;  %v5103_v16 = vmul.f32 %v4967_v23, %v8706_v4  ;;  %v8712_v15 = vld [vmem:[#allocation34_spill] sm:$0xff]  ;;  %v8713_v23 = vld [vmem:[#allocation21_spill] sm:$0xff] }
 0x2b2   : > { %6238 = vst [vmem:[%s8306_s17 + $0x68] sm:$0xff] %v6169_v32   ;;  %6237 = vst [vmem:[%s8306_s17 + $0x60] sm:$0xff] %v6164_v2   ;;  %v5071_v61 = vadd.f32 %v8283_v19, %v5070_v7  ;;  %v6316_v45 = vpop.f32.mrb[154].mxu1  ;;  %v8709_v19 = vld [vmem:[#allocation24_spill] sm:$0xff] }
 0x2b3   : > { %v5104_v49 = vmul.f32 %v4970_v31, %v8707_v18  ;;  %v5082_v56 = vadd.f32 %v8317_v3, %v6316_v45  ;;  %v5073_v40 = vpop.f32.mrb[155].mxu1  ;;  %v5318_v35 = vadd.f32 %v5317_v28, %v5103_v16  ;;  %v5361_v22 = vmul.f32 %v5103_v16, %v5103_v16 }
 0x2b4   : > { %v4797_v47 = vpop.f32.mrb[8].mxu0  ;;  %v5074_v46 = vadd.f32 %v8289_v44, %v5073_v40  ;;  %v8441_v33 = vmul.f32 %v5079_v43, %v8709_v19  ;;  %v8449_v44 = vmul.f32 %v5071_v61, %v8711_v1  ;;  %v8714_v43 = vld [vmem:[#allocation9_spill] sm:$0xff]  ;;  %v8715_v40 = vld [vmem:[#allocation8_spill] sm:$0xff]  ;;  %v8718_v19 = vld [vmem:[#allocation27_spill] sm:$0xff] }
 0x2b5   : > { %v6109_v63 = vpack.c.bf16 %v5104_v49, %v5103_v16  ;;  %v5362_v21 = vmul.f32 %v5104_v49, %v5104_v49  ;;  %v6357_v51 = vadd.f32 %v4797_v47, %v8708_v25  ;;  %v4799_v10 = vpop.f32.mrb[9].mxu0  ;;  %v5396_v34 = vadd.f32 %v5395_v53, %v5361_v22  ;;  %v8720_v1 = vld [vmem:[#allocation36_spill] sm:$0xff] }
 0x2b6   : > { %v5319_v60 = vadd.f32 %v5318_v35, %v5104_v49  ;;  %v8444_v36 = vmul.f32 %v5082_v56, %v8710_v17  ;;  %v4800_v3 = vpop.f32.mrb[10].mxu0  ;;  %v8453_v32 = vmul.f32 %v5074_v46, %v8713_v23  ;;  %v8716_v10 = vld [vmem:[#allocation28_spill] sm:$0xff] }
 0x2b7   : > { %6226 = vst [vmem:[%s8306_s17 + $0x8] sm:$0xff] %v6109_v63   ;;  %v4975_v28 = vadd.f32 %v6357_v51, %v8271_v62  ;;  %v6358_v41 = vadd.f32 %v4800_v3, %v8712_v15  ;;  %v4802_v53 = vpop.f32.mrb[11].mxu0  ;;  %v5397_v2 = vadd.f32 %v5396_v34, %v5362_v21  ;;  %v8717_v34 = vld [vmem:[#allocation35_spill] sm:$0xff] }
 0x2b8   : > { %v6179_v13 = vpack.c.bf16 %v8444_v36, %v8441_v33  ;;  %v6319_v31 = vpop.f32.mrb[156].mxu1  ;;  %v6174_v62 = vpack.c.bf16 %v8453_v32, %v8449_v44 }
 0x2b9   : > { %v5105_v7 = vmul.f32 %v4975_v28, %v8714_v43  ;;  %v4978_v4 = vadd.f32 %v6358_v41, %v8278_v50  ;;  %v5086_v16 = vpop.f32.mrb[157].mxu1  ;;  %v5095_v61 = vadd.f32 %v8369_v37, %v6319_v31  ;;  %v8719_v28 = vld [vmem:[#allocation26_spill] sm:$0xff]  ;;  %v8721_v41 = vld [vmem:[#allocation25_spill] sm:$0xff]  ;;  %v8722_v31 = vld [vmem:[#allocation39_spill] sm:$0xff] }
 0x2ba   : > { %6240 = vst [vmem:[%s8306_s17 + $0x78] sm:$0xff] %v6179_v13   ;;  %v5087_v45 = vadd.f32 %v8339_v8, %v5086_v16  ;;  %v6320_v18 = vpop.f32.mrb[158].mxu1  ;;  %6239 = vst [vmem:[%s8306_s17 + $0x70] sm:$0xff] %v6174_v62   ;;  %v8724_v16 = vld [vmem:[#allocation10_spill] sm:$0xff] }
 0x2bb   : > { %v5320_v49 = vadd.f32 %v5319_v60, %v5105_v7  ;;  %v5363_v56 = vmul.f32 %v5105_v7, %v5105_v7  ;;  %v5106_v35 = vmul.f32 %v4978_v4, %v8715_v40  ;;  %v5098_v22 = vadd.f32 %v8376_v0, %v6320_v18  ;;  %v5089_v47 = vpop.f32.mrb[159].mxu1  ;;  %v8723_v4 = vld [vmem:[#allocation11_spill] sm:$0xff]  ;;  %v8725_v40 = vld [vmem:[#allocation37_spill] sm:$0xff] }
 0x2bc   : > { %v4805_v50 = vpop.f32.mrb[12].mxu0  ;;  %v5090_v46 = vadd.f32 %v8346_v39, %v5089_v47  ;;  %v8469_v8 = vmul.f32 %v5095_v61, %v8716_v10  ;;  %v8477_v39 = vmul.f32 %v5087_v45, %v8719_v28  ;;  %v8728_v28 = vld [vmem:[#allocation12_spill] sm:$0xff] }
 0x2bd   : > { %v5398_v63 = vadd.f32 %v5397_v2, %v5363_v56  ;;  %v6114_v21 = vpack.c.bf16 %v5106_v35, %v5105_v7  ;;  %v5321_v25 = vadd.f32 %v5320_v49, %v5106_v35  ;;  %v5364_v51 = vmul.f32 %v5106_v35, %v5106_v35  ;;  %v4807_v37 = vpop.f32.mrb[13].mxu0 }
 0x2be   : > { %v6359_v60 = vadd.f32 %v4805_v50, %v8717_v34  ;;  %v8473_v17 = vmul.f32 %v5098_v22, %v8718_v19  ;;  %v4808_v0 = vpop.f32.mrb[14].mxu0  ;;  %v8481_v23 = vmul.f32 %v5090_v46, %v8721_v41  ;;  %v8727_v34 = vld [vmem:[#allocation13_spill] sm:$0xff] }
 0x2bf   : > { %6227 = vst [vmem:[%s8306_s17 + $0x10] sm:$0xff] %v6114_v21   ;;  %v5399_v3 = vadd.f32 %v5398_v63, %v5364_v51  ;;  %v6360_v15 = vadd.f32 %v4808_v0, %v8720_v1  ;;  %v4810_v53 = vpop.f32.mrb[15].mxu0  ;;  %v8726_v21 = vld [vmem:[#allocation38_spill] sm:$0xff] }
 0x2c0   : > { %v4983_v2 = vadd.f32 %v6359_v60, %v8269_v24  ;;  %v6189_v13 = vpack.c.bf16 %v8473_v17, %v8469_v8  ;;  %v6184_v7 = vpack.c.bf16 %v8481_v23, %v8477_v39 }
 0x2c1   : > { %v4986_v43 = vadd.f32 %v6360_v15, %v8722_v31  ;;  %v5370_v31 = vmul.f32 %v8299_v6, %v8299_v6 }
 0x2c2   : > { %v5107_v62 = vmul.f32 %v4983_v2, %v8723_v4  ;;  %6242 = vst [vmem:[%s8306_s17 + $0x88] sm:$0xff] %v6189_v13   ;;  %6241 = vst [vmem:[%s8306_s17 + $0x80] sm:$0xff] %v6184_v7   ;;  %v5369_v2 = vmul.f32 %v8295_v52, %v8295_v52  ;;  %v5371_v7 = vmul.f32 %v8330_v11, %v8330_v11 }
 0x2c3   : > { %v5108_v61 = vmul.f32 %v4986_v43, %v8724_v16  ;;  %v5372_v16 = vmul.f32 %v8333_v55, %v8333_v55 }
 0x2c4   : > { %v5322_v45 = vadd.f32 %v5321_v25, %v5107_v62  ;;  %v5365_v18 = vmul.f32 %v5107_v62, %v5107_v62  ;;  %v4813_v49 = vpop.f32.mrb[16].mxu0 }
 0x2c5   : > { %v6119_v56 = vpack.c.bf16 %v5108_v61, %v5107_v62  ;;  %v5366_v24 = vmul.f32 %v5108_v61, %v5108_v61  ;;  %v6361_v35 = vadd.f32 %v4813_v49, %v8725_v40  ;;  %v4815_v22 = vpop.f32.mrb[17].mxu0 }
 0x2c6   : > { %v5400_v47 = vadd.f32 %v5399_v3, %v5365_v18  ;;  %v5323_v50 = vadd.f32 %v5322_v45, %v5108_v61  ;;  %v4816_v46 = vpop.f32.mrb[18].mxu0 }
 0x2c7   : > { %6228 = vst [vmem:[%s8306_s17 + $0x18] sm:$0xff] %v6119_v56   ;;  %v4991_v63 = vadd.f32 %v6361_v35, %v8286_v30  ;;  %v6362_v51 = vadd.f32 %v4816_v46, %v8726_v21  ;;  %v4818_v37 = vpop.f32.mrb[19].mxu0 }
 0x2c8   : > { %v5401_v10 = vadd.f32 %v5400_v47, %v5366_v24 }
 0x2c9   : > { %v5109_v25 = vmul.f32 %v4991_v63, %v8727_v34  ;;  %v4994_v60 = vadd.f32 %v6362_v51, %v8292_v59 }
 0x2cb   : > { %v5324_v19 = vadd.f32 %v5323_v50, %v5109_v25  ;;  %v5367_v0 = vmul.f32 %v5109_v25, %v5109_v25  ;;  %v5110_v1 = vmul.f32 %v4994_v60, %v8728_v28 }
 0x2cd   : > { %v5402_v15 = vadd.f32 %v5401_v10, %v5367_v0  ;;  %v6124_v3 = vpack.c.bf16 %v5110_v1, %v5109_v25  ;;  %v5325_v41 = vadd.f32 %v5324_v19, %v5110_v1  ;;  %v5368_v53 = vmul.f32 %v5110_v1, %v5110_v1 }
 0x2cf   : > { %6229 = vst [vmem:[%s8306_s17 + $0x20] sm:$0xff] %v6124_v3   ;;  %v5326_v30 = vadd.f32 %v5325_v41, %v8295_v52  ;;  %v5403_v13 = vadd.f32 %v5402_v15, %v5368_v53  ;;  %v5373_v52 = vmul.f32 %v8323_v27, %v8323_v27 }
 0x2d1   : > { %v5327_v59 = vadd.f32 %v5326_v30, %v8299_v6  ;;  %v5404_v43 = vadd.f32 %v5403_v13, %v5369_v2  ;;  %v5374_v6 = vmul.f32 %v8327_v29, %v8327_v29 }
 0x2d3   : > { %v5328_v4 = vadd.f32 %v5327_v59, %v8330_v11  ;;  %v5405_v62 = vadd.f32 %v5404_v43, %v5370_v31  ;;  %v5375_v11 = vmul.f32 %v8360_v20, %v8360_v20 }
 0x2d5   : > { %v5329_v61 = vadd.f32 %v5328_v4, %v8333_v55  ;;  %v5406_v45 = vadd.f32 %v5405_v62, %v5371_v7  ;;  %v5376_v55 = vmul.f32 %v8363_v9, %v8363_v9 }
 0x2d7   : > { %v5330_v18 = vadd.f32 %v5329_v61, %v8323_v27  ;;  %v5407_v49 = vadd.f32 %v5406_v45, %v5372_v16  ;;  %v5377_v27 = vmul.f32 %v8353_v42, %v8353_v42 }
 0x2d9   : > { %v5331_v56 = vadd.f32 %v5330_v18, %v8327_v29  ;;  %v5408_v24 = vadd.f32 %v5407_v49, %v5373_v52  ;;  %v5378_v29 = vmul.f32 %v8357_v14, %v8357_v14 }
 0x2db   : > { %v5332_v40 = vadd.f32 %v5331_v56, %v8360_v20  ;;  %v5409_v35 = vadd.f32 %v5408_v24, %v5374_v6  ;;  %v5379_v20 = vmul.f32 %v8390_v48, %v8390_v48  ;;  %v5394_v6 = vmul.f32 %v8473_v17, %v8473_v17 }
 0x2dd   : > { %v5333_v22 = vadd.f32 %v5332_v40, %v8363_v9  ;;  %v5410_v47 = vadd.f32 %v5409_v35, %v5375_v11  ;;  %v5380_v9 = vmul.f32 %v8393_v5, %v8393_v5 }
 0x2df   : > { %v5334_v50 = vadd.f32 %v5333_v22, %v8353_v42  ;;  %v5411_v46 = vadd.f32 %v5410_v47, %v5376_v55  ;;  %v5381_v42 = vmul.f32 %v8383_v54, %v8383_v54 }
 0x2e1   : > { %v5335_v63 = vadd.f32 %v5334_v50, %v8357_v14  ;;  %v5412_v21 = vadd.f32 %v5411_v46, %v5377_v27  ;;  %v5382_v14 = vmul.f32 %v8387_v12, %v8387_v12 }
 0x2e3   : > { %v5336_v51 = vadd.f32 %v5335_v63, %v8390_v48  ;;  %v5413_v37 = vadd.f32 %v5412_v21, %v5378_v29  ;;  %v5383_v48 = vmul.f32 %v8415_v38, %v8415_v38 }
 0x2e5   : > { %v5337_v10 = vadd.f32 %v5336_v51, %v8393_v5  ;;  %v5414_v34 = vadd.f32 %v5413_v37, %v5379_v20  ;;  %v5384_v5 = vmul.f32 %v8421_v57, %v8421_v57 }
 0x2e7   : > { %v5338_v25 = vadd.f32 %v5337_v10, %v8383_v54  ;;  %v5415_v60 = vadd.f32 %v5414_v34, %v5380_v9  ;;  %v5385_v54 = vmul.f32 %v8411_v58, %v8411_v58 }
 0x2e9   : > { %v5339_v19 = vadd.f32 %v5338_v25, %v8387_v12  ;;  %v5416_v0 = vadd.f32 %v5415_v60, %v5381_v42  ;;  %v5386_v12 = vmul.f32 %v8418_v26, %v8418_v26 }
 0x2eb   : > { %v5340_v28 = vadd.f32 %v5339_v19, %v8415_v38  ;;  %v5417_v1 = vadd.f32 %v5416_v0, %v5382_v14  ;;  %v5387_v38 = vmul.f32 %v8449_v44, %v8449_v44 }
 0x2ed   : > { %v5341_v15 = vadd.f32 %v5340_v28, %v8421_v57  ;;  %v5418_v3 = vadd.f32 %v5417_v1, %v5383_v48  ;;  %v5388_v57 = vmul.f32 %v8453_v32, %v8453_v32 }
 0x2ef   : > { %v5342_v41 = vadd.f32 %v5341_v15, %v8411_v58  ;;  %v5419_v53 = vadd.f32 %v5418_v3, %v5384_v5  ;;  %v5389_v58 = vmul.f32 %v8441_v33, %v8441_v33 }
 0x2f1   : > { %v5343_v2 = vadd.f32 %v5342_v41, %v8418_v26  ;;  %v5420_v30 = vadd.f32 %v5419_v53, %v5385_v54  ;;  %v5390_v26 = vmul.f32 %v8444_v36, %v8444_v36 }
 0x2f3   : > { %v5344_v13 = vadd.f32 %v5343_v2, %v8449_v44  ;;  %v5421_v31 = vadd.f32 %v5420_v30, %v5386_v12  ;;  %v5391_v44 = vmul.f32 %v8477_v39, %v8477_v39 }
 0x2f5   : > { %v5345_v59 = vadd.f32 %v5344_v13, %v8453_v32  ;;  %v5422_v43 = vadd.f32 %v5421_v31, %v5387_v38  ;;  %v5392_v32 = vmul.f32 %v8481_v23, %v8481_v23 }
 0x2f7   : > { %v5346_v7 = vadd.f32 %v5345_v59, %v8441_v33  ;;  %v5423_v4 = vadd.f32 %v5422_v43, %v5388_v57  ;;  %v5393_v33 = vmul.f32 %v8469_v8, %v8469_v8 }
 0x2f9   : > { %v5347_v62 = vadd.f32 %v5346_v7, %v8444_v36  ;;  %v5424_v16 = vadd.f32 %v5423_v4, %v5389_v58 }
 0x2fb   : > { %v5348_v61 = vadd.f32 %v5347_v62, %v8477_v39  ;;  %v5425_v45 = vadd.f32 %v5424_v16, %v5390_v26 }
 0x2fd   : > { %v5349_v52 = vadd.f32 %v5348_v61, %v8481_v23  ;;  %v5426_v18 = vadd.f32 %v5425_v45, %v5391_v44 }
 0x2ff   : > { %v5350_v49 = vadd.f32 %v5349_v52, %v8469_v8  ;;  %v5427_v36 = vadd.f32 %v5426_v18, %v5392_v32 }
 0x301   : > { %v5351_v39 = vadd.f32 %v5350_v49, %v8473_v17  ;;  %v5428_v56 = vadd.f32 %v5427_v36, %v5393_v33 }
 0x303   : > { %v5352_v24 = vrot.slane %v5351_v39, 4  ;;  %v5429_v11 = vadd.f32 %v5428_v56, %v5394_v6 }
 0x305   : > { %v5353_v40 = vadd.f32 %v5352_v24, %v5351_v39  ;;  %v5430_v35 = vrot.slane %v5429_v11, 4 }
 0x307   : > { %v5354_v23 = vrot.slane %v5353_v40, 2  ;;  %v5431_v55 = vadd.f32 %v5430_v35, %v5429_v11 }
 0x309   : > { %v5355_v22 = vadd.f32 %v5354_v23, %v5353_v40  ;;  %v5432_v47 = vrot.slane %v5431_v55, 2 }
 0x30b   : > { %v5356_v27 = vrot.slane %v5355_v22, 1  ;;  %v5433_v50 = vadd.f32 %v5432_v47, %v5431_v55 }
 0x30d   : > { %v5357_v8 = vadd.f32 %v5356_v27, %v5355_v22  ;;  %v5434_v46 = vrot.slane %v5433_v50, 1 }
 0x30f   : > { %5358 = vst [vmem:[%s292_s19] sm:$0x1] %v5357_v8  ;;  %v5435_v17 = vadd.f32 %v5434_v46, %v5433_v50 }
 0x311   : > { %5436 = vst [vmem:[%s295_s22] sm:$0x1] %v5435_v17 }
 0x312 PF: > { %s18_s24 = sadd.s32 1, %s6784_s24  }
 0x313   : > { %p15_p4 = scmp.ge.s32.totalorder %s18_s24, 4  }
 0x315   :  { %17 = sbr.rel (!%p15_p4) target bundleno = 1 (0x1), region = 94 }

</bundles_post_ra>
